<compile_context>
chip_gen: v7x
topology: tpu7x:2x2x1
jax: 0.10.0
libtpu: 0.0.40
codegen_flags: <defaults>
</compile_context>

<pallas_src>
import functools

import jax
import jax.numpy as jnp
import numpy as np
from jax import lax
from jax.experimental import pallas as pl
from jax.experimental.pallas import tpu as pltpu

EPS = 1e-5

# MXU operand dtype.  f32 keeps the 1e-3 check bit-safe at tiny C; set to
# jnp.bfloat16 on v6e/v7x for ~2x MXU throughput and halved weight VMEM
# (accumulation stays f32 via preferred_element_type).
MXU_DTYPE = jnp.float32


def _residual_block_kernel(x_ref, w1_ref, w2_ref, g1_ref, b1_ref, g2_ref,
                           b2_ref, o_ref, pad_a, pad_b, acc_ref, *, H, W):
    # x_ref : (1, H*(W+2), Cp)  one sample, W-halo columns already zero,
    #                           channels lane-dense (padded to Cp)
    # w*_ref: (3, 3, Cp, Cp)    conv weights, HWIO, channel-padded
    # g*/b* : (1, Cp)           InstanceNorm affine params, channel-padded
    # o_ref : (1, H*(W+2), Cp)  flat output rows (garbage columns dropped by
    #                           the wrapper)
    # pad_a : (R2, Cp)          padded-input rows  (py*(W+2)+px)
    # pad_b : (R2, Cp)          padded-hidden rows
    # acc_ref: (H*(W+2), Cp)    f32 conv accumulator
    WP = W + 2
    R1 = H * WP
    R2 = pad_a.shape[0]
    Cp = o_ref.shape[-1]
    inv_hw = 1.0 / float(H * W)

    # Rows whose (r mod WP) >= W wrap across image rows -> garbage rows.
    row_in_img = (lax.broadcasted_iota(jnp.int32, (R1, 1), 0) % WP) < W

    def conv3x3(src, w_ref):
        # 9 taps: contiguous row-slices of the flat padded buffer (static
        # offsets), one MXU matmul each, accumulated in the f32 VMEM scratch.
        first = True
        for dy in range(3):
            for dx in range(3):
                off = dy * WP + dx
                patch = src[pl.ds(off, R1), :].astype(MXU_DTYPE)
                tap_w = w_ref[dy, dx].astype(MXU_DTYPE)
                contrib = jnp.dot(patch, tap_w,
                                  preferred_element_type=jnp.float32)
                if first:
                    acc_ref[...] = contrib
                    first = False
                else:
                    acc_ref[...] += contrib
        return acc_ref[...]

    def instance_norm(y, g_ref, b_ref):
        # Per-channel spatial stats over the H*W valid rows only; (y - mean)
        # is computed once and reused for variance and normalisation.
        ym = jnp.where(row_in_img, y, 0.0)
        mean = jnp.sum(ym, axis=0, keepdims=True) * inv_hw
        d = jnp.where(row_in_img, y - mean, 0.0)
        var = jnp.sum(d * d, axis=0, keepdims=True) * inv_hw
        scale = lax.rsqrt(var + EPS) * g_ref[...]
        return d * scale + b_ref[...]

    # ---- zero only the halo rows never covered by per-iteration stores ----
    pad_a[pl.ds(0, WP), :] = jnp.zeros((WP, Cp), jnp.float32)
    pad_a[pl.ds((H + 1) * WP, R2 - (H + 1) * WP), :] = jnp.zeros(
        (R2 - (H + 1) * WP, Cp), jnp.float32)
    pad_b[pl.ds(0, WP + 1), :] = jnp.zeros((WP + 1, Cp), jnp.float32)
    pad_b[pl.ds((H + 1) * WP + 1, R2 - (H + 1) * WP - 1), :] = jnp.zeros(
        (R2 - (H + 1) * WP - 1, Cp), jnp.float32)

    # ---- place the W-halo'd input block into padded row space (1 copy) ----
    pad_a[pl.ds(WP, R1), :] = x_ref[0]

    # conv1 -> IN1 -> ReLU.  Garbage rows are forced to 0 so they land as the
    # zero halo *columns* of pad_b.
    h = instance_norm(conv3x3(pad_a, w1_ref), g1_ref, b1_ref)
    h = jnp.where(row_in_img, jnp.maximum(h, 0.0), 0.0)
    pad_b[pl.ds(W + 3, R1), :] = h            # pixel (y,x) -> padded row r+W+3

    # conv2 -> IN2
    z = instance_norm(conv3x3(pad_b, w2_ref), g2_ref, b2_ref)

    # Residual add: input pixel (y,x) sits at padded row r + W + 3 of pad_a
    # (contiguous slice -- no unaligned 3-D re-slice).  Fully dense store.
    resid = pad_a[pl.ds(W + 3, R1), :]
    o_ref[0] = (resid + z).astype(o_ref.dtype)


@jax.jit
def residual_block(x_nchw, w1, w2, g1, b1, g2, b2):
    """x_nchw: (N, C, H, W); w*: (Cout, Cin, 3, 3) PyTorch OIHW; g*/b*: (C,)."""
    N, C, H, W = x_nchw.shape
    WP = W + 2
    R1 = H * WP
    R2 = ((H + 2) * WP + 2 + 7) // 8 * 8      # padded rows (+2 tap overrun)
    Cp = max(128, ((C + 127) // 128) * 128)   # lane-dense channel count

    # Single wrapper-side layout transform (XLA fuses transpose+pad+reshape):
    # NCHW -> NHWC, 1-px halo columns on W, channels zero-padded to Cp,
    # flattened to (N, H*(W+2), Cp).
    x = jnp.transpose(x_nchw, (0, 2, 3, 1)).astype(jnp.float32)
    x = jnp.pad(x, ((0, 0), (0, 0), (1, 1), (0, Cp - C)))
    x = x.reshape(N, R1, Cp)

    def prep_w(w):  # OIHW -> HWIO, zero-pad Cin/Cout to Cp
        w = jnp.transpose(w, (2, 3, 1, 0)).astype(jnp.float32)
        return jnp.pad(w, ((0, 0), (0, 0), (0, Cp - C), (0, Cp - C)))

    def prep_v(v):  # (C,) -> (1, Cp)
        return jnp.pad(v.astype(jnp.float32), (0, Cp - C)).reshape(1, Cp)

    kernel = functools.partial(_residual_block_kernel, H=H, W=W)

    out_flat = pl.pallas_call(
        kernel,
        out_shape=jax.ShapeDtypeStruct((N, R1, Cp), jnp.float32),
        grid_spec=pltpu.PrefetchScalarGridSpec(
            num_scalar_prefetch=0,
            grid=(N,),
            in_specs=[
                pl.BlockSpec((1, R1, Cp), lambda n: (n, 0, 0)),
                # Constant-index weight / affine blocks (revisited every step).
                pl.BlockSpec((3, 3, Cp, Cp), lambda n: (0, 0, 0, 0)),
                pl.BlockSpec((3, 3, Cp, Cp), lambda n: (0, 0, 0, 0)),
                pl.BlockSpec((1, Cp), lambda n: (0, 0)),
                pl.BlockSpec((1, Cp), lambda n: (0, 0)),
                pl.BlockSpec((1, Cp), lambda n: (0, 0)),
                pl.BlockSpec((1, Cp), lambda n: (0, 0)),
            ],
            out_specs=pl.BlockSpec((1, R1, Cp), lambda n: (n, 0, 0)),
            scratch_shapes=[
                pltpu.VMEM((R2, Cp), jnp.float32),   # padded input rows
                pltpu.VMEM((R2, Cp), jnp.float32),   # padded hidden rows
                pltpu.VMEM((R1, Cp), jnp.float32),   # conv accumulator
            ],
        ),
        compiler_params=pltpu.CompilerParams(
            dimension_semantics=("parallel",)),      # shard N across v7x TCs
    )(x, prep_w(w1), prep_w(w2), prep_v(g1), prep_v(b1), prep_v(g2), prep_v(b2))

    # Drop the 2 garbage columns per row and the padded channels; back to NCHW.
    out = out_flat.reshape(N, H, WP, Cp)[:, :, :W, :C]
    return jnp.transpose(out, (0, 3, 1, 2))


def _reference(x, w1, w2, g1, b1, g2, b2):
    """Pure-JAX reference matching PyTorch training-mode forward."""
    def conv(h, w):
        return jax.lax.conv_general_dilated(
            h, w, window_strides=(1, 1), padding=((1, 1), (1, 1)),
            dimension_numbers=("NCHW", "OIHW", "NCHW"),
            precision=jax.lax.Precision.HIGHEST)

    def inorm(h, g, b):
        mean = h.mean(axis=(2, 3), keepdims=True)
        var = ((h - mean) ** 2).mean(axis=(2, 3), keepdims=True)
        return ((h - mean) * jax.lax.rsqrt(var + EPS)
                * g[None, :, None, None] + b[None, :, None, None])

    h = conv(x, w1)
    h = inorm(h, g1, b1)
    h = jnp.maximum(h, 0.0)
    h = conv(h, w2)
    h = inorm(h, g2, b2)
    return x + h


if __name__ == "__main__":
    N, C, H, W = 2, 4, 16, 16      # input_dim == output_dim (residual add)

    key = jax.random.PRNGKey(0)
    kx, k1, k2, kg1, kb1, kg2, kb2 = jax.random.split(key, 7)

    x = jax.random.normal(kx, (N, C, H, W), jnp.float32)
    # Conv2d weights: (Cout, Cin, 3, 3), bias=False
    w1 = jax.random.normal(k1, (C, C, 3, 3), jnp.float32) * 0.1
    w2 = jax.random.normal(k2, (C, C, 3, 3), jnp.float32) * 0.1
    # InstanceNorm affine params (perturbed so the affine path is exercised)
    g1 = 1.0 + 0.1 * jax.random.normal(kg1, (C,), jnp.float32)
    b1 = 0.1 * jax.random.normal(kb1, (C,), jnp.float32)
    g2 = 1.0 + 0.1 * jax.random.normal(kg2, (C,), jnp.float32)
    b2 = 0.1 * jax.random.normal(kb2, (C,), jnp.float32)

    out = residual_block(x, w1, w2, g1, b1, g2, b2)
    out = jax.block_until_ready(out)

    ref = jax.block_until_ready(_reference(x, w1, w2, g1, b1, g2, b2))
    assert out.shape == (N, C, H, W) and out.dtype == jnp.float32
    if not np.allclose(np.asarray(out), np.asarray(ref), atol=1e-3, rtol=1e-3):
        raise AssertionError("Pallas kernel mismatch vs JAX reference")

    print("KERNEL_OK")
</pallas_src>

<mosaic_0001>
module attributes {stable_mosaic.version = 11 : i64} {
  func.func @_residual_block_kernel(%arg0: i32, %arg1: memref<1x288x128xf32, #tpu.memory_space<vmem>>, %arg2: memref<3x3x128x128xf32, #tpu.memory_space<vmem>>, %arg3: memref<3x3x128x128xf32, #tpu.memory_space<vmem>>, %arg4: memref<1x128xf32, #tpu.memory_space<vmem>>, %arg5: memref<1x128xf32, #tpu.memory_space<vmem>>, %arg6: memref<1x128xf32, #tpu.memory_space<vmem>>, %arg7: memref<1x128xf32, #tpu.memory_space<vmem>>, %arg8: memref<1x288x128xf32, #tpu.memory_space<vmem>>, %arg9: memref<328x128xf32, #tpu.memory_space<vmem>>, %arg10: memref<328x128xf32, #tpu.memory_space<vmem>>, %arg11: memref<288x128xf32, #tpu.memory_space<vmem>>) attributes {dimension_semantics = [#tpu.dimension_semantics<parallel>], iteration_bounds = array<i64: 2>, scalar_prefetch = 0 : i64, scratch_operands = 3 : i64, tpu.core_type = #tpu.core_type<tc>, window_params = [{transform_indices = @transform_0, window_bounds = array<i64: 1, 288, 128>}, {pipeline_mode = #tpu.pipeline_mode<synchronous>, transform_indices = @transform_1, window_bounds = array<i64: 3, 3, 128, 128>}, {pipeline_mode = #tpu.pipeline_mode<synchronous>, transform_indices = @transform_2, window_bounds = array<i64: 3, 3, 128, 128>}, {pipeline_mode = #tpu.pipeline_mode<synchronous>, transform_indices = @transform_3, window_bounds = array<i64: 1, 128>}, {pipeline_mode = #tpu.pipeline_mode<synchronous>, transform_indices = @transform_4, window_bounds = array<i64: 1, 128>}, {pipeline_mode = #tpu.pipeline_mode<synchronous>, transform_indices = @transform_5, window_bounds = array<i64: 1, 128>}, {pipeline_mode = #tpu.pipeline_mode<synchronous>, transform_indices = @transform_6, window_bounds = array<i64: 1, 128>}, {transform_indices = @transform_7, window_bounds = array<i64: 1, 288, 128>}]} {
    %0 = tpu.iota {dimensions = array<i32: 0>} : vector<288x1xi32>
    %c18_i32 = arith.constant 18 : i32
    %c0_i32 = arith.constant 0 : i32
    %1 = arith.cmpi eq, %c18_i32, %c0_i32 : i32
    %c1_i32 = arith.constant 1 : i32
    %2 = arith.select %1, %c1_i32, %c18_i32 : i32
    %3 = vector.broadcast %2 : i32 to vector<288x1xi32>
    %4 = arith.remsi %0, %3 : vector<288x1xi32>
    %c0_i32_0 = arith.constant 0 : i32
    %5 = vector.broadcast %c0_i32_0 : i32 to vector<288x1xi32>
    %6 = arith.cmpi ne, %4, %5 : vector<288x1xi32>
    %c0_i32_1 = arith.constant 0 : i32
    %7 = vector.broadcast %c0_i32_1 : i32 to vector<288x1xi32>
    %8 = arith.cmpi slt, %4, %7 : vector<288x1xi32>
    %c0_i32_2 = arith.constant 0 : i32
    %9 = arith.cmpi slt, %2, %c0_i32_2 : i32
    %10 = vector.broadcast %9 : i1 to vector<288x1xi1>
    %11 = vector.broadcast %10 : vector<288x1xi1> to vector<288x1xi1>
    %12 = arith.xori %8, %11 : vector<288x1xi1>
    %13 = arith.andi %12, %6 : vector<288x1xi1>
    %14 = vector.broadcast %2 : i32 to vector<288x1xi32>
    %15 = arith.addi %4, %14 : vector<288x1xi32>
    %16 = arith.select %13, %15, %4 : vector<288x1xi1>, vector<288x1xi32>
    %c16_i32 = arith.constant 16 : i32
    %17 = vector.broadcast %c16_i32 : i32 to vector<288x1xi32>
    %18 = arith.cmpi slt, %16, %17 : vector<288x1xi32>
    %cst = arith.constant 0.000000e+00 : f32
    %19 = vector.broadcast %cst : f32 to vector<18x128xf32>
    %c0 = arith.constant 0 : index
    %c0_3 = arith.constant 0 : index
    %20 = vector.load %arg9[%c0, %c0_3] : memref<328x128xf32, #tpu.memory_space<vmem>>, vector<18x128xf32>
    tpu.vector_store %arg9[%c0, %c0_3], %19 {strides = array<i32>} : memref<328x128xf32, #tpu.memory_space<vmem>>, vector<18x128xf32>,
    %cst_4 = arith.constant 0.000000e+00 : f32
    %21 = vector.broadcast %cst_4 : f32 to vector<22x128xf32>
    %c306 = arith.constant 306 : index
    %c0_5 = arith.constant 0 : index
    %22 = vector.load %arg9[%c306, %c0_5] : memref<328x128xf32, #tpu.memory_space<vmem>>, vector<22x128xf32>
    tpu.vector_store %arg9[%c306, %c0_5], %21 {strides = array<i32>} : memref<328x128xf32, #tpu.memory_space<vmem>>, vector<22x128xf32>,
    %cst_6 = arith.constant 0.000000e+00 : f32
    %23 = vector.broadcast %cst_6 : f32 to vector<19x128xf32>
    %c0_7 = arith.constant 0 : index
    %c0_8 = arith.constant 0 : index
    %24 = vector.load %arg10[%c0_7, %c0_8] : memref<328x128xf32, #tpu.memory_space<vmem>>, vector<19x128xf32>
    tpu.vector_store %arg10[%c0_7, %c0_8], %23 {strides = array<i32>} : memref<328x128xf32, #tpu.memory_space<vmem>>, vector<19x128xf32>,
    %cst_9 = arith.constant 0.000000e+00 : f32
    %25 = vector.broadcast %cst_9 : f32 to vector<21x128xf32>
    %c307 = arith.constant 307 : index
    %c0_10 = arith.constant 0 : index
    %26 = vector.load %arg10[%c307, %c0_10] : memref<328x128xf32, #tpu.memory_space<vmem>>, vector<21x128xf32>
    tpu.vector_store %arg10[%c307, %c0_10], %25 {strides = array<i32>} : memref<328x128xf32, #tpu.memory_space<vmem>>, vector<21x128xf32>,
    %c0_11 = arith.constant 0 : index
    %c0_12 = arith.constant 0 : index
    %c0_13 = arith.constant 0 : index
    %27 = vector.load %arg1[%c0_11, %c0_12, %c0_13] : memref<1x288x128xf32, #tpu.memory_space<vmem>>, vector<1x288x128xf32>
    %28 = vector.shape_cast %27 : vector<1x288x128xf32> to vector<288x128xf32>
    %c18 = arith.constant 18 : index
    %c0_14 = arith.constant 0 : index
    %29 = vector.load %arg9[%c18, %c0_14] : memref<328x128xf32, #tpu.memory_space<vmem>>, vector<288x128xf32>
    tpu.vector_store %arg9[%c18, %c0_14], %28 {strides = array<i32>} : memref<328x128xf32, #tpu.memory_space<vmem>>, vector<288x128xf32>,
    %c0_15 = arith.constant 0 : index
    %c0_16 = arith.constant 0 : index
    %30 = vector.load %arg9[%c0_15, %c0_16] : memref<328x128xf32, #tpu.memory_space<vmem>>, vector<288x128xf32>
    %c0_17 = arith.constant 0 : index
    %c0_18 = arith.constant 0 : index
    %c0_19 = arith.constant 0 : index
    %c0_20 = arith.constant 0 : index
    %31 = vector.load %arg2[%c0_17, %c0_18, %c0_19, %c0_20] : memref<3x3x128x128xf32, #tpu.memory_space<vmem>>, vector<1x1x128x128xf32>
    %32 = vector.shape_cast %31 : vector<1x1x128x128xf32> to vector<128x128xf32>
    %cst_21 = arith.constant dense<0.000000e+00> : vector<288x128xf32>
    %33 = tpu.matmul %30, %32, %cst_21 {dimension_numbers = #tpu.dot_dimension_numbers<[1], [0], [0], [1], [0, 0, 1, 1], [], []>} : vector<288x128xf32>, vector<128x128xf32>, vector<288x128xf32> -> vector<288x128xf32>
    %c0_22 = arith.constant 0 : index
    %c0_23 = arith.constant 0 : index
    %34 = vector.load %arg11[%c0_22, %c0_23] : memref<288x128xf32, #tpu.memory_space<vmem>>, vector<288x128xf32>
    tpu.vector_store %arg11[%c0_22, %c0_23], %33 {strides = array<i32>} : memref<288x128xf32, #tpu.memory_space<vmem>>, vector<288x128xf32>,
    %c1 = arith.constant 1 : index
    %c0_24 = arith.constant 0 : index
    %35 = vector.load %arg9[%c1, %c0_24] : memref<328x128xf32, #tpu.memory_space<vmem>>, vector<288x128xf32>
    %c0_25 = arith.constant 0 : index
    %c1_26 = arith.constant 1 : index
    %c0_27 = arith.constant 0 : index
    %c0_28 = arith.constant 0 : index
    %36 = vector.load %arg2[%c0_25, %c1_26, %c0_27, %c0_28] : memref<3x3x128x128xf32, #tpu.memory_space<vmem>>, vector<1x1x128x128xf32>
    %37 = vector.shape_cast %36 : vector<1x1x128x128xf32> to vector<128x128xf32>
    %cst_29 = arith.constant dense<0.000000e+00> : vector<288x128xf32>
    %38 = tpu.matmul %35, %37, %cst_29 {dimension_numbers = #tpu.dot_dimension_numbers<[1], [0], [0], [1], [0, 0, 1, 1], [], []>} : vector<288x128xf32>, vector<128x128xf32>, vector<288x128xf32> -> vector<288x128xf32>
    %c0_30 = arith.constant 0 : index
    %c0_31 = arith.constant 0 : index
    %39 = vector.load %arg11[%c0_30, %c0_31] : memref<288x128xf32, #tpu.memory_space<vmem>>, vector<288x128xf32>
    %40 = arith.addf %39, %38 : vector<288x128xf32>
    %c0_32 = arith.constant 0 : index
    %c0_33 = arith.constant 0 : index
    %41 = vector.load %arg11[%c0_32, %c0_33] : memref<288x128xf32, #tpu.memory_space<vmem>>, vector<288x128xf32>
    tpu.vector_store %arg11[%c0_32, %c0_33], %40 {strides = array<i32>} : memref<288x128xf32, #tpu.memory_space<vmem>>, vector<288x128xf32>,
    %c2 = arith.constant 2 : index
    %c0_34 = arith.constant 0 : index
    %42 = vector.load %arg9[%c2, %c0_34] : memref<328x128xf32, #tpu.memory_space<vmem>>, vector<288x128xf32>
    %c0_35 = arith.constant 0 : index
    %c2_36 = arith.constant 2 : index
    %c0_37 = arith.constant 0 : index
    %c0_38 = arith.constant 0 : index
    %43 = vector.load %arg2[%c0_35, %c2_36, %c0_37, %c0_38] : memref<3x3x128x128xf32, #tpu.memory_space<vmem>>, vector<1x1x128x128xf32>
    %44 = vector.shape_cast %43 : vector<1x1x128x128xf32> to vector<128x128xf32>
    %cst_39 = arith.constant dense<0.000000e+00> : vector<288x128xf32>
    %45 = tpu.matmul %42, %44, %cst_39 {dimension_numbers = #tpu.dot_dimension_numbers<[1], [0], [0], [1], [0, 0, 1, 1], [], []>} : vector<288x128xf32>, vector<128x128xf32>, vector<288x128xf32> -> vector<288x128xf32>
    %c0_40 = arith.constant 0 : index
    %c0_41 = arith.constant 0 : index
    %46 = vector.load %arg11[%c0_40, %c0_41] : memref<288x128xf32, #tpu.memory_space<vmem>>, vector<288x128xf32>
    %47 = arith.addf %46, %45 : vector<288x128xf32>
    %c0_42 = arith.constant 0 : index
    %c0_43 = arith.constant 0 : index
    %48 = vector.load %arg11[%c0_42, %c0_43] : memref<288x128xf32, #tpu.memory_space<vmem>>, vector<288x128xf32>
    tpu.vector_store %arg11[%c0_42, %c0_43], %47 {strides = array<i32>} : memref<288x128xf32, #tpu.memory_space<vmem>>, vector<288x128xf32>,
    %c18_44 = arith.constant 18 : index
    %c0_45 = arith.constant 0 : index
    %49 = vector.load %arg9[%c18_44, %c0_45] : memref<328x128xf32, #tpu.memory_space<vmem>>, vector<288x128xf32>
    %c1_46 = arith.constant 1 : index
    %c0_47 = arith.constant 0 : index
    %c0_48 = arith.constant 0 : index
    %c0_49 = arith.constant 0 : index
    %50 = vector.load %arg2[%c1_46, %c0_47, %c0_48, %c0_49] : memref<3x3x128x128xf32, #tpu.memory_space<vmem>>, vector<1x1x128x128xf32>
    %51 = vector.shape_cast %50 : vector<1x1x128x128xf32> to vector<128x128xf32>
    %cst_50 = arith.constant dense<0.000000e+00> : vector<288x128xf32>
    %52 = tpu.matmul %49, %51, %cst_50 {dimension_numbers = #tpu.dot_dimension_numbers<[1], [0], [0], [1], [0, 0, 1, 1], [], []>} : vector<288x128xf32>, vector<128x128xf32>, vector<288x128xf32> -> vector<288x128xf32>
    %c0_51 = arith.constant 0 : index
    %c0_52 = arith.constant 0 : index
    %53 = vector.load %arg11[%c0_51, %c0_52] : memref<288x128xf32, #tpu.memory_space<vmem>>, vector<288x128xf32>
    %54 = arith.addf %53, %52 : vector<288x128xf32>
    %c0_53 = arith.constant 0 : index
    %c0_54 = arith.constant 0 : index
    %55 = vector.load %arg11[%c0_53, %c0_54] : memref<288x128xf32, #tpu.memory_space<vmem>>, vector<288x128xf32>
    tpu.vector_store %arg11[%c0_53, %c0_54], %54 {strides = array<i32>} : memref<288x128xf32, #tpu.memory_space<vmem>>, vector<288x128xf32>,
    %c19 = arith.constant 19 : index
    %c0_55 = arith.constant 0 : index
    %56 = vector.load %arg9[%c19, %c0_55] : memref<328x128xf32, #tpu.memory_space<vmem>>, vector<288x128xf32>
    %c1_56 = arith.constant 1 : index
    %c1_57 = arith.constant 1 : index
    %c0_58 = arith.constant 0 : index
    %c0_59 = arith.constant 0 : index
    %57 = vector.load %arg2[%c1_56, %c1_57, %c0_58, %c0_59] : memref<3x3x128x128xf32, #tpu.memory_space<vmem>>, vector<1x1x128x128xf32>
    %58 = vector.shape_cast %57 : vector<1x1x128x128xf32> to vector<128x128xf32>
    %cst_60 = arith.constant dense<0.000000e+00> : vector<288x128xf32>
    %59 = tpu.matmul %56, %58, %cst_60 {dimension_numbers = #tpu.dot_dimension_numbers<[1], [0], [0], [1], [0, 0, 1, 1], [], []>} : vector<288x128xf32>, vector<128x128xf32>, vector<288x128xf32> -> vector<288x128xf32>
    %c0_61 = arith.constant 0 : index
    %c0_62 = arith.constant 0 : index
    %60 = vector.load %arg11[%c0_61, %c0_62] : memref<288x128xf32, #tpu.memory_space<vmem>>, vector<288x128xf32>
    %61 = arith.addf %60, %59 : vector<288x128xf32>
    %c0_63 = arith.constant 0 : index
    %c0_64 = arith.constant 0 : index
    %62 = vector.load %arg11[%c0_63, %c0_64] : memref<288x128xf32, #tpu.memory_space<vmem>>, vector<288x128xf32>
    tpu.vector_store %arg11[%c0_63, %c0_64], %61 {strides = array<i32>} : memref<288x128xf32, #tpu.memory_space<vmem>>, vector<288x128xf32>,
    %c20 = arith.constant 20 : index
    %c0_65 = arith.constant 0 : index
    %63 = vector.load %arg9[%c20, %c0_65] : memref<328x128xf32, #tpu.memory_space<vmem>>, vector<288x128xf32>
    %c1_66 = arith.constant 1 : index
    %c2_67 = arith.constant 2 : index
    %c0_68 = arith.constant 0 : index
    %c0_69 = arith.constant 0 : index
    %64 = vector.load %arg2[%c1_66, %c2_67, %c0_68, %c0_69] : memref<3x3x128x128xf32, #tpu.memory_space<vmem>>, vector<1x1x128x128xf32>
    %65 = vector.shape_cast %64 : vector<1x1x128x128xf32> to vector<128x128xf32>
    %cst_70 = arith.constant dense<0.000000e+00> : vector<288x128xf32>
    %66 = tpu.matmul %63, %65, %cst_70 {dimension_numbers = #tpu.dot_dimension_numbers<[1], [0], [0], [1], [0, 0, 1, 1], [], []>} : vector<288x128xf32>, vector<128x128xf32>, vector<288x128xf32> -> vector<288x128xf32>
    %c0_71 = arith.constant 0 : index
    %c0_72 = arith.constant 0 : index
    %67 = vector.load %arg11[%c0_71, %c0_72] : memref<288x128xf32, #tpu.memory_space<vmem>>, vector<288x128xf32>
    %68 = arith.addf %67, %66 : vector<288x128xf32>
    %c0_73 = arith.constant 0 : index
    %c0_74 = arith.constant 0 : index
    %69 = vector.load %arg11[%c0_73, %c0_74] : memref<288x128xf32, #tpu.memory_space<vmem>>, vector<288x128xf32>
    tpu.vector_store %arg11[%c0_73, %c0_74], %68 {strides = array<i32>} : memref<288x128xf32, #tpu.memory_space<vmem>>, vector<288x128xf32>,
    %c36 = arith.constant 36 : index
    %c0_75 = arith.constant 0 : index
    %70 = vector.load %arg9[%c36, %c0_75] : memref<328x128xf32, #tpu.memory_space<vmem>>, vector<288x128xf32>
    %c2_76 = arith.constant 2 : index
    %c0_77 = arith.constant 0 : index
    %c0_78 = arith.constant 0 : index
    %c0_79 = arith.constant 0 : index
    %71 = vector.load %arg2[%c2_76, %c0_77, %c0_78, %c0_79] : memref<3x3x128x128xf32, #tpu.memory_space<vmem>>, vector<1x1x128x128xf32>
    %72 = vector.shape_cast %71 : vector<1x1x128x128xf32> to vector<128x128xf32>
    %cst_80 = arith.constant dense<0.000000e+00> : vector<288x128xf32>
    %73 = tpu.matmul %70, %72, %cst_80 {dimension_numbers = #tpu.dot_dimension_numbers<[1], [0], [0], [1], [0, 0, 1, 1], [], []>} : vector<288x128xf32>, vector<128x128xf32>, vector<288x128xf32> -> vector<288x128xf32>
    %c0_81 = arith.constant 0 : index
    %c0_82 = arith.constant 0 : index
    %74 = vector.load %arg11[%c0_81, %c0_82] : memref<288x128xf32, #tpu.memory_space<vmem>>, vector<288x128xf32>
    %75 = arith.addf %74, %73 : vector<288x128xf32>
    %c0_83 = arith.constant 0 : index
    %c0_84 = arith.constant 0 : index
    %76 = vector.load %arg11[%c0_83, %c0_84] : memref<288x128xf32, #tpu.memory_space<vmem>>, vector<288x128xf32>
    tpu.vector_store %arg11[%c0_83, %c0_84], %75 {strides = array<i32>} : memref<288x128xf32, #tpu.memory_space<vmem>>, vector<288x128xf32>,
    %c37 = arith.constant 37 : index
    %c0_85 = arith.constant 0 : index
    %77 = vector.load %arg9[%c37, %c0_85] : memref<328x128xf32, #tpu.memory_space<vmem>>, vector<288x128xf32>
    %c2_86 = arith.constant 2 : index
    %c1_87 = arith.constant 1 : index
    %c0_88 = arith.constant 0 : index
    %c0_89 = arith.constant 0 : index
    %78 = vector.load %arg2[%c2_86, %c1_87, %c0_88, %c0_89] : memref<3x3x128x128xf32, #tpu.memory_space<vmem>>, vector<1x1x128x128xf32>
    %79 = vector.shape_cast %78 : vector<1x1x128x128xf32> to vector<128x128xf32>
    %cst_90 = arith.constant dense<0.000000e+00> : vector<288x128xf32>
    %80 = tpu.matmul %77, %79, %cst_90 {dimension_numbers = #tpu.dot_dimension_numbers<[1], [0], [0], [1], [0, 0, 1, 1], [], []>} : vector<288x128xf32>, vector<128x128xf32>, vector<288x128xf32> -> vector<288x128xf32>
    %c0_91 = arith.constant 0 : index
    %c0_92 = arith.constant 0 : index
    %81 = vector.load %arg11[%c0_91, %c0_92] : memref<288x128xf32, #tpu.memory_space<vmem>>, vector<288x128xf32>
    %82 = arith.addf %81, %80 : vector<288x128xf32>
    %c0_93 = arith.constant 0 : index
    %c0_94 = arith.constant 0 : index
    %83 = vector.load %arg11[%c0_93, %c0_94] : memref<288x128xf32, #tpu.memory_space<vmem>>, vector<288x128xf32>
    tpu.vector_store %arg11[%c0_93, %c0_94], %82 {strides = array<i32>} : memref<288x128xf32, #tpu.memory_space<vmem>>, vector<288x128xf32>,
    %c38 = arith.constant 38 : index
    %c0_95 = arith.constant 0 : index
    %84 = vector.load %arg9[%c38, %c0_95] : memref<328x128xf32, #tpu.memory_space<vmem>>, vector<288x128xf32>
    %c2_96 = arith.constant 2 : index
    %c2_97 = arith.constant 2 : index
    %c0_98 = arith.constant 0 : index
    %c0_99 = arith.constant 0 : index
    %85 = vector.load %arg2[%c2_96, %c2_97, %c0_98, %c0_99] : memref<3x3x128x128xf32, #tpu.memory_space<vmem>>, vector<1x1x128x128xf32>
    %86 = vector.shape_cast %85 : vector<1x1x128x128xf32> to vector<128x128xf32>
    %cst_100 = arith.constant dense<0.000000e+00> : vector<288x128xf32>
    %87 = tpu.matmul %84, %86, %cst_100 {dimension_numbers = #tpu.dot_dimension_numbers<[1], [0], [0], [1], [0, 0, 1, 1], [], []>} : vector<288x128xf32>, vector<128x128xf32>, vector<288x128xf32> -> vector<288x128xf32>
    %c0_101 = arith.constant 0 : index
    %c0_102 = arith.constant 0 : index
    %88 = vector.load %arg11[%c0_101, %c0_102] : memref<288x128xf32, #tpu.memory_space<vmem>>, vector<288x128xf32>
    %89 = arith.addf %88, %87 : vector<288x128xf32>
    %c0_103 = arith.constant 0 : index
    %c0_104 = arith.constant 0 : index
    %90 = vector.load %arg11[%c0_103, %c0_104] : memref<288x128xf32, #tpu.memory_space<vmem>>, vector<288x128xf32>
    tpu.vector_store %arg11[%c0_103, %c0_104], %89 {strides = array<i32>} : memref<288x128xf32, #tpu.memory_space<vmem>>, vector<288x128xf32>,
    %c0_105 = arith.constant 0 : index
    %c0_106 = arith.constant 0 : index
    %91 = vector.load %arg11[%c0_105, %c0_106] : memref<288x128xf32, #tpu.memory_space<vmem>>, vector<288x128xf32>
    %cst_107 = arith.constant 0.000000e+00 : f32
    %92 = vector.shape_cast %18 : vector<288x1xi1> to vector<288x1xi1>
    %93 = vector.broadcast %92 : vector<288x1xi1> to vector<288x128xi1>
    %94 = vector.broadcast %cst_107 : f32 to vector<288x128xf32>
    %95 = arith.select %93, %91, %94 : vector<288x128xi1>, vector<288x128xf32>
    %cst_108 = arith.constant dense<0.000000e+00> : vector<128xf32>
    %96 = vector.multi_reduction <add>, %95, %cst_108 [0] : vector<288x128xf32> to vector<128xf32>
    %97 = vector.shape_cast %96 : vector<128xf32> to vector<1x128xf32>
    %cst_109 = arith.constant 3.906250e-03 : f32
    %98 = vector.broadcast %cst_109 : f32 to vector<1x128xf32>
    %99 = arith.mulf %97, %98 : vector<1x128xf32>
    %100 = vector.broadcast %99 : vector<1x128xf32> to vector<288x128xf32>
    %101 = arith.subf %91, %100 : vector<288x128xf32>
    %cst_110 = arith.constant 0.000000e+00 : f32
    %102 = vector.shape_cast %18 : vector<288x1xi1> to vector<288x1xi1>
    %103 = vector.broadcast %102 : vector<288x1xi1> to vector<288x128xi1>
    %104 = vector.broadcast %cst_110 : f32 to vector<288x128xf32>
    %105 = arith.select %103, %101, %104 : vector<288x128xi1>, vector<288x128xf32>
    %106 = arith.mulf %105, %105 : vector<288x128xf32>
    %cst_111 = arith.constant dense<0.000000e+00> : vector<128xf32>
    %107 = vector.multi_reduction <add>, %106, %cst_111 [0] : vector<288x128xf32> to vector<128xf32>
    %108 = vector.shape_cast %107 : vector<128xf32> to vector<1x128xf32>
    %cst_112 = arith.constant 3.906250e-03 : f32
    %109 = vector.broadcast %cst_112 : f32 to vector<1x128xf32>
    %110 = arith.mulf %108, %109 : vector<1x128xf32>
    %cst_113 = arith.constant 9.99999974E-6 : f32
    %111 = vector.broadcast %cst_113 : f32 to vector<1x128xf32>
    %112 = arith.addf %110, %111 : vector<1x128xf32>
    %113 = math.rsqrt %112 : vector<1x128xf32>
    %c0_114 = arith.constant 0 : index
    %c0_115 = arith.constant 0 : index
    %114 = vector.load %arg4[%c0_114, %c0_115] : memref<1x128xf32, #tpu.memory_space<vmem>>, vector<1x128xf32>
    %115 = arith.mulf %113, %114 : vector<1x128xf32>
    %116 = vector.broadcast %115 : vector<1x128xf32> to vector<288x128xf32>
    %117 = arith.mulf %105, %116 : vector<288x128xf32>
    %c0_116 = arith.constant 0 : index
    %c0_117 = arith.constant 0 : index
    %118 = vector.load %arg5[%c0_116, %c0_117] : memref<1x128xf32, #tpu.memory_space<vmem>>, vector<1x128xf32>
    %119 = vector.broadcast %118 : vector<1x128xf32> to vector<288x128xf32>
    %120 = arith.addf %117, %119 : vector<288x128xf32>
    %cst_118 = arith.constant 0.000000e+00 : f32
    %121 = vector.broadcast %cst_118 : f32 to vector<288x128xf32>
    %122 = arith.maximumf %120, %121 : vector<288x128xf32>
    %cst_119 = arith.constant 0.000000e+00 : f32
    %123 = vector.shape_cast %18 : vector<288x1xi1> to vector<288x1xi1>
    %124 = vector.broadcast %123 : vector<288x1xi1> to vector<288x128xi1>
    %125 = vector.broadcast %cst_119 : f32 to vector<288x128xf32>
    %126 = arith.select %124, %122, %125 : vector<288x128xi1>, vector<288x128xf32>
    %c19_120 = arith.constant 19 : index
    %c0_121 = arith.constant 0 : index
    %127 = vector.load %arg10[%c19_120, %c0_121] : memref<328x128xf32, #tpu.memory_space<vmem>>, vector<288x128xf32>
    tpu.vector_store %arg10[%c19_120, %c0_121], %126 {strides = array<i32>} : memref<328x128xf32, #tpu.memory_space<vmem>>, vector<288x128xf32>,
    %c0_122 = arith.constant 0 : index
    %c0_123 = arith.constant 0 : index
    %128 = vector.load %arg10[%c0_122, %c0_123] : memref<328x128xf32, #tpu.memory_space<vmem>>, vector<288x128xf32>
    %c0_124 = arith.constant 0 : index
    %c0_125 = arith.constant 0 : index
    %c0_126 = arith.constant 0 : index
    %c0_127 = arith.constant 0 : index
    %129 = vector.load %arg3[%c0_124, %c0_125, %c0_126, %c0_127] : memref<3x3x128x128xf32, #tpu.memory_space<vmem>>, vector<1x1x128x128xf32>
    %130 = vector.shape_cast %129 : vector<1x1x128x128xf32> to vector<128x128xf32>
    %cst_128 = arith.constant dense<0.000000e+00> : vector<288x128xf32>
    %131 = tpu.matmul %128, %130, %cst_128 {dimension_numbers = #tpu.dot_dimension_numbers<[1], [0], [0], [1], [0, 0, 1, 1], [], []>} : vector<288x128xf32>, vector<128x128xf32>, vector<288x128xf32> -> vector<288x128xf32>
    %c0_129 = arith.constant 0 : index
    %c0_130 = arith.constant 0 : index
    %132 = vector.load %arg11[%c0_129, %c0_130] : memref<288x128xf32, #tpu.memory_space<vmem>>, vector<288x128xf32>
    tpu.vector_store %arg11[%c0_129, %c0_130], %131 {strides = array<i32>} : memref<288x128xf32, #tpu.memory_space<vmem>>, vector<288x128xf32>,
    %c1_131 = arith.constant 1 : index
    %c0_132 = arith.constant 0 : index
    %133 = vector.load %arg10[%c1_131, %c0_132] : memref<328x128xf32, #tpu.memory_space<vmem>>, vector<288x128xf32>
    %c0_133 = arith.constant 0 : index
    %c1_134 = arith.constant 1 : index
    %c0_135 = arith.constant 0 : index
    %c0_136 = arith.constant 0 : index
    %134 = vector.load %arg3[%c0_133, %c1_134, %c0_135, %c0_136] : memref<3x3x128x128xf32, #tpu.memory_space<vmem>>, vector<1x1x128x128xf32>
    %135 = vector.shape_cast %134 : vector<1x1x128x128xf32> to vector<128x128xf32>
    %cst_137 = arith.constant dense<0.000000e+00> : vector<288x128xf32>
    %136 = tpu.matmul %133, %135, %cst_137 {dimension_numbers = #tpu.dot_dimension_numbers<[1], [0], [0], [1], [0, 0, 1, 1], [], []>} : vector<288x128xf32>, vector<128x128xf32>, vector<288x128xf32> -> vector<288x128xf32>
    %c0_138 = arith.constant 0 : index
    %c0_139 = arith.constant 0 : index
    %137 = vector.load %arg11[%c0_138, %c0_139] : memref<288x128xf32, #tpu.memory_space<vmem>>, vector<288x128xf32>
    %138 = arith.addf %137, %136 : vector<288x128xf32>
    %c0_140 = arith.constant 0 : index
    %c0_141 = arith.constant 0 : index
    %139 = vector.load %arg11[%c0_140, %c0_141] : memref<288x128xf32, #tpu.memory_space<vmem>>, vector<288x128xf32>
    tpu.vector_store %arg11[%c0_140, %c0_141], %138 {strides = array<i32>} : memref<288x128xf32, #tpu.memory_space<vmem>>, vector<288x128xf32>,
    %c2_142 = arith.constant 2 : index
    %c0_143 = arith.constant 0 : index
    %140 = vector.load %arg10[%c2_142, %c0_143] : memref<328x128xf32, #tpu.memory_space<vmem>>, vector<288x128xf32>
    %c0_144 = arith.constant 0 : index
    %c2_145 = arith.constant 2 : index
    %c0_146 = arith.constant 0 : index
    %c0_147 = arith.constant 0 : index
    %141 = vector.load %arg3[%c0_144, %c2_145, %c0_146, %c0_147] : memref<3x3x128x128xf32, #tpu.memory_space<vmem>>, vector<1x1x128x128xf32>
    %142 = vector.shape_cast %141 : vector<1x1x128x128xf32> to vector<128x128xf32>
    %cst_148 = arith.constant dense<0.000000e+00> : vector<288x128xf32>
    %143 = tpu.matmul %140, %142, %cst_148 {dimension_numbers = #tpu.dot_dimension_numbers<[1], [0], [0], [1], [0, 0, 1, 1], [], []>} : vector<288x128xf32>, vector<128x128xf32>, vector<288x128xf32> -> vector<288x128xf32>
    %c0_149 = arith.constant 0 : index
    %c0_150 = arith.constant 0 : index
    %144 = vector.load %arg11[%c0_149, %c0_150] : memref<288x128xf32, #tpu.memory_space<vmem>>, vector<288x128xf32>
    %145 = arith.addf %144, %143 : vector<288x128xf32>
    %c0_151 = arith.constant 0 : index
    %c0_152 = arith.constant 0 : index
    %146 = vector.load %arg11[%c0_151, %c0_152] : memref<288x128xf32, #tpu.memory_space<vmem>>, vector<288x128xf32>
    tpu.vector_store %arg11[%c0_151, %c0_152], %145 {strides = array<i32>} : memref<288x128xf32, #tpu.memory_space<vmem>>, vector<288x128xf32>,
    %c18_153 = arith.constant 18 : index
    %c0_154 = arith.constant 0 : index
    %147 = vector.load %arg10[%c18_153, %c0_154] : memref<328x128xf32, #tpu.memory_space<vmem>>, vector<288x128xf32>
    %c1_155 = arith.constant 1 : index
    %c0_156 = arith.constant 0 : index
    %c0_157 = arith.constant 0 : index
    %c0_158 = arith.constant 0 : index
    %148 = vector.load %arg3[%c1_155, %c0_156, %c0_157, %c0_158] : memref<3x3x128x128xf32, #tpu.memory_space<vmem>>, vector<1x1x128x128xf32>
    %149 = vector.shape_cast %148 : vector<1x1x128x128xf32> to vector<128x128xf32>
    %cst_159 = arith.constant dense<0.000000e+00> : vector<288x128xf32>
    %150 = tpu.matmul %147, %149, %cst_159 {dimension_numbers = #tpu.dot_dimension_numbers<[1], [0], [0], [1], [0, 0, 1, 1], [], []>} : vector<288x128xf32>, vector<128x128xf32>, vector<288x128xf32> -> vector<288x128xf32>
    %c0_160 = arith.constant 0 : index
    %c0_161 = arith.constant 0 : index
    %151 = vector.load %arg11[%c0_160, %c0_161] : memref<288x128xf32, #tpu.memory_space<vmem>>, vector<288x128xf32>
    %152 = arith.addf %151, %150 : vector<288x128xf32>
    %c0_162 = arith.constant 0 : index
    %c0_163 = arith.constant 0 : index
    %153 = vector.load %arg11[%c0_162, %c0_163] : memref<288x128xf32, #tpu.memory_space<vmem>>, vector<288x128xf32>
    tpu.vector_store %arg11[%c0_162, %c0_163], %152 {strides = array<i32>} : memref<288x128xf32, #tpu.memory_space<vmem>>, vector<288x128xf32>,
    %c19_164 = arith.constant 19 : index
    %c0_165 = arith.constant 0 : index
    %154 = vector.load %arg10[%c19_164, %c0_165] : memref<328x128xf32, #tpu.memory_space<vmem>>, vector<288x128xf32>
    %c1_166 = arith.constant 1 : index
    %c1_167 = arith.constant 1 : index
    %c0_168 = arith.constant 0 : index
    %c0_169 = arith.constant 0 : index
    %155 = vector.load %arg3[%c1_166, %c1_167, %c0_168, %c0_169] : memref<3x3x128x128xf32, #tpu.memory_space<vmem>>, vector<1x1x128x128xf32>
    %156 = vector.shape_cast %155 : vector<1x1x128x128xf32> to vector<128x128xf32>
    %cst_170 = arith.constant dense<0.000000e+00> : vector<288x128xf32>
    %157 = tpu.matmul %154, %156, %cst_170 {dimension_numbers = #tpu.dot_dimension_numbers<[1], [0], [0], [1], [0, 0, 1, 1], [], []>} : vector<288x128xf32>, vector<128x128xf32>, vector<288x128xf32> -> vector<288x128xf32>
    %c0_171 = arith.constant 0 : index
    %c0_172 = arith.constant 0 : index
    %158 = vector.load %arg11[%c0_171, %c0_172] : memref<288x128xf32, #tpu.memory_space<vmem>>, vector<288x128xf32>
    %159 = arith.addf %158, %157 : vector<288x128xf32>
    %c0_173 = arith.constant 0 : index
    %c0_174 = arith.constant 0 : index
    %160 = vector.load %arg11[%c0_173, %c0_174] : memref<288x128xf32, #tpu.memory_space<vmem>>, vector<288x128xf32>
    tpu.vector_store %arg11[%c0_173, %c0_174], %159 {strides = array<i32>} : memref<288x128xf32, #tpu.memory_space<vmem>>, vector<288x128xf32>,
    %c20_175 = arith.constant 20 : index
    %c0_176 = arith.constant 0 : index
    %161 = vector.load %arg10[%c20_175, %c0_176] : memref<328x128xf32, #tpu.memory_space<vmem>>, vector<288x128xf32>
    %c1_177 = arith.constant 1 : index
    %c2_178 = arith.constant 2 : index
    %c0_179 = arith.constant 0 : index
    %c0_180 = arith.constant 0 : index
    %162 = vector.load %arg3[%c1_177, %c2_178, %c0_179, %c0_180] : memref<3x3x128x128xf32, #tpu.memory_space<vmem>>, vector<1x1x128x128xf32>
    %163 = vector.shape_cast %162 : vector<1x1x128x128xf32> to vector<128x128xf32>
    %cst_181 = arith.constant dense<0.000000e+00> : vector<288x128xf32>
    %164 = tpu.matmul %161, %163, %cst_181 {dimension_numbers = #tpu.dot_dimension_numbers<[1], [0], [0], [1], [0, 0, 1, 1], [], []>} : vector<288x128xf32>, vector<128x128xf32>, vector<288x128xf32> -> vector<288x128xf32>
    %c0_182 = arith.constant 0 : index
    %c0_183 = arith.constant 0 : index
    %165 = vector.load %arg11[%c0_182, %c0_183] : memref<288x128xf32, #tpu.memory_space<vmem>>, vector<288x128xf32>
    %166 = arith.addf %165, %164 : vector<288x128xf32>
    %c0_184 = arith.constant 0 : index
    %c0_185 = arith.constant 0 : index
    %167 = vector.load %arg11[%c0_184, %c0_185] : memref<288x128xf32, #tpu.memory_space<vmem>>, vector<288x128xf32>
    tpu.vector_store %arg11[%c0_184, %c0_185], %166 {strides = array<i32>} : memref<288x128xf32, #tpu.memory_space<vmem>>, vector<288x128xf32>,
    %c36_186 = arith.constant 36 : index
    %c0_187 = arith.constant 0 : index
    %168 = vector.load %arg10[%c36_186, %c0_187] : memref<328x128xf32, #tpu.memory_space<vmem>>, vector<288x128xf32>
    %c2_188 = arith.constant 2 : index
    %c0_189 = arith.constant 0 : index
    %c0_190 = arith.constant 0 : index
    %c0_191 = arith.constant 0 : index
    %169 = vector.load %arg3[%c2_188, %c0_189, %c0_190, %c0_191] : memref<3x3x128x128xf32, #tpu.memory_space<vmem>>, vector<1x1x128x128xf32>
    %170 = vector.shape_cast %169 : vector<1x1x128x128xf32> to vector<128x128xf32>
    %cst_192 = arith.constant dense<0.000000e+00> : vector<288x128xf32>
    %171 = tpu.matmul %168, %170, %cst_192 {dimension_numbers = #tpu.dot_dimension_numbers<[1], [0], [0], [1], [0, 0, 1, 1], [], []>} : vector<288x128xf32>, vector<128x128xf32>, vector<288x128xf32> -> vector<288x128xf32>
    %c0_193 = arith.constant 0 : index
    %c0_194 = arith.constant 0 : index
    %172 = vector.load %arg11[%c0_193, %c0_194] : memref<288x128xf32, #tpu.memory_space<vmem>>, vector<288x128xf32>
    %173 = arith.addf %172, %171 : vector<288x128xf32>
    %c0_195 = arith.constant 0 : index
    %c0_196 = arith.constant 0 : index
    %174 = vector.load %arg11[%c0_195, %c0_196] : memref<288x128xf32, #tpu.memory_space<vmem>>, vector<288x128xf32>
    tpu.vector_store %arg11[%c0_195, %c0_196], %173 {strides = array<i32>} : memref<288x128xf32, #tpu.memory_space<vmem>>, vector<288x128xf32>,
    %c37_197 = arith.constant 37 : index
    %c0_198 = arith.constant 0 : index
    %175 = vector.load %arg10[%c37_197, %c0_198] : memref<328x128xf32, #tpu.memory_space<vmem>>, vector<288x128xf32>
    %c2_199 = arith.constant 2 : index
    %c1_200 = arith.constant 1 : index
    %c0_201 = arith.constant 0 : index
    %c0_202 = arith.constant 0 : index
    %176 = vector.load %arg3[%c2_199, %c1_200, %c0_201, %c0_202] : memref<3x3x128x128xf32, #tpu.memory_space<vmem>>, vector<1x1x128x128xf32>
    %177 = vector.shape_cast %176 : vector<1x1x128x128xf32> to vector<128x128xf32>
    %cst_203 = arith.constant dense<0.000000e+00> : vector<288x128xf32>
    %178 = tpu.matmul %175, %177, %cst_203 {dimension_numbers = #tpu.dot_dimension_numbers<[1], [0], [0], [1], [0, 0, 1, 1], [], []>} : vector<288x128xf32>, vector<128x128xf32>, vector<288x128xf32> -> vector<288x128xf32>
    %c0_204 = arith.constant 0 : index
    %c0_205 = arith.constant 0 : index
    %179 = vector.load %arg11[%c0_204, %c0_205] : memref<288x128xf32, #tpu.memory_space<vmem>>, vector<288x128xf32>
    %180 = arith.addf %179, %178 : vector<288x128xf32>
    %c0_206 = arith.constant 0 : index
    %c0_207 = arith.constant 0 : index
    %181 = vector.load %arg11[%c0_206, %c0_207] : memref<288x128xf32, #tpu.memory_space<vmem>>, vector<288x128xf32>
    tpu.vector_store %arg11[%c0_206, %c0_207], %180 {strides = array<i32>} : memref<288x128xf32, #tpu.memory_space<vmem>>, vector<288x128xf32>,
    %c38_208 = arith.constant 38 : index
    %c0_209 = arith.constant 0 : index
    %182 = vector.load %arg10[%c38_208, %c0_209] : memref<328x128xf32, #tpu.memory_space<vmem>>, vector<288x128xf32>
    %c2_210 = arith.constant 2 : index
    %c2_211 = arith.constant 2 : index
    %c0_212 = arith.constant 0 : index
    %c0_213 = arith.constant 0 : index
    %183 = vector.load %arg3[%c2_210, %c2_211, %c0_212, %c0_213] : memref<3x3x128x128xf32, #tpu.memory_space<vmem>>, vector<1x1x128x128xf32>
    %184 = vector.shape_cast %183 : vector<1x1x128x128xf32> to vector<128x128xf32>
    %cst_214 = arith.constant dense<0.000000e+00> : vector<288x128xf32>
    %185 = tpu.matmul %182, %184, %cst_214 {dimension_numbers = #tpu.dot_dimension_numbers<[1], [0], [0], [1], [0, 0, 1, 1], [], []>} : vector<288x128xf32>, vector<128x128xf32>, vector<288x128xf32> -> vector<288x128xf32>
    %c0_215 = arith.constant 0 : index
    %c0_216 = arith.constant 0 : index
    %186 = vector.load %arg11[%c0_215, %c0_216] : memref<288x128xf32, #tpu.memory_space<vmem>>, vector<288x128xf32>
    %187 = arith.addf %186, %185 : vector<288x128xf32>
    %c0_217 = arith.constant 0 : index
    %c0_218 = arith.constant 0 : index
    %188 = vector.load %arg11[%c0_217, %c0_218] : memref<288x128xf32, #tpu.memory_space<vmem>>, vector<288x128xf32>
    tpu.vector_store %arg11[%c0_217, %c0_218], %187 {strides = array<i32>} : memref<288x128xf32, #tpu.memory_space<vmem>>, vector<288x128xf32>,
    %c0_219 = arith.constant 0 : index
    %c0_220 = arith.constant 0 : index
    %189 = vector.load %arg11[%c0_219, %c0_220] : memref<288x128xf32, #tpu.memory_space<vmem>>, vector<288x128xf32>
    %cst_221 = arith.constant 0.000000e+00 : f32
    %190 = vector.shape_cast %18 : vector<288x1xi1> to vector<288x1xi1>
    %191 = vector.broadcast %190 : vector<288x1xi1> to vector<288x128xi1>
    %192 = vector.broadcast %cst_221 : f32 to vector<288x128xf32>
    %193 = arith.select %191, %189, %192 : vector<288x128xi1>, vector<288x128xf32>
    %cst_222 = arith.constant dense<0.000000e+00> : vector<128xf32>
    %194 = vector.multi_reduction <add>, %193, %cst_222 [0] : vector<288x128xf32> to vector<128xf32>
    %195 = vector.shape_cast %194 : vector<128xf32> to vector<1x128xf32>
    %cst_223 = arith.constant 3.906250e-03 : f32
    %196 = vector.broadcast %cst_223 : f32 to vector<1x128xf32>
    %197 = arith.mulf %195, %196 : vector<1x128xf32>
    %198 = vector.broadcast %197 : vector<1x128xf32> to vector<288x128xf32>
    %199 = arith.subf %189, %198 : vector<288x128xf32>
    %cst_224 = arith.constant 0.000000e+00 : f32
    %200 = vector.shape_cast %18 : vector<288x1xi1> to vector<288x1xi1>
    %201 = vector.broadcast %200 : vector<288x1xi1> to vector<288x128xi1>
    %202 = vector.broadcast %cst_224 : f32 to vector<288x128xf32>
    %203 = arith.select %201, %199, %202 : vector<288x128xi1>, vector<288x128xf32>
    %204 = arith.mulf %203, %203 : vector<288x128xf32>
    %cst_225 = arith.constant dense<0.000000e+00> : vector<128xf32>
    %205 = vector.multi_reduction <add>, %204, %cst_225 [0] : vector<288x128xf32> to vector<128xf32>
    %206 = vector.shape_cast %205 : vector<128xf32> to vector<1x128xf32>
    %cst_226 = arith.constant 3.906250e-03 : f32
    %207 = vector.broadcast %cst_226 : f32 to vector<1x128xf32>
    %208 = arith.mulf %206, %207 : vector<1x128xf32>
    %cst_227 = arith.constant 9.99999974E-6 : f32
    %209 = vector.broadcast %cst_227 : f32 to vector<1x128xf32>
    %210 = arith.addf %208, %209 : vector<1x128xf32>
    %211 = math.rsqrt %210 : vector<1x128xf32>
    %c0_228 = arith.constant 0 : index
    %c0_229 = arith.constant 0 : index
    %212 = vector.load %arg6[%c0_228, %c0_229] : memref<1x128xf32, #tpu.memory_space<vmem>>, vector<1x128xf32>
    %213 = arith.mulf %211, %212 : vector<1x128xf32>
    %214 = vector.broadcast %213 : vector<1x128xf32> to vector<288x128xf32>
    %215 = arith.mulf %203, %214 : vector<288x128xf32>
    %c0_230 = arith.constant 0 : index
    %c0_231 = arith.constant 0 : index
    %216 = vector.load %arg7[%c0_230, %c0_231] : memref<1x128xf32, #tpu.memory_space<vmem>>, vector<1x128xf32>
    %217 = vector.broadcast %216 : vector<1x128xf32> to vector<288x128xf32>
    %218 = arith.addf %215, %217 : vector<288x128xf32>
    %c19_232 = arith.constant 19 : index
    %c0_233 = arith.constant 0 : index
    %219 = vector.load %arg9[%c19_232, %c0_233] : memref<328x128xf32, #tpu.memory_space<vmem>>, vector<288x128xf32>
    %220 = arith.addf %219, %218 : vector<288x128xf32>
    %c0_234 = arith.constant 0 : index
    %c0_235 = arith.constant 0 : index
    %c0_236 = arith.constant 0 : index
    %221 = vector.load %arg8[%c0_234, %c0_235, %c0_236] : memref<1x288x128xf32, #tpu.memory_space<vmem>>, vector<1x288x128xf32>
    %222 = vector.shape_cast %221 : vector<1x288x128xf32> to vector<288x128xf32>
    %223 = vector.shape_cast %220 : vector<288x128xf32> to vector<1x288x128xf32>
    tpu.vector_store %arg8[%c0_234, %c0_235, %c0_236], %223 {strides = array<i32>} : memref<1x288x128xf32, #tpu.memory_space<vmem>>, vector<1x288x128xf32>,
    return
  }
  func.func @transform_0(%arg0: i32) -> (i32, i32, i32) {
    %c0_i32 = arith.constant 0 : i32
    %c0_i32_0 = arith.constant 0 : i32
    %c0_i32_1 = arith.constant 0 : i32
    return %arg0, %c0_i32, %c0_i32_0 : i32, i32, i32
  }
  func.func @transform_1(%arg0: i32) -> (i32, i32, i32, i32) {
    %c0_i32 = arith.constant 0 : i32
    %c0_i32_0 = arith.constant 0 : i32
    %c0_i32_1 = arith.constant 0 : i32
    %c0_i32_2 = arith.constant 0 : i32
    %c0_i32_3 = arith.constant 0 : i32
    return %c0_i32, %c0_i32_0, %c0_i32_1, %c0_i32_2 : i32, i32, i32, i32
  }
  func.func @transform_2(%arg0: i32) -> (i32, i32, i32, i32) {
    %c0_i32 = arith.constant 0 : i32
    %c0_i32_0 = arith.constant 0 : i32
    %c0_i32_1 = arith.constant 0 : i32
    %c0_i32_2 = arith.constant 0 : i32
    %c0_i32_3 = arith.constant 0 : i32
    return %c0_i32, %c0_i32_0, %c0_i32_1, %c0_i32_2 : i32, i32, i32, i32
  }
  func.func @transform_3(%arg0: i32) -> (i32, i32) {
    %c0_i32 = arith.constant 0 : i32
    %c0_i32_0 = arith.constant 0 : i32
    %c0_i32_1 = arith.constant 0 : i32
    return %c0_i32, %c0_i32_0 : i32, i32
  }
  func.func @transform_4(%arg0: i32) -> (i32, i32) {
    %c0_i32 = arith.constant 0 : i32
    %c0_i32_0 = arith.constant 0 : i32
    %c0_i32_1 = arith.constant 0 : i32
    return %c0_i32, %c0_i32_0 : i32, i32
  }
  func.func @transform_5(%arg0: i32) -> (i32, i32) {
    %c0_i32 = arith.constant 0 : i32
    %c0_i32_0 = arith.constant 0 : i32
    %c0_i32_1 = arith.constant 0 : i32
    return %c0_i32, %c0_i32_0 : i32, i32
  }
  func.func @transform_6(%arg0: i32) -> (i32, i32) {
    %c0_i32 = arith.constant 0 : i32
    %c0_i32_0 = arith.constant 0 : i32
    %c0_i32_1 = arith.constant 0 : i32
    return %c0_i32, %c0_i32_0 : i32, i32
  }
  func.func @transform_7(%arg0: i32) -> (i32, i32, i32) {
    %c0_i32 = arith.constant 0 : i32
    %c0_i32_0 = arith.constant 0 : i32
    %c0_i32_1 = arith.constant 0 : i32
    return %arg0, %c0_i32, %c0_i32_0 : i32, i32, i32
  }
}

</mosaic_0001>

<bundles_post_ra>
// kernel: residual_block.1
= control target key start
LH: loop header
LB: loop body
LE: loop exit
PB: predicated region body
PF: predicated region fallthrough
CT: control target
= control target key end

     0   :  { %s13267_s24 = smov 0   ;;  %s17378_s0 = inlined_call_operand.vmem [shape: f32[2,288,128], index: 0, kind: input, shape index: {}]   ;;  %s17379_s1 = inlined_call_operand.vmem [shape: f32[3,3,128,128], index: 1, kind: input, shape index: {}]   ;;  %s17380_s2 = inlined_call_operand.vmem [shape: f32[3,3,128,128], index: 2, kind: input, shape index: {}]   ;;  %s17381_s3 = inlined_call_operand.vmem [shape: f32[1,128], index: 3, kind: input, shape index: {}]   ;;  %s17382_s4 = inlined_call_operand.vmem [shape: f32[1,128], index: 4, kind: input, shape index: {}]   ;;  %s17383_s5 = inlined_call_operand.vmem [shape: f32[1,128], index: 5, kind: input, shape index: {}]   ;;  %s17384_s6 = inlined_call_operand.vmem [shape: f32[1,128], index: 6, kind: input, shape index: {}]   ;;  %s17385_s7 = inlined_call_operand.vmem [shape: f32[2,288,128], index: 7, kind: output, shape index: {}]  }
   0x1 LB: > { %s9219_s25 = sadd.s32 4294967295, %s13224_s24   ;;  %p9223_p0 = scmp.ge.s32.totalorder %s13224_s24, 1  ;;  %s13224_s24 = sphi %s13267_s24, %s17_s24  }
   0x2   : > { %p237_p1 = scmp.lt.s32.totalorder %s13224_s24, 3 }
   0x4   : > { %p238_p2 = pnand %p9223_p0, %p237_p1 }
   0x6   : > { %241 = sbr.rel (%p238_p2) target bundleno = 2102 (0x836), region = 48 }
   0xd   : > { %v1048_v0 = vld [vmem:[%s17379_s1] sm:$0xff]  ;;  %v1049_v1 = vld [vmem:[%s17379_s1 + $0x8] sm:$0xff]  ;;  %v1050_v2 = vld [vmem:[%s17379_s1 + $0x10] sm:$0xff]  ;;  %p13284_p3 = scmp.lt.s32.totalorder %s9219_s25, 1  ;;  %v13226_v5 = vmov 0.0  }
   0xe   : > { %v11970_v3 = vpack.c.bf16 %v1049_v1, %v1048_v0  ;;  %v1051_v4 = vld [vmem:[%s17379_s1 + $0x18] sm:$0xff]  ;;  %928 = vst [vmem:[#allocation2] sm:$0xff] %v13226_v5  ;;  %10454 = vmatprep.mubr.f32.mxu0 %v13226_v5  ;;  %929 = vst [vmem:[#allocation2 + $0x8] sm:$0xff] %v13226_v5  ;;  %11228 = vmatprep.mubr.f32.mxu1 %v13226_v5  ;;  %v1052_v7 = vld [vmem:[%s17379_s1 + $0x20] sm:$0xff] }
   0xf   : > { %930 = vst [vmem:[#allocation2 + $0x10] sm:$0x3] %v13226_v5  ;;  %931 = vst [vmem:[#allocation2 + $0x132] sm:$0xff] %v13226_v5  ;;  %v11974_v6 = vpack.c.bf16 %v1051_v4, %v1050_v2  ;;  %v1053_v8 = vld [vmem:[%s17379_s1 + $0x28] sm:$0xff]  ;;  %s17987_s25 = smov (!%p13284_p3, %s9219_s25), 1  ;;  %v1054_v10 = vld [vmem:[%s17379_s1 + $0x30] sm:$0xff] }
  0x10   : > { %932 = vst [vmem:[#allocation2 + $0x13a] sm:$0xff] %v13226_v5  ;;  %933 = vst [vmem:[#allocation2 + $0x142] sm:$0x3f] %v13226_v5  ;;  %11971 = vmatprep.subr.bf16.mxu0 %v11970_v3  ;;  %s13122_s16 = smul.u32 288, %s17987_s25  ;;  %v11978_v9 = vpack.c.bf16 %v1053_v8, %v1052_v7  ;;  %v1055_v11 = vld [vmem:[%s17379_s1 + $0x38] sm:$0xff]  ;;  %v1056_v15 = vld [vmem:[%s17379_s1 + $0x40] sm:$0xff] }
  0x11   : > { %934 = vst [vmem:[#allocation3] sm:$0xff] %v13226_v5  ;;  %935 = vst [vmem:[#allocation3 + $0x8] sm:$0xff] %v13226_v5  ;;  %11973 = vmatpush3.bf16.msra.mxu0 %v11970_v3  ;;  %v11982_v19 = vpack.c.bf16 %v1055_v11, %v1054_v10  ;;  %v1057_v20 = vld [vmem:[%s17379_s1 + $0x48] sm:$0xff]  ;;  %v1058_v34 = vld [vmem:[%s17379_s1 + $0x50] sm:$0xff] }
  0x12   : > { %936 = vst [vmem:[#allocation3 + $0x10] sm:$0x7] %v13226_v5  ;;  %937 = vst [vmem:[#allocation3 + $0x133] sm:$0xff] %v13226_v5  ;;  %11975 = vmatprep.subr.bf16.mxu0 %v11974_v6  ;;  %s13327_s23 = scalar_lea.vmem %s17378_s0, %s13122_s16  ;;  %v11986_v30 = vpack.c.bf16 %v1057_v20, %v1056_v15  ;;  %v1059_v35 = vld [vmem:[%s17379_s1 + $0x58] sm:$0xff]  ;;  %v1060_v38 = vld [vmem:[%s17379_s1 + $0x60] sm:$0xff]  ;;  %s17301_s18 = scalar_lea.vmem %s17385_s7, %s13122_s16 }
  0x13   : > { %938 = vst [vmem:[#allocation3 + $0x13b] sm:$0xff] %v13226_v5  ;;  %939 = vst [vmem:[#allocation3 + $0x143] sm:$0x1f] %v13226_v5  ;;  %v13330_v12 = vld [vmem:[%s13327_s23] sm:$0xff]  ;;  %v13333_v13 = vld [vmem:[%s13327_s23 + $0x8] sm:$0xff]  ;;  %v11990_v37 = vpack.c.bf16 %v1059_v35, %v1058_v34 }
  0x14   : > { %v13336_v14 = vld [vmem:[%s13327_s23 + $0x10] sm:$0xff]  ;;  %976 = vst [vmem:[#allocation2 + $0x12] sm:$0xff] %v13330_v12  ;;  %977 = vst [vmem:[#allocation2 + $0x1a] sm:$0xff] %v13333_v13  ;;  %v13345_v16 = vld [vmem:[%s13327_s23 + $0x18] sm:$0xff] }
  0x15   : > { %11977 = vmatpush3.bf16.msra.mxu0 %v11974_v6  ;;  %978 = vst [vmem:[#allocation2 + $0x22] sm:$0xff] %v13336_v14  ;;  %v13348_v17 = vld [vmem:[%s13327_s23 + $0x20] sm:$0xff]  ;;  %v13351_v18 = vld [vmem:[%s13327_s23 + $0x28] sm:$0xff]  ;;  %979 = vst [vmem:[#allocation2 + $0x2a] sm:$0xff] %v13345_v16 }
  0x16   : > { %11979 = vmatprep.subr.bf16.mxu0 %v11978_v9  ;;  %980 = vst [vmem:[#allocation2 + $0x32] sm:$0xff] %v13348_v17  ;;  %981 = vst [vmem:[#allocation2 + $0x3a] sm:$0xff] %v13351_v18  ;;  %v13360_v21 = vld [vmem:[%s13327_s23 + $0x30] sm:$0xff]  ;;  %v13363_v22 = vld [vmem:[%s13327_s23 + $0x38] sm:$0xff] }
  0x17   : > { %982 = vst [vmem:[#allocation2 + $0x42] sm:$0xff] %v13360_v21  ;;  %983 = vst [vmem:[#allocation2 + $0x4a] sm:$0xff] %v13363_v22  ;;  %v13368_v23 = vld [vmem:[%s13327_s23 + $0x40] sm:$0xff]  ;;  %v13371_v24 = vld [vmem:[%s13327_s23 + $0x48] sm:$0xff] }
  0x18   : > { %v13374_v25 = vld [vmem:[%s13327_s23 + $0x50] sm:$0xff]  ;;  %984 = vst [vmem:[#allocation2 + $0x52] sm:$0xff] %v13368_v23  ;;  %985 = vst [vmem:[#allocation2 + $0x5a] sm:$0xff] %v13371_v24  ;;  %v13380_v26 = vld [vmem:[%s13327_s23 + $0x58] sm:$0xff] }
  0x19   : > { %986 = vst [vmem:[#allocation2 + $0x62] sm:$0xff] %v13374_v25  ;;  %v13383_v27 = vld [vmem:[%s13327_s23 + $0x60] sm:$0xff]  ;;  %11981 = vmatpush3.bf16.msra.mxu0 %v11978_v9  ;;  %987 = vst [vmem:[#allocation2 + $0x6a] sm:$0xff] %v13380_v26  ;;  %v13388_v28 = vld [vmem:[%s13327_s23 + $0x68] sm:$0xff] }
  0x1a   : > { %988 = vst [vmem:[#allocation2 + $0x72] sm:$0xff] %v13383_v27  ;;  %v13391_v29 = vld [vmem:[%s13327_s23 + $0x70] sm:$0xff]  ;;  %11983 = vmatprep.subr.bf16.mxu0 %v11982_v19  ;;  %989 = vst [vmem:[#allocation2 + $0x7a] sm:$0xff] %v13388_v28  ;;  %v13396_v31 = vld [vmem:[%s13327_s23 + $0x78] sm:$0xff] }
  0x1b   : > { %990 = vst [vmem:[#allocation2 + $0x82] sm:$0xff] %v13391_v29  ;;  %v13399_v32 = vld [vmem:[%s13327_s23 + $0x80] sm:$0xff]  ;;  %v13402_v33 = vld [vmem:[%s13327_s23 + $0x88] sm:$0xff]  ;;  %991 = vst [vmem:[#allocation2 + $0x8a] sm:$0xff] %v13396_v31 }
  0x1c   : > { %992 = vst [vmem:[#allocation2 + $0x92] sm:$0xff] %v13399_v32  ;;  %993 = vst [vmem:[#allocation2 + $0x9a] sm:$0xff] %v13402_v33  ;;  %v13414_v36 = vld [vmem:[%s13327_s23 + $0x90] sm:$0xff]  ;;  %v1061_v39 = vld [vmem:[%s17379_s1 + $0x68] sm:$0xff] }
  0x1d   : > { %994 = vst [vmem:[#allocation2 + $0xa2] sm:$0xff] %v13414_v36  ;;  %11985 = vmatpush3.bf16.msra.mxu0 %v11982_v19  ;;  %v11994_v40 = vpack.c.bf16 %v1061_v39, %v1060_v38  ;;  %v1062_v41 = vld [vmem:[%s17379_s1 + $0x70] sm:$0xff]  ;;  %v1063_v42 = vld [vmem:[%s17379_s1 + $0x78] sm:$0xff]  ;;  %v13433_v44 = vld [vmem:[%s13327_s23 + $0xa0] sm:$0xff] }
  0x1e   : > { %11987 = vmatprep.subr.bf16.mxu0 %v11986_v30  ;;  %v13430_v43 = vld [vmem:[%s13327_s23 + $0x98] sm:$0xff]  ;;  %v11998_v45 = vpack.c.bf16 %v1063_v42, %v1062_v41  ;;  %v9226_v46 = vld [vmem:[%s17379_s1 + $0x80] sm:$0xff]  ;;  %v9227_v47 = vld [vmem:[%s17379_s1 + $0x88] sm:$0xff]  ;;  %996 = vst [vmem:[#allocation2 + $0xb2] sm:$0xff] %v13433_v44 }
  0x1f   : > { %995 = vst [vmem:[#allocation2 + $0xaa] sm:$0xff] %v13430_v43  ;;  %v13444_v48 = vld [vmem:[%s13327_s23 + $0xa8] sm:$0xff]  ;;  %v13448_v49 = vld [vmem:[%s13327_s23 + $0xb0] sm:$0xff]  ;;  %v13451_v50 = vld [vmem:[%s13327_s23 + $0xb8] sm:$0xff]  ;;  %v12002_v56 = vpack.c.bf16 %v9227_v47, %v9226_v46 }
  0x20   : > { %997 = vst [vmem:[#allocation2 + $0xba] sm:$0xff] %v13444_v48  ;;  %v13454_v51 = vld [vmem:[%s13327_s23 + $0xc0] sm:$0xff]  ;;  %998 = vst [vmem:[#allocation2 + $0xc2] sm:$0xff] %v13448_v49  ;;  %v13460_v52 = vld [vmem:[%s13327_s23 + $0xc8] sm:$0xff] }
  0x21   : > { %11989 = vmatpush3.bf16.msra.mxu0 %v11986_v30  ;;  %999 = vst [vmem:[#allocation2 + $0xca] sm:$0xff] %v13451_v50  ;;  %1000 = vst [vmem:[#allocation2 + $0xd2] sm:$0xff] %v13454_v51  ;;  %v13464_v53 = vld [vmem:[%s13327_s23 + $0xd0] sm:$0xff]  ;;  %v13467_v54 = vld [vmem:[%s13327_s23 + $0xd8] sm:$0xff] }
  0x22   : > { %11991 = vmatprep.subr.bf16.mxu0 %v11990_v37  ;;  %1001 = vst [vmem:[#allocation2 + $0xda] sm:$0xff] %v13460_v52  ;;  %v13470_v55 = vld [vmem:[%s13327_s23 + $0xe0] sm:$0xff]  ;;  %v9228_v57 = vld [vmem:[%s17379_s1 + $0x90] sm:$0xff]  ;;  %1002 = vst [vmem:[#allocation2 + $0xe2] sm:$0xff] %v13464_v53 }
  0x23   : > { %1003 = vst [vmem:[#allocation2 + $0xea] sm:$0xff] %v13467_v54  ;;  %1004 = vst [vmem:[#allocation2 + $0xf2] sm:$0xff] %v13470_v55  ;;  %v13479_v58 = vld [vmem:[%s13327_s23 + $0xe8] sm:$0xff]  ;;  %v13482_v59 = vld [vmem:[%s13327_s23 + $0xf0] sm:$0xff] }
  0x24   : > { %v9229_v60 = vld [vmem:[%s17379_s1 + $0x98] sm:$0xff]  ;;  %1005 = vst [vmem:[#allocation2 + $0xfa] sm:$0xff] %v13479_v58  ;;  %1006 = vst [vmem:[#allocation2 + $0x102] sm:$0xff] %v13482_v59  ;;  %v13493_v62 = vld [vmem:[%s13327_s23 + $0x100] sm:$0xff] }
  0x25   : > { %11993 = vmatpush3.bf16.msra.mxu0 %v11990_v37  ;;  %v13490_v61 = vld [vmem:[%s13327_s23 + $0xf8] sm:$0xff]  ;;  %1008 = vst [vmem:[#allocation2 + $0x112] sm:$0xff] %v13493_v62  ;;  %v13498_v63 = vld [vmem:[%s13327_s23 + $0x108] sm:$0xff]  ;;  %v1014_v0 = vld [vmem:[#allocation2 + $0x10] sm:$0xff]  ;;  %v12006_v1 = vpack.c.bf16 %v9229_v60, %v9228_v57 }
  0x26   : > { %11995 = vmatprep.subr.bf16.mxu0 %v11994_v40  ;;  %1007 = vst [vmem:[#allocation2 + $0x10a] sm:$0xff] %v13490_v61  ;;  %1009 = vst [vmem:[#allocation2 + $0x11a] sm:$0xff] %v13498_v63  ;;  %v9230_v2 = vld [vmem:[%s17379_s1 + $0xa0] sm:$0xff]  ;;  %v9231_v3 = vld [vmem:[%s17379_s1 + $0xa8] sm:$0xff] }
  0x27   : > { %v1015_v4 = vld [vmem:[#allocation2 + $0x18] sm:$0xff]  ;;  %v1016_v6 = vld [vmem:[#allocation2 + $0x20] sm:$0xff]  ;;  %v12010_v7 = vpack.c.bf16 %v9231_v3, %v9230_v2  ;;  %v9232_v8 = vld [vmem:[%s17379_s1 + $0xb0] sm:$0xff] }
  0x28   : > { %v9233_v9 = vld [vmem:[%s17379_s1 + $0xb8] sm:$0xff]  ;;  %v1017_v10 = vld [vmem:[#allocation2 + $0x28] sm:$0xff]  ;;  %v1018_v11 = vld [vmem:[#allocation2 + $0x30] sm:$0xff] }
  0x29   : > { %11997 = vmatpush3.bf16.msra.mxu0 %v11994_v40  ;;  %v9234_v15 = vld [vmem:[%s17379_s1 + $0xc0] sm:$0xff]  ;;  %v9235_v19 = vld [vmem:[%s17379_s1 + $0xc8] sm:$0xff]  ;;  %v1019_v20 = vld [vmem:[#allocation2 + $0x38] sm:$0xff] }
  0x2a   : > { %11999 = vmatprep.subr.bf16.mxu0 %v11998_v45  ;;  %v1020_v30 = vld [vmem:[#allocation2 + $0x40] sm:$0xff]  ;;  %v12018_v34 = vpack.c.bf16 %v9235_v19, %v9234_v15  ;;  %v9236_v35 = vld [vmem:[%s17379_s1 + $0xd0] sm:$0xff]  ;;  %v9237_v37 = vld [vmem:[%s17379_s1 + $0xd8] sm:$0xff] }
  0x2b   : > { %v1021_v38 = vld [vmem:[#allocation2 + $0x48] sm:$0xff]  ;;  %v1022_v39 = vld [vmem:[#allocation2 + $0x50] sm:$0xff]  ;;  %v12022_v40 = vpack.c.bf16 %v9237_v37, %v9236_v35  ;;  %v9238_v41 = vld [vmem:[%s17379_s1 + $0xe0] sm:$0xff] }
  0x2c   : > { %v9239_v42 = vld [vmem:[%s17379_s1 + $0xe8] sm:$0xff]  ;;  %v1024_v46 = vld [vmem:[#allocation2 + $0x60] sm:$0xff]  ;;  %v9241_v57 = vld [vmem:[%s17379_s1 + $0xf8] sm:$0xff] }
  0x2d   : > { %12001 = vmatpush3.bf16.msra.mxu0 %v11998_v45  ;;  %v1023_v45 = vld [vmem:[#allocation2 + $0x58] sm:$0xff]  ;;  %v12026_v47 = vpack.c.bf16 %v9239_v42, %v9238_v41  ;;  %v1025_v60 = vld [vmem:[#allocation2 + $0x68] sm:$0xff]  ;;  %v9242_v2 = vld [vmem:[%s17379_s1 + $0x100] sm:$0xff] }
  0x2e   : > { %12003 = vmatprep.subr.bf16.mxu0 %v12002_v56  ;;  %v9243_v3 = vld [vmem:[%s17379_s1 + $0x108] sm:$0xff]  ;;  %v1034_v15 = vld [vmem:[#allocation2 + $0xb0] sm:$0xff]  ;;  %v1035_v19 = vld [vmem:[#allocation2 + $0xb8] sm:$0xff] }
  0x2f   : > { %v1039_v35 = vld [vmem:[#allocation2 + $0xd8] sm:$0xff]  ;;  %v1040_v37 = vld [vmem:[#allocation2 + $0xe0] sm:$0xff]  ;;  %v1045_v42 = vld [vmem:[#allocation2 + $0x108] sm:$0xff] }
  0x30   : > { %10455 = vmatmul.mubr.f32.vlgmr.msra.gmra.mrb[0].mxu0 %v13226_v5  ;;  %v12014_v5 = vpack.c.bf16 %v9233_v9, %v9232_v8  ;;  %v1029_v8 = vld [vmem:[#allocation2 + $0x88] sm:$0xff]  ;;  %v1030_v9 = vld [vmem:[#allocation2 + $0x90] sm:$0xff]  ;;  %v1044_v41 = vld [vmem:[#allocation2 + $0x100] sm:$0xff] }
  0x31   : > { %12005 = vmatpush3.bf16.msra.mxu0 %v12002_v56  ;;  %10457 = vmatprep.mubr.f32.mxu0 %v1014_v0  ;;  %v9240_v56 = vld [vmem:[%s17379_s1 + $0xf0] sm:$0xff] }
  0x32   : > { %12007 = vmatprep.subr.bf16.mxu0 %v12006_v1  ;;  %v1026_v0 = vld [vmem:[#allocation2 + $0x70] sm:$0xff] }
  0x34   : > { %10458 = vmatmul.mubr.f32.gmra.mrb[2].mxu0 %v1015_v4  ;;  %v1027_v4 = vld [vmem:[#allocation2 + $0x78] sm:$0xff] }
  0x35   : > { %10460 = vmatprep.mubr.f32.mxu0 %v1016_v6  ;;  %12009 = vmatpush3.bf16.msra.mxu0 %v12006_v1  ;;  %v12030_v1 = vpack.c.bf16 %v9241_v57, %v9240_v56  ;;  %v1028_v6 = vld [vmem:[#allocation2 + $0x80] sm:$0xff]  ;;  %v9244_v56 = vld [vmem:[%s17379_s1 + $0x110] sm:$0xff]  ;;  %v9245_v57 = vld [vmem:[%s17379_s1 + $0x118] sm:$0xff] }
  0x36   : > { %12011 = vmatprep.subr.bf16.mxu0 %v12010_v7 }
  0x38   : > { %10461 = vmatmul.mubr.f32.gmra.mrb[4].mxu0 %v1017_v10  ;;  %v1031_v10 = vld [vmem:[#allocation2 + $0x98] sm:$0xff] }
  0x39   : > { %10463 = vmatprep.mubr.f32.mxu0 %v1018_v11  ;;  %12013 = vmatpush3.bf16.msra.mxu0 %v12010_v7  ;;  %v12034_v7 = vpack.c.bf16 %v9243_v3, %v9242_v2  ;;  %v1032_v11 = vld [vmem:[#allocation2 + $0xa0] sm:$0xff]  ;;  %v9247_v3 = vld [vmem:[%s17379_s1 + $0x128] sm:$0xff] }
  0x3a   : > { %12015 = vmatprep.subr.bf16.mxu0 %v12014_v5  ;;  %v9246_v2 = vld [vmem:[%s17379_s1 + $0x120] sm:$0xff] }
  0x3c   : > { %10464 = vmatmul.mubr.f32.gmra.mrb[6].mxu0 %v1019_v20  ;;  %v1036_v20 = vld [vmem:[#allocation2 + $0xc0] sm:$0xff] }
  0x3d   : > { %10466 = vmatprep.mubr.f32.mxu0 %v1020_v30  ;;  %12017 = vmatpush3.bf16.msra.mxu0 %v12014_v5  ;;  %v1033_v5 = vld [vmem:[#allocation2 + $0xa8] sm:$0xff] }
  0x3e   : > { %12019 = vmatprep.subr.bf16.mxu0 %v12018_v34  ;;  %v1037_v30 = vld [vmem:[#allocation2 + $0xc8] sm:$0xff] }
  0x40   : > { %10467 = vmatmul.mubr.f32.gmra.mrb[8].mxu0 %v1021_v38  ;;  %v1041_v38 = vld [vmem:[#allocation2 + $0xe8] sm:$0xff] }
  0x41   : > { %10469 = vmatprep.mubr.f32.mxu0 %v1022_v39  ;;  %12021 = vmatpush3.bf16.msra.mxu0 %v12018_v34  ;;  %v1038_v34 = vld [vmem:[#allocation2 + $0xd0] sm:$0xff] }
  0x42   : > { %12023 = vmatprep.subr.bf16.mxu0 %v12022_v40  ;;  %v1042_v39 = vld [vmem:[#allocation2 + $0xf0] sm:$0xff] }
  0x44   : > { %10470 = vmatmul.mubr.f32.gmra.mrb[10].mxu0 %v1023_v45  ;;  %v1046_v45 = vld [vmem:[#allocation2 + $0x110] sm:$0xff] }
  0x45   : > { %10472 = vmatprep.mubr.f32.mxu0 %v1024_v46  ;;  %12025 = vmatpush3.bf16.msra.mxu0 %v12022_v40  ;;  %v1043_v40 = vld [vmem:[#allocation2 + $0xf8] sm:$0xff] }
  0x46   : > { %12027 = vmatprep.subr.bf16.mxu0 %v12026_v47  ;;  %v1047_v46 = vld [vmem:[#allocation2 + $0x118] sm:$0xff] }
  0x48   : > { %10473 = vmatmul.mubr.f32.gmra.mrb[12].mxu0 %v1025_v60  ;;  %v1346_v60 = vld [vmem:[#allocation2 + $0x9] sm:$0xff] }
  0x49   : > { %10475 = vmatprep.mubr.f32.mxu0 %v1026_v0  ;;  %12029 = vmatpush3.bf16.msra.mxu0 %v12026_v47  ;;  %v1345_v47 = vld [vmem:[#allocation2 + $0x1] sm:$0xff]  ;;  %v1347_v0 = vld [vmem:[#allocation2 + $0x11] sm:$0xff] }
  0x4a   : > { %12031 = vmatprep.subr.bf16.mxu0 %v12030_v1 }
  0x4c   : > { %10476 = vmatmul.mubr.f32.gmra.mrb[14].mxu0 %v1027_v4  ;;  %v1348_v4 = vld [vmem:[#allocation2 + $0x19] sm:$0xff] }
  0x4d   : > { %10478 = vmatprep.mubr.f32.mxu0 %v1028_v6  ;;  %12033 = vmatpush3.bf16.msra.mxu0 %v12030_v1  ;;  %v12038_v1 = vpack.c.bf16 %v9245_v57, %v9244_v56  ;;  %v1349_v6 = vld [vmem:[#allocation2 + $0x21] sm:$0xff]  ;;  %v9256_v56 = vld [vmem:[%s17379_s1 + $0x170] sm:$0xff]  ;;  %v9257_v57 = vld [vmem:[%s17379_s1 + $0x178] sm:$0xff] }
  0x4e   : > { %12035 = vmatprep.subr.bf16.mxu0 %v12034_v7 }
  0x50   : > { %10479 = vmatmul.mubr.f32.gmra.mrb[16].mxu0 %v1029_v8  ;;  %v12042_v8 = vpack.c.bf16 %v9247_v3, %v9246_v2  ;;  %v9258_v2 = vld [vmem:[%s17379_s1 + $0x180] sm:$0xff]  ;;  %v9259_v3 = vld [vmem:[%s17379_s1 + $0x188] sm:$0xff] }
  0x51   : > { %10481 = vmatprep.mubr.f32.mxu0 %v1030_v9  ;;  %v9248_v9 = vld [vmem:[%s17379_s1 + $0x130] sm:$0xff] }
  0x54   : > { %10482 = vmatmul.mubr.f32.gmra.mrb[18].mxu0 %v1031_v10  ;;  %v9249_v10 = vld [vmem:[%s17379_s1 + $0x138] sm:$0xff] }
  0x55   : > { %10484 = vmatprep.mubr.f32.mxu0 %v1032_v11  ;;  %v1350_v11 = vld [vmem:[#allocation2 + $0x29] sm:$0xff] }
  0x58   : > { %10485 = vmatmul.mubr.f32.gmra.mrb[20].mxu0 %v1033_v5  ;;  %v1351_v5 = vld [vmem:[#allocation2 + $0x31] sm:$0xff] }
  0x59   : > { %10487 = vmatprep.mubr.f32.mxu0 %v1034_v15  ;;  %v9250_v15 = vld [vmem:[%s17379_s1 + $0x140] sm:$0xff] }
  0x5c   : > { %10488 = vmatmul.mubr.f32.gmra.mrb[22].mxu0 %v1035_v19  ;;  %v9251_v19 = vld [vmem:[%s17379_s1 + $0x148] sm:$0xff] }
  0x5d   : > { %10490 = vmatprep.mubr.f32.mxu0 %v1036_v20  ;;  %v1352_v20 = vld [vmem:[#allocation2 + $0x39] sm:$0xff] }
  0x60   : > { %10491 = vmatmul.mubr.f32.gmra.mrb[24].mxu0 %v1037_v30  ;;  %v1353_v30 = vld [vmem:[#allocation2 + $0x41] sm:$0xff] }
  0x61   : > { %10493 = vmatprep.mubr.f32.mxu0 %v1038_v34  ;;  %v12050_v34 = vpack.c.bf16 %v9251_v19, %v9250_v15  ;;  %v1367_v15 = vld [vmem:[#allocation2 + $0xb1] sm:$0xff]  ;;  %v1368_v19 = vld [vmem:[#allocation2 + $0xb9] sm:$0xff] }
  0x64   : > { %10494 = vmatmul.mubr.f32.gmra.mrb[26].mxu0 %v1039_v35  ;;  %v9252_v35 = vld [vmem:[%s17379_s1 + $0x150] sm:$0xff] }
  0x65   : > { %10496 = vmatprep.mubr.f32.mxu0 %v1040_v37  ;;  %v9253_v37 = vld [vmem:[%s17379_s1 + $0x158] sm:$0xff] }
  0x68   : > { %10497 = vmatmul.mubr.f32.gmra.mrb[28].mxu0 %v1041_v38  ;;  %v1354_v38 = vld [vmem:[#allocation2 + $0x49] sm:$0xff] }
  0x69   : > { %10499 = vmatprep.mubr.f32.mxu0 %v1042_v39  ;;  %v1355_v39 = vld [vmem:[#allocation2 + $0x51] sm:$0xff] }
  0x6c   : > { %10500 = vmatmul.mubr.f32.gmra.mrb[30].mxu0 %v1043_v40  ;;  %v12054_v40 = vpack.c.bf16 %v9253_v37, %v9252_v35  ;;  %v1372_v35 = vld [vmem:[#allocation2 + $0xd9] sm:$0xff]  ;;  %v1373_v37 = vld [vmem:[#allocation2 + $0xe1] sm:$0xff] }
  0x6d   : > { %10502 = vmatprep.mubr.f32.mxu0 %v1044_v41  ;;  %v9254_v41 = vld [vmem:[%s17379_s1 + $0x160] sm:$0xff] }
  0x70   : > { %10503 = vmatmul.mubr.f32.gmra.mrb[32].mxu0 %v1045_v42  ;;  %v9255_v42 = vld [vmem:[%s17379_s1 + $0x168] sm:$0xff] }
  0x71   : > { %10505 = vmatprep.mubr.f32.mxu0 %v1046_v45  ;;  %v1356_v45 = vld [vmem:[#allocation2 + $0x59] sm:$0xff] }
  0x74   : > { %10506 = vmatmul.mubr.f32.gmra.mrb[34].mxu0 %v1047_v46  ;;  %v1357_v46 = vld [vmem:[#allocation2 + $0x61] sm:$0xff] }
  0x75   : > { %10540 = vmatprep.mubr.f32.mxu0 %v1345_v47  ;;  %v12058_v47 = vpack.c.bf16 %v9255_v42, %v9254_v41  ;;  %v1377_v41 = vld [vmem:[#allocation2 + $0x101] sm:$0xff]  ;;  %v1378_v42 = vld [vmem:[#allocation2 + $0x109] sm:$0xff] }
  0x78   : > { %10541 = vmatmul.mubr.f32.vlgmr.msra.gmra.mrb[0].mxu0 %v1346_v60  ;;  %v1358_v60 = vld [vmem:[#allocation2 + $0x69] sm:$0xff] }
  0x79   : > { %12037 = vmatpush3.bf16.msra.mxu0 %v12034_v7  ;;  %10543 = vmatprep.mubr.f32.mxu0 %v1347_v0  ;;  %v12046_v7 = vpack.c.bf16 %v9249_v10, %v9248_v9  ;;  %v1359_v0 = vld [vmem:[#allocation2 + $0x71] sm:$0xff]  ;;  %v1362_v9 = vld [vmem:[#allocation2 + $0x89] sm:$0xff] }
  0x7a   : > { %12039 = vmatprep.subr.bf16.mxu0 %v12038_v1  ;;  %v1363_v10 = vld [vmem:[#allocation2 + $0x91] sm:$0xff] }
  0x7c   : > { %10544 = vmatmul.mubr.f32.gmra.mrb[2].mxu0 %v1348_v4  ;;  %v1360_v4 = vld [vmem:[#allocation2 + $0x79] sm:$0xff] }
  0x7d   : > { %10546 = vmatprep.mubr.f32.mxu0 %v1349_v6  ;;  %12041 = vmatpush3.bf16.msra.mxu0 %v12038_v1  ;;  %v12062_v1 = vpack.c.bf16 %v9257_v57, %v9256_v56  ;;  %v1361_v6 = vld [vmem:[#allocation2 + $0x81] sm:$0xff]  ;;  %v9260_v56 = vld [vmem:[%s17379_s1 + $0x190] sm:$0xff]  ;;  %v9261_v57 = vld [vmem:[%s17379_s1 + $0x198] sm:$0xff] }
  0x7e   : > { %12043 = vmatprep.subr.bf16.mxu0 %v12042_v8 }
  0x80   : > { %10547 = vmatmul.mubr.f32.gmra.mrb[4].mxu0 %v1350_v11  ;;  %v1364_v11 = vld [vmem:[#allocation2 + $0x99] sm:$0xff] }
  0x81   : > { %10549 = vmatprep.mubr.f32.mxu0 %v1351_v5  ;;  %12045 = vmatpush3.bf16.msra.mxu0 %v12042_v8  ;;  %v12066_v8 = vpack.c.bf16 %v9259_v3, %v9258_v2  ;;  %v1365_v5 = vld [vmem:[#allocation2 + $0xa1] sm:$0xff] }
  0x82   : > { %12047 = vmatprep.subr.bf16.mxu0 %v12046_v7  ;;  %v9263_v2 = vld [vmem:[%s17379_s1 + $0x1a8] sm:$0xff] }
  0x84   : > { %10550 = vmatmul.mubr.f32.gmra.mrb[6].mxu0 %v1352_v20  ;;  %v1369_v20 = vld [vmem:[#allocation2 + $0xc1] sm:$0xff] }
  0x85   : > { %10552 = vmatprep.mubr.f32.mxu0 %v1353_v30  ;;  %12049 = vmatpush3.bf16.msra.mxu0 %v12046_v7  ;;  %v1366_v7 = vld [vmem:[#allocation2 + $0xa9] sm:$0xff] }
  0x86   : > { %12051 = vmatprep.subr.bf16.mxu0 %v12050_v34  ;;  %v1370_v30 = vld [vmem:[#allocation2 + $0xc9] sm:$0xff] }
  0x88   : > { %10553 = vmatmul.mubr.f32.gmra.mrb[8].mxu0 %v1354_v38  ;;  %v1374_v38 = vld [vmem:[#allocation2 + $0xe9] sm:$0xff] }
  0x89   : > { %10555 = vmatprep.mubr.f32.mxu0 %v1355_v39  ;;  %12053 = vmatpush3.bf16.msra.mxu0 %v12050_v34  ;;  %v1371_v34 = vld [vmem:[#allocation2 + $0xd1] sm:$0xff] }
  0x8a   : > { %12055 = vmatprep.subr.bf16.mxu0 %v12054_v40  ;;  %v1375_v39 = vld [vmem:[#allocation2 + $0xf1] sm:$0xff] }
  0x8c   : > { %10556 = vmatmul.mubr.f32.gmra.mrb[10].mxu0 %v1356_v45  ;;  %v1379_v45 = vld [vmem:[#allocation2 + $0x111] sm:$0xff] }
  0x8d   : > { %10558 = vmatprep.mubr.f32.mxu0 %v1357_v46  ;;  %12057 = vmatpush3.bf16.msra.mxu0 %v12054_v40  ;;  %v1376_v40 = vld [vmem:[#allocation2 + $0xf9] sm:$0xff] }
  0x8e   : > { %12059 = vmatprep.subr.bf16.mxu0 %v12058_v47  ;;  %v1380_v46 = vld [vmem:[#allocation2 + $0x119] sm:$0xff] }
  0x90   : > { %10559 = vmatmul.mubr.f32.gmra.mrb[12].mxu0 %v1358_v60  ;;  %v1752_v60 = vld [vmem:[#allocation2 + $0xa] sm:$0xff] }
  0x91   : > { %10561 = vmatprep.mubr.f32.mxu0 %v1359_v0  ;;  %12061 = vmatpush3.bf16.msra.mxu0 %v12058_v47  ;;  %v1751_v47 = vld [vmem:[#allocation2 + $0x2] sm:$0xff]  ;;  %v12070_v0 = vpack.c.bf16 %v9261_v57, %v9260_v56 }
  0x92   : > { %12063 = vmatprep.subr.bf16.mxu0 %v12062_v1  ;;  %v9278_v56 = vld [vmem:[%s17379_s1 + $0x220] sm:$0xff]  ;;  %v9279_v57 = vld [vmem:[%s17379_s1 + $0x228] sm:$0xff] }
  0x94   : > { %10562 = vmatmul.mubr.f32.gmra.mrb[14].mxu0 %v1360_v4  ;;  %v9264_v4 = vld [vmem:[%s17379_s1 + $0x1b0] sm:$0xff] }
  0x95   : > { %10564 = vmatprep.mubr.f32.mxu0 %v1361_v6  ;;  %12065 = vmatpush3.bf16.msra.mxu0 %v12062_v1  ;;  %v9262_v1 = vld [vmem:[%s17379_s1 + $0x1a0] sm:$0xff]  ;;  %v9265_v6 = vld [vmem:[%s17379_s1 + $0x1b8] sm:$0xff] }
  0x96   : > { %12067 = vmatprep.subr.bf16.mxu0 %v12066_v8  ;;  %v12074_v3 = vpack.c.bf16 %v9263_v2, %v9262_v1  ;;  %v9283_v1 = vld [vmem:[%s17379_s1 + $0x248] sm:$0xff]  ;;  %v9285_v2 = vld [vmem:[%s17379_s1 + $0x258] sm:$0xff] }
  0x98   : > { %10565 = vmatmul.mubr.f32.gmra.mrb[16].mxu0 %v1362_v9  ;;  %v9266_v9 = vld [vmem:[%s17379_s1 + $0x1c0] sm:$0xff] }
  0x99   : > { %10567 = vmatprep.mubr.f32.mxu0 %v1363_v10  ;;  %v9267_v10 = vld [vmem:[%s17379_s1 + $0x1c8] sm:$0xff] }
  0x9c   : > { %10568 = vmatmul.mubr.f32.gmra.mrb[18].mxu0 %v1364_v11  ;;  %v13621_v11 = vld [vmem:[%s13327_s23 + $0x110] sm:$0xff] }
  0x9d   : > { %10570 = vmatprep.mubr.f32.mxu0 %v1365_v5  ;;  %1010 = vst [vmem:[#allocation2 + $0x122] sm:$0xff] %v13621_v11  ;;  %v13626_v5 = vld [vmem:[%s13327_s23 + $0x118] sm:$0xff] }
  0x9e   : > { %1011 = vst [vmem:[#allocation2 + $0x12a] sm:$0xff] %v13626_v5 }
  0xa0   : > { %10571 = vmatmul.mubr.f32.gmra.mrb[20].mxu0 %v1366_v7  ;;  %v12082_v7 = vpack.c.bf16 %v9267_v10, %v9266_v9  ;;  %v2572_v9 = vld [vmem:[#allocation2 + $0x5b] sm:$0xff]  ;;  %v2573_v10 = vld [vmem:[#allocation2 + $0x63] sm:$0xff] }
  0xa1   : > { %10573 = vmatprep.mubr.f32.mxu0 %v1367_v15  ;;  %v9268_v15 = vld [vmem:[%s17379_s1 + $0x1d0] sm:$0xff] }
  0xa4   : > { %10574 = vmatmul.mubr.f32.gmra.mrb[22].mxu0 %v1368_v19  ;;  %v9269_v19 = vld [vmem:[%s17379_s1 + $0x1d8] sm:$0xff] }
  0xa5   : > { %10576 = vmatprep.mubr.f32.mxu0 %v1369_v20  ;;  %v12086_v20 = vpack.c.bf16 %v9269_v19, %v9268_v15  ;;  %v2574_v15 = vld [vmem:[#allocation2 + $0x6b] sm:$0xff]  ;;  %v2575_v19 = vld [vmem:[#allocation2 + $0x73] sm:$0xff] }
  0xa8   : > { %10577 = vmatmul.mubr.f32.gmra.mrb[24].mxu0 %v1370_v30  ;;  %v9270_v30 = vld [vmem:[%s17379_s1 + $0x1e0] sm:$0xff] }
  0xa9   : > { %10579 = vmatprep.mubr.f32.mxu0 %v1371_v34  ;;  %v9271_v34 = vld [vmem:[%s17379_s1 + $0x1e8] sm:$0xff] }
  0xac   : > { %10580 = vmatmul.mubr.f32.gmra.mrb[26].mxu0 %v1372_v35  ;;  %v12090_v35 = vpack.c.bf16 %v9271_v34, %v9270_v30  ;;  %v9304_v30 = vld [vmem:[%s17379_s1 + $0x2f0] sm:$0xff]  ;;  %v9305_v34 = vld [vmem:[%s17379_s1 + $0x2f8] sm:$0xff] }
  0xad   : > { %10582 = vmatprep.mubr.f32.mxu0 %v1373_v37  ;;  %v9272_v37 = vld [vmem:[%s17379_s1 + $0x1f0] sm:$0xff] }
  0xb0   : > { %10583 = vmatmul.mubr.f32.gmra.mrb[28].mxu0 %v1374_v38  ;;  %v9273_v38 = vld [vmem:[%s17379_s1 + $0x1f8] sm:$0xff] }
  0xb1   : > { %10585 = vmatprep.mubr.f32.mxu0 %v1375_v39  ;;  %v12094_v39 = vpack.c.bf16 %v9273_v38, %v9272_v37  ;;  %v2577_v37 = vld [vmem:[#allocation2 + $0x83] sm:$0xff]  ;;  %v12158_v38 = vpack.c.bf16 %v9305_v34, %v9304_v30 }
  0xb2   : > { %v9322_v34 = vld [vmem:[%s17379_s1 + $0x380] sm:$0xff] }
  0xb4   : > { %10586 = vmatmul.mubr.f32.gmra.mrb[30].mxu0 %v1376_v40  ;;  %v9274_v40 = vld [vmem:[%s17379_s1 + $0x200] sm:$0xff] }
  0xb5   : > { %10588 = vmatprep.mubr.f32.mxu0 %v1377_v41  ;;  %v9275_v41 = vld [vmem:[%s17379_s1 + $0x208] sm:$0xff] }
  0xb8   : > { %10589 = vmatmul.mubr.f32.gmra.mrb[32].mxu0 %v1378_v42  ;;  %v12098_v42 = vpack.c.bf16 %v9275_v41, %v9274_v40  ;;  %v9307_v40 = vld [vmem:[%s17379_s1 + $0x308] sm:$0xff] }
  0xb9   : > { %10591 = vmatprep.mubr.f32.mxu0 %v1379_v45  ;;  %v9276_v45 = vld [vmem:[%s17379_s1 + $0x210] sm:$0xff] }
  0xba   : > { %v2578_v41 = vld [vmem:[#allocation2 + $0x8b] sm:$0xff] }
  0xbc   : > { %10592 = vmatmul.mubr.f32.gmra.mrb[34].mxu0 %v1380_v46  ;;  %v9277_v46 = vld [vmem:[%s17379_s1 + $0x218] sm:$0xff] }
  0xbd   : > { %10626 = vmatprep.mubr.f32.mxu0 %v1751_v47  ;;  %v12102_v47 = vpack.c.bf16 %v9277_v46, %v9276_v45  ;;  %v2580_v46 = vld [vmem:[#allocation2 + $0x9b] sm:$0xff] }
  0xc0   : > { %10627 = vmatmul.mubr.f32.vlgmr.msra.gmra.mrb[0].mxu0 %v1752_v60  ;;  %v12106_v60 = vpack.c.bf16 %v9279_v57, %v9278_v56  ;;  %v2582_v56 = vld [vmem:[#allocation2 + $0xab] sm:$0xff]  ;;  %v2583_v57 = vld [vmem:[#allocation2 + $0xb3] sm:$0xff] }
  0xc1   : > { %12069 = vmatpush3.bf16.msra.mxu0 %v12066_v8  ;;  %10629 = vmatprep.mubr.f32.mxu0 %v13330_v12  ;;  %v12078_v8 = vpack.c.bf16 %v9265_v6, %v9264_v4  ;;  %v9289_v4 = vld [vmem:[%s17379_s1 + $0x278] sm:$0xff]  ;;  %v9291_v6 = vld [vmem:[%s17379_s1 + $0x288] sm:$0xff] }
  0xc2   : > { %12071 = vmatprep.subr.bf16.mxu0 %v12070_v0 }
  0xc4   : > { %10630 = vmatmul.mubr.f32.gmra.mrb[2].mxu0 %v13333_v13 }
  0xc5   : > { %10632 = vmatprep.mubr.f32.mxu0 %v13336_v14  ;;  %12073 = vmatpush3.bf16.msra.mxu0 %v12070_v0  ;;  %v9281_v0 = vld [vmem:[%s17379_s1 + $0x238] sm:$0xff] }
  0xc6   : > { %12075 = vmatprep.subr.bf16.mxu0 %v12074_v3 }
  0xc8   : > { %10633 = vmatmul.mubr.f32.gmra.mrb[4].mxu0 %v13345_v16 }
  0xc9   : > { %10635 = vmatprep.mubr.f32.mxu0 %v13348_v17  ;;  %12077 = vmatpush3.bf16.msra.mxu0 %v12074_v3  ;;  %v9287_v3 = vld [vmem:[%s17379_s1 + $0x268] sm:$0xff] }
  0xca   : > { %12079 = vmatprep.subr.bf16.mxu0 %v12078_v8 }
  0xcc   : > { %10636 = vmatmul.mubr.f32.gmra.mrb[6].mxu0 %v13351_v18 }
  0xcd   : > { %10638 = vmatprep.mubr.f32.mxu0 %v13360_v21  ;;  %12081 = vmatpush3.bf16.msra.mxu0 %v12078_v8  ;;  %v9301_v8 = vld [vmem:[%s17379_s1 + $0x2d8] sm:$0xff] }
  0xce   : > { %12083 = vmatprep.subr.bf16.mxu0 %v12082_v7 }
  0xd0   : > { %10639 = vmatmul.mubr.f32.gmra.mrb[8].mxu0 %v13363_v22 }
  0xd1   : > { %10641 = vmatprep.mubr.f32.mxu0 %v13368_v23  ;;  %12085 = vmatpush3.bf16.msra.mxu0 %v12082_v7  ;;  %v9303_v7 = vld [vmem:[%s17379_s1 + $0x2e8] sm:$0xff] }
  0xd2   : > { %12087 = vmatprep.subr.bf16.mxu0 %v12086_v20 }
  0xd4   : > { %10642 = vmatmul.mubr.f32.gmra.mrb[10].mxu0 %v13371_v24 }
  0xd5   : > { %10644 = vmatprep.mubr.f32.mxu0 %v13374_v25  ;;  %12089 = vmatpush3.bf16.msra.mxu0 %v12086_v20 }
  0xd6   : > { %12091 = vmatprep.subr.bf16.mxu0 %v12090_v35 }
  0xd8   : > { %10645 = vmatmul.mubr.f32.gmra.mrb[12].mxu0 %v13380_v26 }
  0xd9   : > { %10647 = vmatprep.mubr.f32.mxu0 %v13383_v27  ;;  %12093 = vmatpush3.bf16.msra.mxu0 %v12090_v35  ;;  %v2576_v35 = vld [vmem:[#allocation2 + $0x7b] sm:$0xff] }
  0xda   : > { %12095 = vmatprep.subr.bf16.mxu0 %v12094_v39 }
  0xdc   : > { %10648 = vmatmul.mubr.f32.gmra.mrb[14].mxu0 %v13388_v28 }
  0xdd   : > { %10650 = vmatprep.mubr.f32.mxu0 %v13391_v29  ;;  %12097 = vmatpush3.bf16.msra.mxu0 %v12094_v39  ;;  %v9306_v39 = vld [vmem:[%s17379_s1 + $0x300] sm:$0xff] }
  0xde   : > { %12099 = vmatprep.subr.bf16.mxu0 %v12098_v42  ;;  %v12162_v45 = vpack.c.bf16 %v9307_v40, %v9306_v39  ;;  %v13907_v40 = vld [vmem:[#allocation2 + $0x9c] sm:$0xff] }
  0xe0   : > { %10651 = vmatmul.mubr.f32.gmra.mrb[16].mxu0 %v13396_v31 }
  0xe1   : > { %10653 = vmatprep.mubr.f32.mxu0 %v13399_v32 }
  0xe4   : > { %10654 = vmatmul.mubr.f32.gmra.mrb[18].mxu0 %v13402_v33 }
  0xe5   : > { %10656 = vmatprep.mubr.f32.mxu0 %v13414_v36 }
  0xe8   : > { %10657 = vmatmul.mubr.f32.gmra.mrb[20].mxu0 %v13430_v43 }
  0xe9   : > { %10659 = vmatprep.mubr.f32.mxu0 %v13433_v44 }
  0xec   : > { %10660 = vmatmul.mubr.f32.gmra.mrb[22].mxu0 %v13444_v48 }
  0xed   : > { %10662 = vmatprep.mubr.f32.mxu0 %v13448_v49 }
  0xf0   : > { %10663 = vmatmul.mubr.f32.gmra.mrb[24].mxu0 %v13451_v50 }
  0xf1   : > { %10665 = vmatprep.mubr.f32.mxu0 %v13454_v51 }
  0xf4   : > { %10666 = vmatmul.mubr.f32.gmra.mrb[26].mxu0 %v13460_v52 }
  0xf5   : > { %10668 = vmatprep.mubr.f32.mxu0 %v13464_v53 }
  0xf8   : > { %10669 = vmatmul.mubr.f32.gmra.mrb[28].mxu0 %v13467_v54 }
  0xf9   : > { %10671 = vmatprep.mubr.f32.mxu0 %v13470_v55 }
  0xfc   : > { %10672 = vmatmul.mubr.f32.gmra.mrb[30].mxu0 %v13479_v58 }
  0xfd   : > { %10674 = vmatprep.mubr.f32.mxu0 %v13482_v59 }
 0x100   : > { %10675 = vmatmul.mubr.f32.gmra.mrb[32].mxu0 %v13490_v61 }
 0x101   : > { %10677 = vmatprep.mubr.f32.mxu0 %v13493_v62 }
 0x104   : > { %10678 = vmatmul.mubr.f32.gmra.mrb[34].mxu0 %v13498_v63 }
 0x105   : > { %10712 = vmatprep.mubr.f32.mxu0 %v13330_v12  ;;  %v9280_v12 = vld [vmem:[%s17379_s1 + $0x230] sm:$0xff] }
 0x108   : > { %10713 = vmatmul.mubr.f32.vlgmr.msra.gmra.mrb[0].mxu0 %v13333_v13  ;;  %v12110_v13 = vpack.c.bf16 %v9281_v0, %v9280_v12  ;;  %v2585_v12 = vld [vmem:[#allocation2 + $0xc3] sm:$0xff]  ;;  %v2586_v0 = vld [vmem:[#allocation2 + $0xcb] sm:$0xff] }
 0x109   : > { %12101 = vmatpush3.bf16.msra.mxu0 %v12098_v42  ;;  %10715 = vmatprep.mubr.f32.mxu0 %v13336_v14  ;;  %v9282_v14 = vld [vmem:[%s17379_s1 + $0x240] sm:$0xff]  ;;  %v2579_v42 = vld [vmem:[#allocation2 + $0x93] sm:$0xff] }
 0x10a   : > { %12103 = vmatprep.subr.bf16.mxu0 %v12102_v47 }
 0x10c   : > { %10716 = vmatmul.mubr.f32.gmra.mrb[2].mxu0 %v13345_v16  ;;  %v12114_v16 = vpack.c.bf16 %v9283_v1, %v9282_v14  ;;  %v2588_v14 = vld [vmem:[#allocation2 + $0xdb] sm:$0xff]  ;;  %v2589_v1 = vld [vmem:[#allocation2 + $0xe3] sm:$0xff] }
 0x10d   : > { %10718 = vmatprep.mubr.f32.mxu0 %v13348_v17  ;;  %12105 = vmatpush3.bf16.msra.mxu0 %v12102_v47  ;;  %v9284_v17 = vld [vmem:[%s17379_s1 + $0x250] sm:$0xff]  ;;  %v2581_v47 = vld [vmem:[#allocation2 + $0xa3] sm:$0xff] }
 0x10e   : > { %12107 = vmatprep.subr.bf16.mxu0 %v12106_v60 }
 0x110   : > { %10719 = vmatmul.mubr.f32.gmra.mrb[4].mxu0 %v13351_v18  ;;  %v12118_v18 = vpack.c.bf16 %v9285_v2, %v9284_v17  ;;  %v2591_v17 = vld [vmem:[#allocation2 + $0xf3] sm:$0xff]  ;;  %v2592_v2 = vld [vmem:[#allocation2 + $0xfb] sm:$0xff] }
 0x111   : > { %10721 = vmatprep.mubr.f32.mxu0 %v13360_v21  ;;  %12109 = vmatpush3.bf16.msra.mxu0 %v12106_v60  ;;  %v9286_v21 = vld [vmem:[%s17379_s1 + $0x260] sm:$0xff] }
 0x112   : > { %12111 = vmatprep.subr.bf16.mxu0 %v12110_v13  ;;  %v2584_v60 = vld [vmem:[#allocation2 + $0xbb] sm:$0xff] }
 0x114   : > { %10722 = vmatmul.mubr.f32.gmra.mrb[6].mxu0 %v13363_v22  ;;  %v12122_v22 = vpack.c.bf16 %v9287_v3, %v9286_v21  ;;  %v2594_v21 = vld [vmem:[#allocation2 + $0x10b] sm:$0xff]  ;;  %v2595_v3 = vld [vmem:[#allocation2 + $0x113] sm:$0xff] }
 0x115   : > { %10724 = vmatprep.mubr.f32.mxu0 %v13368_v23  ;;  %12113 = vmatpush3.bf16.msra.mxu0 %v12110_v13  ;;  %v9288_v23 = vld [vmem:[%s17379_s1 + $0x270] sm:$0xff] }
 0x116   : > { %12115 = vmatprep.subr.bf16.mxu0 %v12114_v16  ;;  %v2587_v13 = vld [vmem:[#allocation2 + $0xd3] sm:$0xff] }
 0x118   : > { %10725 = vmatmul.mubr.f32.gmra.mrb[8].mxu0 %v13371_v24  ;;  %v12126_v24 = vpack.c.bf16 %v9289_v4, %v9288_v23  ;;  %v2597_v23 = vld [vmem:[#allocation2 + $0x123] sm:$0xff]  ;;  %v2598_v4 = vld [vmem:[#allocation2 + $0x12b] sm:$0xff] }
 0x119   : > { %10727 = vmatprep.mubr.f32.mxu0 %v13374_v25  ;;  %12117 = vmatpush3.bf16.msra.mxu0 %v12114_v16  ;;  %v9290_v25 = vld [vmem:[%s17379_s1 + $0x280] sm:$0xff]  ;;  %v2590_v16 = vld [vmem:[#allocation2 + $0xeb] sm:$0xff] }
 0x11a   : > { %12119 = vmatprep.subr.bf16.mxu0 %v12118_v18 }
 0x11c   : > { %10728 = vmatmul.mubr.f32.gmra.mrb[10].mxu0 %v13380_v26  ;;  %v12130_v26 = vpack.c.bf16 %v9291_v6, %v9290_v25  ;;  %v9308_v25 = vld [vmem:[%s17379_s1 + $0x310] sm:$0xff]  ;;  %v9309_v6 = vld [vmem:[%s17379_s1 + $0x318] sm:$0xff] }
 0x11d   : > { %10730 = vmatprep.mubr.f32.mxu0 %v13383_v27  ;;  %12121 = vmatpush3.bf16.msra.mxu0 %v12118_v18  ;;  %v9056_v27 = vld [vmem:[#allocation2 + $0x13] sm:$0xff]  ;;  %v2593_v18 = vld [vmem:[#allocation2 + $0x103] sm:$0xff] }
 0x11e   : > { %12123 = vmatprep.subr.bf16.mxu0 %v12122_v22 }
 0x120   : > { %10731 = vmatmul.mubr.f32.gmra.mrb[12].mxu0 %v13388_v28  ;;  %v9292_v28 = vld [vmem:[%s17379_s1 + $0x290] sm:$0xff] }
 0x121   : > { %10733 = vmatprep.mubr.f32.mxu0 %v13391_v29  ;;  %12125 = vmatpush3.bf16.msra.mxu0 %v12122_v22  ;;  %v9293_v29 = vld [vmem:[%s17379_s1 + $0x298] sm:$0xff] }
 0x122   : > { %12127 = vmatprep.subr.bf16.mxu0 %v12126_v24  ;;  %v2596_v22 = vld [vmem:[#allocation2 + $0x11b] sm:$0xff] }
 0x124   : > { %10734 = vmatmul.mubr.f32.gmra.mrb[14].mxu0 %v13396_v31  ;;  %v9057_v31 = vld [vmem:[#allocation2 + $0x1b] sm:$0xff] }
 0x125   : > { %10736 = vmatprep.mubr.f32.mxu0 %v13399_v32  ;;  %12129 = vmatpush3.bf16.msra.mxu0 %v12126_v24  ;;  %v9058_v32 = vld [vmem:[#allocation2 + $0x23] sm:$0xff]  ;;  %v2969_v24 = vld [vmem:[#allocation2 + $0x14] sm:$0xff] }
 0x126   : > { %12131 = vmatprep.subr.bf16.mxu0 %v12130_v26 }
 0x128   : > { %10737 = vmatmul.mubr.f32.gmra.mrb[16].mxu0 %v13402_v33  ;;  %v12134_v33 = vpack.c.bf16 %v9293_v29, %v9292_v28  ;;  %v12166_v28 = vpack.c.bf16 %v9309_v6, %v9308_v25  ;;  %v9310_v29 = vld [vmem:[%s17379_s1 + $0x320] sm:$0xff]  ;;  %v9328_v6 = vld [vmem:[%s17379_s1 + $0x3b0] sm:$0xff] }
 0x129   : > { %10739 = vmatprep.mubr.f32.mxu0 %v13414_v36  ;;  %v9294_v36 = vld [vmem:[%s17379_s1 + $0x2a0] sm:$0xff] }
 0x12c   : > { %10740 = vmatmul.mubr.f32.gmra.mrb[18].mxu0 %v13430_v43  ;;  %v9295_v43 = vld [vmem:[%s17379_s1 + $0x2a8] sm:$0xff] }
 0x12d   : > { %10742 = vmatprep.mubr.f32.mxu0 %v13433_v44  ;;  %v9059_v44 = vld [vmem:[#allocation2 + $0x2b] sm:$0xff] }
 0x130   : > { %10743 = vmatmul.mubr.f32.gmra.mrb[20].mxu0 %v13444_v48  ;;  %v9060_v48 = vld [vmem:[#allocation2 + $0x33] sm:$0xff] }
 0x131   : > { %10745 = vmatprep.mubr.f32.mxu0 %v13448_v49  ;;  %v12138_v49 = vpack.c.bf16 %v9295_v43, %v9294_v36  ;;  %v9312_v43 = vld [vmem:[%s17379_s1 + $0x330] sm:$0xff] }
 0x134   : > { %10746 = vmatmul.mubr.f32.gmra.mrb[22].mxu0 %v13451_v50  ;;  %v9296_v50 = vld [vmem:[%s17379_s1 + $0x2b0] sm:$0xff] }
 0x135   : > { %10748 = vmatprep.mubr.f32.mxu0 %v13454_v51  ;;  %v9297_v51 = vld [vmem:[%s17379_s1 + $0x2b8] sm:$0xff] }
 0x138   : > { %10749 = vmatmul.mubr.f32.gmra.mrb[24].mxu0 %v13460_v52  ;;  %v9061_v52 = vld [vmem:[#allocation2 + $0x3b] sm:$0xff] }
 0x139   : > { %10751 = vmatprep.mubr.f32.mxu0 %v13464_v53  ;;  %v9062_v53 = vld [vmem:[#allocation2 + $0x43] sm:$0xff] }
 0x13c   : > { %10752 = vmatmul.mubr.f32.gmra.mrb[26].mxu0 %v13467_v54  ;;  %v12142_v54 = vpack.c.bf16 %v9297_v51, %v9296_v50  ;;  %v9314_v51 = vld [vmem:[%s17379_s1 + $0x340] sm:$0xff] }
 0x13d   : > { %10754 = vmatprep.mubr.f32.mxu0 %v13470_v55  ;;  %v9298_v55 = vld [vmem:[%s17379_s1 + $0x2c0] sm:$0xff] }
 0x140   : > { %10755 = vmatmul.mubr.f32.gmra.mrb[28].mxu0 %v13479_v58  ;;  %v9299_v58 = vld [vmem:[%s17379_s1 + $0x2c8] sm:$0xff] }
 0x141   : > { %10757 = vmatprep.mubr.f32.mxu0 %v13482_v59  ;;  %v9063_v59 = vld [vmem:[#allocation2 + $0x4b] sm:$0xff] }
 0x144   : > { %10758 = vmatmul.mubr.f32.gmra.mrb[30].mxu0 %v13490_v61  ;;  %v9064_v61 = vld [vmem:[#allocation2 + $0x53] sm:$0xff] }
 0x145   : > { %10760 = vmatprep.mubr.f32.mxu0 %v13493_v62  ;;  %v12146_v62 = vpack.c.bf16 %v9299_v58, %v9298_v55  ;;  %v9316_v58 = vld [vmem:[%s17379_s1 + $0x350] sm:$0xff] }
 0x148   : > { %10761 = vmatmul.mubr.f32.gmra.mrb[32].mxu0 %v13498_v63  ;;  %v9300_v63 = vld [vmem:[%s17379_s1 + $0x2d0] sm:$0xff] }
 0x149   : > { %10763 = vmatprep.mubr.f32.mxu0 %v13621_v11  ;;  %v12150_v11 = vpack.c.bf16 %v9301_v8, %v9300_v63  ;;  %v9318_v8 = vld [vmem:[%s17379_s1 + $0x360] sm:$0xff] }
 0x14c   : > { %10764 = vmatmul.mubr.f32.gmra.mrb[34].mxu0 %v13626_v5  ;;  %v9302_v5 = vld [vmem:[%s17379_s1 + $0x2e0] sm:$0xff] }
 0x14d   : > { %10798 = vmatprep.mubr.f32.mxu0 %v9056_v27  ;;  %v12154_v20 = vpack.c.bf16 %v9303_v7, %v9302_v5  ;;  %v13820_v27 = vld [vmem:[#allocation2 + $0x24] sm:$0xff]  ;;  %v9320_v7 = vld [vmem:[%s17379_s1 + $0x370] sm:$0xff] }
 0x150   : > { %10799 = vmatmul.mubr.f32.vlgmr.msra.gmra.mrb[0].mxu0 %v9057_v31  ;;  %v9311_v31 = vld [vmem:[%s17379_s1 + $0x328] sm:$0xff] }
 0x151   : > { %12133 = vmatpush3.bf16.msra.mxu0 %v12130_v26  ;;  %10801 = vmatprep.mubr.f32.mxu0 %v9058_v32  ;;  %v2970_v26 = vld [vmem:[#allocation2 + $0x1c] sm:$0xff]  ;;  %v13829_v32 = vld [vmem:[#allocation2 + $0x2c] sm:$0xff]  ;;  %v12170_v36 = vpack.c.bf16 %v9311_v31, %v9310_v29 }
 0x152   : > { %12135 = vmatprep.subr.bf16.mxu0 %v12134_v33  ;;  %v9331_v29 = vld [vmem:[%s17379_s1 + $0x3c8] sm:$0xff] }
 0x154   : > { %10802 = vmatmul.mubr.f32.gmra.mrb[2].mxu0 %v9059_v44  ;;  %v9313_v44 = vld [vmem:[%s17379_s1 + $0x338] sm:$0xff] }
 0x155   : > { %10804 = vmatprep.mubr.f32.mxu0 %v9060_v48  ;;  %12137 = vmatpush3.bf16.msra.mxu0 %v12134_v33  ;;  %v13831_v33 = vld [vmem:[#allocation2 + $0x34] sm:$0xff]  ;;  %v13841_v48 = vld [vmem:[#allocation2 + $0x3c] sm:$0xff]  ;;  %v12174_v50 = vpack.c.bf16 %v9313_v44, %v9312_v43  ;;  %v9335_v44 = vld [vmem:[%s17379_s1 + $0x3e8] sm:$0xff] }
 0x156   : > { %12139 = vmatprep.subr.bf16.mxu0 %v12138_v49  ;;  %v9334_v43 = vld [vmem:[%s17379_s1 + $0x3e0] sm:$0xff] }
 0x158   : > { %10805 = vmatmul.mubr.f32.gmra.mrb[4].mxu0 %v9061_v52  ;;  %v9315_v52 = vld [vmem:[%s17379_s1 + $0x348] sm:$0xff] }
 0x159   : > { %10807 = vmatprep.mubr.f32.mxu0 %v9062_v53  ;;  %12141 = vmatpush3.bf16.msra.mxu0 %v12138_v49  ;;  %v13843_v49 = vld [vmem:[#allocation2 + $0x44] sm:$0xff]  ;;  %v13853_v53 = vld [vmem:[#allocation2 + $0x4c] sm:$0xff]  ;;  %v12178_v55 = vpack.c.bf16 %v9315_v52, %v9314_v51 }
 0x15a   : > { %12143 = vmatprep.subr.bf16.mxu0 %v12142_v54  ;;  %v9338_v52 = vld [vmem:[%s17379_s1 + $0x400] sm:$0xff] }
 0x15c   : > { %10808 = vmatmul.mubr.f32.gmra.mrb[6].mxu0 %v9063_v59  ;;  %v9317_v59 = vld [vmem:[%s17379_s1 + $0x358] sm:$0xff] }
 0x15d   : > { %10810 = vmatprep.mubr.f32.mxu0 %v9064_v61  ;;  %12145 = vmatpush3.bf16.msra.mxu0 %v12142_v54  ;;  %v13855_v54 = vld [vmem:[#allocation2 + $0x54] sm:$0xff]  ;;  %v13865_v61 = vld [vmem:[#allocation2 + $0x5c] sm:$0xff]  ;;  %v12182_v63 = vpack.c.bf16 %v9317_v59, %v9316_v58  ;;  %v3781_v59 = vld [vmem:[#allocation2 + $0x25] sm:$0xff] }
 0x15e   : > { %12147 = vmatprep.subr.bf16.mxu0 %v12146_v62  ;;  %v3410_v58 = vld [vmem:[#allocation2 + $0x13c] sm:$0xff] }
 0x160   : > { %10811 = vmatmul.mubr.f32.gmra.mrb[8].mxu0 %v2572_v9  ;;  %v9319_v9 = vld [vmem:[%s17379_s1 + $0x368] sm:$0xff] }
 0x161   : > { %10813 = vmatprep.mubr.f32.mxu0 %v2573_v10  ;;  %12149 = vmatpush3.bf16.msra.mxu0 %v12146_v62  ;;  %v13867_v62 = vld [vmem:[#allocation2 + $0x64] sm:$0xff]  ;;  %v13877_v10 = vld [vmem:[#allocation2 + $0x6c] sm:$0xff]  ;;  %v12186_v5 = vpack.c.bf16 %v9319_v9, %v9318_v8  ;;  %v3783_v8 = vld [vmem:[#allocation2 + $0x35] sm:$0xff] }
 0x162   : > { %12151 = vmatprep.subr.bf16.mxu0 %v12150_v11 }
 0x164   : > { %10814 = vmatmul.mubr.f32.gmra.mrb[10].mxu0 %v2574_v15  ;;  %v9321_v15 = vld [vmem:[%s17379_s1 + $0x378] sm:$0xff] }
 0x165   : > { %10816 = vmatprep.mubr.f32.mxu0 %v2575_v19  ;;  %12153 = vmatpush3.bf16.msra.mxu0 %v12150_v11  ;;  %v13879_v11 = vld [vmem:[#allocation2 + $0x74] sm:$0xff]  ;;  %v13889_v19 = vld [vmem:[#allocation2 + $0x7c] sm:$0xff]  ;;  %v12190_v30 = vpack.c.bf16 %v9321_v15, %v9320_v7  ;;  %v3785_v7 = vld [vmem:[#allocation2 + $0x45] sm:$0xff] }
 0x166   : > { %12155 = vmatprep.subr.bf16.mxu0 %v12154_v20 }
 0x168   : > { %10817 = vmatmul.mubr.f32.gmra.mrb[12].mxu0 %v2576_v35  ;;  %v9323_v35 = vld [vmem:[%s17379_s1 + $0x388] sm:$0xff] }
 0x169   : > { %10819 = vmatprep.mubr.f32.mxu0 %v2577_v37  ;;  %12157 = vmatpush3.bf16.msra.mxu0 %v12154_v20  ;;  %v13891_v20 = vld [vmem:[#allocation2 + $0x84] sm:$0xff]  ;;  %v13901_v37 = vld [vmem:[#allocation2 + $0x8c] sm:$0xff]  ;;  %v12194_v39 = vpack.c.bf16 %v9323_v35, %v9322_v34  ;;  %v3787_v34 = vld [vmem:[#allocation2 + $0x55] sm:$0xff] }
 0x16a   : > { %12159 = vmatprep.subr.bf16.mxu0 %v12158_v38 }
 0x16c   : > { %10820 = vmatmul.mubr.f32.gmra.mrb[14].mxu0 %v2578_v41  ;;  %v13909_v41 = vld [vmem:[#allocation2 + $0xa4] sm:$0xff] }
 0x16d   : > { %10822 = vmatprep.mubr.f32.mxu0 %v2579_v42  ;;  %12161 = vmatpush3.bf16.msra.mxu0 %v12158_v38  ;;  %v13903_v38 = vld [vmem:[#allocation2 + $0x94] sm:$0xff]  ;;  %v13913_v42 = vld [vmem:[#allocation2 + $0xac] sm:$0xff] }
 0x16e   : > { %12163 = vmatprep.subr.bf16.mxu0 %v12162_v45 }
 0x170   : > { %10823 = vmatmul.mubr.f32.gmra.mrb[16].mxu0 %v2580_v46  ;;  %v13919_v46 = vld [vmem:[#allocation2 + $0xbc] sm:$0xff] }
 0x171   : > { %10825 = vmatprep.mubr.f32.mxu0 %v2581_v47  ;;  %v13921_v47 = vld [vmem:[#allocation2 + $0xc4] sm:$0xff] }
 0x174   : > { %10826 = vmatmul.mubr.f32.gmra.mrb[18].mxu0 %v2582_v56  ;;  %v13925_v56 = vld [vmem:[#allocation2 + $0xcc] sm:$0xff] }
 0x175   : > { %10828 = vmatprep.mubr.f32.mxu0 %v2583_v57  ;;  %v13927_v57 = vld [vmem:[#allocation2 + $0xd4] sm:$0xff] }
 0x178   : > { %10829 = vmatmul.mubr.f32.gmra.mrb[20].mxu0 %v2584_v60  ;;  %v13931_v60 = vld [vmem:[#allocation2 + $0xdc] sm:$0xff] }
 0x179   : > { %10831 = vmatprep.mubr.f32.mxu0 %v2585_v12  ;;  %v13933_v12 = vld [vmem:[#allocation2 + $0xe4] sm:$0xff] }
 0x17c   : > { %10832 = vmatmul.mubr.f32.gmra.mrb[22].mxu0 %v2586_v0  ;;  %v13937_v0 = vld [vmem:[#allocation2 + $0xec] sm:$0xff] }
 0x17d   : > { %10834 = vmatprep.mubr.f32.mxu0 %v2587_v13  ;;  %v13939_v13 = vld [vmem:[#allocation2 + $0xf4] sm:$0xff] }
 0x180   : > { %10835 = vmatmul.mubr.f32.gmra.mrb[24].mxu0 %v2588_v14  ;;  %v13943_v14 = vld [vmem:[#allocation2 + $0xfc] sm:$0xff] }
 0x181   : > { %10837 = vmatprep.mubr.f32.mxu0 %v2589_v1  ;;  %v13945_v1 = vld [vmem:[#allocation2 + $0x104] sm:$0xff] }
 0x184   : > { %10838 = vmatmul.mubr.f32.gmra.mrb[26].mxu0 %v2590_v16  ;;  %v13949_v16 = vld [vmem:[#allocation2 + $0x10c] sm:$0xff] }
 0x185   : > { %10840 = vmatprep.mubr.f32.mxu0 %v2591_v17  ;;  %v13951_v17 = vld [vmem:[#allocation2 + $0x114] sm:$0xff] }
 0x188   : > { %10841 = vmatmul.mubr.f32.gmra.mrb[28].mxu0 %v2592_v2  ;;  %v13955_v2 = vld [vmem:[#allocation2 + $0x11c] sm:$0xff] }
 0x189   : > { %10843 = vmatprep.mubr.f32.mxu0 %v2593_v18  ;;  %v13957_v18 = vld [vmem:[#allocation2 + $0x124] sm:$0xff] }
 0x18c   : > { %10844 = vmatmul.mubr.f32.gmra.mrb[30].mxu0 %v2594_v21  ;;  %v13961_v21 = vld [vmem:[#allocation2 + $0x12c] sm:$0xff] }
 0x18d   : > { %10846 = vmatprep.mubr.f32.mxu0 %v2595_v3  ;;  %v9324_v3 = vld [vmem:[%s17379_s1 + $0x390] sm:$0xff] }
 0x190   : > { %10847 = vmatmul.mubr.f32.gmra.mrb[32].mxu0 %v2596_v22  ;;  %v9325_v22 = vld [vmem:[%s17379_s1 + $0x398] sm:$0xff] }
 0x191   : > { %10849 = vmatprep.mubr.f32.mxu0 %v2597_v23  ;;  %v12198_v23 = vpack.c.bf16 %v9325_v22, %v9324_v3  ;;  %v3798_v3 = vld [vmem:[#allocation2 + $0xad] sm:$0xff]  ;;  %v3799_v22 = vld [vmem:[#allocation2 + $0xb5] sm:$0xff] }
 0x194   : > { %10850 = vmatmul.mubr.f32.gmra.mrb[34].mxu0 %v2598_v4  ;;  %v9326_v4 = vld [vmem:[%s17379_s1 + $0x3a0] sm:$0xff] }
 0x195   : > { %10884 = vmatprep.mubr.f32.mxu0 %v2969_v24  ;;  %v9327_v24 = vld [vmem:[%s17379_s1 + $0x3a8] sm:$0xff] }
 0x196   : > { %v12202_v25 = vpack.c.bf16 %v9327_v24, %v9326_v4  ;;  %v3801_v4 = vld [vmem:[#allocation2 + $0xc5] sm:$0xff]  ;;  %v3802_v24 = vld [vmem:[#allocation2 + $0xcd] sm:$0xff] }
 0x198   : > { %10885 = vmatmul.mubr.f32.vlgmr.msra.gmra.mrb[0].mxu0 %v2970_v26  ;;  %v9329_v26 = vld [vmem:[%s17379_s1 + $0x3b8] sm:$0xff] }
 0x199   : > { %12165 = vmatpush3.bf16.msra.mxu0 %v12162_v45  ;;  %10887 = vmatprep.mubr.f32.mxu0 %v13820_v27  ;;  %v13915_v45 = vld [vmem:[#allocation2 + $0xb4] sm:$0xff] }
 0x19a   : > { %12167 = vmatprep.subr.bf16.mxu0 %v12166_v28 }
 0x19c   : > { %10888 = vmatmul.mubr.f32.gmra.mrb[2].mxu0 %v13829_v32 }
 0x19d   : > { %10890 = vmatprep.mubr.f32.mxu0 %v13831_v33  ;;  %12169 = vmatpush3.bf16.msra.mxu0 %v12166_v28  ;;  %v9330_v28 = vld [vmem:[%s17379_s1 + $0x3c0] sm:$0xff] }
 0x19e   : > { %12171 = vmatprep.subr.bf16.mxu0 %v12170_v36  ;;  %v12210_v31 = vpack.c.bf16 %v9331_v29, %v9330_v28  ;;  %v3807_v28 = vld [vmem:[#allocation2 + $0xf5] sm:$0xff]  ;;  %v3808_v29 = vld [vmem:[#allocation2 + $0xfd] sm:$0xff] }
 0x1a0   : > { %10891 = vmatmul.mubr.f32.gmra.mrb[4].mxu0 %v13841_v48 }
 0x1a1   : > { %10893 = vmatprep.mubr.f32.mxu0 %v13843_v49  ;;  %12173 = vmatpush3.bf16.msra.mxu0 %v12170_v36 }
 0x1a2   : > { %12175 = vmatprep.subr.bf16.mxu0 %v12174_v50 }
 0x1a4   : > { %10894 = vmatmul.mubr.f32.gmra.mrb[6].mxu0 %v13853_v53 }
 0x1a5   : > { %10896 = vmatprep.mubr.f32.mxu0 %v13855_v54  ;;  %12177 = vmatpush3.bf16.msra.mxu0 %v12174_v50  ;;  %v9337_v50 = vld [vmem:[%s17379_s1 + $0x3f8] sm:$0xff] }
 0x1a6   : > { %12179 = vmatprep.subr.bf16.mxu0 %v12178_v55 }
 0x1a8   : > { %10897 = vmatmul.mubr.f32.gmra.mrb[8].mxu0 %v13865_v61 }
 0x1a9   : > { %10899 = vmatprep.mubr.f32.mxu0 %v13867_v62  ;;  %12181 = vmatpush3.bf16.msra.mxu0 %v12178_v55  ;;  %v3409_v55 = vld [vmem:[#allocation2 + $0x134] sm:$0xff] }
 0x1aa   : > { %12183 = vmatprep.subr.bf16.mxu0 %v12182_v63 }
 0x1ac   : > { %10900 = vmatmul.mubr.f32.gmra.mrb[10].mxu0 %v13877_v10 }
 0x1ad   : > { %10902 = vmatprep.mubr.f32.mxu0 %v13879_v11  ;;  %12185 = vmatpush3.bf16.msra.mxu0 %v12182_v63  ;;  %v3782_v63 = vld [vmem:[#allocation2 + $0x2d] sm:$0xff] }
 0x1ae   : > { %12187 = vmatprep.subr.bf16.mxu0 %v12186_v5 }
 0x1b0   : > { %10903 = vmatmul.mubr.f32.gmra.mrb[12].mxu0 %v13889_v19 }
 0x1b1   : > { %10905 = vmatprep.mubr.f32.mxu0 %v13891_v20  ;;  %12189 = vmatpush3.bf16.msra.mxu0 %v12186_v5  ;;  %v3784_v5 = vld [vmem:[#allocation2 + $0x3d] sm:$0xff] }
 0x1b2   : > { %12191 = vmatprep.subr.bf16.mxu0 %v12190_v30 }
 0x1b4   : > { %10906 = vmatmul.mubr.f32.gmra.mrb[14].mxu0 %v13901_v37 }
 0x1b5   : > { %10908 = vmatprep.mubr.f32.mxu0 %v13903_v38  ;;  %12193 = vmatpush3.bf16.msra.mxu0 %v12190_v30  ;;  %v3786_v30 = vld [vmem:[#allocation2 + $0x4d] sm:$0xff] }
 0x1b6   : > { %12195 = vmatprep.subr.bf16.mxu0 %v12194_v39 }
 0x1b8   : > { %10909 = vmatmul.mubr.f32.gmra.mrb[16].mxu0 %v13907_v40 }
 0x1b9   : > { %10911 = vmatprep.mubr.f32.mxu0 %v13909_v41 }
 0x1bc   : > { %10912 = vmatmul.mubr.f32.gmra.mrb[18].mxu0 %v13913_v42 }
 0x1bd   : > { %10914 = vmatprep.mubr.f32.mxu0 %v13915_v45 }
 0x1c0   : > { %10915 = vmatmul.mubr.f32.gmra.mrb[20].mxu0 %v13919_v46 }
 0x1c1   : > { %10917 = vmatprep.mubr.f32.mxu0 %v13921_v47 }
 0x1c4   : > { %10918 = vmatmul.mubr.f32.gmra.mrb[22].mxu0 %v13925_v56 }
 0x1c5   : > { %10920 = vmatprep.mubr.f32.mxu0 %v13927_v57 }
 0x1c8   : > { %10921 = vmatmul.mubr.f32.gmra.mrb[24].mxu0 %v13931_v60 }
 0x1c9   : > { %10923 = vmatprep.mubr.f32.mxu0 %v13933_v12 }
 0x1cc   : > { %10924 = vmatmul.mubr.f32.gmra.mrb[26].mxu0 %v13937_v0 }
 0x1cd   : > { %10926 = vmatprep.mubr.f32.mxu0 %v13939_v13 }
 0x1d0   : > { %10927 = vmatmul.mubr.f32.gmra.mrb[28].mxu0 %v13943_v14 }
 0x1d1   : > { %10929 = vmatprep.mubr.f32.mxu0 %v13945_v1 }
 0x1d4   : > { %10930 = vmatmul.mubr.f32.gmra.mrb[30].mxu0 %v13949_v16 }
 0x1d5   : > { %10932 = vmatprep.mubr.f32.mxu0 %v13951_v17 }
 0x1d8   : > { %10933 = vmatmul.mubr.f32.gmra.mrb[32].mxu0 %v13955_v2 }
 0x1d9   : > { %10935 = vmatprep.mubr.f32.mxu0 %v13957_v18 }
 0x1dc   : > { %10936 = vmatmul.mubr.f32.gmra.mrb[34].mxu0 %v13961_v21 }
 0x1dd   : > { %10970 = vmatprep.mubr.f32.mxu0 %v13820_v27  ;;  %v12206_v27 = vpack.c.bf16 %v9329_v26, %v9328_v6  ;;  %v3804_v6 = vld [vmem:[#allocation2 + $0xdd] sm:$0xff]  ;;  %v3805_v26 = vld [vmem:[#allocation2 + $0xe5] sm:$0xff] }
 0x1e0   : > { %10971 = vmatmul.mubr.f32.vlgmr.msra.gmra.mrb[0].mxu0 %v13829_v32  ;;  %v9332_v32 = vld [vmem:[%s17379_s1 + $0x3d0] sm:$0xff] }
 0x1e1   : > { %12197 = vmatpush3.bf16.msra.mxu0 %v12194_v39  ;;  %10973 = vmatprep.mubr.f32.mxu0 %v13831_v33  ;;  %v9333_v33 = vld [vmem:[%s17379_s1 + $0x3d8] sm:$0xff] }
 0x1e2   : > { %12199 = vmatprep.subr.bf16.mxu0 %v12198_v23  ;;  %v12214_v36 = vpack.c.bf16 %v9333_v33, %v9332_v32  ;;  %v3788_v39 = vld [vmem:[#allocation2 + $0x5d] sm:$0xff]  ;;  %v3810_v32 = vld [vmem:[#allocation2 + $0x10d] sm:$0xff]  ;;  %v3811_v33 = vld [vmem:[#allocation2 + $0x115] sm:$0xff] }
 0x1e4   : > { %10974 = vmatmul.mubr.f32.gmra.mrb[2].mxu0 %v13841_v48  ;;  %v12218_v48 = vpack.c.bf16 %v9335_v44, %v9334_v43  ;;  %v3813_v43 = vld [vmem:[#allocation2 + $0x125] sm:$0xff]  ;;  %v3814_v44 = vld [vmem:[#allocation2 + $0x12d] sm:$0xff] }
 0x1e5   : > { %10976 = vmatprep.mubr.f32.mxu0 %v13843_v49  ;;  %12201 = vmatpush3.bf16.msra.mxu0 %v12198_v23  ;;  %v9336_v49 = vld [vmem:[%s17379_s1 + $0x3f0] sm:$0xff]  ;;  %v3800_v23 = vld [vmem:[#allocation2 + $0xbd] sm:$0xff] }
 0x1e6   : > { %12203 = vmatprep.subr.bf16.mxu0 %v12202_v25  ;;  %v12222_v51 = vpack.c.bf16 %v9337_v50, %v9336_v49  ;;  %v3816_v49 = vld [vmem:[#allocation2 + $0x13d] sm:$0xff]  ;;  %v4187_v50 = vld [vmem:[#allocation2 + $0x26] sm:$0xff] }
 0x1e8   : > { %10977 = vmatmul.mubr.f32.gmra.mrb[4].mxu0 %v13853_v53  ;;  %v9339_v53 = vld [vmem:[%s17379_s1 + $0x408] sm:$0xff] }
 0x1e9   : > { %10979 = vmatprep.mubr.f32.mxu0 %v13855_v54  ;;  %12205 = vmatpush3.bf16.msra.mxu0 %v12202_v25  ;;  %v12226_v54 = vpack.c.bf16 %v9339_v53, %v9338_v52  ;;  %v3803_v25 = vld [vmem:[#allocation2 + $0xd5] sm:$0xff]  ;;  %v4190_v53 = vld [vmem:[#allocation2 + $0x3e] sm:$0xff] }
 0x1ea   : > { %12207 = vmatprep.subr.bf16.mxu0 %v12206_v27  ;;  %v4189_v52 = vld [vmem:[#allocation2 + $0x36] sm:$0xff] }
 0x1ec   : > { %10980 = vmatmul.mubr.f32.gmra.mrb[6].mxu0 %v13865_v61  ;;  %v9340_v61 = vld [vmem:[%s17379_s1 + $0x410] sm:$0xff] }
 0x1ed   : > { %10982 = vmatprep.mubr.f32.mxu0 %v13867_v62  ;;  %12209 = vmatpush3.bf16.msra.mxu0 %v12206_v27  ;;  %v9341_v62 = vld [vmem:[%s17379_s1 + $0x418] sm:$0xff]  ;;  %v3806_v27 = vld [vmem:[#allocation2 + $0xed] sm:$0xff] }
 0x1ee   : > { %12211 = vmatprep.subr.bf16.mxu0 %v12210_v31  ;;  %v12230_v9 = vpack.c.bf16 %v9341_v62, %v9340_v61  ;;  %v4195_v61 = vld [vmem:[#allocation2 + $0x66] sm:$0xff]  ;;  %v4196_v62 = vld [vmem:[#allocation2 + $0x6e] sm:$0xff] }
 0x1f0   : > { %10983 = vmatmul.mubr.f32.gmra.mrb[8].mxu0 %v13877_v10  ;;  %v9342_v10 = vld [vmem:[%s17379_s1 + $0x420] sm:$0xff] }
 0x1f1   : > { %10985 = vmatprep.mubr.f32.mxu0 %v13879_v11  ;;  %12213 = vmatpush3.bf16.msra.mxu0 %v12210_v31  ;;  %v9343_v11 = vld [vmem:[%s17379_s1 + $0x428] sm:$0xff] }
 0x1f2   : > { %12215 = vmatprep.subr.bf16.mxu0 %v12214_v36  ;;  %v12234_v15 = vpack.c.bf16 %v9343_v11, %v9342_v10  ;;  %v3809_v31 = vld [vmem:[#allocation2 + $0x105] sm:$0xff]  ;;  %v4200_v10 = vld [vmem:[#allocation2 + $0x8e] sm:$0xff]  ;;  %v4201_v11 = vld [vmem:[#allocation2 + $0x96] sm:$0xff] }
 0x1f4   : > { %10986 = vmatmul.mubr.f32.gmra.mrb[10].mxu0 %v13889_v19  ;;  %v9344_v19 = vld [vmem:[%s17379_s1 + $0x430] sm:$0xff] }
 0x1f5   : > { %10988 = vmatprep.mubr.f32.mxu0 %v13891_v20  ;;  %12217 = vmatpush3.bf16.msra.mxu0 %v12214_v36  ;;  %v9345_v20 = vld [vmem:[%s17379_s1 + $0x438] sm:$0xff] }
 0x1f6   : > { %12219 = vmatprep.subr.bf16.mxu0 %v12218_v48  ;;  %v12238_v35 = vpack.c.bf16 %v9345_v20, %v9344_v19  ;;  %v3812_v36 = vld [vmem:[#allocation2 + $0x11d] sm:$0xff] }
 0x1f7   : > { %v4205_v19 = vld [vmem:[#allocation2 + $0xb6] sm:$0xff]  ;;  %v4206_v20 = vld [vmem:[#allocation2 + $0xbe] sm:$0xff] }
 0x1f8   : > { %10989 = vmatmul.mubr.f32.gmra.mrb[12].mxu0 %v13901_v37  ;;  %v9346_v37 = vld [vmem:[%s17379_s1 + $0x440] sm:$0xff] }
 0x1f9   : > { %10991 = vmatprep.mubr.f32.mxu0 %v13903_v38  ;;  %12221 = vmatpush3.bf16.msra.mxu0 %v12218_v48  ;;  %v9347_v38 = vld [vmem:[%s17379_s1 + $0x448] sm:$0xff]  ;;  %v3815_v48 = vld [vmem:[#allocation2 + $0x135] sm:$0xff] }
 0x1fa   : > { %12223 = vmatprep.subr.bf16.mxu0 %v12222_v51 }
 0x1fc   : > { %10992 = vmatmul.mubr.f32.gmra.mrb[14].mxu0 %v13907_v40  ;;  %v3789_v40 = vld [vmem:[#allocation2 + $0x65] sm:$0xff] }
 0x1fd   : > { %10994 = vmatprep.mubr.f32.mxu0 %v13909_v41  ;;  %12225 = vmatpush3.bf16.msra.mxu0 %v12222_v51  ;;  %v12242_v41 = vpack.c.bf16 %v9347_v38, %v9346_v37  ;;  %v4188_v51 = vld [vmem:[#allocation2 + $0x2e] sm:$0xff]  ;;  %v4210_v37 = vld [vmem:[#allocation2 + $0xde] sm:$0xff]  ;;  %v4211_v38 = vld [vmem:[#allocation2 + $0xe6] sm:$0xff] }
 0x1fe   : > { %12227 = vmatprep.subr.bf16.mxu0 %v12226_v54 }
 0x200   : > { %10995 = vmatmul.mubr.f32.gmra.mrb[16].mxu0 %v13913_v42  ;;  %v9348_v42 = vld [vmem:[%s17379_s1 + $0x450] sm:$0xff] }
 0x201   : > { %10997 = vmatprep.mubr.f32.mxu0 %v13915_v45  ;;  %v9349_v45 = vld [vmem:[%s17379_s1 + $0x458] sm:$0xff] }
 0x204   : > { %10998 = vmatmul.mubr.f32.gmra.mrb[18].mxu0 %v13919_v46  ;;  %v3790_v46 = vld [vmem:[#allocation2 + $0x6d] sm:$0xff] }
 0x205   : > { %11000 = vmatprep.mubr.f32.mxu0 %v13921_v47  ;;  %v3791_v47 = vld [vmem:[#allocation2 + $0x75] sm:$0xff] }
 0x208   : > { %11001 = vmatmul.mubr.f32.gmra.mrb[20].mxu0 %v13925_v56  ;;  %v12246_v56 = vpack.c.bf16 %v9349_v45, %v9348_v42  ;;  %v4215_v42 = vld [vmem:[#allocation2 + $0x106] sm:$0xff]  ;;  %v4216_v45 = vld [vmem:[#allocation2 + $0x10e] sm:$0xff] }
 0x209   : > { %11003 = vmatprep.mubr.f32.mxu0 %v13927_v57  ;;  %v9350_v57 = vld [vmem:[%s17379_s1 + $0x460] sm:$0xff] }
 0x20c   : > { %11004 = vmatmul.mubr.f32.gmra.mrb[22].mxu0 %v13931_v60  ;;  %v9351_v60 = vld [vmem:[%s17379_s1 + $0x468] sm:$0xff] }
 0x20d   : > { %11006 = vmatprep.mubr.f32.mxu0 %v13933_v12  ;;  %v3792_v12 = vld [vmem:[#allocation2 + $0x7d] sm:$0xff] }
 0x210   : > { %11007 = vmatmul.mubr.f32.gmra.mrb[24].mxu0 %v13937_v0  ;;  %v3793_v0 = vld [vmem:[#allocation2 + $0x85] sm:$0xff] }
 0x211   : > { %11009 = vmatprep.mubr.f32.mxu0 %v13939_v13  ;;  %v12250_v13 = vpack.c.bf16 %v9351_v60, %v9350_v57  ;;  %v4220_v57 = vld [vmem:[#allocation2 + $0x12e] sm:$0xff]  ;;  %v4221_v60 = vld [vmem:[#allocation2 + $0x136] sm:$0xff] }
 0x214   : > { %11010 = vmatmul.mubr.f32.gmra.mrb[26].mxu0 %v13943_v14  ;;  %v9352_v14 = vld [vmem:[%s17379_s1 + $0x470] sm:$0xff] }
 0x215   : > { %11012 = vmatprep.mubr.f32.mxu0 %v13945_v1  ;;  %v9353_v1 = vld [vmem:[%s17379_s1 + $0x478] sm:$0xff] }
 0x218   : > { %11013 = vmatmul.mubr.f32.gmra.mrb[28].mxu0 %v13949_v16  ;;  %v3794_v16 = vld [vmem:[#allocation2 + $0x8d] sm:$0xff] }
 0x219   : > { %11015 = vmatprep.mubr.f32.mxu0 %v13951_v17  ;;  %v3795_v17 = vld [vmem:[#allocation2 + $0x95] sm:$0xff] }
 0x21c   : > { %11016 = vmatmul.mubr.f32.gmra.mrb[30].mxu0 %v13955_v2  ;;  %v12254_v2 = vpack.c.bf16 %v9353_v1, %v9352_v14 }
 0x21d   : > { %11018 = vmatprep.mubr.f32.mxu0 %v13957_v18  ;;  %v3796_v18 = vld [vmem:[#allocation2 + $0x9d] sm:$0xff] }
 0x220   : > { %11019 = vmatmul.mubr.f32.gmra.mrb[32].mxu0 %v13961_v21  ;;  %v3797_v21 = vld [vmem:[#allocation2 + $0xa5] sm:$0xff] }
 0x221   : > { %11021 = vmatprep.mubr.f32.mxu0 %v3409_v55  ;;  %v4192_v55 = vld [vmem:[#allocation2 + $0x4e] sm:$0xff] }
 0x224   : > { %11022 = vmatmul.mubr.f32.gmra.mrb[34].mxu0 %v3410_v58  ;;  %v4193_v58 = vld [vmem:[#allocation2 + $0x56] sm:$0xff] }
 0x225   : > { %11056 = vmatprep.mubr.f32.mxu0 %v3781_v59  ;;  %v4194_v59 = vld [vmem:[#allocation2 + $0x5e] sm:$0xff] }
 0x228   : > { %11057 = vmatmul.mubr.f32.vlgmr.msra.gmra.mrb[0].mxu0 %v3782_v63  ;;  %v4197_v63 = vld [vmem:[#allocation2 + $0x76] sm:$0xff] }
 0x229   : > { %12229 = vmatpush3.bf16.msra.mxu0 %v12226_v54  ;;  %11059 = vmatprep.mubr.f32.mxu0 %v3783_v8  ;;  %v4191_v54 = vld [vmem:[#allocation2 + $0x46] sm:$0xff]  ;;  %v4198_v8 = vld [vmem:[#allocation2 + $0x7e] sm:$0xff] }
 0x22a   : > { %12231 = vmatprep.subr.bf16.mxu0 %v12230_v9 }
 0x22c   : > { %11060 = vmatmul.mubr.f32.gmra.mrb[2].mxu0 %v3784_v5  ;;  %v4202_v5 = vld [vmem:[#allocation2 + $0x9e] sm:$0xff] }
 0x22d   : > { %11062 = vmatprep.mubr.f32.mxu0 %v3785_v7  ;;  %12233 = vmatpush3.bf16.msra.mxu0 %v12230_v9  ;;  %v4199_v9 = vld [vmem:[#allocation2 + $0x86] sm:$0xff] }
 0x22e   : > { %12235 = vmatprep.subr.bf16.mxu0 %v12234_v15  ;;  %v4203_v7 = vld [vmem:[#allocation2 + $0xa6] sm:$0xff] }
 0x230   : > { %11063 = vmatmul.mubr.f32.gmra.mrb[4].mxu0 %v3786_v30  ;;  %v4207_v30 = vld [vmem:[#allocation2 + $0xc6] sm:$0xff] }
 0x231   : > { %11065 = vmatprep.mubr.f32.mxu0 %v3787_v34  ;;  %12237 = vmatpush3.bf16.msra.mxu0 %v12234_v15  ;;  %v4204_v15 = vld [vmem:[#allocation2 + $0xae] sm:$0xff] }
 0x232   : > { %12239 = vmatprep.subr.bf16.mxu0 %v12238_v35  ;;  %v4208_v34 = vld [vmem:[#allocation2 + $0xce] sm:$0xff] }
 0x234   : > { %11066 = vmatmul.mubr.f32.gmra.mrb[6].mxu0 %v3788_v39  ;;  %v4212_v39 = vld [vmem:[#allocation2 + $0xee] sm:$0xff] }
 0x235   : > { %11068 = vmatprep.mubr.f32.mxu0 %v3789_v40  ;;  %12241 = vmatpush3.bf16.msra.mxu0 %v12238_v35  ;;  %v4209_v35 = vld [vmem:[#allocation2 + $0xd6] sm:$0xff] }
 0x236   : > { %12243 = vmatprep.subr.bf16.mxu0 %v12242_v41  ;;  %v4213_v40 = vld [vmem:[#allocation2 + $0xf6] sm:$0xff] }
 0x238   : > { %11069 = vmatmul.mubr.f32.gmra.mrb[8].mxu0 %v3790_v46  ;;  %v4217_v46 = vld [vmem:[#allocation2 + $0x116] sm:$0xff] }
 0x239   : > { %11071 = vmatprep.mubr.f32.mxu0 %v3791_v47  ;;  %12245 = vmatpush3.bf16.msra.mxu0 %v12242_v41  ;;  %v4214_v41 = vld [vmem:[#allocation2 + $0xfe] sm:$0xff] }
 0x23a   : > { %12247 = vmatprep.subr.bf16.mxu0 %v12246_v56  ;;  %v4218_v47 = vld [vmem:[#allocation2 + $0x11e] sm:$0xff] }
 0x23c   : > { %11072 = vmatmul.mubr.f32.gmra.mrb[10].mxu0 %v3792_v12  ;;  %v4222_v12 = vld [vmem:[#allocation2 + $0x13e] sm:$0xff] }
 0x23d   : > { %11074 = vmatprep.mubr.f32.mxu0 %v3793_v0  ;;  %12249 = vmatpush3.bf16.msra.mxu0 %v12246_v56  ;;  %v4219_v56 = vld [vmem:[#allocation2 + $0x126] sm:$0xff]  ;;  %v279_v0 = vlaneseq }
 0x23e   : > { %12251 = vmatprep.subr.bf16.mxu0 %v12250_v13 }
 0x240   : > { %11075 = vmatmul.mubr.f32.gmra.mrb[12].mxu0 %v3794_v16 }
 0x241   : > { %11077 = vmatprep.mubr.f32.mxu0 %v3795_v17  ;;  %12253 = vmatpush3.bf16.msra.mxu0 %v12250_v13  ;;  %v14088_v13 = vshrl.u32 %v279_v0, 7 }
 0x242   : > { %12255 = vmatprep.subr.bf16.mxu0 %v12254_v2 }
 0x243   : > { %17556 = vst [vmem:[#allocation5_spill] sm:$0xff] %v14088_v13  ;;  %v281_v14 = vadd.s32 8, %v14088_v13  ;;  %v283_v17 = vadd.s32 24, %v14088_v13 }
 0x244   : > { %11078 = vmatmul.mubr.f32.gmra.mrb[14].mxu0 %v3796_v18 }
 0x245   : > { %11080 = vmatprep.mubr.f32.mxu0 %v3797_v21  ;;  %12257 = vmatpush3.bf16.msra.mxu0 %v12254_v2  ;;  %v14091_v1 = vmul.u32.u64.low 3817748708, %v281_v14  ;;  %v14092_v16 = vmul.u32.u64.high 3817748708, %v281_v14, %v14091_v1  ;;  %v14096_v2 = vmul.u32.u64.low 3817748708, %v14088_v13  ;;  %v14097_v18 = vmul.u32.u64.high 3817748708, %v14088_v13, %v14096_v2 }
 0x246   : > { %v282_v21 = vadd.s32 16, %v14088_v13  ;;  %v14210_v2 = vadd.s32 112, %v14088_v13 }
 0x248   : > { %11081 = vmatmul.mubr.f32.gmra.mrb[16].mxu0 %v3798_v3 }
 0x249   : > { %11083 = vmatprep.mubr.f32.mxu0 %v3799_v22  ;;  %v14100_v3 = vmul.u32.u64.low 3817748708, %v283_v17  ;;  %v14101_v22 = vmul.u32.u64.high 3817748708, %v283_v17, %v14100_v3 }
 0x24c   : > { %11084 = vmatmul.mubr.f32.gmra.mrb[18].mxu0 %v3800_v23  ;;  %v285_v23 = vadd.s32 40, %v14088_v13 }
 0x24d   : > { %11086 = vmatprep.mubr.f32.mxu0 %v3801_v4  ;;  %v284_v4 = vadd.s32 32, %v14088_v13 }
 0x250   : > { %11087 = vmatmul.mubr.f32.gmra.mrb[20].mxu0 %v3802_v24 }
 0x251   : > { %11089 = vmatprep.mubr.f32.mxu0 %v3803_v25  ;;  %v14105_v24 = vmul.u32.u64.low 3817748708, %v282_v21  ;;  %v14106_v25 = vmul.u32.u64.high 3817748708, %v282_v21, %v14105_v24 }
 0x254   : > { %11090 = vmatmul.mubr.f32.gmra.mrb[22].mxu0 %v3804_v6  ;;  %v333_v6 = vshrl.u32 %v14092_v16, 4 }
 0x255   : > { %11092 = vmatprep.mubr.f32.mxu0 %v3805_v26 }
 0x258   : > { %11093 = vmatmul.mubr.f32.gmra.mrb[24].mxu0 %v3806_v27  ;;  %v14109_v26 = vmul.u32.u64.low 3817748708, %v285_v23  ;;  %v14110_v27 = vmul.u32.u64.high 3817748708, %v285_v23, %v14109_v26 }
 0x259   : > { %11095 = vmatprep.mubr.f32.mxu0 %v3807_v28  ;;  %v287_v28 = vadd.s32 56, %v14088_v13 }
 0x25c   : > { %11096 = vmatmul.mubr.f32.gmra.mrb[26].mxu0 %v3808_v29  ;;  %v322_v29 = vshrl.u32 %v14097_v18, 4 }
 0x25d   : > { %11098 = vmatprep.mubr.f32.mxu0 %v3809_v31 }
 0x260   : > { %11099 = vmatmul.mubr.f32.gmra.mrb[28].mxu0 %v3810_v32  ;;  %v14114_v31 = vmul.u32.u64.low 3817748708, %v284_v4  ;;  %v14115_v32 = vmul.u32.u64.high 3817748708, %v284_v4, %v14114_v31 }
 0x261   : > { %11101 = vmatprep.mubr.f32.mxu0 %v3811_v33  ;;  %v334_v33 = vmul.u32 18, %v333_v6 }
 0x264   : > { %11102 = vmatmul.mubr.f32.gmra.mrb[30].mxu0 %v3812_v36  ;;  %v14118_v36 = vadd.s32 48, %v14088_v13 }
 0x265   : > { %11104 = vmatprep.mubr.f32.mxu0 %v3813_v43  ;;  %v355_v43 = vshrl.u32 %v14101_v22, 4 }
 0x268   : > { %11105 = vmatmul.mubr.f32.gmra.mrb[32].mxu0 %v3814_v44 }
 0x269   : > { %11107 = vmatprep.mubr.f32.mxu0 %v3815_v48  ;;  %v14121_v44 = vmul.u32.u64.low 3817748708, %v287_v28  ;;  %v14122_v48 = vmul.u32.u64.high 3817748708, %v287_v28, %v14121_v44 }
 0x26c   : > { %11108 = vmatmul.mubr.f32.gmra.mrb[34].mxu0 %v3816_v49  ;;  %v323_v49 = vmul.u32 18, %v322_v29  ;;  %v14265_v29 = vmul.u32.u64.low 3817748708, %v14210_v2  ;;  %v14266_v31 = vmul.u32.u64.high 3817748708, %v14210_v2, %v14265_v29 }
 0x26d   : > { %11142 = vmatprep.mubr.f32.mxu0 %v4187_v50  ;;  %v344_v50 = vshrl.u32 %v14106_v25, 4 }
 0x270   : > { %11143 = vmatmul.mubr.f32.vlgmr.msra.gmra.mrb[0].mxu0 %v4188_v51  ;;  %v14125_v51 = vsub.s32 %v281_v14, %v334_v33  ;;  %v14201_v14 = vadd.s32 120, %v14088_v13 }
 0x271   : > { %11145 = vmatprep.mubr.f32.mxu0 %v4189_v52 }
 0x272   : > { %vm713_vm0 = vcmp.ne.s32.totalorder %v14125_v51, 0  ;;  %vm749_vm1 = vcmp.lt.s32.totalorder %v14125_v51, 0 }
 0x273   : > { %vm14216_vm8 = vmand %vm749_vm1, %vm713_vm0 }
 0x274   : > { %11146 = vmatmul.mubr.f32.gmra.mrb[2].mxu0 %v4190_v53  ;;  %v14128_v52 = vmul.u32.u64.low 3817748708, %v14118_v36  ;;  %v14129_v53 = vmul.u32.u64.high 3817748708, %v14118_v36, %v14128_v52 }
 0x275   : > { %11148 = vmatprep.mubr.f32.mxu0 %v4191_v54  ;;  %v356_v54 = vmul.u32 18, %v355_v43 }
 0x278   : > { %11149 = vmatmul.mubr.f32.gmra.mrb[4].mxu0 %v4192_v55  ;;  %v377_v55 = vshrl.u32 %v14110_v27, 4  ;;  %v14251_v26 = vmul.u32.u64.low 3817748708, %v14201_v14  ;;  %v14252_v27 = vmul.u32.u64.high 3817748708, %v14201_v14, %v14251_v26 }
 0x279   : > { %11151 = vmatprep.mubr.f32.mxu0 %v4193_v58  ;;  %v14133_v58 = vsub.s32 %v14088_v13, %v323_v49 }
 0x27b   : > { %vm712_vm2 = vcmp.ne.s32.totalorder %v14133_v58, 0  ;;  %vm748_vm3 = vcmp.lt.s32.totalorder %v14133_v58, 0 }
 0x27c   : > { %11152 = vmatmul.mubr.f32.gmra.mrb[6].mxu0 %v4194_v59  ;;  %v366_v59 = vshrl.u32 %v14115_v32, 4  ;;  %vm14228_vm12 = vmand %vm748_vm3, %vm712_vm2 }
 0x27d   : > { %11154 = vmatprep.mubr.f32.mxu0 %v4195_v61  ;;  %v14137_v61 = vadd.s32 72, %v14088_v13 }
 0x280   : > { %11155 = vmatmul.mubr.f32.gmra.mrb[8].mxu0 %v4196_v62  ;;  %v345_v62 = vmul.u32 18, %v344_v50 }
 0x281   : > { %11157 = vmatprep.mubr.f32.mxu0 %v4197_v63  ;;  %v14140_v63 = vadd.s32 64, %v14088_v13 }
 0x284   : > { %11158 = vmatmul.mubr.f32.gmra.mrb[10].mxu0 %v4198_v8  ;;  %v14145_v8 = vadd.s32 88, %v14088_v13 }
 0x285   : > { %11160 = vmatprep.mubr.f32.mxu0 %v4199_v9  ;;  %v14148_v9 = vadd.s32 18, %v14125_v51 }
 0x287   : > { %v857_v32 = vsel %vm14216_vm8, %v14148_v9, %v14125_v51 }
 0x288   : > { %11161 = vmatmul.mubr.f32.gmra.mrb[12].mxu0 %v4200_v10  ;;  %v14150_v10 = vsub.s32 %v283_v17, %v356_v54 }
 0x289   : > { %11163 = vmatprep.mubr.f32.mxu0 %v4201_v11  ;;  %v378_v11 = vmul.u32 18, %v377_v55 }
 0x28a   : > { %vm715_vm4 = vcmp.ne.s32.totalorder %v14150_v10, 0  ;;  %vm751_vm5 = vcmp.lt.s32.totalorder %v14150_v10, 0 }
 0x28b   : > { %vm14242_vm14 = vmand %vm751_vm5, %vm715_vm4 }
 0x28c   : > { %11164 = vmatmul.mubr.f32.gmra.mrb[14].mxu0 %v4202_v5  ;;  %v399_v5 = vshrl.u32 %v14122_v48, 4 }
 0x28d   : > { %11166 = vmatprep.mubr.f32.mxu0 %v4203_v7  ;;  %v367_v7 = vmul.u32 18, %v366_v59 }
 0x290   : > { %11167 = vmatmul.mubr.f32.gmra.mrb[16].mxu0 %v4204_v15 }
 0x291   : > { %11169 = vmatprep.mubr.f32.mxu0 %v4205_v19  ;;  %v14155_v15 = vmul.u32.u64.low 3817748708, %v14137_v61  ;;  %v14156_v19 = vmul.u32.u64.high 3817748708, %v14137_v61, %v14155_v15 }
 0x294   : > { %11170 = vmatmul.mubr.f32.gmra.mrb[18].mxu0 %v4206_v20  ;;  %v14158_v20 = vsub.s32 %v282_v21, %v345_v62  ;;  %v421_v21 = vshrl.u32 %v14156_v19, 4  ;;  %v14318_v62 = vadd.s32 136, %v14088_v13 }
 0x295   : > { %11172 = vmatprep.mubr.f32.mxu0 %v4207_v30 }
 0x296   : > { %vm714_vm6 = vcmp.ne.s32.totalorder %v14158_v20, 0  ;;  %vm750_vm7 = vcmp.lt.s32.totalorder %v14158_v20, 0  ;;  %v422_v43 = vmul.u32 18, %v421_v21  ;;  %v14382_v21 = vadd.s32 152, %v14088_v13 }
 0x297   : > { %vm14258_vm15 = vmand %vm750_vm7, %vm714_vm6 }
 0x298   : > { %11173 = vmatmul.mubr.f32.gmra.mrb[20].mxu0 %v4208_v34  ;;  %v14161_v30 = vmul.u32.u64.low 3817748708, %v14140_v63  ;;  %v14162_v34 = vmul.u32.u64.high 3817748708, %v14140_v63, %v14161_v30 }
 0x299   : > { %11175 = vmatprep.mubr.f32.mxu0 %v4209_v35  ;;  %v14165_v35 = vadd.s32 80, %v14088_v13 }
 0x29a   : > { %v410_v22 = vshrl.u32 %v14162_v34, 4 }
 0x29c   : > { %11176 = vmatmul.mubr.f32.gmra.mrb[22].mxu0 %v4210_v37  ;;  %v388_v37 = vshrl.u32 %v14129_v53, 4  ;;  %v411_v53 = vmul.u32 18, %v410_v22 }
 0x29d   : > { %11178 = vmatprep.mubr.f32.mxu0 %v4211_v38 }
 0x29e   : > { %v389_v0 = vmul.u32 18, %v388_v37  ;;  %v14351_v34 = vsub.s32 %v14140_v63, %v411_v53 }
 0x2a0   : > { %11179 = vmatmul.mubr.f32.gmra.mrb[24].mxu0 %v4212_v39  ;;  %v14170_v38 = vmul.u32.u64.low 3817748708, %v14145_v8  ;;  %v14171_v39 = vmul.u32.u64.high 3817748708, %v14145_v8, %v14170_v38  ;;  %v14247_v25 = vsub.s32 %v14118_v36, %v389_v0 }
 0x2a1   : > { %11181 = vmatprep.mubr.f32.mxu0 %v4213_v40  ;;  %v14174_v40 = vadd.s32 18, %v14133_v58  ;;  %v487_v38 = vshrl.u32 %v14252_v27, 4  ;;  %v17576_v27 = vmov 0 }
 0x2a2   : > { %v443_v6 = vshrl.u32 %v14171_v39, 4  ;;  %vm718_vm5 = vcmp.ne.s32.totalorder %v14247_v25, 0  ;;  %vm754_vm6 = vcmp.lt.s32.totalorder %v14247_v25, 0  ;;  %v14358_v39 = vadd.s32 144, %v14088_v13 }
 0x2a3   : > { %v856_v44 = vsel %vm14228_vm12, %v14174_v40, %v14133_v58  ;;  %vm14345_vm7 = vmand %vm754_vm6, %vm718_vm5  ;;  %v488_v18 = vmul.u32 18, %v487_v38  ;;  %vm14393_vm12 = vcmp.lt.s32.totalorder %v857_v32, 16 }
 0x2a4   : > { %11182 = vmatmul.mubr.f32.gmra.mrb[26].mxu0 %v4214_v41  ;;  %v400_v41 = vmul.u32 18, %v399_v5  ;;  %v444_v54 = vmul.u32 18, %v443_v6  ;;  %v14328_v5 = vsub.s32 %v14137_v61, %v422_v43  ;;  %v14398_v6 = vadd.s32 18, %v14351_v34 }
 0x2a5   : > { %11184 = vmatprep.mubr.f32.mxu0 %v4215_v42  ;;  %v14178_v42 = vadd.s32 104, %v14088_v13  ;;  %v14385_v3 = vmul.u32.u64.low 3817748708, %v14358_v39  ;;  %v14386_v22 = vmul.u32.u64.high 3817748708, %v14358_v39, %v14385_v3  ;;  %v14418_v29 = vsub.s32 %v14201_v14, %v488_v18 }
 0x2a6   : > { %v14203_v1 = vsub.s32 %v287_v28, %v400_v41  ;;  %v14354_v37 = vsub.s32 %v14145_v8, %v444_v54  ;;  %v476_v41 = vshrl.u32 %v14266_v31, 4  ;;  %vm721_vm8 = vcmp.ne.s32.totalorder %v14328_v5, 0 }
 0x2a7   : > { %v14206_v16 = vmul.u32.u64.low 3817748708, %v14178_v42  ;;  %v14207_v17 = vmul.u32.u64.high 3817748708, %v14178_v42, %v14206_v16  ;;  %v14376_v0 = vadd.s32 18, %v14328_v5  ;;  %v14415_v28 = vadd.s32 168, %v14088_v13 }
 0x2a8   : > { %11185 = vmatmul.mubr.f32.gmra.mrb[28].mxu0 %v4216_v45  ;;  %v14182_v45 = vadd.s32 18, %v14150_v10  ;;  %vm719_vm0 = vcmp.ne.s32.totalorder %v14203_v1, 0  ;;  %vm755_vm1 = vcmp.lt.s32.totalorder %v14203_v1, 0  ;;  %v14299_v50 = vadd.s32 18, %v14203_v1 }
 0x2a9   : > { %11187 = vmatprep.mubr.f32.mxu0 %v4217_v46  ;;  %v14184_v46 = vsub.s32 %v285_v23, %v378_v11  ;;  %vm14302_vm4 = vmand %vm755_vm1, %vm719_vm0  ;;  %v465_v59 = vshrl.u32 %v14207_v17, 4  ;;  %v14325_v11 = vadd.s32 18, %v14247_v25  ;;  %v14403_v26 = vadd.s32 18, %v14354_v37 }
 0x2aa   : > { %v859_v55 = vsel %vm14242_vm14, %v14182_v45, %v14150_v10  ;;  %v863_v19 = vsel %vm14302_vm4, %v14299_v50, %v14203_v1  ;;  %vm14405_vm0 = vcmp.lt.s32.totalorder %v856_v44, 16  ;;  %v14425_v43 = vadd.s32 160, %v14088_v13 }
 0x2ab   : > { %vm717_vm9 = vcmp.ne.s32.totalorder %v14184_v46, 0  ;;  %vm753_vm10 = vcmp.lt.s32.totalorder %v14184_v46, 0  ;;  %v14281_v36 = vadd.s32 18, %v14184_v46  ;;  %v466_v40 = vmul.u32 18, %v465_v59 }
 0x2ac   : > { %11188 = vmatmul.mubr.f32.gmra.mrb[30].mxu0 %v4218_v47  ;;  %v14186_v47 = vsub.s32 %v284_v4, %v367_v7  ;;  %vm14276_vm2 = vmand %vm753_vm10, %vm717_vm9  ;;  %v14331_v7 = vadd.s32 128, %v14088_v13  ;;  %v862_v63 = vsel %vm14345_vm7, %v14325_v11, %v14247_v25  ;;  %vm757_vm9 = vcmp.lt.s32.totalorder %v14328_v5, 0 }
 0x2ad   : > { %11190 = vmatprep.mubr.f32.mxu0 %v4219_v56  ;;  %v861_v9 = vsel %vm14276_vm2, %v14281_v36, %v14184_v46  ;;  %vm720_vm10 = vcmp.ne.s32.totalorder %v14351_v34, 0  ;;  %v17577_v27 = vsel %vm14405_vm0, 4294967295, %v17576_v27  ;;  %vm14439_vm5 = vmand %vm757_vm9, %vm721_vm8  ;;  %v17581_v59 = vmov 0 }
 0x2ae   : > { %vm716_vm11 = vcmp.ne.s32.totalorder %v14186_v47, 0  ;;  %vm752_vm13 = vcmp.lt.s32.totalorder %v14186_v47, 0  ;;  %v14296_v49 = vadd.s32 18, %v14186_v47  ;;  %17578 = vst [vmem:[#allocation7_spill] sm:$0xff] %v17577_v27  ;;  %vm763_vm1 = vcmp.lt.s32.totalorder %v14418_v29, 0 }
 0x2af   : > { %vm14291_vm3 = vmand %vm752_vm13, %vm716_vm11  ;;  %vm756_vm11 = vcmp.lt.s32.totalorder %v14351_v34, 0  ;;  %vm723_vm13 = vcmp.ne.s32.totalorder %v14354_v37, 0  ;;  %v14421_v31 = vmul.u32.u64.low 3817748708, %v14382_v21  ;;  %v14422_v32 = vmul.u32.u64.high 3817748708, %v14382_v21, %v14421_v31 }
 0x2b0   : > { %11191 = vmatmul.mubr.f32.gmra.mrb[32].mxu0 %v4220_v57  ;;  %v14190_v56 = vmul.u32.u64.low 3817748708, %v14165_v35  ;;  %v14191_v57 = vmul.u32.u64.high 3817748708, %v14165_v35, %v14190_v56  ;;  %v860_v15 = vsel %vm14291_vm3, %v14296_v49, %v14186_v47  ;;  %vm14459_vm8 = vmand %vm756_vm11, %vm720_vm10  ;;  %vm14488_vm11 = vcmp.lt.s32.totalorder %v859_v55, 16 }
 0x2b1   : > { %11193 = vmatprep.mubr.f32.mxu0 %v4221_v60  ;;  %v14194_v60 = vadd.s32 96, %v14088_v13  ;;  %v17599_v18 = vmov 0  ;;  %v865_v3 = vsel %vm14439_vm5, %v14376_v0, %v14328_v5  ;;  %v14547_v49 = vadd.s32 18, %v14418_v29 }
 0x2b2   : > { %v432_v51 = vshrl.u32 %v14191_v57, 4  ;;  %v14362_v56 = vmul.u32.u64.low 3817748708, %v14318_v62  ;;  %v14363_v57 = vmul.u32.u64.high 3817748708, %v14318_v62, %v14362_v56  ;;  %vm17606_vm3 = vcmp.ne.s32.totalorder %v14418_v29, 0 }
 0x2b3   : > { %v14235_v23 = vmul.u32.u64.low 3817748708, %v14194_v60  ;;  %v14236_v4 = vmul.u32.u64.high 3817748708, %v14194_v60, %v14235_v23  ;;  %vm14559_vm5 = vmand %vm763_vm1, %vm17606_vm3  ;;  %vm14577_vm1 = vcmp.lt.s32.totalorder %v861_v9, 16  ;;  %v17609_v14 = vmov 0 }
 0x2b4   : > { %11194 = vmatmul.mubr.f32.gmra.mrb[34].mxu0 %v4222_v12  ;;  %v14198_v12 = vadd.s32 18, %v14158_v20  ;;  %v14391_v23 = vsub.s32 %v14178_v42, %v466_v40  ;;  %v520_v40 = vshrl.u32 %v14386_v22, 4  ;;  %v864_v22 = vsel %vm14459_vm8, %v14398_v6, %v14351_v34 }
 0x2b5   : > { %v454_v30 = vshrl.u32 %v14236_v4, 4  ;;  %v477_v4 = vmul.u32 18, %v476_v41  ;;  %v14480_v41 = vmul.u32.u64.low 3817748708, %v14425_v43  ;;  %v14481_v56 = vmul.u32.u64.high 3817748708, %v14425_v43, %v14480_v41 }
 0x2b6   : > { %v858_v58 = vsel %vm14258_vm15, %v14198_v12, %v14158_v20  ;;  %v433_v20 = vmul.u32 18, %v432_v51  ;;  %v14371_v8 = vmul.u32.u64.low 3817748708, %v14331_v7  ;;  %v14372_v12 = vmul.u32.u64.high 3817748708, %v14331_v7, %v14371_v8 }
 0x2b7   : > { %v455_v17 = vmul.u32 18, %v454_v30  ;;  %vm759_vm15 = vcmp.lt.s32.totalorder %v14354_v37, 0  ;;  %v509_v51 = vshrl.u32 %v14363_v57, 4  ;;  %v14445_v53 = vadd.s32 18, %v14391_v23 }
 0x2b8   : > { %v14379_v16 = vsub.s32 %v14165_v35, %v433_v20  ;;  %v17573_v35 = vmov 0  ;;  %v498_v54 = vshrl.u32 %v14372_v12, 4  ;;  %vm14451_vm6 = vcmp.lt.s32.totalorder %v858_v58, 16 }
 0x2b9   : > { %v17574_v35 = vsel %vm14393_vm12, 4294967295, %v17573_v35  ;;  %v14412_v42 = vsub.s32 %v14194_v60, %v455_v17  ;;  %v14432_v60 = vsub.s32 %v14210_v2, %v477_v4  ;;  %v14449_v2 = vadd.s32 184, %v14088_v13 }
 0x2ba   : > { %17575 = vst [vmem:[#allocation6_spill] sm:$0xff] %v17574_v35  ;;  %v14428_v44 = vadd.s32 18, %v14379_v16  ;;  %v17582_v59 = vsel %vm14451_vm6, 4294967295, %v17581_v59  ;;  %v14466_v30 = vmul.u32.u64.low 3817748708, %v14415_v28  ;;  %v14467_v38 = vmul.u32.u64.high 3817748708, %v14415_v28, %v14466_v30  ;;  %vm14473_vm6 = vmand %vm759_vm15, %vm723_vm13 }
 0x2bb   : > { %17583 = vst [vmem:[#allocation8_spill] sm:$0xff] %v17582_v59  ;;  %v17588_v57 = vmov 0  ;;  %vm17591_vm13 = vcmp.ne.s32.totalorder %v14379_v16, 0  ;;  %vm17592_vm15 = vcmp.lt.s32.totalorder %v14379_v16, 0  ;;  %vm726_vm9 = vcmp.ne.s32.totalorder %v14432_v60, 0 }
 0x2bc   : > { %v17589_v57 = vsel %vm14488_vm11, 4294967295, %v17588_v57  ;;  %vm14496_vm10 = vmand %vm17592_vm15, %vm17591_vm13  ;;  %v510_v24 = vmul.u32 18, %v509_v51  ;;  %v14503_v12 = vadd.s32 176, %v14088_v13  ;;  %vm17595_vm14 = vcmp.ne.s32.totalorder %v14391_v23, 0 }
 0x2bd   : > { %17590 = vst [vmem:[#allocation9_spill] sm:$0xff] %v17589_v57  ;;  %vm17596_vm11 = vcmp.lt.s32.totalorder %v14391_v23, 0  ;;  %v499_v45 = vmul.u32 18, %v498_v54  ;;  %v14515_v55 = vmul.u32.u64.low 3817748708, %v14449_v2  ;;  %v14516_v17 = vmul.u32.u64.high 3817748708, %v14449_v2, %v14515_v55 }
 0x2be   : > { %vm14509_vm4 = vmand %vm17596_vm11, %vm17595_vm14  ;;  %vm14523_vm15 = vcmp.lt.s32.totalorder %v860_v15, 16  ;;  %vm17602_vm11 = vcmp.ne.s32.totalorder %v14412_v42, 0  ;;  %vm17603_vm14 = vcmp.lt.s32.totalorder %v14412_v42, 0  ;;  %v14544_v48 = vadd.s32 18, %v14412_v42 }
 0x2bf   : > { %v17600_v18 = vsel %vm14523_vm15, 4294967295, %v17599_v18  ;;  %vm14539_vm13 = vmand %vm17603_vm14, %vm17602_vm11  ;;  %v867_v15 = vsel %vm14473_vm6, %v14403_v26, %v14354_v37  ;;  %v14564_v0 = vadd.s32 18, %v14432_v60  ;;  %v531_v4 = vshrl.u32 %v14422_v32, 4 }
 0x2c0   : > { %17601 = vst [vmem:[#allocation10_spill] sm:$0xff] %v17600_v18  ;;  %v521_v6 = vmul.u32 18, %v520_v40  ;;  %v17610_v14 = vsel %vm14577_vm1, 4294967295, %v17609_v14  ;;  %vm17612_vm8 = vcmp.lt.s32.totalorder %v14432_v60, 0  ;;  %v14590_v54 = vsub.s32 %v14318_v62, %v510_v24 }
 0x2c1   : > { %17611 = vst [vmem:[#allocation11_spill] sm:$0xff] %v17610_v14  ;;  %vm14585_vm11 = vmand %vm17612_vm8, %vm726_vm9  ;;  %v14593_v33 = vmul.u32.u64.low 3817748708, %v14503_v12  ;;  %v14594_v20 = vmul.u32.u64.high 3817748708, %v14503_v12, %v14593_v33  ;;  %v866_v36 = vsel %vm14496_vm10, %v14428_v44, %v14379_v16  ;;  %v869_v9 = vsel %vm14509_vm4, %v14445_v53, %v14391_v23 }
 0x2c2   : > { %v14608_v62 = vsub.s32 %v14331_v7, %v499_v45  ;;  %vm14615_vm2 = vcmp.lt.s32.totalorder %v862_v63, 16  ;;  %v17615_v40 = vmov 0  ;;  %v868_v16 = vsel %vm14539_vm13, %v14544_v48, %v14412_v42 }
 0x2c3   : > { %v17616_v40 = vsel %vm14615_vm2, 4294967295, %v17615_v40  ;;  %v553_v44 = vshrl.u32 %v14467_v38, 4  ;;  %v870_v25 = vsel %vm14585_vm11, %v14564_v0, %v14432_v60  ;;  %v532_v11 = vmul.u32 18, %v531_v4 }
 0x2c4   : > { %17617 = vst [vmem:[#allocation12_spill] sm:$0xff] %v17616_v40  ;;  %v14635_v63 = vsub.s32 %v14358_v39, %v521_v6  ;;  %v542_v42 = vshrl.u32 %v14481_v56, 4  ;;  %vm14645_vm9 = vcmp.lt.s32.totalorder %v863_v19, 16  ;;  %v17619_v38 = vmov 0 }
 0x2c5   : > { %v17620_v38 = vsel %vm14645_vm9, 4294967295, %v17619_v38  ;;  %vm729_vm10 = vcmp.ne.s32.totalorder %v14590_v54, 0  ;;  %v14652_v39 = vadd.s32 18, %v14590_v54  ;;  %v14655_v56 = vadd.s32 200, %v14088_v13 }
 0x2c6   : > { %17621 = vst [vmem:[#allocation13_spill] sm:$0xff] %v17620_v38  ;;  %vm17622_vm14 = vnez %v17582_v59  ;;  %v575_v1 = vshrl.u32 %v14516_v17, 4  ;;  %vm14663_vm7 = vcmp.lt.s32.totalorder %v864_v22, 16  ;;  %v17623_v19 = vmov 0 }
 0x2c7   : > { %v17624_v19 = vsel %vm14663_vm7, 4294967295, %v17623_v19  ;;  %v14668_v8 = vadd.s32 18, %v14608_v62  ;;  %v554_v24 = vmul.u32 18, %v553_v44  ;;  %v14671_v45 = vadd.s32 192, %v14088_v13 }
 0x2c8   : > { %17625 = vst [vmem:[#allocation14_spill] sm:$0xff] %v17624_v19  ;;  %vm17626_vm13 = vnez %v17589_v57  ;;  %vm17627_vm8 = vcmp.lt.s32.totalorder %v14590_v54, 0  ;;  %v14687_v22 = vsub.s32 %v14382_v21, %v532_v11  ;;  %v543_v48 = vmul.u32 18, %v542_v42 }
 0x2c9   : > { %vm14682_vm3 = vmand %vm17627_vm8, %vm729_vm10  ;;  %vm17634_vm10 = vcmp.lt.s32.totalorder %v14608_v62, 0  ;;  %v14706_v21 = vadd.s32 18, %v14635_v63  ;;  %v14713_v44 = vmul.u32.u64.low 3817748708, %v14655_v56  ;;  %v14714_v11 = vmul.u32.u64.high 3817748708, %v14655_v56, %v14713_v44 }
 0x2ca   : > { %v17642_v33 = vmov 0  ;;  %v14769_v58 = vadd.s32 18, %v14687_v22  ;;  %vm14774_vm6 = vcmp.lt.s32.totalorder %v868_v16, 16  ;;  %vm14825_vm4 = vcmp.lt.s32.totalorder %v870_v25, 16 }
 0x2cb   : > { %v597_v23 = vshrl.u32 %v14714_v11, 4  ;;  %vm17655_vm11 = vcmp.lt.s32.totalorder %v14687_v22, 0  ;;  %v14852_v25 = vadd.s32 224, %v14088_v13  ;;  %v17681_v18 = vmov 0 }
 0x2cc   : > { %v14944_v59 = vadd.s32 240, %v14088_v13 }
 0x343   : > { %v14549_v5 = vpop.f32.mrb[0].mxu0 }
 0x344   : > { %v4702_v31 = vsel %vm14393_vm12, %v14549_v5, 0.0  ;;  %v14570_v51 = vpop.f32.mrb[1].mxu0  ;;  %vm17633_vm12 = vcmp.ne.s32.totalorder %v14608_v62, 0 }
 0x345   : > { %v4701_v46 = vsel %vm14405_vm0, %v14570_v51, 0.0  ;;  %vm14700_vm8 = vmand %vm17634_vm10, %vm17633_vm12  ;;  %vm766_vm0 = vcmp.lt.s32.totalorder %v14635_v63, 0  ;;  %vm14716_vm12 = vcmp.lt.s32.totalorder %v866_v36, 16  ;;  %v17670_v36 = vmov 0 }
 0x346   : > { %v4737_v30 = vadd.f32 %v4702_v31, %v4701_v46  ;;  %v17630_v31 = vmov 0  ;;  %v564_v46 = vshrl.u32 %v14594_v20, 4 }
 0x347   : > { %v14628_v61 = vpop.f32.mrb[2].mxu0 }
 0x348   : > { %v14638_v41 = vpop.f32.mrb[3].mxu0  ;;  %v4704_v55 = vsel %vm17626_vm13, %v14628_v61, 0.0  ;;  %vm14692_vm13 = vcmp.lt.s32.totalorder %v865_v3, 16 }
 0x349   : > { %v4703_v52 = vsel %vm17622_vm14, %v14638_v41, 0.0  ;;  %vm730_vm14 = vcmp.ne.s32.totalorder %v14635_v63, 0  ;;  %v17631_v31 = vsel %vm14692_vm13, 4294967295, %v17630_v31 }
 0x34a   : > { %v4738_v50 = vadd.f32 %v4737_v30, %v4703_v52  ;;  %17632 = vst [vmem:[#allocation15_spill] sm:$0xff] %v17631_v31  ;;  %v576_v30 = vmul.u32 18, %v575_v1  ;;  %v17637_v52 = vmov 0  ;;  %vm14742_vm10 = vmand %vm766_vm0, %vm730_vm14  ;;  %vm17654_vm14 = vcmp.ne.s32.totalorder %v14687_v22, 0 }
 0x34b   : > { %v14676_v47 = vpop.f32.mrb[4].mxu0  ;;  %v17638_v52 = vsel %vm14716_vm12, 4294967295, %v17637_v52  ;;  %vm14843_vm0 = vmand %vm17655_vm11, %vm17654_vm14 }
 0x34c   : > { %v14690_v4 = vpop.f32.mrb[5].mxu0  ;;  %v4739_v6 = vadd.f32 %v4738_v50, %v4704_v55  ;;  %17639 = vst [vmem:[#allocation16_spill] sm:$0xff] %v17638_v52  ;;  %v14721_v50 = vsub.s32 %v14415_v28, %v554_v24  ;;  %v14724_v55 = vmul.u32.u64.low 3817748708, %v14671_v45  ;;  %v14725_v20 = vmul.u32.u64.high 3817748708, %v14671_v45, %v14724_v55 }
 0x34d   : > { %v4705_v3 = vsel %vm14523_vm15, %v14690_v4, 0.0  ;;  %v4706_v1 = vsel %vm14577_vm1, %v14676_v47, 0.0  ;;  %v872_v28 = vsel %vm14700_vm8, %v14668_v8, %v14608_v62  ;;  %vm14756_vm1 = vcmp.lt.s32.totalorder %v867_v15, 16 }
 0x34e   : > { %v4740_v42 = vadd.f32 %v4739_v6, %v4705_v3  ;;  %v14747_v6 = vsub.s32 %v14425_v43, %v543_v48  ;;  %v17643_v33 = vsel %vm14756_vm1, 4294967295, %v17642_v33  ;;  %v565_v62 = vmul.u32 18, %v564_v46 }
 0x34f   : > { %v14730_v7 = vpop.f32.mrb[6].mxu0  ;;  %17644 = vst [vmem:[#allocation17_spill] sm:$0xff] %v17643_v33  ;;  %v14762_v8 = vadd.s32 208, %v14088_v13  ;;  %v14772_v37 = vsub.s32 %v14449_v2, %v576_v30  ;;  %v17645_v15 = vmov 0  ;;  %v14784_v46 = vadd.s32 216, %v14088_v13 }
 0x350   : > { %v14749_v3 = vpop.f32.mrb[7].mxu0  ;;  %v4741_v44 = vadd.f32 %v4740_v42, %v4706_v1  ;;  %v17646_v15 = vsel %vm14774_vm6, 4294967295, %v17645_v15  ;;  %v4708_v2 = vsel %vm14645_vm9, %v14730_v7, 0.0  ;;  %v14793_v16 = vadd.s32 18, %v14721_v50 }
 0x351   : > { %v4707_v43 = vsel %vm14615_vm2, %v14749_v3, 0.0  ;;  %17647 = vst [vmem:[#allocation18_spill] sm:$0xff] %v17646_v15  ;;  %vm14803_vm8 = vcmp.lt.s32.totalorder %v869_v9, 16  ;;  %v17648_v1 = vmov 0  ;;  %v586_v10 = vshrl.u32 %v14725_v20, 4 }
 0x352   : > { %v4742_v26 = vadd.f32 %v4741_v44, %v4707_v43  ;;  %v17649_v1 = vsel %vm14803_vm8, 4294967295, %v17648_v1  ;;  %v14808_v44 = vsub.s32 %v14503_v12, %v565_v62  ;;  %v17651_v12 = vmov 0 }
 0x353   : > { %v14789_v30 = vpop.f32.mrb[8].mxu0  ;;  %17650 = vst [vmem:[#allocation19_spill] sm:$0xff] %v17649_v1  ;;  %v14811_v43 = vmul.u32.u64.low 3817748708, %v14762_v8  ;;  %v14812_v48 = vmul.u32.u64.high 3817748708, %v14762_v8, %v14811_v43  ;;  %v17652_v12 = vsel %vm14825_vm4, 4294967295, %v17651_v12  ;;  %v14832_v9 = vadd.s32 232, %v14088_v13 }
 0x354   : > { %v14796_v42 = vpop.f32.mrb[9].mxu0  ;;  %v4743_v55 = vadd.f32 %v4742_v26, %v4708_v2  ;;  %17653 = vst [vmem:[#allocation20_spill] sm:$0xff] %v17652_v12  ;;  %v4710_v11 = vsel %vm14692_vm13, %v14789_v30, 0.0  ;;  %v14848_v0 = vmul.u32.u64.low 3817748708, %v14784_v46  ;;  %v14849_v32 = vmul.u32.u64.high 3817748708, %v14784_v46, %v14848_v0 }
 0x355   : > { %v4709_v26 = vsel %vm14663_vm7, %v14796_v42, 0.0  ;;  %v17659_v43 = vmov 0  ;;  %vm17662_vm14 = vcmp.ne.s32.totalorder %v14721_v50, 0  ;;  %vm17663_vm11 = vcmp.lt.s32.totalorder %v14721_v50, 0 }
 0x356   : > { %v4744_v53 = vadd.f32 %v4743_v55, %v4709_v26  ;;  %v17658_v55 = vsel %vm14559_vm5, %v14547_v49, %v14418_v29  ;;  %vm14869_vm13 = vmand %vm17663_vm11, %vm17662_vm14  ;;  %v840_v0 = vadd.s32 18, %v14747_v6  ;;  %vm770_vm2 = vcmp.lt.s32.totalorder %v14808_v44, 0 }
 0x357   : > { %v14837_v62 = vpop.f32.mrb[10].mxu0  ;;  %vm14861_vm9 = vcmp.lt.s32.totalorder %v17658_v55, 16  ;;  %vm17666_vm5 = vcmp.ne.s32.totalorder %v14747_v6, 0  ;;  %vm17667_vm15 = vcmp.lt.s32.totalorder %v14747_v6, 0  ;;  %v14888_v34 = vadd.s32 18, %v14772_v37 }
 0x358   : > { %v14854_v20 = vpop.f32.mrb[11].mxu0  ;;  %v4745_v2 = vadd.f32 %v4744_v53, %v4710_v11  ;;  %v17660_v43 = vsel %vm14861_vm9, 4294967295, %v17659_v43  ;;  %vm14883_vm9 = vmand %vm17667_vm15, %vm17666_vm5  ;;  %v14891_v53 = vadd.s32 18, %v14808_v44  ;;  %v598_v11 = vmul.u32 18, %v597_v23 }
 0x359   : > { %17661 = vst [vmem:[#allocation21_spill] sm:$0xff] %v17660_v43  ;;  %v4711_v29 = vsel %vm14716_vm12, %v14854_v20, 0.0  ;;  %vm14893_vm14 = vcmp.lt.s32.totalorder %v872_v28, 16  ;;  %vm17673_vm11 = vcmp.ne.s32.totalorder %v14772_v37, 0  ;;  %vm17674_vm7 = vcmp.lt.s32.totalorder %v14772_v37, 0 }
 0x35a   : > { %v4746_v55 = vadd.f32 %v4745_v2, %v4711_v29  ;;  %v17671_v36 = vsel %vm14893_vm14, 4294967295, %v17670_v36  ;;  %vm14901_vm15 = vmand %vm17674_vm7, %vm17673_vm11  ;;  %v587_v31 = vmul.u32 18, %v586_v10  ;;  %v4712_v28 = vsel %vm14756_vm1, %v14837_v62, 0.0 }
 0x35b   : > { %17672 = vst [vmem:[#allocation22_spill] sm:$0xff] %v17671_v36  ;;  %v14906_v19 = vmul.u32.u64.low 3817748708, %v14832_v9  ;;  %v14907_v38 = vmul.u32.u64.high 3817748708, %v14832_v9, %v14906_v19  ;;  %v14912_v23 = vpop.f32.mrb[12].mxu0  ;;  %vm17677_vm5 = vcmp.ne.s32.totalorder %v14808_v44, 0  ;;  %v14925_v10 = vadd.s32 248, %v14088_v13 }
 0x35c   : > { %vm14916_vm12 = vmand %vm770_vm2, %vm17677_vm5  ;;  %v14921_v29 = vmul.u32.u64.low 3817748708, %v14852_v25  ;;  %v14922_v40 = vmul.u32.u64.high 3817748708, %v14852_v25, %v14921_v29  ;;  %v14927_v19 = vpop.f32.mrb[13].mxu0  ;;  %v4747_v14 = vadd.f32 %v4746_v55, %v4712_v28  ;;  %v17680_v33 = vsel %vm14682_vm3, %v14652_v39, %v14590_v54 }
 0x35d   : > { %vm14934_vm7 = vcmp.lt.s32.totalorder %v17680_v33, 16  ;;  %v875_v29 = vsel %vm14843_vm0, %v14769_v58, %v14687_v22  ;;  %v608_v57 = vshrl.u32 %v14812_v48, 4  ;;  %v4713_v17 = vsel %vm14774_vm6, %v14927_v19, 0.0 }
 0x35e   : > { %v17682_v18 = vsel %vm14934_vm7, 4294967295, %v17681_v18  ;;  %v877_v54 = vsel %vm14869_vm13, %v14793_v16, %v14721_v50  ;;  %v876_v39 = vsel %vm14883_vm9, %v840_v0, %v14747_v6  ;;  %v14957_v22 = vsub.s32 %v14655_v56, %v598_v11 }
 0x35f   : > { %17683 = vst [vmem:[#allocation23_spill] sm:$0xff] %v17682_v18  ;;  %v4748_v33 = vadd.f32 %v4747_v14, %v4713_v17  ;;  %v17684_v58 = vsel %vm14742_vm10, %v14706_v21, %v14635_v63  ;;  %v17685_v48 = vmov 0  ;;  %v879_v50 = vsel %vm14901_vm15, %v14888_v34, %v14772_v37  ;;  %v14982_v21 = vpop.f32.mrb[14].mxu0 }
 0x360   : > { %vm14964_vm2 = vcmp.lt.s32.totalorder %v17684_v58, 16  ;;  %v878_v56 = vsel %vm14916_vm12, %v14891_v53, %v14808_v44  ;;  %v14977_v14 = vsub.s32 %v14671_v45, %v587_v31  ;;  %v4714_v63 = vsel %vm14803_vm8, %v14912_v23, 0.0  ;;  %v14989_v37 = vpop.f32.mrb[15].mxu0 }
 0x361   : > { %v17686_v48 = vsel %vm14964_vm2, 4294967295, %v17685_v48  ;;  %v619_v24 = vshrl.u32 %v14849_v32, 4  ;;  %v14986_v6 = vmul.u32.u64.low 3817748708, %v14925_v10  ;;  %v14987_v52 = vmul.u32.u64.high 3817748708, %v14925_v10, %v14986_v6 }
 0x362   : > { %17687 = vst [vmem:[#allocation24_spill] sm:$0xff] %v17686_v48  ;;  %v4749_v16 = vadd.f32 %v4748_v33, %v4714_v63  ;;  %vm14991_vm9 = vcmp.lt.s32.totalorder %v875_v29, 16  ;;  %v17688_v44 = vmov 0  ;;  %v609_v45 = vmul.u32 18, %v608_v57  ;;  %v17799_v12 = vld [vmem:[#allocation22_spill] sm:$0xff] }
 0x363   : > { %v17689_v44 = vsel %vm14991_vm9, 4294967295, %v17688_v44  ;;  %v14996_v31 = vmul.u32.u64.low 3817748708, %v14944_v59  ;;  %v14997_v60 = vmul.u32.u64.high 3817748708, %v14944_v59, %v14996_v31  ;;  %v4715_v32 = vsel %vm14825_vm4, %v14989_v37, 0.0  ;;  %v15019_v11 = vpop.f32.mrb[16].mxu0 }
 0x364   : > { %17690 = vst [vmem:[#allocation25_spill] sm:$0xff] %v17689_v44  ;;  %vm737_vm13 = vcmp.ne.s32.totalorder %v14957_v22, 0  ;;  %v15004_v26 = vadd.s32 264, %v14088_v13  ;;  %v15007_v0 = vadd.s32 256, %v14088_v13  ;;  %v4750_v49 = vadd.f32 %v4749_v16, %v4715_v32  ;;  %v15023_v29 = vpop.f32.mrb[17].mxu0 }
 0x365   : > { %vm15009_vm3 = vcmp.lt.s32.totalorder %v876_v39, 16  ;;  %v17691_v34 = vmov 0  ;;  %vm773_vm12 = vcmp.lt.s32.totalorder %v14957_v22, 0  ;;  %v845_v57 = vadd.s32 18, %v14957_v22 }
 0x366   : > { %v17692_v34 = vsel %vm15009_vm3, 4294967295, %v17691_v34  ;;  %vm17694_vm0 = vnez %v17660_v43  ;;  %v620_v55 = vmul.u32 18, %v619_v24  ;;  %v641_v28 = vshrl.u32 %v14907_v38, 4  ;;  %vm15064_vm15 = vmand %vm773_vm12, %vm737_vm13 }
 0x367   : > { %17693 = vst [vmem:[#allocation26_spill] sm:$0xff] %v17692_v34  ;;  %v4716_v53 = vsel %vm17694_vm0, %v14982_v21, 0.0  ;;  %v630_v2 = vshrl.u32 %v14922_v40, 4  ;;  %vm15025_vm11 = vcmp.lt.s32.totalorder %v877_v54, 16  ;;  %v17695_v39 = vmov 0  ;;  %v15058_v32 = vpop.f32.mrb[18].mxu0 }
 0x368   : > { %v4751_v17 = vadd.f32 %v4750_v49, %v4716_v53  ;;  %v17696_v39 = vsel %vm15025_vm11, 4294967295, %v17695_v39  ;;  %v844_v33 = vadd.s32 18, %v14977_v14  ;;  %v15032_v58 = vsub.s32 %v14762_v8, %v609_v45 }
 0x369   : > { %17697 = vst [vmem:[#allocation27_spill] sm:$0xff] %v17696_v39  ;;  %v4717_v38 = vsel %vm14893_vm14, %v15023_v29, 0.0  ;;  %v15038_v40 = vmul.u32.u64.low 3817748708, %v15007_v0  ;;  %v15039_v63 = vmul.u32.u64.high 3817748708, %v15007_v0, %v15038_v40  ;;  %v15042_v54 = vadd.s32 272, %v14088_v13 }
 0x36a   : > { %v4752_v24 = vadd.f32 %v4751_v17, %v4717_v38  ;;  %vm15044_vm5 = vcmp.lt.s32.totalorder %v878_v56, 16  ;;  %v17698_v6 = vmov 0  ;;  %v15053_v45 = vadd.s32 280, %v14088_v13  ;;  %v15071_v38 = vpop.f32.mrb[19].mxu0 }
 0x36b   : > { %v17699_v6 = vsel %vm15044_vm5, 4294967295, %v17698_v6  ;;  %v15049_v16 = vmul.u32.u64.low 3817748708, %v15004_v26  ;;  %v15050_v8 = vmul.u32.u64.high 3817748708, %v15004_v26, %v15049_v16  ;;  %v4718_v31 = vsel %vm14934_vm7, %v15019_v11, 0.0  ;;  %v15106_v48 = vpop.f32.mrb[20].mxu0 }
 0x36c   : > { %17700 = vst [vmem:[#allocation28_spill] sm:$0xff] %v17699_v6  ;;  %v15069_v49 = vsub.s32 %v14784_v46, %v620_v55  ;;  %v642_v53 = vmul.u32 18, %v641_v28  ;;  %v631_v17 = vmul.u32 18, %v630_v2  ;;  %v4753_v40 = vadd.f32 %v4752_v24, %v4718_v31 }
 0x36d   : > { %vm15073_vm10 = vcmp.lt.s32.totalorder %v879_v50, 16  ;;  %v17703_v16 = vmov 0  ;;  %vm17706_vm7 = vcmp.ne.s32.totalorder %v14977_v14, 0  ;;  %vm17707_vm14 = vcmp.lt.s32.totalorder %v14977_v14, 0 }
 0x36e   : > { %v17704_v16 = vsel %vm15073_vm10, 4294967295, %v17703_v16  ;;  %vm15081_vm13 = vmand %vm17707_vm14, %vm17706_vm7  ;;  %vm738_vm12 = vcmp.ne.s32.totalorder %v15032_v58, 0  ;;  %v663_v46 = vshrl.u32 %v14987_v52, 4  ;;  %v652_v55 = vshrl.u32 %v14997_v60, 4 }
 0x36f   : > { %17705 = vst [vmem:[#allocation29_spill] sm:$0xff] %v17704_v16  ;;  %v4719_v50 = vsel %vm14964_vm2, %v15071_v38, 0.0  ;;  %vm774_vm0 = vcmp.lt.s32.totalorder %v15032_v58, 0  ;;  %v15093_v28 = vmul.u32.u64.low 3817748708, %v15042_v54  ;;  %v15094_v2 = vmul.u32.u64.high 3817748708, %v15042_v54, %v15093_v28 }
 0x370   : > { %v4754_v24 = vadd.f32 %v4753_v40, %v4719_v50  ;;  %v881_v31 = vsel %vm15064_vm15, %v845_v57, %v14957_v22  ;;  %v15100_v18 = vmul.u32.u64.low 3817748708, %v15053_v45  ;;  %v15101_v52 = vmul.u32.u64.high 3817748708, %v15053_v45, %v15100_v18  ;;  %v15115_v22 = vpop.f32.mrb[21].mxu0  ;;  %vm15119_vm14 = vmand %vm774_vm0, %vm738_vm12 }
 0x371   : > { %v4720_v60 = vsel %vm14991_vm9, %v15058_v32, 0.0  ;;  %v880_v36 = vsel %vm15081_vm13, %v844_v33, %v14977_v14  ;;  %v846_v40 = vadd.s32 18, %v15032_v58  ;;  %v15113_v50 = vsub.s32 %v14832_v9, %v642_v53 }
 0x372   : > { %v4755_v57 = vadd.f32 %v4754_v24, %v4720_v60  ;;  %v15124_v56 = vsub.s32 %v14852_v25, %v631_v17  ;;  %v664_v28 = vmul.u32 18, %v663_v46  ;;  %v653_v13 = vmul.u32 18, %v652_v55  ;;  %v15144_v55 = vpop.f32.mrb[22].mxu0 }
 0x373   : > { %v4721_v14 = vsel %vm15009_vm3, %v15115_v22, 0.0  ;;  %vm739_vm7 = vcmp.ne.s32.totalorder %v15069_v49, 0  ;;  %vm775_vm15 = vcmp.lt.s32.totalorder %v15069_v49, 0  ;;  %v674_v9 = vshrl.u32 %v15039_v63, 4 }
 0x374   : > { %v4756_v33 = vadd.f32 %v4755_v57, %v4721_v14  ;;  %vm15132_vm0 = vcmp.lt.s32.totalorder %v881_v31, 16  ;;  %v17712_v53 = vmov 0  ;;  %vm15136_vm13 = vcmp.lt.s32.totalorder %v880_v36, 16  ;;  %v15151_v36 = vpop.f32.mrb[23].mxu0  ;;  %vm15157_vm3 = vmand %vm775_vm15, %vm739_vm7 }
 0x375   : > { %v17713_v53 = vsel %vm15132_vm0, 4294967295, %v17712_v53  ;;  %v17715_v25 = vmov 0  ;;  %v685_v17 = vshrl.u32 %v15050_v8, 4  ;;  %v4722_v46 = vsel %vm15025_vm11, %v15106_v48, 0.0 }
 0x376   : > { %17714 = vst [vmem:[#allocation30_spill] sm:$0xff] %v17713_v53  ;;  %v17716_v25 = vsel %vm15136_vm13, 4294967295, %v17715_v25  ;;  %v847_v24 = vadd.s32 18, %v15069_v49  ;;  %v882_v63 = vsel %vm15119_vm14, %v846_v40, %v15032_v58  ;;  %v4757_v31 = vadd.f32 %v4756_v33, %v4722_v46 }
 0x377   : > { %17717 = vst [vmem:[#allocation31_spill] sm:$0xff] %v17716_v25  ;;  %vm740_vm11 = vcmp.ne.s32.totalorder %v15124_v56, 0  ;;  %v15163_v60 = vsub.s32 %v14925_v10, %v664_v28  ;;  %v15166_v58 = vsub.s32 %v14944_v59, %v653_v13  ;;  %v4723_v40 = vsel %vm15044_vm5, %v15151_v36, 0.0  ;;  %v15178_v10 = vpop.f32.mrb[24].mxu0 }
 0x378   : > { %vm776_vm14 = vcmp.lt.s32.totalorder %v15124_v56, 0  ;;  %v675_v57 = vmul.u32 18, %v674_v9  ;;  %v696_v18 = vshrl.u32 %v15094_v2, 4  ;;  %v4758_v14 = vadd.f32 %v4757_v31, %v4723_v40  ;;  %v15185_v9 = vpop.f32.mrb[25].mxu0 }
 0x379   : > { %v686_v33 = vmul.u32 18, %v685_v17  ;;  %v707_v46 = vshrl.u32 %v15101_v52, 4  ;;  %v4724_v59 = vsel %vm15073_vm10, %v15144_v55, 0.0  ;;  %v883_v28 = vsel %vm15157_vm3, %v847_v24, %v15069_v49  ;;  %vm15195_vm7 = vmand %vm776_vm14, %vm740_vm11  ;;  %v15219_v16 = vpop.f32.mrb[26].mxu0 }
 0x37a   : > { %v849_v13 = vadd.s32 18, %v15113_v50  ;;  %v848_v2 = vadd.s32 18, %v15124_v56  ;;  %v4759_v31 = vadd.f32 %v4758_v14, %v4724_v59  ;;  %vm15187_vm15 = vcmp.lt.s32.totalorder %v882_v63, 16 }
 0x37b   : > { %v17720_v17 = vmov 0  ;;  %vm743_vm3 = vcmp.ne.s32.totalorder %v15163_v60, 0  ;;  %vm742_vm12 = vcmp.ne.s32.totalorder %v15166_v58, 0  ;;  %v4725_v49 = vsel %vm15136_vm13, %v15185_v9, 0.0 }
 0x37c   : > { %v17721_v17 = vsel %vm15187_vm15, 4294967295, %v17720_v17  ;;  %vm17725_vm10 = vcmp.ne.s32.totalorder %v15113_v50, 0  ;;  %vm17726_vm5 = vcmp.lt.s32.totalorder %v15113_v50, 0  ;;  %vm778_vm11 = vcmp.lt.s32.totalorder %v15166_v58, 0 }
 0x37d   : > { %17722 = vst [vmem:[#allocation32_spill] sm:$0xff] %v17721_v17  ;;  %vm15208_vm9 = vmand %vm17726_vm5, %vm17725_vm10  ;;  %v676_v63 = vsub.s32 %v15007_v0, %v675_v57  ;;  %v697_v8 = vmul.u32 18, %v696_v18  ;;  %v4760_v40 = vadd.f32 %v4759_v31, %v4725_v49  ;;  %vm779_vm14 = vcmp.lt.s32.totalorder %v15163_v60, 0  ;;  %v15229_v57 = vpop.f32.mrb[27].mxu0 }
 0x37e   : > { %v687_v14 = vsub.s32 %v15004_v26, %v686_v33  ;;  %v708_v59 = vmul.u32 18, %v707_v46  ;;  %v4726_v25 = vsel %vm15132_vm0, %v15178_v10, 0.0  ;;  %v884_v6 = vsel %vm15195_vm7, %v848_v2, %v15124_v56  ;;  %vm15239_vm5 = vmand %vm778_vm11, %vm742_vm12  ;;  %v15261_v52 = vpop.f32.mrb[28].mxu0 }
 0x37f   : > { %v850_v39 = vadd.s32 18, %v15166_v58  ;;  %vm15225_vm10 = vcmp.lt.s32.totalorder %v883_v28, 16  ;;  %v17729_v0 = vmov 0  ;;  %v4761_v26 = vadd.f32 %v4760_v40, %v4726_v25  ;;  %vm15248_vm7 = vmand %vm779_vm14, %vm743_vm3  ;;  %v15270_v24 = vpop.f32.mrb[29].mxu0 }
 0x380   : > { %v17730_v0 = vsel %vm15225_vm10, 4294967295, %v17729_v0  ;;  %v885_v18 = vsel %vm15208_vm9, %v849_v13, %v15113_v50  ;;  %v851_v33 = vadd.s32 18, %v15163_v60  ;;  %v4727_v46 = vsel %vm15187_vm15, %v15229_v57, 0.0 }
 0x381   : > { %17731 = vst [vmem:[#allocation33_spill] sm:$0xff] %v17730_v0  ;;  %vm744_vm9 = vcmp.ne.s32.totalorder %v676_v63, 0  ;;  %vm780_vm0 = vcmp.lt.s32.totalorder %v676_v63, 0  ;;  %v698_v50 = vsub.s32 %v15042_v54, %v697_v8  ;;  %v4762_v28 = vadd.f32 %v4761_v26, %v4727_v46 }
 0x382   : > { %vm15253_vm13 = vcmp.lt.s32.totalorder %v884_v6, 16  ;;  %v17736_v13 = vmov 0  ;;  %v709_v2 = vsub.s32 %v15053_v45, %v708_v59  ;;  %v4728_v31 = vsel %vm15225_vm10, %v15219_v16, 0.0  ;;  %vm15277_vm14 = vmand %vm780_vm0, %vm744_vm9 }
 0x383   : > { %v17737_v13 = vsel %vm15253_vm13, 4294967295, %v17736_v13  ;;  %v886_v49 = vsel %vm15239_vm5, %v850_v39, %v15166_v58  ;;  %vm781_vm3 = vcmp.lt.s32.totalorder %v687_v14, 0  ;;  %v852_v54 = vadd.s32 18, %v676_v63 }
 0x384   : > { %17738 = vst [vmem:[#allocation34_spill] sm:$0xff] %v17737_v13  ;;  %vm15266_vm11 = vcmp.lt.s32.totalorder %v885_v18, 16  ;;  %v17739_v6 = vmov 0  ;;  %v4763_v8 = vadd.f32 %v4762_v28, %v4728_v31  ;;  %v887_v45 = vsel %vm15248_vm7, %v851_v33, %v15163_v60  ;;  %v15296_v33 = vpop.f32.mrb[30].mxu0 }
 0x385   : > { %v17740_v6 = vsel %vm15266_vm11, 4294967295, %v17739_v6  ;;  %v4729_v39 = vsel %vm15253_vm13, %v15270_v24, 0.0  ;;  %v853_v58 = vadd.s32 18, %v687_v14  ;;  %vm746_vm5 = vcmp.ne.s32.totalorder %v698_v50, 0  ;;  %v15304_v28 = vpop.f32.mrb[31].mxu0 }
 0x386   : > { %17741 = vst [vmem:[#allocation35_spill] sm:$0xff] %v17740_v6  ;;  %vm782_vm12 = vcmp.lt.s32.totalorder %v698_v50, 0  ;;  %v4764_v59 = vadd.f32 %v4763_v8, %v4729_v39  ;;  %vm15284_vm10 = vcmp.lt.s32.totalorder %v886_v49, 16  ;;  %v17744_v26 = vmov 0 }
 0x387   : > { %v17745_v26 = vsel %vm15284_vm10, 4294967295, %v17744_v26  ;;  %vm17747_vm15 = vcmp.ne.s32.totalorder %v687_v14, 0  ;;  %vm747_vm0 = vcmp.ne.s32.totalorder %v709_v2, 0  ;;  %v4730_v18 = vsel %vm15266_vm11, %v15261_v52, 0.0 }
 0x388   : > { %17746 = vst [vmem:[#allocation36_spill] sm:$0xff] %v17745_v26  ;;  %vm15289_vm7 = vmand %vm781_vm3, %vm17747_vm15  ;;  %v888_v56 = vsel %vm15277_vm14, %v852_v54, %v676_v63  ;;  %vm783_vm9 = vcmp.lt.s32.totalorder %v709_v2, 0  ;;  %v854_v46 = vadd.s32 18, %v698_v50  ;;  %vm15300_vm13 = vcmp.lt.s32.totalorder %v887_v45, 16 }
 0x389   : > { %v17750_v25 = vmov 0  ;;  %v4765_v31 = vadd.f32 %v4764_v59, %v4730_v18  ;;  %vm15306_vm15 = vmand %vm782_vm12, %vm746_vm5  ;;  %v4731_v8 = vsel %vm15284_vm10, %v15304_v28, 0.0  ;;  %v889_v63 = vsel %vm15289_vm7, %v853_v58, %v687_v14  ;;  %v15323_v59 = vpop.f32.mrb[32].mxu0 }
 0x38a   : > { %v17751_v25 = vsel %vm15300_vm13, 4294967295, %v17750_v25  ;;  %v855_v54 = vadd.s32 18, %v709_v2  ;;  %vm15315_vm3 = vcmp.lt.s32.totalorder %v888_v56, 16  ;;  %v17755_v45 = vmov 0  ;;  %vm819_vm14 = vmand %vm783_vm9, %vm747_vm0  ;;  %v15331_v14 = vpop.f32.mrb[33].mxu0 }
 0x38b   : > { %17752 = vst [vmem:[#allocation37_spill] sm:$0xff] %v17751_v25  ;;  %v4766_v40 = vadd.f32 %v4765_v31, %v4731_v8  ;;  %v17756_v45 = vsel %vm15315_vm3, 4294967295, %v17755_v45  ;;  %v4732_v39 = vsel %vm15300_vm13, %v15296_v33, 0.0  ;;  %v890_v18 = vsel %vm15306_vm15, %v854_v46, %v698_v50  ;;  %v15343_v46 = vpop.f32.mrb[34].mxu0 }
 0x38c   : > { %17757 = vst [vmem:[#allocation38_spill] sm:$0xff] %v17756_v45  ;;  %vm15327_vm12 = vcmp.lt.s32.totalorder %v889_v63, 16  ;;  %v17758_v60 = vmov 0  ;;  %v4733_v56 = vsel %vm15315_vm3, %v15331_v14, 0.0  ;;  %v891_v31 = vsel %vm819_vm14, %v855_v54, %v709_v2  ;;  %v15349_v63 = vpop.f32.mrb[35].mxu0 }
 0x38d   : > { %v17759_v60 = vsel %vm15327_vm12, 4294967295, %v17758_v60  ;;  %v4767_v58 = vadd.f32 %v4766_v40, %v4732_v39  ;;  %vm15336_vm5 = vcmp.lt.s32.totalorder %v890_v18, 16  ;;  %v17761_v25 = vmov 0 }
 0x38e   : > { %17760 = vst [vmem:[#allocation39_spill] sm:$0xff] %v17759_v60  ;;  %v17762_v25 = vsel %vm15336_vm5, 4294967295, %v17761_v25  ;;  %v4734_v50 = vsel %vm15327_vm12, %v15323_v59, 0.0  ;;  %vm15345_vm7 = vcmp.lt.s32.totalorder %v891_v31, 16  ;;  %v17764_v49 = vmov 0 }
 0x38f   : > { %v4768_v8 = vadd.f32 %v4767_v58, %v4733_v56  ;;  %17763 = vst [vmem:[#allocation40_spill] sm:$0xff] %v17762_v25  ;;  %v17765_v49 = vsel %vm15345_vm7, 4294967295, %v17764_v49  ;;  %v4735_v2 = vsel %vm15336_vm5, %v15349_v63, 0.0  ;;  %v4736_v39 = vsel %vm15345_vm7, %v15343_v46, 0.0  ;;  %v17858_v25 = vld [vmem:[#allocation14_spill] sm:$0xff] }
 0x390   : > { %17766 = vst [vmem:[#allocation41_spill] sm:$0xff] %v17765_v49  ;;  %vm17767_vm0 = vnez %v17577_v27  ;;  %vm17768_vm9 = vnez %v17574_v35  ;;  %v5164_v27 = vld [vmem:[%s17380_s2 + $0x20] sm:$0xff] }
 0x391   : > { %v4769_v40 = vadd.f32 %v4768_v8, %v4734_v50 }
 0x393   : > { %v4770_v54 = vadd.f32 %v4769_v40, %v4735_v2 }
 0x395   : > { %v4771_v18 = vadd.f32 %v4770_v54, %v4736_v39 }
 0x397   : > { %v4772_v58 = vrot.slane %v4771_v18, 4 }
 0x399   : > { %v4773_v56 = vadd.f32 %v4772_v58, %v4771_v18  ;;  %v17770_v18 = vld [vmem:[#allocation8_spill] sm:$0xff] }
 0x39a   : > { %vm17771_vm15 = vnez %v17770_v18  ;;  %v17774_v18 = vld [vmem:[#allocation10_spill] sm:$0xff] }
 0x39b   : > { %v4774_v60 = vrot.slane %v4773_v56, 2 }
 0x39d   : > { %v4775_v31 = vadd.f32 %v4774_v60, %v4773_v56 }
 0x39f   : > { %v4776_v45 = vrot.slane %v4775_v31, 1 }
 0x3a1   : > { %v4777_v26 = vadd.f32 %v4776_v45, %v4775_v31  ;;  %v5160_v31 = vld [vmem:[%s17380_s2] sm:$0xff] }
 0x3a3   : > { %v15357_v6 = vmul.f32 0.00390625, %v4777_v26 }
 0x3a5   : > { %v4779_v8 = vsub.f32 %v14570_v51, %v15357_v6  ;;  %v4780_v50 = vsub.f32 %v14549_v5, %v15357_v6  ;;  %v4781_v40 = vsub.f32 %v14638_v41, %v15357_v6  ;;  %v4782_v2 = vsub.f32 %v14628_v61, %v15357_v6 }
 0x3a6   : > { %v4783_v54 = vsub.f32 %v14690_v4, %v15357_v6  ;;  %v4784_v45 = vsub.f32 %v14676_v47, %v15357_v6  ;;  %v4785_v26 = vsub.f32 %v14749_v3, %v15357_v6  ;;  %v4786_v51 = vsub.f32 %v14730_v7, %v15357_v6  ;;  %v5163_v3 = vld [vmem:[%s17380_s2 + $0x18] sm:$0xff]  ;;  %v17772_v47 = vld [vmem:[#allocation9_spill] sm:$0xff] }
 0x3a7   : > { %v15433_v60 = vsel %vm17767_vm0, %v4779_v8, 0.0  ;;  %v15437_v39 = vsel %vm17768_vm9, %v4780_v50, 0.0  ;;  %v15448_v7 = vsel %vm17771_vm15, %v4781_v40, 0.0  ;;  %v5161_v8 = vld [vmem:[%s17380_s2 + $0x8] sm:$0xff]  ;;  %v5162_v50 = vld [vmem:[%s17380_s2 + $0x10] sm:$0xff]  ;;  %vm17773_vm14 = vnez %v17772_v47 }
 0x3a8   : > { %17769 = vst [vmem:[#allocation42_spill] sm:$0xff] %v15437_v39  ;;  %v4851_v58 = vmul.f32 %v15433_v60, %v15433_v60  ;;  %v4852_v56 = vmul.f32 %v15437_v39, %v15437_v39  ;;  %v15461_v4 = vsel %vm17773_vm14, %v4782_v2, 0.0  ;;  %v4853_v40 = vmul.f32 %v15448_v7, %v15448_v7  ;;  %v5165_v47 = vld [vmem:[%s17380_s2 + $0x28] sm:$0xff] }
 0x3a9   : > { %v12258_v41 = vpack.c.bf16 %v5161_v8, %v5160_v31  ;;  %v12262_v5 = vpack.c.bf16 %v5163_v3, %v5162_v50  ;;  %vm17775_vm15 = vnez %v17774_v18  ;;  %v4854_v2 = vmul.f32 %v15461_v4, %v15461_v4  ;;  %v17778_v8 = vld [vmem:[#allocation12_spill] sm:$0xff] }
 0x3aa   : > { %v4887_v61 = vadd.f32 %v4852_v56, %v4851_v58  ;;  %v15467_v35 = vsel %vm17775_vm15, %v4783_v54, 0.0  ;;  %v17776_v58 = vld [vmem:[#allocation11_spill] sm:$0xff]  ;;  %v12266_v31 = vpack.c.bf16 %v5165_v47, %v5164_v27  ;;  %vm17779_vm15 = vnez %v17778_v8  ;;  %v17783_v8 = vld [vmem:[#allocation14_spill] sm:$0xff] }
 0x3ab   : > { %12259 = vmatprep.subr.bf16.mxu1 %v12258_v41  ;;  %vm17777_vm14 = vnez %v17776_v58  ;;  %v4855_v54 = vmul.f32 %v15467_v35, %v15467_v35  ;;  %v15485_v50 = vsel %vm17779_vm15, %v4785_v26, 0.0  ;;  %v17780_v58 = vld [vmem:[#allocation13_spill] sm:$0xff]  ;;  %vm17784_vm15 = vnez %v17783_v8 }
 0x3ac   : > { %v4888_v39 = vadd.f32 %v4887_v61, %v4853_v40  ;;  %v15479_v3 = vsel %vm17777_vm14, %v4784_v45, 0.0  ;;  %12261 = vmatpush3.bf16.msra.mxu1 %v12258_v41  ;;  %v5166_v61 = vld [vmem:[%s17380_s2 + $0x30] sm:$0xff]  ;;  %v5167_v45 = vld [vmem:[%s17380_s2 + $0x38] sm:$0xff]  ;;  %vm17781_vm14 = vnez %v17780_v58  ;;  %v4857_v27 = vmul.f32 %v15485_v50, %v15485_v50  ;;  %v17789_v58 = vld [vmem:[#allocation16_spill] sm:$0xff] }
 0x3ad   : > { %12263 = vmatprep.subr.bf16.mxu1 %v12262_v5  ;;  %v4856_v41 = vmul.f32 %v15479_v3, %v15479_v3  ;;  %v12270_v47 = vpack.c.bf16 %v5167_v45, %v5166_v61  ;;  %v17785_v61 = vsub.f32 %v14789_v30, %v15357_v6  ;;  %v17788_v8 = vsub.f32 %v14854_v20, %v15357_v6  ;;  %v5170_v30 = vld [vmem:[%s17380_s2 + $0x50] sm:$0xff] }
 0x3ae   : > { %v4889_v56 = vadd.f32 %v4888_v39, %v4854_v2  ;;  %v15497_v39 = vsel %vm17781_vm14, %v4786_v51, 0.0  ;;  %v17782_v2 = vsub.f32 %v14796_v42, %v15357_v6  ;;  %v5169_v51 = vld [vmem:[%s17380_s2 + $0x48] sm:$0xff]  ;;  %v17786_v42 = vld [vmem:[#allocation15_spill] sm:$0xff]  ;;  %v17792_v20 = vld [vmem:[#allocation17_spill] sm:$0xff] }
 0x3af   : > { %vm17787_vm14 = vnez %v17786_v42 }
 0x3b0   : > { %v4890_v40 = vadd.f32 %v4889_v56, %v4855_v54  ;;  %12265 = vmatpush3.bf16.msra.mxu1 %v12262_v5  ;;  %v15506_v18 = vsel %vm17784_vm15, %v17782_v2, 0.0  ;;  %v5168_v54 = vld [vmem:[%s17380_s2 + $0x40] sm:$0xff]  ;;  %v4858_v5 = vmul.f32 %v15497_v39, %v15497_v39  ;;  %v15521_v45 = vsel %vm17787_vm14, %v17785_v61, 0.0 }
 0x3b1   : > { %12267 = vmatprep.subr.bf16.mxu1 %v12266_v31  ;;  %v12274_v2 = vpack.c.bf16 %v5169_v51, %v5168_v54  ;;  %vm17790_vm15 = vnez %v17789_v58  ;;  %v17791_v54 = vsub.f32 %v14837_v62, %v15357_v6  ;;  %v17793_v58 = vsub.f32 %v14927_v19, %v15357_v6  ;;  %v5172_v62 = vld [vmem:[%s17380_s2 + $0x60] sm:$0xff] }
 0x3b2   : > { %v4891_v26 = vadd.f32 %v4890_v40, %v4856_v41  ;;  %v4859_v41 = vmul.f32 %v15506_v18, %v15506_v18 }
 0x3b3   : > { %v15545_v51 = vsel %vm14756_vm1, %v17791_v54, 0.0  ;;  %v17795_v54 = vsub.f32 %v14989_v37, %v15357_v6 }
 0x3b4   : > { %v4892_v56 = vadd.f32 %v4891_v26, %v4857_v27  ;;  %12269 = vmatpush3.bf16.msra.mxu1 %v12266_v31  ;;  %v15530_v27 = vsel %vm17790_vm15, %v17788_v8, 0.0  ;;  %v5171_v31 = vld [vmem:[%s17380_s2 + $0x58] sm:$0xff]  ;;  %v4860_v26 = vmul.f32 %v15521_v45, %v15521_v45 }
 0x3b5   : > { %12271 = vmatprep.subr.bf16.mxu1 %v12270_v47  ;;  %v4861_v8 = vmul.f32 %v15530_v27, %v15530_v27  ;;  %v12278_v61 = vpack.c.bf16 %v5171_v31, %v5170_v30  ;;  %v17794_v30 = vsub.f32 %v14912_v23, %v15357_v6  ;;  %v5174_v23 = vld [vmem:[%s17380_s2 + $0x70] sm:$0xff] }
 0x3b6   : > { %v4893_v40 = vadd.f32 %v4892_v56, %v4858_v5 }
 0x3b7   : > { %v15569_v19 = vsel %vm14803_vm8, %v17794_v30, 0.0  ;;  %vm17797_vm8 = vnez %v17660_v43  ;;  %v17805_v43 = vld [vmem:[#allocation24_spill] sm:$0xff] }
 0x3b8   : > { %v4894_v5 = vadd.f32 %v4893_v40, %v4859_v41  ;;  %12273 = vmatpush3.bf16.msra.mxu1 %v12270_v47  ;;  %v15554_v41 = vsel %vm14774_vm6, %v17793_v58, 0.0  ;;  %v5173_v47 = vld [vmem:[%s17380_s2 + $0x68] sm:$0xff]  ;;  %v4862_v40 = vmul.f32 %v15545_v51, %v15545_v51 }
 0x3b9   : > { %12275 = vmatprep.subr.bf16.mxu1 %v12274_v2  ;;  %v4863_v58 = vmul.f32 %v15554_v41, %v15554_v41 }
 0x3ba   : > { %v4895_v56 = vadd.f32 %v4894_v5, %v4860_v26  ;;  %v12282_v5 = vpack.c.bf16 %v5173_v47, %v5172_v62  ;;  %v17796_v62 = vsub.f32 %v14982_v21, %v15357_v6  ;;  %v9355_v21 = vld [vmem:[%s17380_s2 + $0x80] sm:$0xff] }
 0x3bc   : > { %v4896_v26 = vadd.f32 %v4895_v56, %v4861_v8  ;;  %12277 = vmatpush3.bf16.msra.mxu1 %v12274_v2  ;;  %v15578_v8 = vsel %vm14825_vm4, %v17795_v54, 0.0  ;;  %v5175_v2 = vld [vmem:[%s17380_s2 + $0x78] sm:$0xff]  ;;  %v4864_v56 = vmul.f32 %v15569_v19, %v15569_v19  ;;  %v15593_v37 = vsel %vm17797_vm8, %v17796_v62, 0.0 }
 0x3bd   : > { %12279 = vmatprep.subr.bf16.mxu1 %v12278_v61  ;;  %v4865_v47 = vmul.f32 %v15578_v8, %v15578_v8  ;;  %v12286_v30 = vpack.c.bf16 %v5175_v2, %v5174_v23  ;;  %v17798_v54 = vsub.f32 %v15023_v29, %v15357_v6  ;;  %vm17800_vm4 = vnez %v17799_v12  ;;  %v17802_v29 = vld [vmem:[#allocation23_spill] sm:$0xff] }
 0x3be   : > { %v4897_v31 = vadd.f32 %v4896_v26, %v4862_v40  ;;  %v17801_v23 = vsub.f32 %v15019_v11, %v15357_v6  ;;  %vm17803_vm8 = vnez %v17802_v29  ;;  %v17804_v12 = vsub.f32 %v15071_v38, %v15357_v6  ;;  %v9357_v11 = vld [vmem:[%s17380_s2 + $0x90] sm:$0xff] }
 0x3c0   : > { %v4898_v40 = vadd.f32 %v4897_v31, %v4863_v58  ;;  %12281 = vmatpush3.bf16.msra.mxu1 %v12278_v61  ;;  %v15602_v58 = vsel %vm17800_vm4, %v17798_v54, 0.0  ;;  %v9356_v61 = vld [vmem:[%s17380_s2 + $0x88] sm:$0xff]  ;;  %v4866_v31 = vmul.f32 %v15593_v37, %v15593_v37  ;;  %v15617_v2 = vsel %vm17803_vm8, %v17801_v23, 0.0 }
 0x3c1   : > { %12283 = vmatprep.subr.bf16.mxu1 %v12282_v5  ;;  %v12290_v54 = vpack.c.bf16 %v9356_v61, %v9355_v21  ;;  %v17806_v21 = vsub.f32 %v15058_v32, %v15357_v6  ;;  %vm17807_vm8 = vnez %v17689_v44  ;;  %v17808_v23 = vsub.f32 %v15115_v22, %v15357_v6  ;;  %v9359_v32 = vld [vmem:[%s17380_s2 + $0xa0] sm:$0xff] }
 0x3c2   : > { %v4899_v26 = vadd.f32 %v4898_v40, %v4864_v56  ;;  %v4867_v40 = vmul.f32 %v15602_v58, %v15602_v58  ;;  %v17810_v22 = vsub.f32 %v15106_v48, %v15357_v6  ;;  %v17813_v44 = vsub.f32 %v15151_v36, %v15357_v6  ;;  %v9361_v48 = vld [vmem:[%s17380_s2 + $0xb0] sm:$0xff] }
 0x3c3   : > { %v15641_v38 = vsel %vm17807_vm8, %v17806_v21, 0.0  ;;  %v17817_v36 = vld [vmem:[#allocation29_spill] sm:$0xff] }
 0x3c4   : > { %v4900_v56 = vadd.f32 %v4899_v26, %v4865_v47  ;;  %12285 = vmatpush3.bf16.msra.mxu1 %v12282_v5  ;;  %v15626_v47 = vsel %vm14964_vm2, %v17804_v12, 0.0  ;;  %v9358_v5 = vld [vmem:[%s17380_s2 + $0x98] sm:$0xff]  ;;  %v4868_v26 = vmul.f32 %v15617_v2, %v15617_v2  ;;  %vm17809_vm2 = vnez %v17692_v34 }
 0x3c5   : > { %12287 = vmatprep.subr.bf16.mxu1 %v12286_v30  ;;  %v4869_v12 = vmul.f32 %v15626_v47, %v15626_v47 }
 0x3c6   : > { %v4901_v62 = vadd.f32 %v4900_v56, %v4866_v31  ;;  %v12294_v56 = vpack.c.bf16 %v9358_v5, %v9357_v11  ;;  %v13208_v11 = vld [vmem:[#allocation2] sm:$0xff] }
 0x3c7   : > { %v17811_v5 = vld [vmem:[#allocation27_spill] sm:$0xff] }
 0x3c8   : > { %v4902_v31 = vadd.f32 %v4901_v62, %v4867_v40  ;;  %12289 = vmatpush3.bf16.msra.mxu1 %v12286_v30  ;;  %v15650_v40 = vsel %vm17809_vm2, %v17808_v23, 0.0  ;;  %v9360_v30 = vld [vmem:[%s17380_s2 + $0xa8] sm:$0xff]  ;;  %v4870_v62 = vmul.f32 %v15641_v38, %v15641_v38  ;;  %vm17812_vm2 = vnez %v17811_v5  ;;  %v17820_v5 = vld [vmem:[#allocation31_spill] sm:$0xff] }
 0x3c9   : > { %12291 = vmatprep.subr.bf16.mxu1 %v12290_v54  ;;  %v4871_v21 = vmul.f32 %v15650_v40, %v15650_v40  ;;  %v12298_v34 = vpack.c.bf16 %v9360_v30, %v9359_v32  ;;  %v17816_v32 = vsub.f32 %v15144_v55, %v15357_v6 }
 0x3ca   : > { %v4903_v61 = vadd.f32 %v4902_v31, %v4868_v26  ;;  %v15665_v31 = vsel %vm17812_vm2, %v17810_v22, 0.0  ;;  %vm17818_vm2 = vnez %v17817_v36 }
 0x3cb   : > { %11229 = vmatmul.mubr.f32.vlgmr.msra.gmra.mrb[0].mxu1 %v13208_v11  ;;  %v15689_v30 = vsel %vm17818_vm2, %v17816_v32, 0.0  ;;  %vm17823_vm2 = vnez %v17713_v53  ;;  %v17824_v32 = vsub.f32 %v15229_v57, %v15357_v6 }
 0x3cc   : > { %v4904_v26 = vadd.f32 %v4903_v61, %v4869_v12  ;;  %12293 = vmatpush3.bf16.msra.mxu1 %v12290_v54  ;;  %v17814_v12 = vld [vmem:[#allocation28_spill] sm:$0xff]  ;;  %v9362_v54 = vld [vmem:[%s17380_s2 + $0xb8] sm:$0xff]  ;;  %v4874_v55 = vmul.f32 %v15689_v30, %v15689_v30 }
 0x3cd   : > { %12295 = vmatprep.subr.bf16.mxu1 %v12294_v56  ;;  %vm17815_vm8 = vnez %v17814_v12  ;;  %v12302_v22 = vpack.c.bf16 %v9362_v54, %v9361_v48  ;;  %v17819_v12 = vsub.f32 %v15185_v9, %v15357_v6  ;;  %v17822_v48 = vsub.f32 %v15178_v10, %v15357_v6 }
 0x3ce   : > { %v4905_v23 = vadd.f32 %v4904_v26, %v4870_v62  ;;  %v15674_v61 = vsel %vm17815_vm8, %v17813_v44, 0.0  ;;  %v4872_v62 = vmul.f32 %v15665_v31, %v15665_v31  ;;  %vm17821_vm8 = vnez %v17820_v5 }
 0x3cf   : > { %v4873_v44 = vmul.f32 %v15674_v61, %v15674_v61  ;;  %v15713_v9 = vsel %vm17823_vm2, %v17822_v48, 0.0  ;;  %vm17827_vm2 = vnez %v17730_v0 }
 0x3d0   : > { %v4906_v26 = vadd.f32 %v4905_v23, %v4871_v21  ;;  %12297 = vmatpush3.bf16.msra.mxu1 %v12294_v56  ;;  %v15698_v21 = vsel %vm17821_vm8, %v17819_v12, 0.0  ;;  %v9363_v56 = vld [vmem:[%s17380_s2 + $0xc0] sm:$0xff]  ;;  %vm17825_vm8 = vnez %v17721_v17  ;;  %v4876_v10 = vmul.f32 %v15713_v9, %v15713_v9 }
 0x3d1   : > { %12299 = vmatprep.subr.bf16.mxu1 %v12298_v34  ;;  %v4875_v12 = vmul.f32 %v15698_v21, %v15698_v21 }
 0x3d2   : > { %v4907_v11 = vadd.f32 %v4906_v26, %v4872_v62  ;;  %v9364_v62 = vld [vmem:[%s17380_s2 + $0xc8] sm:$0xff] }
 0x3d3   : > { %v12306_v26 = vpack.c.bf16 %v9364_v62, %v9363_v56 }
 0x3d4   : > { %v4908_v23 = vadd.f32 %v4907_v11, %v4873_v44  ;;  %12301 = vmatpush3.bf16.msra.mxu1 %v12298_v34  ;;  %v15722_v44 = vsel %vm17825_vm8, %v17824_v32, 0.0  ;;  %v17826_v34 = vsub.f32 %v15219_v16, %v15357_v6  ;;  %vm17829_vm8 = vnez %v17737_v13  ;;  %v9366_v32 = vld [vmem:[%s17380_s2 + $0xd8] sm:$0xff] }
 0x3d5   : > { %12303 = vmatprep.subr.bf16.mxu1 %v12302_v22 }
 0x3d6   : > { %v4909_v54 = vadd.f32 %v4908_v23, %v4874_v55  ;;  %v15731_v48 = vsel %vm17827_vm2, %v17826_v34, 0.0  ;;  %v4877_v55 = vmul.f32 %v15722_v44, %v15722_v44  ;;  %v17828_v23 = vsub.f32 %v15270_v24, %v15357_v6  ;;  %v9365_v24 = vld [vmem:[%s17380_s2 + $0xd0] sm:$0xff] }
 0x3d7   : > { %v4878_v16 = vmul.f32 %v15731_v48, %v15731_v48  ;;  %v12310_v34 = vpack.c.bf16 %v9366_v32, %v9365_v24 }
 0x3d8   : > { %v4910_v11 = vadd.f32 %v4909_v54, %v4875_v12  ;;  %12305 = vmatpush3.bf16.msra.mxu1 %v12302_v22  ;;  %v15740_v56 = vsel %vm17829_vm8, %v17828_v23, 0.0  ;;  %v17830_v12 = vsub.f32 %v15261_v52, %v15357_v6  ;;  %v17832_v52 = vsub.f32 %v15304_v28, %v15357_v6  ;;  %v17835_v22 = vld [vmem:[#allocation37_spill] sm:$0xff] }
 0x3d9   : > { %12307 = vmatprep.subr.bf16.mxu1 %v12306_v26 }
 0x3da   : > { %v4911_v57 = vadd.f32 %v4910_v11, %v4876_v10  ;;  %v15749_v54 = vsel %vm15266_vm11, %v17830_v12, 0.0  ;;  %v4879_v10 = vmul.f32 %v15740_v56, %v15740_v56  ;;  %v17834_v12 = vsub.f32 %v15296_v33, %v15357_v6 }
 0x3dc   : > { %v4912_v62 = vadd.f32 %v4911_v57, %v4877_v55  ;;  %12309 = vmatpush3.bf16.msra.mxu1 %v12306_v26  ;;  %v15764_v57 = vsel %vm15284_vm10, %v17832_v52, 0.0  ;;  %v4880_v26 = vmul.f32 %v15749_v54, %v15749_v54  ;;  %v15773_v13 = vsel %vm15300_vm13, %v17834_v12, 0.0 }
 0x3dd   : > { %12311 = vmatprep.subr.bf16.mxu1 %v12310_v34  ;;  %v4881_v28 = vmul.f32 %v15764_v57, %v15764_v57  ;;  %v17841_v52 = vsub.f32 %v15343_v46, %v15357_v6 }
 0x3de   : > { %v4913_v11 = vadd.f32 %v4912_v62, %v4878_v16  ;;  %v17836_v62 = vsub.f32 %v15331_v14, %v15357_v6  ;;  %v9368_v14 = vld [vmem:[%s17380_s2 + $0xe8] sm:$0xff] }
 0x3df   : > { %v15813_v24 = vsel %vm15345_vm7, %v17841_v52, 0.0 }
 0x3e0   : > { %v4914_v23 = vadd.f32 %v4913_v11, %v4879_v10  ;;  %12313 = vmatpush3.bf16.msra.mxu1 %v12310_v34  ;;  %v15782_v32 = vsel %vm15315_vm3, %v17836_v62, 0.0  ;;  %v4882_v10 = vmul.f32 %v15773_v13, %v15773_v13  ;;  %v17838_v11 = vsub.f32 %v15323_v59, %v15357_v6 }
 0x3e1   : > { %v17840_v59 = vsub.f32 %v15349_v63, %v15357_v6  ;;  %v4886_v63 = vmul.f32 %v15813_v24, %v15813_v24 }
 0x3e2   : > { %v4915_v16 = vadd.f32 %v4914_v23, %v4880_v26  ;;  %v15791_v34 = vsel %vm15327_vm12, %v17838_v11, 0.0  ;;  %v9367_v26 = vld [vmem:[%s17380_s2 + $0xe0] sm:$0xff]  ;;  %v4883_v23 = vmul.f32 %v15782_v32, %v15782_v32 }
 0x3e3   : > { %v4884_v62 = vmul.f32 %v15791_v34, %v15791_v34 }
 0x3e4   : > { %v4916_v33 = vadd.f32 %v4915_v16, %v4881_v28  ;;  %v12314_v28 = vpack.c.bf16 %v9368_v14, %v9367_v26  ;;  %v4849_v16 = vsel %vm15336_vm5, %v17840_v59, 0.0  ;;  %v9369_v14 = vld [vmem:[%s17380_s2 + $0xf0] sm:$0xff] }
 0x3e6   : > { %v4917_v12 = vadd.f32 %v4916_v33, %v4882_v10  ;;  %12315 = vmatprep.subr.bf16.mxu1 %v12314_v28  ;;  %v4885_v10 = vmul.f32 %v4849_v16, %v4849_v16 }
 0x3e7   : > { %12317 = vmatpush3.bf16.msra.mxu1 %v12314_v28 }
 0x3e8   : > { %v4918_v11 = vadd.f32 %v4917_v12, %v4883_v23  ;;  %v9370_v23 = vld [vmem:[%s17380_s2 + $0xf8] sm:$0xff] }
 0x3e9   : > { %v12318_v46 = vpack.c.bf16 %v9370_v23, %v9369_v14  ;;  %v4931_v14 = vld [vmem:[%s17381_s3] sm:$0x1]  ;;  %v17842_v23 = vld [vmem:[#allocation5_spill] sm:$0xff] }
 0x3ea   : > { %v4919_v33 = vadd.f32 %v4918_v11, %v4884_v62  ;;  %v9371_v11 = vld [vmem:[%s17380_s2 + $0x100] sm:$0xff] }
 0x3eb   : > { %12319 = vmatprep.subr.bf16.mxu1 %v12318_v46 }
 0x3ec   : > { %v4920_v26 = vadd.f32 %v4919_v33, %v4885_v10  ;;  %12321 = vmatpush3.bf16.msra.mxu1 %v12318_v46  ;;  %v9372_v10 = vld [vmem:[%s17380_s2 + $0x108] sm:$0xff] }
 0x3ed   : > { %v15829_v33 = vpack.c.bf16 %v9372_v10, %v9371_v11 }
 0x3ee   : > { %v4921_v6 = vadd.f32 %v4920_v26, %v4886_v63 }
 0x3ef   : > { %12323 = vmatprep.subr.bf16.mxu1 %v15829_v33 }
 0x3f0   : > { %v4922_v12 = vrot.slane %v4921_v6, 4 }
 0x3f2   : > { %v4923_v52 = vadd.f32 %v4922_v12, %v4921_v6  ;;  %v17501_v6 = vsub.s32 0, %v17842_v23 }
 0x3f4   : > { %v4924_v28 = vrot.slane %v4923_v52, 2 }
 0x3f6   : > { %v4925_v59 = vadd.f32 %v4924_v28, %v4923_v52  ;;  %v15841_v28 = vld [vmem:[%s17382_s4] ss:$0 sm:$0xff] }
 0x3f8   : > { %v4926_v62 = vrot.slane %v4925_v59, 1 }
 0x3fa   : > { %v4927_v49 = vadd.f32 %v4926_v62, %v4925_v59  ;;  %v17843_v62 = vld [vmem:[#allocation42_spill] sm:$0xff] }
 0x3fc   : > { %v4928_v63 = vmul.f32 0.00390625, %v4927_v49 }
 0x3fe   : > { %v4929_v26 = vadd.f32 1e-05, %v4928_v63 }
 0x400   : > { %13204 = vrsqrt.f32 %v4929_v26 }
 0x40a   : > { %v13205_v46 = vpop.eup %13204 }
 0x40b   : > { %v4932_v12 = vmul.f32 %v13205_v46, %v4931_v14 }
 0x40d   : > { %v4936_v52 = vrot.slane %v4932_v12, %v17501_v6 }
 0x40f   : > { %v4971_v59 = vmul.f32 %v4936_v52, %v4849_v16  ;;  %v4937_v49 = vmul.f32 %v4936_v52, %v15433_v60  ;;  %v4938_v11 = vmul.f32 %v4936_v52, %v17843_v62  ;;  %v4939_v10 = vmul.f32 %v4936_v52, %v15448_v7 }
 0x410   : > { %v4940_v63 = vmul.f32 %v4936_v52, %v15461_v4  ;;  %v4941_v26 = vmul.f32 %v4936_v52, %v15467_v35  ;;  %v4942_v14 = vmul.f32 %v4936_v52, %v15479_v3  ;;  %v4943_v46 = vmul.f32 %v4936_v52, %v15485_v50 }
 0x411   : > { %v5014_v12 = vadd.f32 %v15841_v28, %v4971_v59  ;;  %v4944_v6 = vmul.f32 %v4936_v52, %v15497_v39  ;;  %v4945_v16 = vmul.f32 %v4936_v52, %v15506_v18  ;;  %v4946_v60 = vmul.f32 %v4936_v52, %v15521_v45 }
 0x412   : > { %v4947_v62 = vmul.f32 %v4936_v52, %v15530_v27  ;;  %v4948_v7 = vmul.f32 %v4936_v52, %v15545_v51  ;;  %v4949_v4 = vmul.f32 %v4936_v52, %v15554_v41  ;;  %v4950_v35 = vmul.f32 %v4936_v52, %v15569_v19 }
 0x413   : > { %v5050_v23 = vmax.f32 %v5014_v12, 0.0  ;;  %v4951_v3 = vmul.f32 %v4936_v52, %v15578_v8  ;;  %v4952_v50 = vmul.f32 %v4936_v52, %v15593_v37  ;;  %v4953_v59 = vmul.f32 %v4936_v52, %v15602_v58 }
 0x414   : > { %v4954_v39 = vmul.f32 %v4936_v52, %v15617_v2  ;;  %v4955_v18 = vmul.f32 %v4936_v52, %v15626_v47  ;;  %v4956_v45 = vmul.f32 %v4936_v52, %v15641_v38  ;;  %v4957_v27 = vmul.f32 %v4936_v52, %v15650_v40 }
 0x415   : > { %v5086_v51 = vsel %vm15336_vm5, %v5050_v23, 0.0  ;;  %v4958_v41 = vmul.f32 %v4936_v52, %v15665_v31  ;;  %v4959_v19 = vmul.f32 %v4936_v52, %v15674_v61  ;;  %v4960_v8 = vmul.f32 %v4936_v52, %v15689_v30 }
 0x416   : > { %5122 = vst [vmem:[#allocation3 + $0x123] sm:$0xff] %v5086_v51  ;;  %v4961_v37 = vmul.f32 %v4936_v52, %v15698_v21  ;;  %v4962_v58 = vmul.f32 %v4936_v52, %v15713_v9  ;;  %v4963_v2 = vmul.f32 %v4936_v52, %v15722_v44  ;;  %v4964_v47 = vmul.f32 %v4936_v52, %v15731_v48 }
 0x417   : > { %v4965_v38 = vmul.f32 %v4936_v52, %v15740_v56  ;;  %v4966_v40 = vmul.f32 %v4936_v52, %v15749_v54  ;;  %v4967_v23 = vmul.f32 %v4936_v52, %v15764_v57  ;;  %v4968_v31 = vmul.f32 %v4936_v52, %v15773_v13 }
 0x418   : > { %v4969_v61 = vmul.f32 %v4936_v52, %v15782_v32  ;;  %v4970_v30 = vmul.f32 %v4936_v52, %v15791_v34  ;;  %v4972_v21 = vmul.f32 %v4936_v52, %v15813_v24  ;;  %v15882_v9 = vadd.f32 %v15841_v28, %v4937_v49 }
 0x419   : > { %v15885_v44 = vadd.f32 %v15841_v28, %v4938_v11  ;;  %v15888_v48 = vadd.f32 %v15841_v28, %v4939_v10  ;;  %v15891_v56 = vadd.f32 %v15841_v28, %v4940_v63  ;;  %v15894_v13 = vadd.f32 %v15841_v28, %v4941_v26 }
 0x41a   : > { %v15897_v54 = vadd.f32 %v15841_v28, %v4942_v14  ;;  %v15900_v57 = vadd.f32 %v15841_v28, %v4943_v46  ;;  %v15903_v24 = vadd.f32 %v15841_v28, %v4944_v6  ;;  %v15906_v32 = vadd.f32 %v15841_v28, %v4945_v16 }
 0x41b   : > { %v15909_v34 = vadd.f32 %v15841_v28, %v4946_v60  ;;  %v15912_v52 = vadd.f32 %v15841_v28, %v4947_v62  ;;  %v15915_v49 = vadd.f32 %v15841_v28, %v4948_v7  ;;  %v15918_v11 = vadd.f32 %v15841_v28, %v4949_v4 }
 0x41c   : > { %v15921_v10 = vadd.f32 %v15841_v28, %v4950_v35  ;;  %v15924_v6 = vadd.f32 %v15841_v28, %v4951_v3  ;;  %v15927_v63 = vadd.f32 %v15841_v28, %v4952_v50  ;;  %v15930_v26 = vadd.f32 %v15841_v28, %v4953_v59 }
 0x41d   : > { %v15933_v14 = vadd.f32 %v15841_v28, %v4954_v39  ;;  %v15936_v46 = vadd.f32 %v15841_v28, %v4955_v18  ;;  %v15939_v12 = vadd.f32 %v15841_v28, %v4956_v45  ;;  %v15942_v16 = vadd.f32 %v15841_v28, %v4957_v27 }
 0x41e   : > { %v15945_v60 = vadd.f32 %v15841_v28, %v4958_v41  ;;  %v15948_v62 = vadd.f32 %v15841_v28, %v4959_v19  ;;  %v15951_v7 = vadd.f32 %v15841_v28, %v4960_v8  ;;  %v15954_v4 = vadd.f32 %v15841_v28, %v4961_v37 }
 0x41f   : > { %v15957_v35 = vadd.f32 %v15841_v28, %v4962_v58  ;;  %v15960_v3 = vadd.f32 %v15841_v28, %v4963_v2  ;;  %v15963_v50 = vadd.f32 %v15841_v28, %v4964_v47  ;;  %v15966_v59 = vadd.f32 %v15841_v28, %v4965_v38 }
 0x420   : > { %v15969_v39 = vadd.f32 %v15841_v28, %v4966_v40  ;;  %v15972_v18 = vadd.f32 %v15841_v28, %v4967_v23  ;;  %v15975_v45 = vadd.f32 %v15841_v28, %v4968_v31  ;;  %v15978_v27 = vadd.f32 %v15841_v28, %v4969_v61 }
 0x421   : > { %v15981_v51 = vadd.f32 %v15841_v28, %v4970_v30  ;;  %v15984_v41 = vadd.f32 %v15841_v28, %v4972_v21  ;;  %v5016_v19 = vmax.f32 %v15882_v9, 0.0  ;;  %v5017_v8 = vmax.f32 %v15885_v44, 0.0 }
 0x422   : > { %v5018_v37 = vmax.f32 %v15888_v48, 0.0  ;;  %v5019_v58 = vmax.f32 %v15891_v56, 0.0  ;;  %v5020_v2 = vmax.f32 %v15894_v13, 0.0  ;;  %v5021_v47 = vmax.f32 %v15897_v54, 0.0 }
 0x423   : > { %v5022_v38 = vmax.f32 %v15900_v57, 0.0  ;;  %v5023_v40 = vmax.f32 %v15903_v24, 0.0  ;;  %v5024_v23 = vmax.f32 %v15906_v32, 0.0  ;;  %v5025_v28 = vmax.f32 %v15909_v34, 0.0 }
 0x424   : > { %v5026_v31 = vmax.f32 %v15912_v52, 0.0  ;;  %v5027_v61 = vmax.f32 %v15915_v49, 0.0  ;;  %v5028_v30 = vmax.f32 %v15918_v11, 0.0  ;;  %v5029_v21 = vmax.f32 %v15921_v10, 0.0 }
 0x425   : > { %v5030_v9 = vmax.f32 %v15924_v6, 0.0  ;;  %v5031_v44 = vmax.f32 %v15927_v63, 0.0  ;;  %v5032_v48 = vmax.f32 %v15930_v26, 0.0  ;;  %v5033_v56 = vmax.f32 %v15933_v14, 0.0 }
 0x426   : > { %v5034_v13 = vmax.f32 %v15936_v46, 0.0  ;;  %v5035_v54 = vmax.f32 %v15939_v12, 0.0  ;;  %v5036_v57 = vmax.f32 %v15942_v16, 0.0  ;;  %v5037_v24 = vmax.f32 %v15945_v60, 0.0  ;;  %v17844_v60 = vld [vmem:[#allocation7_spill] sm:$0xff] }
 0x427   : > { %v5038_v32 = vmax.f32 %v15948_v62, 0.0  ;;  %v5039_v34 = vmax.f32 %v15951_v7, 0.0  ;;  %v5040_v52 = vmax.f32 %v15954_v4, 0.0  ;;  %v5041_v49 = vmax.f32 %v15957_v35, 0.0  ;;  %v17846_v35 = vld [vmem:[#allocation8_spill] sm:$0xff] }
 0x428   : > { %v5042_v11 = vmax.f32 %v15960_v3, 0.0  ;;  %v5043_v10 = vmax.f32 %v15963_v50, 0.0  ;;  %v5044_v6 = vmax.f32 %v15966_v59, 0.0  ;;  %v5045_v63 = vmax.f32 %v15969_v39, 0.0  ;;  %v17848_v50 = vld [vmem:[#allocation9_spill] sm:$0xff]  ;;  %v17850_v39 = vld [vmem:[#allocation10_spill] sm:$0xff] }
 0x429   : > { %v5046_v26 = vmax.f32 %v15972_v18, 0.0  ;;  %v5047_v14 = vmax.f32 %v15975_v45, 0.0  ;;  %v5048_v46 = vmax.f32 %v15978_v27, 0.0  ;;  %v5049_v12 = vmax.f32 %v15981_v51, 0.0  ;;  %v17852_v45 = vld [vmem:[#allocation11_spill] sm:$0xff]  ;;  %v17854_v51 = vld [vmem:[#allocation12_spill] sm:$0xff] }
 0x42a   : > { %v5051_v16 = vmax.f32 %v15984_v41, 0.0  ;;  %v5052_v62 = vsel %vm17767_vm0, %v5016_v19, 0.0  ;;  %v5053_v4 = vsel %vm17768_vm9, %v5017_v8, 0.0  ;;  %vm17847_vm5 = vnez %v17846_v35  ;;  %v17856_v19 = vld [vmem:[#allocation13_spill] sm:$0xff] }
 0x42b   : > { %v5054_v3 = vsel %vm17847_vm5, %v5018_v37, 0.0  ;;  %vm17849_vm7 = vnez %v17848_v50  ;;  %vm17851_vm12 = vnez %v17850_v39  ;;  %vm17853_vm3 = vnez %v17852_v45  ;;  %5088 = vst [vmem:[#allocation3 + $0x13] sm:$0xff] %v5052_v62  ;;  %5089 = vst [vmem:[#allocation3 + $0x1b] sm:$0xff] %v5053_v4  ;;  %v17860_v39 = vld [vmem:[#allocation16_spill] sm:$0xff]  ;;  %v17866_v4 = vld [vmem:[#allocation22_spill] sm:$0xff] }
 0x42c   : > { %v5055_v59 = vsel %vm17849_vm7, %v5019_v58, 0.0  ;;  %v5056_v18 = vsel %vm17851_vm12, %v5020_v2, 0.0  ;;  %v5057_v27 = vsel %vm17853_vm3, %v5021_v47, 0.0  ;;  %vm17855_vm13 = vnez %v17854_v51  ;;  %5090 = vst [vmem:[#allocation3 + $0x23] sm:$0xff] %v5054_v3 }
 0x42d   : > { %v5058_v41 = vsel %vm17855_vm13, %v5022_v38, 0.0  ;;  %vm17857_vm0 = vnez %v17856_v19  ;;  %vm17859_vm5 = vnez %v17858_v25  ;;  %v5061_v58 = vsel %vm17787_vm14, %v5025_v28, 0.0  ;;  %5091 = vst [vmem:[#allocation3 + $0x2b] sm:$0xff] %v5055_v59  ;;  %5092 = vst [vmem:[#allocation3 + $0x33] sm:$0xff] %v5056_v18  ;;  %v17864_v28 = vld [vmem:[#allocation21_spill] sm:$0xff]  ;;  %v17871_v59 = vld [vmem:[#allocation26_spill] sm:$0xff] }
 0x42e   : > { %v5059_v8 = vsel %vm17857_vm0, %v5023_v40, 0.0  ;;  %v5060_v37 = vsel %vm17859_vm5, %v5024_v23, 0.0  ;;  %v5062_v2 = vsel %vm17790_vm15, %v5026_v31, 0.0  ;;  %5093 = vst [vmem:[#allocation3 + $0x3b] sm:$0xff] %v5057_v27  ;;  %5094 = vst [vmem:[#allocation3 + $0x43] sm:$0xff] %v5058_v41  ;;  %v5063_v47 = vsel %vm14756_vm1, %v5027_v61, 0.0 }
 0x42f   : > { %v5064_v38 = vsel %vm14774_vm6, %v5028_v30, 0.0  ;;  %vm17861_vm0 = vnez %v17649_v1  ;;  %v17862_v23 = vld [vmem:[#allocation20_spill] sm:$0xff]  ;;  %5095 = vst [vmem:[#allocation3 + $0x4b] sm:$0xff] %v5059_v8  ;;  %5096 = vst [vmem:[#allocation3 + $0x53] sm:$0xff] %v5060_v37  ;;  %vm17865_vm15 = vnez %v17864_v28  ;;  %v5068_v3 = vsel %vm17800_vm4, %v5032_v48, 0.0 }
 0x430   : > { %v5065_v40 = vsel %vm17861_vm0, %v5029_v21, 0.0  ;;  %vm17863_vm5 = vnez %v17862_v23  ;;  %5097 = vst [vmem:[#allocation3 + $0x5b] sm:$0xff] %v5061_v58  ;;  %5098 = vst [vmem:[#allocation3 + $0x63] sm:$0xff] %v5062_v2  ;;  %v5067_v31 = vsel %vm17865_vm15, %v5031_v44, 0.0  ;;  %vm17867_vm1 = vnez %v17802_v29  ;;  %v17869_v21 = vld [vmem:[#allocation25_spill] sm:$0xff]  ;;  %v17873_v44 = vld [vmem:[#allocation27_spill] sm:$0xff] }
 0x431   : > { %v5066_v62 = vsel %vm17863_vm5, %v5030_v9, 0.0  ;;  %v5069_v61 = vsel %vm17867_vm1, %v5033_v56, 0.0  ;;  %vm17868_vm6 = vnez %v17805_v43  ;;  %5099 = vst [vmem:[#allocation3 + $0x6b] sm:$0xff] %v5063_v47  ;;  %5100 = vst [vmem:[#allocation3 + $0x73] sm:$0xff] %v5064_v38  ;;  %vm17870_vm5 = vnez %v17869_v21  ;;  %v17875_v48 = vld [vmem:[#allocation28_spill] sm:$0xff] }
 0x432   : > { %v5070_v30 = vsel %vm17868_vm6, %v5034_v13, 0.0  ;;  %5101 = vst [vmem:[#allocation3 + $0x7b] sm:$0xff] %v5065_v40  ;;  %5102 = vst [vmem:[#allocation3 + $0x83] sm:$0xff] %v5066_v62  ;;  %v5071_v9 = vsel %vm17870_vm5, %v5035_v54, 0.0  ;;  %vm17872_vm0 = vnez %v17871_v59  ;;  %vm17874_vm15 = vnez %v17873_v44 }
 0x433   : > { %v5072_v18 = vsel %vm17872_vm0, %v5036_v57, 0.0  ;;  %v5073_v27 = vsel %vm17874_vm15, %v5037_v24, 0.0  ;;  %vm17876_vm4 = vnez %v17875_v48  ;;  %5103 = vst [vmem:[#allocation3 + $0x8b] sm:$0xff] %v5067_v31  ;;  %5104 = vst [vmem:[#allocation3 + $0x93] sm:$0xff] %v5068_v3  ;;  %vm17877_vm6 = vnez %v17817_v36 }
 0x434   : > { %v5074_v41 = vsel %vm17876_vm4, %v5038_v32, 0.0  ;;  %5105 = vst [vmem:[#allocation3 + $0x9b] sm:$0xff] %v5069_v61  ;;  %5106 = vst [vmem:[#allocation3 + $0xa3] sm:$0xff] %v5070_v30  ;;  %v5075_v56 = vsel %vm17877_vm6, %v5039_v34, 0.0  ;;  %vm17878_vm1 = vnez %v17820_v5  ;;  %vm17879_vm5 = vnez %v17713_v53  ;;  %v9405_v34 = vld [vmem:[%s17380_s2 + $0x210] sm:$0xff]  ;;  %v9406_v32 = vld [vmem:[%s17380_s2 + $0x218] sm:$0xff] }
 0x435   : > { %v5076_v13 = vsel %vm17878_vm1, %v5040_v52, 0.0  ;;  %v5077_v54 = vsel %vm17879_vm5, %v5041_v49, 0.0  ;;  %vm17880_vm0 = vnez %v17721_v17  ;;  %5107 = vst [vmem:[#allocation3 + $0xab] sm:$0xff] %v5071_v9  ;;  %5108 = vst [vmem:[#allocation3 + $0xb3] sm:$0xff] %v5072_v18  ;;  %v5079_v24 = vsel %vm17827_vm2, %v5043_v10, 0.0  ;;  %v17886_v10 = vld [vmem:[#allocation39_spill] sm:$0xff] }
 0x436   : > { %v5078_v57 = vsel %vm17880_vm0, %v5042_v11, 0.0  ;;  %5109 = vst [vmem:[#allocation3 + $0xbb] sm:$0xff] %v5073_v27  ;;  %5110 = vst [vmem:[#allocation3 + $0xc3] sm:$0xff] %v5074_v41  ;;  %v5080_v8 = vsel %vm17829_vm8, %v5044_v6, 0.0  ;;  %v5081_v37 = vsel %vm15266_vm11, %v5045_v63, 0.0  ;;  %v5082_v52 = vsel %vm15284_vm10, %v5046_v26, 0.0 }
 0x437   : > { %5111 = vst [vmem:[#allocation3 + $0xcb] sm:$0xff] %v5075_v56  ;;  %5112 = vst [vmem:[#allocation3 + $0xd3] sm:$0xff] %v5076_v13  ;;  %vm17883_vm0 = vnez %v17835_v22  ;;  %v17884_v11 = vld [vmem:[#allocation38_spill] sm:$0xff]  ;;  %vm17887_vm2 = vnez %v17886_v10  ;;  %v17888_v6 = vld [vmem:[#allocation41_spill] sm:$0xff]  ;;  %v12390_v0 = vpack.c.bf16 %v9406_v32, %v9405_v34 }
 0x438   : > { %5113 = vst [vmem:[#allocation3 + $0xdb] sm:$0xff] %v5077_v54  ;;  %5114 = vst [vmem:[#allocation3 + $0xe3] sm:$0xff] %v5078_v57  ;;  %v5083_v49 = vsel %vm17883_vm0, %v5047_v14, 0.0  ;;  %vm17885_vm5 = vnez %v17884_v11  ;;  %v5085_v2 = vsel %vm17887_vm2, %v5049_v12, 0.0  ;;  %vm17889_vm8 = vnez %v17888_v6  ;;  %v5126_v63 = vld [vmem:[#allocation3 + $0x10] sm:$0xff]  ;;  %v5127_v26 = vld [vmem:[#allocation3 + $0x18] sm:$0xff] }
 0x439   : > { %v5084_v58 = vsel %vm17885_vm5, %v5048_v46, 0.0  ;;  %v5087_v47 = vsel %vm17889_vm8, %v5051_v16, 0.0  ;;  %5115 = vst [vmem:[#allocation3 + $0xeb] sm:$0xff] %v5079_v24  ;;  %5116 = vst [vmem:[#allocation3 + $0xf3] sm:$0xff] %v5080_v8  ;;  %11231 = vmatprep.mubr.f32.mxu1 %v5126_v63  ;;  %v5128_v14 = vld [vmem:[#allocation3 + $0x20] sm:$0xff]  ;;  %v5129_v46 = vld [vmem:[#allocation3 + $0x28] sm:$0xff]  ;;  %vm17890_vm8 = vnez %v17844_v60  ;;  %vm17891_vm2 = vnez %v17846_v35 }
 0x43a   : > { %5117 = vst [vmem:[#allocation3 + $0xfb] sm:$0xff] %v5081_v37  ;;  %5118 = vst [vmem:[#allocation3 + $0x103] sm:$0xff] %v5082_v52  ;;  %11232 = vmatmul.mubr.f32.gmra.mrb[2].mxu1 %v5127_v26  ;;  %v5130_v12 = vld [vmem:[#allocation3 + $0x30] sm:$0xff]  ;;  %v5131_v38 = vld [vmem:[#allocation3 + $0x38] sm:$0xff] }
 0x43b   : > { %5119 = vst [vmem:[#allocation3 + $0x10b] sm:$0xff] %v5083_v49  ;;  %5120 = vst [vmem:[#allocation3 + $0x113] sm:$0xff] %v5084_v58  ;;  %11234 = vmatprep.mubr.f32.mxu1 %v5128_v14  ;;  %v5132_v16 = vld [vmem:[#allocation3 + $0x40] sm:$0xff]  ;;  %v5133_v40 = vld [vmem:[#allocation3 + $0x48] sm:$0xff] }
 0x43c   : > { %5121 = vst [vmem:[#allocation3 + $0x11b] sm:$0xff] %v5085_v2  ;;  %5123 = vst [vmem:[#allocation3 + $0x12b] sm:$0xff] %v5087_v47  ;;  %v5134_v62 = vld [vmem:[#allocation3 + $0x50] sm:$0xff]  ;;  %v5135_v31 = vld [vmem:[#allocation3 + $0x58] sm:$0xff] }
 0x43d   : > { %v5136_v3 = vld [vmem:[#allocation3 + $0x60] sm:$0xff]  ;;  %v5137_v61 = vld [vmem:[#allocation3 + $0x68] sm:$0xff]  ;;  %v5138_v30 = vld [vmem:[#allocation3 + $0x70] sm:$0xff] }
 0x43e   : > { %11235 = vmatmul.mubr.f32.gmra.mrb[4].mxu1 %v5129_v46  ;;  %v5139_v9 = vld [vmem:[#allocation3 + $0x78] sm:$0xff]  ;;  %v5140_v18 = vld [vmem:[#allocation3 + $0x80] sm:$0xff]  ;;  %v5141_v27 = vld [vmem:[#allocation3 + $0x88] sm:$0xff] }
 0x43f   : > { %11237 = vmatprep.mubr.f32.mxu1 %v5130_v12  ;;  %v5142_v41 = vld [vmem:[#allocation3 + $0x90] sm:$0xff]  ;;  %v5143_v56 = vld [vmem:[#allocation3 + $0x98] sm:$0xff]  ;;  %v5144_v13 = vld [vmem:[#allocation3 + $0xa0] sm:$0xff] }
 0x440   : > { %v5145_v54 = vld [vmem:[#allocation3 + $0xa8] sm:$0xff]  ;;  %v5146_v57 = vld [vmem:[#allocation3 + $0xb0] sm:$0xff]  ;;  %v5147_v24 = vld [vmem:[#allocation3 + $0xb8] sm:$0xff] }
 0x441   : > { %v5148_v8 = vld [vmem:[#allocation3 + $0xc0] sm:$0xff]  ;;  %v5149_v37 = vld [vmem:[#allocation3 + $0xc8] sm:$0xff]  ;;  %v5150_v52 = vld [vmem:[#allocation3 + $0xd0] sm:$0xff] }
 0x442   : > { %11238 = vmatmul.mubr.f32.gmra.mrb[6].mxu1 %v5131_v38  ;;  %v5151_v49 = vld [vmem:[#allocation3 + $0xd8] sm:$0xff]  ;;  %v5152_v58 = vld [vmem:[#allocation3 + $0xe0] sm:$0xff]  ;;  %v5153_v2 = vld [vmem:[#allocation3 + $0xe8] sm:$0xff] }
 0x443   : > { %11240 = vmatprep.mubr.f32.mxu1 %v5132_v16  ;;  %v5154_v47 = vld [vmem:[#allocation3 + $0xf0] sm:$0xff]  ;;  %v5155_v63 = vld [vmem:[#allocation3 + $0xf8] sm:$0xff]  ;;  %v5156_v26 = vld [vmem:[#allocation3 + $0x100] sm:$0xff] }
 0x444   : > { %v5157_v14 = vld [vmem:[#allocation3 + $0x108] sm:$0xff]  ;;  %v5158_v46 = vld [vmem:[#allocation3 + $0x110] sm:$0xff]  ;;  %v5159_v38 = vld [vmem:[#allocation3 + $0x118] sm:$0xff] }
 0x445   : > { %v5457_v12 = vld [vmem:[#allocation3 + $0x1] sm:$0xff]  ;;  %v16281_v11 = vld [vmem:[#allocation3 + $0x10a] sm:$0xff]  ;;  %v16284_v22 = vld [vmem:[#allocation3 + $0x112] sm:$0xff] }
 0x446   : > { %11241 = vmatmul.mubr.f32.gmra.mrb[8].mxu1 %v5133_v40  ;;  %v9373_v16 = vld [vmem:[%s17380_s2 + $0x110] sm:$0xff]  ;;  %v9374_v40 = vld [vmem:[%s17380_s2 + $0x118] sm:$0xff]  ;;  %v16275_v6 = vld [vmem:[#allocation3 + $0xfa] sm:$0xff] }
 0x447   : > { %11243 = vmatprep.mubr.f32.mxu1 %v5134_v62  ;;  %v5458_v62 = vld [vmem:[#allocation3 + $0x9] sm:$0xff]  ;;  %v16287_v55 = vld [vmem:[#allocation3 + $0x11a] sm:$0xff] }
 0x448   : > { %v16278_v10 = vld [vmem:[#allocation3 + $0x102] sm:$0xff]  ;;  %v9407_v17 = vld [vmem:[%s17380_s2 + $0x220] sm:$0xff]  ;;  %v9410_v32 = vld [vmem:[%s17380_s2 + $0x238] sm:$0xff] }
 0x449   : > { %v9408_v53 = vld [vmem:[%s17380_s2 + $0x228] sm:$0xff] }
 0x44a   : > { %11244 = vmatmul.mubr.f32.gmra.mrb[10].mxu1 %v5135_v31  ;;  %v12326_v31 = vpack.c.bf16 %v9374_v40, %v9373_v16  ;;  %v9386_v16 = vld [vmem:[%s17380_s2 + $0x178] sm:$0xff]  ;;  %v5469_v40 = vld [vmem:[#allocation3 + $0x61] sm:$0xff]  ;;  %v12394_v5 = vpack.c.bf16 %v9408_v53, %v9407_v17 }
 0x44b   : > { %11246 = vmatprep.mubr.f32.mxu1 %v5136_v3  ;;  %v9375_v3 = vld [vmem:[%s17380_s2 + $0x120] sm:$0xff]  ;;  %v9412_v53 = vld [vmem:[%s17380_s2 + $0x248] sm:$0xff] }
 0x44e   : > { %11247 = vmatmul.mubr.f32.gmra.mrb[12].mxu1 %v5137_v61  ;;  %v9376_v61 = vld [vmem:[%s17380_s2 + $0x128] sm:$0xff] }
 0x44f   : > { %11249 = vmatprep.mubr.f32.mxu1 %v5138_v30  ;;  %v5459_v30 = vld [vmem:[#allocation3 + $0x11] sm:$0xff] }
 0x452   : > { %11250 = vmatmul.mubr.f32.gmra.mrb[14].mxu1 %v5139_v9  ;;  %v12330_v9 = vpack.c.bf16 %v9376_v61, %v9375_v3  ;;  %v9387_v3 = vld [vmem:[%s17380_s2 + $0x180] sm:$0xff]  ;;  %v9388_v61 = vld [vmem:[%s17380_s2 + $0x188] sm:$0xff] }
 0x453   : > { %11252 = vmatprep.mubr.f32.mxu1 %v5140_v18  ;;  %v5460_v18 = vld [vmem:[#allocation3 + $0x19] sm:$0xff] }
 0x456   : > { %11253 = vmatmul.mubr.f32.gmra.mrb[16].mxu1 %v5141_v27  ;;  %v9377_v27 = vld [vmem:[%s17380_s2 + $0x130] sm:$0xff] }
 0x457   : > { %11255 = vmatprep.mubr.f32.mxu1 %v5142_v41  ;;  %v9378_v41 = vld [vmem:[%s17380_s2 + $0x138] sm:$0xff] }
 0x45a   : > { %11256 = vmatmul.mubr.f32.gmra.mrb[18].mxu1 %v5143_v56  ;;  %v5461_v56 = vld [vmem:[#allocation3 + $0x21] sm:$0xff] }
 0x45b   : > { %11258 = vmatprep.mubr.f32.mxu1 %v5144_v13  ;;  %v12334_v13 = vpack.c.bf16 %v9378_v41, %v9377_v27  ;;  %v5473_v27 = vld [vmem:[#allocation3 + $0x81] sm:$0xff]  ;;  %v5474_v41 = vld [vmem:[#allocation3 + $0x89] sm:$0xff] }
 0x45e   : > { %11259 = vmatmul.mubr.f32.gmra.mrb[20].mxu1 %v5145_v54  ;;  %v5462_v54 = vld [vmem:[#allocation3 + $0x29] sm:$0xff] }
 0x45f   : > { %11261 = vmatprep.mubr.f32.mxu1 %v5146_v57  ;;  %v9380_v57 = vld [vmem:[%s17380_s2 + $0x148] sm:$0xff] }
 0x462   : > { %11262 = vmatmul.mubr.f32.gmra.mrb[22].mxu1 %v5147_v24  ;;  %v5463_v24 = vld [vmem:[#allocation3 + $0x31] sm:$0xff] }
 0x463   : > { %11264 = vmatprep.mubr.f32.mxu1 %v5148_v8 }
 0x466   : > { %11265 = vmatmul.mubr.f32.gmra.mrb[24].mxu1 %v5149_v37  ;;  %v5464_v37 = vld [vmem:[#allocation3 + $0x39] sm:$0xff] }
 0x467   : > { %11267 = vmatprep.mubr.f32.mxu1 %v5150_v52  ;;  %v9381_v52 = vld [vmem:[%s17380_s2 + $0x150] sm:$0xff] }
 0x46a   : > { %11268 = vmatmul.mubr.f32.gmra.mrb[26].mxu1 %v5151_v49  ;;  %v9382_v49 = vld [vmem:[%s17380_s2 + $0x158] sm:$0xff] }
 0x46b   : > { %11270 = vmatprep.mubr.f32.mxu1 %v5152_v58  ;;  %v5465_v58 = vld [vmem:[#allocation3 + $0x41] sm:$0xff] }
 0x46e   : > { %11271 = vmatmul.mubr.f32.gmra.mrb[28].mxu1 %v5153_v2  ;;  %v12342_v2 = vpack.c.bf16 %v9382_v49, %v9381_v52  ;;  %v5483_v52 = vld [vmem:[#allocation3 + $0xd1] sm:$0xff]  ;;  %v5484_v49 = vld [vmem:[#allocation3 + $0xd9] sm:$0xff] }
 0x46f   : > { %11273 = vmatprep.mubr.f32.mxu1 %v5154_v47  ;;  %v5466_v47 = vld [vmem:[#allocation3 + $0x49] sm:$0xff] }
 0x472   : > { %11274 = vmatmul.mubr.f32.gmra.mrb[30].mxu1 %v5155_v63  ;;  %v9383_v63 = vld [vmem:[%s17380_s2 + $0x160] sm:$0xff] }
 0x473   : > { %11276 = vmatprep.mubr.f32.mxu1 %v5156_v26  ;;  %v9384_v26 = vld [vmem:[%s17380_s2 + $0x168] sm:$0xff] }
 0x476   : > { %11277 = vmatmul.mubr.f32.gmra.mrb[32].mxu1 %v5157_v14  ;;  %v5467_v14 = vld [vmem:[#allocation3 + $0x51] sm:$0xff] }
 0x477   : > { %11279 = vmatprep.mubr.f32.mxu1 %v5158_v46  ;;  %v12346_v46 = vpack.c.bf16 %v9384_v26, %v9383_v63  ;;  %v5488_v63 = vld [vmem:[#allocation3 + $0xf9] sm:$0xff]  ;;  %v5489_v26 = vld [vmem:[#allocation3 + $0x101] sm:$0xff] }
 0x47a   : > { %11280 = vmatmul.mubr.f32.gmra.mrb[34].mxu1 %v5159_v38  ;;  %v9385_v38 = vld [vmem:[%s17380_s2 + $0x170] sm:$0xff] }
 0x47b   : > { %11314 = vmatprep.mubr.f32.mxu1 %v5457_v12  ;;  %v5468_v12 = vld [vmem:[#allocation3 + $0x59] sm:$0xff] }
 0x47e   : > { %11315 = vmatmul.mubr.f32.vlgmr.msra.gmra.mrb[0].mxu1 %v5458_v62  ;;  %v12350_v62 = vpack.c.bf16 %v9386_v16, %v9385_v38  ;;  %v5492_v38 = vld [vmem:[#allocation3 + $0x119] sm:$0xff]  ;;  %v9389_v16 = vld [vmem:[%s17380_s2 + $0x190] sm:$0xff] }
 0x47f   : > { %11317 = vmatprep.mubr.f32.mxu1 %v5459_v30  ;;  %12325 = vmatpush3.bf16.msra.mxu1 %v15829_v33  ;;  %v9379_v33 = vld [vmem:[%s17380_s2 + $0x140] sm:$0xff] }
 0x480   : > { %12327 = vmatprep.subr.bf16.mxu1 %v12326_v31  ;;  %v12338_v8 = vpack.c.bf16 %v9380_v57, %v9379_v33  ;;  %v5471_v30 = vld [vmem:[#allocation3 + $0x71] sm:$0xff]  ;;  %v5478_v33 = vld [vmem:[#allocation3 + $0xa9] sm:$0xff] }
 0x481   : > { %v5479_v57 = vld [vmem:[#allocation3 + $0xb1] sm:$0xff] }
 0x482   : > { %11318 = vmatmul.mubr.f32.gmra.mrb[2].mxu1 %v5460_v18  ;;  %v5472_v18 = vld [vmem:[#allocation3 + $0x79] sm:$0xff] }
 0x483   : > { %11320 = vmatprep.mubr.f32.mxu1 %v5461_v56  ;;  %12329 = vmatpush3.bf16.msra.mxu1 %v12326_v31  ;;  %v5470_v31 = vld [vmem:[#allocation3 + $0x69] sm:$0xff]  ;;  %v5475_v56 = vld [vmem:[#allocation3 + $0x91] sm:$0xff] }
 0x484   : > { %12331 = vmatprep.subr.bf16.mxu1 %v12330_v9 }
 0x486   : > { %11321 = vmatmul.mubr.f32.gmra.mrb[4].mxu1 %v5462_v54  ;;  %v5477_v54 = vld [vmem:[#allocation3 + $0xa1] sm:$0xff] }
 0x487   : > { %11323 = vmatprep.mubr.f32.mxu1 %v5463_v24  ;;  %12333 = vmatpush3.bf16.msra.mxu1 %v12330_v9  ;;  %v12354_v9 = vpack.c.bf16 %v9388_v61, %v9387_v3  ;;  %v5480_v24 = vld [vmem:[#allocation3 + $0xb9] sm:$0xff] }
 0x488   : > { %12335 = vmatprep.subr.bf16.mxu1 %v12334_v13  ;;  %v9391_v3 = vld [vmem:[%s17380_s2 + $0x1a0] sm:$0xff]  ;;  %v9392_v61 = vld [vmem:[%s17380_s2 + $0x1a8] sm:$0xff] }
 0x48a   : > { %11324 = vmatmul.mubr.f32.gmra.mrb[6].mxu1 %v5464_v37  ;;  %v5482_v37 = vld [vmem:[#allocation3 + $0xc9] sm:$0xff] }
 0x48b   : > { %11326 = vmatprep.mubr.f32.mxu1 %v5465_v58  ;;  %12337 = vmatpush3.bf16.msra.mxu1 %v12334_v13  ;;  %v5476_v13 = vld [vmem:[#allocation3 + $0x99] sm:$0xff]  ;;  %v5485_v58 = vld [vmem:[#allocation3 + $0xe1] sm:$0xff] }
 0x48c   : > { %12339 = vmatprep.subr.bf16.mxu1 %v12338_v8 }
 0x48e   : > { %11327 = vmatmul.mubr.f32.gmra.mrb[8].mxu1 %v5466_v47  ;;  %v5487_v47 = vld [vmem:[#allocation3 + $0xf1] sm:$0xff] }
 0x48f   : > { %11329 = vmatprep.mubr.f32.mxu1 %v5467_v14  ;;  %12341 = vmatpush3.bf16.msra.mxu1 %v12338_v8  ;;  %v5481_v8 = vld [vmem:[#allocation3 + $0xc1] sm:$0xff]  ;;  %v5490_v14 = vld [vmem:[#allocation3 + $0x109] sm:$0xff] }
 0x490   : > { %12343 = vmatprep.subr.bf16.mxu1 %v12342_v2 }
 0x492   : > { %11330 = vmatmul.mubr.f32.gmra.mrb[10].mxu1 %v5468_v12  ;;  %v5863_v12 = vld [vmem:[#allocation3 + $0x2] sm:$0xff] }
 0x493   : > { %11332 = vmatprep.mubr.f32.mxu1 %v5469_v40  ;;  %12345 = vmatpush3.bf16.msra.mxu1 %v12342_v2  ;;  %v5486_v2 = vld [vmem:[#allocation3 + $0xe9] sm:$0xff] }
 0x494   : > { %12347 = vmatprep.subr.bf16.mxu1 %v12346_v46  ;;  %v9390_v40 = vld [vmem:[%s17380_s2 + $0x198] sm:$0xff] }
 0x496   : > { %11333 = vmatmul.mubr.f32.gmra.mrb[12].mxu1 %v5470_v31  ;;  %v12358_v31 = vpack.c.bf16 %v9390_v40, %v9389_v16  ;;  %v9402_v16 = vld [vmem:[%s17380_s2 + $0x1f8] sm:$0xff]  ;;  %v16212_v40 = vld [vmem:[#allocation3 + $0x62] sm:$0xff] }
 0x497   : > { %11335 = vmatprep.mubr.f32.mxu1 %v5471_v30  ;;  %12349 = vmatpush3.bf16.msra.mxu1 %v12346_v46  ;;  %v5491_v46 = vld [vmem:[#allocation3 + $0x111] sm:$0xff] }
 0x498   : > { %12351 = vmatprep.subr.bf16.mxu1 %v12350_v62  ;;  %v16152_v30 = vld [vmem:[#allocation3 + $0x12] sm:$0xff] }
 0x49a   : > { %11336 = vmatmul.mubr.f32.gmra.mrb[14].mxu1 %v5472_v18  ;;  %v12362_v18 = vpack.c.bf16 %v9392_v61, %v9391_v3  ;;  %v9403_v3 = vld [vmem:[%s17380_s2 + $0x200] sm:$0xff]  ;;  %v9404_v61 = vld [vmem:[%s17380_s2 + $0x208] sm:$0xff] }
 0x49b   : > { %11338 = vmatprep.mubr.f32.mxu1 %v5473_v27  ;;  %12353 = vmatpush3.bf16.msra.mxu1 %v12350_v62  ;;  %v5864_v62 = vld [vmem:[#allocation3 + $0xa] sm:$0xff]  ;;  %v16155_v27 = vld [vmem:[#allocation3 + $0x1a] sm:$0xff] }
 0x49c   : > { %12355 = vmatprep.subr.bf16.mxu1 %v12354_v9 }
 0x49e   : > { %11339 = vmatmul.mubr.f32.gmra.mrb[16].mxu1 %v5474_v41  ;;  %v9393_v41 = vld [vmem:[%s17380_s2 + $0x1b0] sm:$0xff] }
 0x49f   : > { %11341 = vmatprep.mubr.f32.mxu1 %v5475_v56  ;;  %v9394_v56 = vld [vmem:[%s17380_s2 + $0x1b8] sm:$0xff] }
 0x4a2   : > { %11342 = vmatmul.mubr.f32.gmra.mrb[18].mxu1 %v5476_v13  ;;  %v16164_v13 = vld [vmem:[#allocation3 + $0x22] sm:$0xff] }
 0x4a3   : > { %11344 = vmatprep.mubr.f32.mxu1 %v5477_v54  ;;  %v16167_v54 = vld [vmem:[#allocation3 + $0x2a] sm:$0xff] }
 0x4a6   : > { %11345 = vmatmul.mubr.f32.gmra.mrb[20].mxu1 %v5478_v33  ;;  %v9395_v33 = vld [vmem:[%s17380_s2 + $0x1c0] sm:$0xff] }
 0x4a7   : > { %11347 = vmatprep.mubr.f32.mxu1 %v5479_v57  ;;  %v9396_v57 = vld [vmem:[%s17380_s2 + $0x1c8] sm:$0xff] }
 0x4aa   : > { %11348 = vmatmul.mubr.f32.gmra.mrb[22].mxu1 %v5480_v24  ;;  %v16176_v24 = vld [vmem:[#allocation3 + $0x32] sm:$0xff] }
 0x4ab   : > { %11350 = vmatprep.mubr.f32.mxu1 %v5481_v8  ;;  %v12370_v8 = vpack.c.bf16 %v9396_v57, %v9395_v33  ;;  %v16233_v33 = vld [vmem:[#allocation3 + $0x8a] sm:$0xff]  ;;  %v16236_v57 = vld [vmem:[#allocation3 + $0x92] sm:$0xff] }
 0x4ae   : > { %11351 = vmatmul.mubr.f32.gmra.mrb[24].mxu1 %v5482_v37  ;;  %v16179_v37 = vld [vmem:[#allocation3 + $0x3a] sm:$0xff] }
 0x4af   : > { %11353 = vmatprep.mubr.f32.mxu1 %v5483_v52  ;;  %v9397_v52 = vld [vmem:[%s17380_s2 + $0x1d0] sm:$0xff] }
 0x4b2   : > { %11354 = vmatmul.mubr.f32.gmra.mrb[26].mxu1 %v5484_v49  ;;  %v9398_v49 = vld [vmem:[%s17380_s2 + $0x1d8] sm:$0xff] }
 0x4b3   : > { %11356 = vmatprep.mubr.f32.mxu1 %v5485_v58  ;;  %v16188_v58 = vld [vmem:[#allocation3 + $0x42] sm:$0xff] }
 0x4b6   : > { %11357 = vmatmul.mubr.f32.gmra.mrb[28].mxu1 %v5486_v2  ;;  %v12374_v2 = vpack.c.bf16 %v9398_v49, %v9397_v52  ;;  %v16242_v52 = vld [vmem:[#allocation3 + $0xa2] sm:$0xff]  ;;  %v16245_v49 = vld [vmem:[#allocation3 + $0xaa] sm:$0xff] }
 0x4b7   : > { %11359 = vmatprep.mubr.f32.mxu1 %v5487_v47  ;;  %v16191_v47 = vld [vmem:[#allocation3 + $0x4a] sm:$0xff] }
 0x4ba   : > { %11360 = vmatmul.mubr.f32.gmra.mrb[30].mxu1 %v5488_v63  ;;  %v9399_v63 = vld [vmem:[%s17380_s2 + $0x1e0] sm:$0xff] }
 0x4bb   : > { %11362 = vmatprep.mubr.f32.mxu1 %v5489_v26  ;;  %v9400_v26 = vld [vmem:[%s17380_s2 + $0x1e8] sm:$0xff] }
 0x4be   : > { %11363 = vmatmul.mubr.f32.gmra.mrb[32].mxu1 %v5490_v14  ;;  %v16200_v14 = vld [vmem:[#allocation3 + $0x52] sm:$0xff] }
 0x4bf   : > { %11365 = vmatprep.mubr.f32.mxu1 %v5491_v46  ;;  %v12378_v46 = vpack.c.bf16 %v9400_v26, %v9399_v63  ;;  %v16251_v63 = vld [vmem:[#allocation3 + $0xba] sm:$0xff]  ;;  %v16254_v26 = vld [vmem:[#allocation3 + $0xc2] sm:$0xff] }
 0x4c2   : > { %11366 = vmatmul.mubr.f32.gmra.mrb[34].mxu1 %v5492_v38  ;;  %v9401_v38 = vld [vmem:[%s17380_s2 + $0x1f0] sm:$0xff] }
 0x4c3   : > { %11400 = vmatprep.mubr.f32.mxu1 %v5863_v12  ;;  %v16203_v12 = vld [vmem:[#allocation3 + $0x5a] sm:$0xff] }
 0x4c6   : > { %11401 = vmatmul.mubr.f32.vlgmr.msra.gmra.mrb[0].mxu1 %v5864_v62  ;;  %v12382_v62 = vpack.c.bf16 %v9402_v16, %v9401_v38  ;;  %v16260_v38 = vld [vmem:[#allocation3 + $0xd2] sm:$0xff]  ;;  %v16263_v16 = vld [vmem:[#allocation3 + $0xda] sm:$0xff] }
 0x4c7   : > { %11403 = vmatprep.mubr.f32.mxu1 %v16152_v30  ;;  %12357 = vmatpush3.bf16.msra.mxu1 %v12354_v9  ;;  %v12366_v9 = vpack.c.bf16 %v9394_v56, %v9393_v41  ;;  %v12386_v41 = vpack.c.bf16 %v9404_v61, %v9403_v3  ;;  %v16227_v56 = vld [vmem:[#allocation3 + $0x7a] sm:$0xff]  ;;  %v16269_v3 = vld [vmem:[#allocation3 + $0xea] sm:$0xff]  ;;  %v16272_v61 = vld [vmem:[#allocation3 + $0xf2] sm:$0xff] }
 0x4c8   : > { %12359 = vmatprep.subr.bf16.mxu1 %v12358_v31 }
 0x4ca   : > { %11404 = vmatmul.mubr.f32.gmra.mrb[2].mxu1 %v16155_v27 }
 0x4cb   : > { %11406 = vmatprep.mubr.f32.mxu1 %v16164_v13  ;;  %12361 = vmatpush3.bf16.msra.mxu1 %v12358_v31  ;;  %v16215_v31 = vld [vmem:[#allocation3 + $0x6a] sm:$0xff] }
 0x4cc   : > { %12363 = vmatprep.subr.bf16.mxu1 %v12362_v18 }
 0x4ce   : > { %11407 = vmatmul.mubr.f32.gmra.mrb[4].mxu1 %v16167_v54 }
 0x4cf   : > { %11409 = vmatprep.mubr.f32.mxu1 %v16176_v24  ;;  %12365 = vmatpush3.bf16.msra.mxu1 %v12362_v18  ;;  %v16224_v18 = vld [vmem:[#allocation3 + $0x72] sm:$0xff] }
 0x4d0   : > { %12367 = vmatprep.subr.bf16.mxu1 %v12366_v9 }
 0x4d2   : > { %11410 = vmatmul.mubr.f32.gmra.mrb[6].mxu1 %v16179_v37 }
 0x4d3   : > { %11412 = vmatprep.mubr.f32.mxu1 %v16188_v58  ;;  %12369 = vmatpush3.bf16.msra.mxu1 %v12366_v9  ;;  %v16230_v9 = vld [vmem:[#allocation3 + $0x82] sm:$0xff] }
 0x4d4   : > { %12371 = vmatprep.subr.bf16.mxu1 %v12370_v8 }
 0x4d6   : > { %11413 = vmatmul.mubr.f32.gmra.mrb[8].mxu1 %v16191_v47 }
 0x4d7   : > { %11415 = vmatprep.mubr.f32.mxu1 %v16200_v14  ;;  %12373 = vmatpush3.bf16.msra.mxu1 %v12370_v8  ;;  %v16239_v8 = vld [vmem:[#allocation3 + $0x9a] sm:$0xff] }
 0x4d8   : > { %12375 = vmatprep.subr.bf16.mxu1 %v12374_v2 }
 0x4da   : > { %11416 = vmatmul.mubr.f32.gmra.mrb[10].mxu1 %v16203_v12 }
 0x4db   : > { %11418 = vmatprep.mubr.f32.mxu1 %v16212_v40  ;;  %12377 = vmatpush3.bf16.msra.mxu1 %v12374_v2  ;;  %v16248_v2 = vld [vmem:[#allocation3 + $0xb2] sm:$0xff] }
 0x4dc   : > { %12379 = vmatprep.subr.bf16.mxu1 %v12378_v46 }
 0x4de   : > { %11419 = vmatmul.mubr.f32.gmra.mrb[12].mxu1 %v16215_v31 }
 0x4df   : > { %11421 = vmatprep.mubr.f32.mxu1 %v16224_v18  ;;  %12381 = vmatpush3.bf16.msra.mxu1 %v12378_v46  ;;  %v16257_v46 = vld [vmem:[#allocation3 + $0xca] sm:$0xff] }
 0x4e0   : > { %12383 = vmatprep.subr.bf16.mxu1 %v12382_v62 }
 0x4e2   : > { %11422 = vmatmul.mubr.f32.gmra.mrb[14].mxu1 %v16227_v56 }
 0x4e3   : > { %11424 = vmatprep.mubr.f32.mxu1 %v16230_v9  ;;  %12385 = vmatpush3.bf16.msra.mxu1 %v12382_v62  ;;  %v16266_v62 = vld [vmem:[#allocation3 + $0xe2] sm:$0xff] }
 0x4e4   : > { %12387 = vmatprep.subr.bf16.mxu1 %v12386_v41 }
 0x4e6   : > { %11425 = vmatmul.mubr.f32.gmra.mrb[16].mxu1 %v16233_v33 }
 0x4e7   : > { %11427 = vmatprep.mubr.f32.mxu1 %v16236_v57 }
 0x4ea   : > { %11428 = vmatmul.mubr.f32.gmra.mrb[18].mxu1 %v16239_v8 }
 0x4eb   : > { %11430 = vmatprep.mubr.f32.mxu1 %v16242_v52 }
 0x4ee   : > { %11431 = vmatmul.mubr.f32.gmra.mrb[20].mxu1 %v16245_v49 }
 0x4ef   : > { %11433 = vmatprep.mubr.f32.mxu1 %v16248_v2 }
 0x4f2   : > { %11434 = vmatmul.mubr.f32.gmra.mrb[22].mxu1 %v16251_v63 }
 0x4f3   : > { %11436 = vmatprep.mubr.f32.mxu1 %v16254_v26 }
 0x4f6   : > { %11437 = vmatmul.mubr.f32.gmra.mrb[24].mxu1 %v16257_v46 }
 0x4f7   : > { %11439 = vmatprep.mubr.f32.mxu1 %v16260_v38 }
 0x4fa   : > { %11440 = vmatmul.mubr.f32.gmra.mrb[26].mxu1 %v16263_v16 }
 0x4fb   : > { %11442 = vmatprep.mubr.f32.mxu1 %v16266_v62 }
 0x4fe   : > { %11443 = vmatmul.mubr.f32.gmra.mrb[28].mxu1 %v16269_v3 }
 0x4ff   : > { %11445 = vmatprep.mubr.f32.mxu1 %v16272_v61 }
 0x502   : > { %11446 = vmatmul.mubr.f32.gmra.mrb[30].mxu1 %v16275_v6 }
 0x503   : > { %11448 = vmatprep.mubr.f32.mxu1 %v16278_v10 }
 0x506   : > { %11449 = vmatmul.mubr.f32.gmra.mrb[32].mxu1 %v16281_v11 }
 0x507   : > { %11451 = vmatprep.mubr.f32.mxu1 %v16284_v22 }
 0x50a   : > { %11452 = vmatmul.mubr.f32.gmra.mrb[34].mxu1 %v16287_v55 }
 0x50b   : > { %11486 = vmatprep.mubr.f32.mxu1 %v16152_v30  ;;  %v9409_v30 = vld [vmem:[%s17380_s2 + $0x230] sm:$0xff] }
 0x50c   : > { %v12398_v34 = vpack.c.bf16 %v9410_v32, %v9409_v30  ;;  %v9430_v30 = vld [vmem:[%s17380_s2 + $0x2d8] sm:$0xff] }
 0x50d   : > { %v6683_v32 = vld [vmem:[#allocation3 + $0x53] sm:$0xff] }
 0x50e   : > { %11487 = vmatmul.mubr.f32.vlgmr.msra.gmra.mrb[0].mxu1 %v16155_v27  ;;  %v9411_v27 = vld [vmem:[%s17380_s2 + $0x240] sm:$0xff] }
 0x50f   : > { %11489 = vmatprep.mubr.f32.mxu1 %v16164_v13  ;;  %12389 = vmatpush3.bf16.msra.mxu1 %v12386_v41  ;;  %v12402_v17 = vpack.c.bf16 %v9412_v53, %v9411_v27  ;;  %v9414_v13 = vld [vmem:[%s17380_s2 + $0x258] sm:$0xff]  ;;  %v6684_v27 = vld [vmem:[#allocation3 + $0x5b] sm:$0xff] }
 0x510   : > { %12391 = vmatprep.subr.bf16.mxu1 %v12390_v0  ;;  %v6304_v41 = vld [vmem:[#allocation3 + $0x12a] sm:$0xff]  ;;  %v9431_v53 = vld [vmem:[%s17380_s2 + $0x2e0] sm:$0xff] }
 0x512   : > { %11490 = vmatmul.mubr.f32.gmra.mrb[2].mxu1 %v16167_v54 }
 0x513   : > { %11492 = vmatprep.mubr.f32.mxu1 %v16176_v24  ;;  %12393 = vmatpush3.bf16.msra.mxu1 %v12390_v0  ;;  %v9413_v0 = vld [vmem:[%s17380_s2 + $0x250] sm:$0xff]  ;;  %v9416_v24 = vld [vmem:[%s17380_s2 + $0x268] sm:$0xff] }
 0x514   : > { %12395 = vmatprep.subr.bf16.mxu1 %v12394_v5  ;;  %v12406_v54 = vpack.c.bf16 %v9414_v13, %v9413_v0  ;;  %v6685_v0 = vld [vmem:[#allocation3 + $0x63] sm:$0xff] }
 0x516   : > { %11493 = vmatmul.mubr.f32.gmra.mrb[4].mxu1 %v16179_v37 }
 0x517   : > { %11495 = vmatprep.mubr.f32.mxu1 %v16188_v58  ;;  %12397 = vmatpush3.bf16.msra.mxu1 %v12394_v5  ;;  %v9415_v5 = vld [vmem:[%s17380_s2 + $0x260] sm:$0xff]  ;;  %v9417_v58 = vld [vmem:[%s17380_s2 + $0x270] sm:$0xff] }
 0x518   : > { %12399 = vmatprep.subr.bf16.mxu1 %v12398_v34  ;;  %v12410_v37 = vpack.c.bf16 %v9416_v24, %v9415_v5  ;;  %v9433_v5 = vld [vmem:[%s17380_s2 + $0x2f0] sm:$0xff]  ;;  %v9434_v24 = vld [vmem:[%s17380_s2 + $0x2f8] sm:$0xff] }
 0x51a   : > { %11496 = vmatmul.mubr.f32.gmra.mrb[6].mxu1 %v16191_v47  ;;  %v9418_v47 = vld [vmem:[%s17380_s2 + $0x278] sm:$0xff] }
 0x51b   : > { %11498 = vmatprep.mubr.f32.mxu1 %v16200_v14  ;;  %12401 = vmatpush3.bf16.msra.mxu1 %v12398_v34  ;;  %v12414_v14 = vpack.c.bf16 %v9418_v47, %v9417_v58  ;;  %v12446_v58 = vpack.c.bf16 %v9434_v24, %v9433_v5  ;;  %v6688_v47 = vld [vmem:[#allocation3 + $0x7b] sm:$0xff]  ;;  %v9442_v5 = vld [vmem:[%s17380_s2 + $0x338] sm:$0xff] }
 0x51c   : > { %12403 = vmatprep.subr.bf16.mxu1 %v12402_v17  ;;  %v16444_v24 = vld [vmem:[#allocation3 + $0x34] sm:$0xff] }
 0x51e   : > { %11499 = vmatmul.mubr.f32.gmra.mrb[8].mxu1 %v16203_v12  ;;  %v9419_v12 = vld [vmem:[%s17380_s2 + $0x280] sm:$0xff] }
 0x51f   : > { %11501 = vmatprep.mubr.f32.mxu1 %v16212_v40  ;;  %12405 = vmatpush3.bf16.msra.mxu1 %v12402_v17  ;;  %v9420_v40 = vld [vmem:[%s17380_s2 + $0x288] sm:$0xff] }
 0x520   : > { %12407 = vmatprep.subr.bf16.mxu1 %v12406_v54  ;;  %v9432_v17 = vld [vmem:[%s17380_s2 + $0x2e8] sm:$0xff] }
 0x521   : > { %v12442_v13 = vpack.c.bf16 %v9432_v17, %v9431_v53  ;;  %v9440_v53 = vld [vmem:[%s17380_s2 + $0x328] sm:$0xff] }
 0x522   : > { %11502 = vmatmul.mubr.f32.gmra.mrb[10].mxu1 %v16215_v31  ;;  %v12418_v31 = vpack.c.bf16 %v9420_v40, %v9419_v12  ;;  %v9436_v12 = vld [vmem:[%s17380_s2 + $0x308] sm:$0xff] }
 0x523   : > { %11504 = vmatprep.mubr.f32.mxu1 %v16224_v18  ;;  %12409 = vmatpush3.bf16.msra.mxu1 %v12406_v54  ;;  %v6303_v18 = vld [vmem:[#allocation3 + $0x122] sm:$0xff]  ;;  %v6686_v54 = vld [vmem:[#allocation3 + $0x6b] sm:$0xff] }
 0x524   : > { %12411 = vmatprep.subr.bf16.mxu1 %v12410_v37  ;;  %v6689_v40 = vld [vmem:[#allocation3 + $0x83] sm:$0xff] }
 0x525   : > { %v16432_v17 = vld [vmem:[#allocation3 + $0x24] sm:$0xff] }
 0x526   : > { %11505 = vmatmul.mubr.f32.gmra.mrb[12].mxu1 %v16227_v56  ;;  %v9421_v56 = vld [vmem:[%s17380_s2 + $0x290] sm:$0xff] }
 0x527   : > { %11507 = vmatprep.mubr.f32.mxu1 %v16230_v9  ;;  %12413 = vmatpush3.bf16.msra.mxu1 %v12410_v37  ;;  %v9422_v9 = vld [vmem:[%s17380_s2 + $0x298] sm:$0xff] }
 0x528   : > { %12415 = vmatprep.subr.bf16.mxu1 %v12414_v14  ;;  %v6687_v37 = vld [vmem:[#allocation3 + $0x73] sm:$0xff] }
 0x52a   : > { %11508 = vmatmul.mubr.f32.gmra.mrb[14].mxu1 %v16233_v33  ;;  %v6677_v33 = vld [vmem:[#allocation3 + $0x23] sm:$0xff] }
 0x52b   : > { %11510 = vmatprep.mubr.f32.mxu1 %v16236_v57  ;;  %12417 = vmatpush3.bf16.msra.mxu1 %v12414_v14  ;;  %v9435_v14 = vld [vmem:[%s17380_s2 + $0x300] sm:$0xff] }
 0x52c   : > { %12419 = vmatprep.subr.bf16.mxu1 %v12418_v31 }
 0x52e   : > { %11511 = vmatmul.mubr.f32.gmra.mrb[16].mxu1 %v16239_v8  ;;  %v6678_v8 = vld [vmem:[#allocation3 + $0x2b] sm:$0xff] }
 0x52f   : > { %11513 = vmatprep.mubr.f32.mxu1 %v16242_v52  ;;  %v9425_v52 = vld [vmem:[%s17380_s2 + $0x2b0] sm:$0xff] }
 0x532   : > { %11514 = vmatmul.mubr.f32.gmra.mrb[18].mxu1 %v16245_v49  ;;  %v9426_v49 = vld [vmem:[%s17380_s2 + $0x2b8] sm:$0xff] }
 0x533   : > { %11516 = vmatprep.mubr.f32.mxu1 %v16248_v2  ;;  %v6679_v2 = vld [vmem:[#allocation3 + $0x33] sm:$0xff] }
 0x536   : > { %11517 = vmatmul.mubr.f32.gmra.mrb[20].mxu1 %v16251_v63  ;;  %v12430_v63 = vpack.c.bf16 %v9426_v49, %v9425_v52  ;;  %v6702_v52 = vld [vmem:[#allocation3 + $0xeb] sm:$0xff]  ;;  %v6703_v49 = vld [vmem:[#allocation3 + $0xf3] sm:$0xff] }
 0x537   : > { %11519 = vmatprep.mubr.f32.mxu1 %v16254_v26  ;;  %v6680_v26 = vld [vmem:[#allocation3 + $0x3b] sm:$0xff] }
 0x53a   : > { %11520 = vmatmul.mubr.f32.gmra.mrb[22].mxu1 %v16257_v46  ;;  %v9427_v46 = vld [vmem:[%s17380_s2 + $0x2c0] sm:$0xff] }
 0x53b   : > { %11522 = vmatprep.mubr.f32.mxu1 %v16260_v38  ;;  %v9428_v38 = vld [vmem:[%s17380_s2 + $0x2c8] sm:$0xff] }
 0x53e   : > { %11523 = vmatmul.mubr.f32.gmra.mrb[24].mxu1 %v16263_v16  ;;  %v6681_v16 = vld [vmem:[#allocation3 + $0x43] sm:$0xff] }
 0x53f   : > { %11525 = vmatprep.mubr.f32.mxu1 %v16266_v62  ;;  %v12434_v62 = vpack.c.bf16 %v9428_v38, %v9427_v46  ;;  %v6707_v46 = vld [vmem:[#allocation3 + $0x113] sm:$0xff]  ;;  %v6708_v38 = vld [vmem:[#allocation3 + $0x11b] sm:$0xff] }
 0x542   : > { %11526 = vmatmul.mubr.f32.gmra.mrb[26].mxu1 %v16269_v3  ;;  %v6682_v3 = vld [vmem:[#allocation3 + $0x4b] sm:$0xff] }
 0x543   : > { %11528 = vmatprep.mubr.f32.mxu1 %v16272_v61  ;;  %v9429_v61 = vld [vmem:[%s17380_s2 + $0x2d0] sm:$0xff] }
 0x544   : > { %v12438_v34 = vpack.c.bf16 %v9430_v30, %v9429_v61  ;;  %v9438_v61 = vld [vmem:[%s17380_s2 + $0x318] sm:$0xff] }
 0x545   : > { %v7081_v30 = vld [vmem:[#allocation3 + $0x14] sm:$0xff] }
 0x546   : > { %11529 = vmatmul.mubr.f32.gmra.mrb[28].mxu1 %v16275_v6  ;;  %v6675_v6 = vld [vmem:[#allocation3 + $0x13] sm:$0xff] }
 0x547   : > { %11531 = vmatprep.mubr.f32.mxu1 %v16278_v10  ;;  %v12422_v10 = vpack.c.bf16 %v9422_v9, %v9421_v56  ;;  %v6692_v56 = vld [vmem:[#allocation3 + $0x9b] sm:$0xff]  ;;  %v6693_v9 = vld [vmem:[#allocation3 + $0xa3] sm:$0xff] }
 0x54a   : > { %11532 = vmatmul.mubr.f32.gmra.mrb[30].mxu1 %v16281_v11  ;;  %v6676_v11 = vld [vmem:[#allocation3 + $0x1b] sm:$0xff] }
 0x54b   : > { %11534 = vmatprep.mubr.f32.mxu1 %v16284_v22  ;;  %v9423_v22 = vld [vmem:[%s17380_s2 + $0x2a0] sm:$0xff] }
 0x54e   : > { %11535 = vmatmul.mubr.f32.gmra.mrb[32].mxu1 %v16287_v55  ;;  %v9424_v55 = vld [vmem:[%s17380_s2 + $0x2a8] sm:$0xff] }
 0x54f   : > { %11537 = vmatprep.mubr.f32.mxu1 %v6303_v18  ;;  %v12426_v57 = vpack.c.bf16 %v9424_v55, %v9423_v22  ;;  %v6690_v18 = vld [vmem:[#allocation3 + $0x8b] sm:$0xff]  ;;  %v6697_v22 = vld [vmem:[#allocation3 + $0xc3] sm:$0xff] }
 0x550   : > { %v6698_v55 = vld [vmem:[#allocation3 + $0xcb] sm:$0xff] }
 0x552   : > { %11538 = vmatmul.mubr.f32.gmra.mrb[34].mxu1 %v6304_v41  ;;  %v6691_v41 = vld [vmem:[#allocation3 + $0x93] sm:$0xff] }
 0x553   : > { %11572 = vmatprep.mubr.f32.mxu1 %v6675_v6  ;;  %v6694_v6 = vld [vmem:[#allocation3 + $0xab] sm:$0xff] }
 0x556   : > { %11573 = vmatmul.mubr.f32.vlgmr.msra.gmra.mrb[0].mxu1 %v6676_v11  ;;  %v6696_v11 = vld [vmem:[#allocation3 + $0xbb] sm:$0xff] }
 0x557   : > { %11575 = vmatprep.mubr.f32.mxu1 %v6677_v33  ;;  %12421 = vmatpush3.bf16.msra.mxu1 %v12418_v31  ;;  %v12450_v31 = vpack.c.bf16 %v9436_v12, %v9435_v14  ;;  %v6699_v33 = vld [vmem:[#allocation3 + $0xd3] sm:$0xff]  ;;  %v9444_v14 = vld [vmem:[%s17380_s2 + $0x348] sm:$0xff] }
 0x558   : > { %12423 = vmatprep.subr.bf16.mxu1 %v12422_v10  ;;  %v16456_v12 = vld [vmem:[#allocation3 + $0x44] sm:$0xff] }
 0x55a   : > { %11576 = vmatmul.mubr.f32.gmra.mrb[2].mxu1 %v6678_v8  ;;  %v6701_v8 = vld [vmem:[#allocation3 + $0xe3] sm:$0xff] }
 0x55b   : > { %11578 = vmatprep.mubr.f32.mxu1 %v6679_v2  ;;  %12425 = vmatpush3.bf16.msra.mxu1 %v12422_v10  ;;  %v6695_v10 = vld [vmem:[#allocation3 + $0xb3] sm:$0xff]  ;;  %v6704_v2 = vld [vmem:[#allocation3 + $0xfb] sm:$0xff] }
 0x55c   : > { %12427 = vmatprep.subr.bf16.mxu1 %v12426_v57 }
 0x55e   : > { %11579 = vmatmul.mubr.f32.gmra.mrb[4].mxu1 %v6680_v26  ;;  %v6706_v26 = vld [vmem:[#allocation3 + $0x10b] sm:$0xff] }
 0x55f   : > { %11581 = vmatprep.mubr.f32.mxu1 %v6681_v16  ;;  %12429 = vmatpush3.bf16.msra.mxu1 %v12426_v57  ;;  %v6700_v57 = vld [vmem:[#allocation3 + $0xdb] sm:$0xff]  ;;  %v6709_v16 = vld [vmem:[#allocation3 + $0x123] sm:$0xff] }
 0x560   : > { %12431 = vmatprep.subr.bf16.mxu1 %v12430_v63 }
 0x562   : > { %11582 = vmatmul.mubr.f32.gmra.mrb[6].mxu1 %v6682_v3  ;;  %v9437_v3 = vld [vmem:[%s17380_s2 + $0x310] sm:$0xff] }
 0x563   : > { %11584 = vmatprep.mubr.f32.mxu1 %v6683_v32  ;;  %12433 = vmatpush3.bf16.msra.mxu1 %v12430_v63  ;;  %v6705_v63 = vld [vmem:[#allocation3 + $0x103] sm:$0xff]  ;;  %v12454_v32 = vpack.c.bf16 %v9438_v61, %v9437_v3 }
 0x564   : > { %12435 = vmatprep.subr.bf16.mxu1 %v12434_v62  ;;  %v16513_v3 = vld [vmem:[#allocation3 + $0x9c] sm:$0xff]  ;;  %v16516_v61 = vld [vmem:[#allocation3 + $0xa4] sm:$0xff] }
 0x566   : > { %11585 = vmatmul.mubr.f32.gmra.mrb[8].mxu1 %v6684_v27  ;;  %v9439_v27 = vld [vmem:[%s17380_s2 + $0x320] sm:$0xff] }
 0x567   : > { %11587 = vmatprep.mubr.f32.mxu1 %v6685_v0  ;;  %12437 = vmatpush3.bf16.msra.mxu1 %v12434_v62  ;;  %v6710_v62 = vld [vmem:[#allocation3 + $0x12b] sm:$0xff]  ;;  %v12458_v0 = vpack.c.bf16 %v9440_v53, %v9439_v27 }
 0x568   : > { %12439 = vmatprep.subr.bf16.mxu1 %v12438_v34  ;;  %v16528_v27 = vld [vmem:[#allocation3 + $0xc4] sm:$0xff]  ;;  %v16531_v53 = vld [vmem:[#allocation3 + $0xcc] sm:$0xff] }
 0x56a   : > { %11588 = vmatmul.mubr.f32.gmra.mrb[10].mxu1 %v6686_v54  ;;  %v9441_v54 = vld [vmem:[%s17380_s2 + $0x330] sm:$0xff] }
 0x56b   : > { %11590 = vmatprep.mubr.f32.mxu1 %v6687_v37  ;;  %12441 = vmatpush3.bf16.msra.mxu1 %v12438_v34  ;;  %v7082_v34 = vld [vmem:[#allocation3 + $0x1c] sm:$0xff]  ;;  %v12462_v37 = vpack.c.bf16 %v9442_v5, %v9441_v54  ;;  %v16540_v5 = vld [vmem:[#allocation3 + $0xe4] sm:$0xff] }
 0x56c   : > { %12443 = vmatprep.subr.bf16.mxu1 %v12442_v13  ;;  %v16537_v54 = vld [vmem:[#allocation3 + $0xdc] sm:$0xff] }
 0x56e   : > { %11591 = vmatmul.mubr.f32.gmra.mrb[12].mxu1 %v6688_v47  ;;  %v9443_v47 = vld [vmem:[%s17380_s2 + $0x340] sm:$0xff] }
 0x56f   : > { %11593 = vmatprep.mubr.f32.mxu1 %v6689_v40  ;;  %12445 = vmatpush3.bf16.msra.mxu1 %v12442_v13  ;;  %v16435_v13 = vld [vmem:[#allocation3 + $0x2c] sm:$0xff]  ;;  %v12466_v40 = vpack.c.bf16 %v9444_v14, %v9443_v47  ;;  %v16546_v47 = vld [vmem:[#allocation3 + $0xf4] sm:$0xff]  ;;  %v16549_v14 = vld [vmem:[#allocation3 + $0xfc] sm:$0xff] }
 0x570   : > { %12447 = vmatprep.subr.bf16.mxu1 %v12446_v58 }
 0x572   : > { %11594 = vmatmul.mubr.f32.gmra.mrb[14].mxu1 %v6690_v18  ;;  %v9445_v18 = vld [vmem:[%s17380_s2 + $0x350] sm:$0xff] }
 0x573   : > { %11596 = vmatprep.mubr.f32.mxu1 %v6691_v41  ;;  %12449 = vmatpush3.bf16.msra.mxu1 %v12446_v58  ;;  %v16447_v58 = vld [vmem:[#allocation3 + $0x3c] sm:$0xff]  ;;  %v9446_v41 = vld [vmem:[%s17380_s2 + $0x358] sm:$0xff] }
 0x574   : > { %12451 = vmatprep.subr.bf16.mxu1 %v12450_v31 }
 0x576   : > { %11597 = vmatmul.mubr.f32.gmra.mrb[16].mxu1 %v6692_v56  ;;  %v16468_v56 = vld [vmem:[#allocation3 + $0x54] sm:$0xff] }
 0x577   : > { %11599 = vmatprep.mubr.f32.mxu1 %v6693_v9  ;;  %v12470_v9 = vpack.c.bf16 %v9446_v41, %v9445_v18  ;;  %v16555_v18 = vld [vmem:[#allocation3 + $0x10c] sm:$0xff]  ;;  %v16558_v41 = vld [vmem:[#allocation3 + $0x114] sm:$0xff] }
 0x57a   : > { %11600 = vmatmul.mubr.f32.gmra.mrb[18].mxu1 %v6694_v6  ;;  %v16471_v6 = vld [vmem:[#allocation3 + $0x5c] sm:$0xff] }
 0x57b   : > { %11602 = vmatprep.mubr.f32.mxu1 %v6695_v10  ;;  %v9447_v10 = vld [vmem:[%s17380_s2 + $0x360] sm:$0xff] }
 0x57e   : > { %11603 = vmatmul.mubr.f32.gmra.mrb[20].mxu1 %v6696_v11  ;;  %v9448_v11 = vld [vmem:[%s17380_s2 + $0x368] sm:$0xff] }
 0x57f   : > { %11605 = vmatprep.mubr.f32.mxu1 %v6697_v22  ;;  %v16480_v22 = vld [vmem:[#allocation3 + $0x64] sm:$0xff] }
 0x582   : > { %11606 = vmatmul.mubr.f32.gmra.mrb[22].mxu1 %v6698_v55  ;;  %v12474_v55 = vpack.c.bf16 %v9448_v11, %v9447_v10  ;;  %v16564_v10 = vld [vmem:[#allocation3 + $0x124] sm:$0xff]  ;;  %v16567_v11 = vld [vmem:[#allocation3 + $0x12c] sm:$0xff] }
 0x583   : > { %11608 = vmatprep.mubr.f32.mxu1 %v6699_v33  ;;  %v16483_v33 = vld [vmem:[#allocation3 + $0x6c] sm:$0xff] }
 0x586   : > { %11609 = vmatmul.mubr.f32.gmra.mrb[24].mxu1 %v6700_v57  ;;  %v9449_v57 = vld [vmem:[%s17380_s2 + $0x370] sm:$0xff] }
 0x587   : > { %11611 = vmatprep.mubr.f32.mxu1 %v6701_v8  ;;  %v9450_v8 = vld [vmem:[%s17380_s2 + $0x378] sm:$0xff] }
 0x58a   : > { %11612 = vmatmul.mubr.f32.gmra.mrb[26].mxu1 %v6702_v52  ;;  %v16492_v52 = vld [vmem:[#allocation3 + $0x74] sm:$0xff] }
 0x58b   : > { %11614 = vmatprep.mubr.f32.mxu1 %v6703_v49  ;;  %v12478_v49 = vpack.c.bf16 %v9450_v8, %v9449_v57  ;;  %v9454_v57 = vld [vmem:[%s17380_s2 + $0x398] sm:$0xff] }
 0x58e   : > { %11615 = vmatmul.mubr.f32.gmra.mrb[28].mxu1 %v6704_v2  ;;  %v16495_v2 = vld [vmem:[#allocation3 + $0x7c] sm:$0xff] }
 0x58f   : > { %11617 = vmatprep.mubr.f32.mxu1 %v6705_v63  ;;  %v9451_v63 = vld [vmem:[%s17380_s2 + $0x380] sm:$0xff] }
 0x592   : > { %11618 = vmatmul.mubr.f32.gmra.mrb[30].mxu1 %v6706_v26  ;;  %v9452_v26 = vld [vmem:[%s17380_s2 + $0x388] sm:$0xff] }
 0x593   : > { %11620 = vmatprep.mubr.f32.mxu1 %v6707_v46  ;;  %v16504_v46 = vld [vmem:[#allocation3 + $0x84] sm:$0xff] }
 0x596   : > { %11621 = vmatmul.mubr.f32.gmra.mrb[32].mxu1 %v6708_v38  ;;  %v12482_v38 = vpack.c.bf16 %v9452_v26, %v9451_v63  ;;  %v9456_v63 = vld [vmem:[%s17380_s2 + $0x3a8] sm:$0xff] }
 0x597   : > { %11623 = vmatprep.mubr.f32.mxu1 %v6709_v16  ;;  %v16507_v16 = vld [vmem:[#allocation3 + $0x8c] sm:$0xff] }
 0x59a   : > { %11624 = vmatmul.mubr.f32.gmra.mrb[34].mxu1 %v6710_v62  ;;  %v16510_v62 = vld [vmem:[#allocation3 + $0x94] sm:$0xff] }
 0x59b   : > { %11658 = vmatprep.mubr.f32.mxu1 %v7081_v30  ;;  %v16519_v30 = vld [vmem:[#allocation3 + $0xac] sm:$0xff] }
 0x59e   : > { %11659 = vmatmul.mubr.f32.vlgmr.msra.gmra.mrb[0].mxu1 %v7082_v34  ;;  %v16525_v34 = vld [vmem:[#allocation3 + $0xbc] sm:$0xff] }
 0x59f   : > { %11661 = vmatprep.mubr.f32.mxu1 %v16432_v17  ;;  %12453 = vmatpush3.bf16.msra.mxu1 %v12450_v31  ;;  %v16459_v31 = vld [vmem:[#allocation3 + $0x4c] sm:$0xff] }
 0x5a0   : > { %12455 = vmatprep.subr.bf16.mxu1 %v12454_v32 }
 0x5a2   : > { %11662 = vmatmul.mubr.f32.gmra.mrb[2].mxu1 %v16435_v13 }
 0x5a3   : > { %11664 = vmatprep.mubr.f32.mxu1 %v16444_v24  ;;  %12457 = vmatpush3.bf16.msra.mxu1 %v12454_v32  ;;  %v16522_v32 = vld [vmem:[#allocation3 + $0xb4] sm:$0xff] }
 0x5a4   : > { %12459 = vmatprep.subr.bf16.mxu1 %v12458_v0 }
 0x5a6   : > { %11665 = vmatmul.mubr.f32.gmra.mrb[4].mxu1 %v16447_v58 }
 0x5a7   : > { %11667 = vmatprep.mubr.f32.mxu1 %v16456_v12  ;;  %12461 = vmatpush3.bf16.msra.mxu1 %v12458_v0  ;;  %v16534_v0 = vld [vmem:[#allocation3 + $0xd4] sm:$0xff] }
 0x5a8   : > { %12463 = vmatprep.subr.bf16.mxu1 %v12462_v37 }
 0x5aa   : > { %11668 = vmatmul.mubr.f32.gmra.mrb[6].mxu1 %v16459_v31 }
 0x5ab   : > { %11670 = vmatprep.mubr.f32.mxu1 %v16468_v56  ;;  %12465 = vmatpush3.bf16.msra.mxu1 %v12462_v37  ;;  %v16543_v37 = vld [vmem:[#allocation3 + $0xec] sm:$0xff] }
 0x5ac   : > { %12467 = vmatprep.subr.bf16.mxu1 %v12466_v40 }
 0x5ae   : > { %11671 = vmatmul.mubr.f32.gmra.mrb[8].mxu1 %v16471_v6 }
 0x5af   : > { %11673 = vmatprep.mubr.f32.mxu1 %v16480_v22  ;;  %12469 = vmatpush3.bf16.msra.mxu1 %v12466_v40  ;;  %v16552_v40 = vld [vmem:[#allocation3 + $0x104] sm:$0xff] }
 0x5b0   : > { %12471 = vmatprep.subr.bf16.mxu1 %v12470_v9 }
 0x5b2   : > { %11674 = vmatmul.mubr.f32.gmra.mrb[10].mxu1 %v16483_v33 }
 0x5b3   : > { %11676 = vmatprep.mubr.f32.mxu1 %v16492_v52  ;;  %12473 = vmatpush3.bf16.msra.mxu1 %v12470_v9  ;;  %v16561_v9 = vld [vmem:[#allocation3 + $0x11c] sm:$0xff] }
 0x5b4   : > { %12475 = vmatprep.subr.bf16.mxu1 %v12474_v55 }
 0x5b6   : > { %11677 = vmatmul.mubr.f32.gmra.mrb[12].mxu1 %v16495_v2 }
 0x5b7   : > { %11679 = vmatprep.mubr.f32.mxu1 %v16504_v46  ;;  %12477 = vmatpush3.bf16.msra.mxu1 %v12474_v55  ;;  %v9453_v55 = vld [vmem:[%s17380_s2 + $0x390] sm:$0xff] }
 0x5b8   : > { %12479 = vmatprep.subr.bf16.mxu1 %v12478_v49  ;;  %v12486_v8 = vpack.c.bf16 %v9454_v57, %v9453_v55  ;;  %v9458_v55 = vld [vmem:[%s17380_s2 + $0x3b8] sm:$0xff] }
 0x5b9   : > { %v9462_v57 = vld [vmem:[%s17380_s2 + $0x3d8] sm:$0xff] }
 0x5ba   : > { %11680 = vmatmul.mubr.f32.gmra.mrb[14].mxu1 %v16507_v16 }
 0x5bb   : > { %11682 = vmatprep.mubr.f32.mxu1 %v16510_v62  ;;  %12481 = vmatpush3.bf16.msra.mxu1 %v12478_v49  ;;  %v9455_v49 = vld [vmem:[%s17380_s2 + $0x3a0] sm:$0xff] }
 0x5bc   : > { %12483 = vmatprep.subr.bf16.mxu1 %v12482_v38  ;;  %v12490_v26 = vpack.c.bf16 %v9456_v63, %v9455_v49  ;;  %v9466_v49 = vld [vmem:[%s17380_s2 + $0x3f8] sm:$0xff]  ;;  %v9468_v63 = vld [vmem:[%s17380_s2 + $0x408] sm:$0xff] }
 0x5be   : > { %11683 = vmatmul.mubr.f32.gmra.mrb[16].mxu1 %v16513_v3 }
 0x5bf   : > { %11685 = vmatprep.mubr.f32.mxu1 %v16516_v61 }
 0x5c2   : > { %11686 = vmatmul.mubr.f32.gmra.mrb[18].mxu1 %v16519_v30 }
 0x5c3   : > { %11688 = vmatprep.mubr.f32.mxu1 %v16522_v32 }
 0x5c6   : > { %11689 = vmatmul.mubr.f32.gmra.mrb[20].mxu1 %v16525_v34 }
 0x5c7   : > { %11691 = vmatprep.mubr.f32.mxu1 %v16528_v27 }
 0x5ca   : > { %11692 = vmatmul.mubr.f32.gmra.mrb[22].mxu1 %v16531_v53 }
 0x5cb   : > { %11694 = vmatprep.mubr.f32.mxu1 %v16534_v0 }
 0x5ce   : > { %11695 = vmatmul.mubr.f32.gmra.mrb[24].mxu1 %v16537_v54 }
 0x5cf   : > { %11697 = vmatprep.mubr.f32.mxu1 %v16540_v5 }
 0x5d2   : > { %11698 = vmatmul.mubr.f32.gmra.mrb[26].mxu1 %v16543_v37 }
 0x5d3   : > { %11700 = vmatprep.mubr.f32.mxu1 %v16546_v47 }
 0x5d6   : > { %11701 = vmatmul.mubr.f32.gmra.mrb[28].mxu1 %v16549_v14 }
 0x5d7   : > { %11703 = vmatprep.mubr.f32.mxu1 %v16552_v40 }
 0x5da   : > { %11704 = vmatmul.mubr.f32.gmra.mrb[30].mxu1 %v16555_v18 }
 0x5db   : > { %11706 = vmatprep.mubr.f32.mxu1 %v16558_v41 }
 0x5de   : > { %11707 = vmatmul.mubr.f32.gmra.mrb[32].mxu1 %v16561_v9 }
 0x5df   : > { %11709 = vmatprep.mubr.f32.mxu1 %v16564_v10 }
 0x5e2   : > { %11710 = vmatmul.mubr.f32.gmra.mrb[34].mxu1 %v16567_v11 }
 0x5e3   : > { %11744 = vmatprep.mubr.f32.mxu1 %v16432_v17  ;;  %v9457_v17 = vld [vmem:[%s17380_s2 + $0x3b0] sm:$0xff] }
 0x5e6   : > { %11745 = vmatmul.mubr.f32.vlgmr.msra.gmra.mrb[0].mxu1 %v16435_v13  ;;  %v12494_v13 = vpack.c.bf16 %v9458_v55, %v9457_v17  ;;  %v9478_v17 = vld [vmem:[%s17380_s2 + $0x458] sm:$0xff]  ;;  %v7901_v55 = vld [vmem:[#allocation3 + $0x65] sm:$0xff] }
 0x5e7   : > { %11747 = vmatprep.mubr.f32.mxu1 %v16444_v24  ;;  %12485 = vmatpush3.bf16.msra.mxu1 %v12482_v38  ;;  %v9459_v24 = vld [vmem:[%s17380_s2 + $0x3c0] sm:$0xff]  ;;  %v9460_v38 = vld [vmem:[%s17380_s2 + $0x3c8] sm:$0xff] }
 0x5e8   : > { %12487 = vmatprep.subr.bf16.mxu1 %v12486_v8 }
 0x5ea   : > { %11748 = vmatmul.mubr.f32.gmra.mrb[2].mxu1 %v16447_v58  ;;  %v12498_v58 = vpack.c.bf16 %v9460_v38, %v9459_v24  ;;  %v7902_v24 = vld [vmem:[#allocation3 + $0x6d] sm:$0xff]  ;;  %v9479_v38 = vld [vmem:[%s17380_s2 + $0x460] sm:$0xff] }
 0x5eb   : > { %11750 = vmatprep.mubr.f32.mxu1 %v16456_v12  ;;  %12489 = vmatpush3.bf16.msra.mxu1 %v12486_v8  ;;  %v9461_v12 = vld [vmem:[%s17380_s2 + $0x3d0] sm:$0xff]  ;;  %v9464_v8 = vld [vmem:[%s17380_s2 + $0x3e8] sm:$0xff] }
 0x5ec   : > { %12491 = vmatprep.subr.bf16.mxu1 %v12490_v26 }
 0x5ee   : > { %11751 = vmatmul.mubr.f32.gmra.mrb[4].mxu1 %v16459_v31  ;;  %v12502_v31 = vpack.c.bf16 %v9462_v57, %v9461_v12  ;;  %v7903_v12 = vld [vmem:[#allocation3 + $0x75] sm:$0xff] }
 0x5ef   : > { %11753 = vmatprep.mubr.f32.mxu1 %v16468_v56  ;;  %12493 = vmatpush3.bf16.msra.mxu1 %v12490_v26  ;;  %v9463_v56 = vld [vmem:[%s17380_s2 + $0x3e0] sm:$0xff]  ;;  %v9477_v26 = vld [vmem:[%s17380_s2 + $0x450] sm:$0xff] }
 0x5f0   : > { %12495 = vmatprep.subr.bf16.mxu1 %v12494_v13 }
 0x5f2   : > { %11754 = vmatmul.mubr.f32.gmra.mrb[6].mxu1 %v16471_v6  ;;  %v12506_v6 = vpack.c.bf16 %v9464_v8, %v9463_v56  ;;  %v9481_v56 = vld [vmem:[%s17380_s2 + $0x470] sm:$0xff]  ;;  %v9482_v8 = vld [vmem:[%s17380_s2 + $0x478] sm:$0xff] }
 0x5f3   : > { %11756 = vmatprep.mubr.f32.mxu1 %v16480_v22  ;;  %12497 = vmatpush3.bf16.msra.mxu1 %v12494_v13  ;;  %v9465_v22 = vld [vmem:[%s17380_s2 + $0x3f0] sm:$0xff]  ;;  %v12534_v13 = vpack.c.bf16 %v9478_v17, %v9477_v26 }
 0x5f4   : > { %12499 = vmatprep.subr.bf16.mxu1 %v12498_v58  ;;  %v8303_v26 = vld [vmem:[#allocation3 + $0x46] sm:$0xff]  ;;  %v8304_v17 = vld [vmem:[#allocation3 + $0x4e] sm:$0xff] }
 0x5f6   : > { %11757 = vmatmul.mubr.f32.gmra.mrb[8].mxu1 %v16483_v33  ;;  %v12510_v33 = vpack.c.bf16 %v9466_v49, %v9465_v22  ;;  %v12542_v22 = vpack.c.bf16 %v9482_v8, %v9481_v56  ;;  %v7906_v49 = vld [vmem:[#allocation3 + $0x8d] sm:$0xff]  ;;  %v8313_v56 = vld [vmem:[#allocation3 + $0x96] sm:$0xff]  ;;  %v8314_v8 = vld [vmem:[#allocation3 + $0x9e] sm:$0xff] }
 0x5f7   : > { %11759 = vmatprep.mubr.f32.mxu1 %v16492_v52  ;;  %12501 = vmatpush3.bf16.msra.mxu1 %v12498_v58  ;;  %v9467_v52 = vld [vmem:[%s17380_s2 + $0x400] sm:$0xff]  ;;  %v9480_v58 = vld [vmem:[%s17380_s2 + $0x468] sm:$0xff] }
 0x5f8   : > { %12503 = vmatprep.subr.bf16.mxu1 %v12502_v31  ;;  %v12538_v57 = vpack.c.bf16 %v9480_v58, %v9479_v38  ;;  %v8308_v38 = vld [vmem:[#allocation3 + $0x6e] sm:$0xff]  ;;  %v8309_v58 = vld [vmem:[#allocation3 + $0x76] sm:$0xff] }
 0x5fa   : > { %11760 = vmatmul.mubr.f32.gmra.mrb[10].mxu1 %v16495_v2  ;;  %v12514_v2 = vpack.c.bf16 %v9468_v63, %v9467_v52  ;;  %v7908_v52 = vld [vmem:[#allocation3 + $0x9d] sm:$0xff]  ;;  %v7909_v63 = vld [vmem:[#allocation3 + $0xa5] sm:$0xff] }
 0x5fb   : > { %11762 = vmatprep.mubr.f32.mxu1 %v16504_v46  ;;  %12505 = vmatpush3.bf16.msra.mxu1 %v12502_v31  ;;  %v7521_v46 = vld [vmem:[#allocation3 + $0x134] sm:$0xff]  ;;  %v7904_v31 = vld [vmem:[#allocation3 + $0x7d] sm:$0xff] }
 0x5fc   : > { %12507 = vmatprep.subr.bf16.mxu1 %v12506_v6 }
 0x5fe   : > { %11763 = vmatmul.mubr.f32.gmra.mrb[12].mxu1 %v16507_v16  ;;  %v7522_v16 = vld [vmem:[#allocation3 + $0x13c] sm:$0xff] }
 0x5ff   : > { %11765 = vmatprep.mubr.f32.mxu1 %v16510_v62  ;;  %12509 = vmatpush3.bf16.msra.mxu1 %v12506_v6  ;;  %v9469_v62 = vld [vmem:[%s17380_s2 + $0x410] sm:$0xff] }
 0x600   : > { %12511 = vmatprep.subr.bf16.mxu1 %v12510_v33  ;;  %v7905_v6 = vld [vmem:[#allocation3 + $0x85] sm:$0xff] }
 0x602   : > { %11766 = vmatmul.mubr.f32.gmra.mrb[14].mxu1 %v16513_v3  ;;  %v9470_v3 = vld [vmem:[%s17380_s2 + $0x418] sm:$0xff] }
 0x603   : > { %11768 = vmatprep.mubr.f32.mxu1 %v16516_v61  ;;  %12513 = vmatpush3.bf16.msra.mxu1 %v12510_v33  ;;  %v7893_v61 = vld [vmem:[#allocation3 + $0x25] sm:$0xff]  ;;  %v7907_v33 = vld [vmem:[#allocation3 + $0x95] sm:$0xff] }
 0x604   : > { %12515 = vmatprep.subr.bf16.mxu1 %v12514_v2 }
 0x606   : > { %11769 = vmatmul.mubr.f32.gmra.mrb[16].mxu1 %v16519_v30  ;;  %v12518_v30 = vpack.c.bf16 %v9470_v3, %v9469_v62  ;;  %v7913_v62 = vld [vmem:[#allocation3 + $0xc5] sm:$0xff]  ;;  %v7914_v3 = vld [vmem:[#allocation3 + $0xcd] sm:$0xff] }
 0x607   : > { %11771 = vmatprep.mubr.f32.mxu1 %v16522_v32  ;;  %v7894_v32 = vld [vmem:[#allocation3 + $0x2d] sm:$0xff] }
 0x60a   : > { %11772 = vmatmul.mubr.f32.gmra.mrb[18].mxu1 %v16525_v34  ;;  %v9471_v34 = vld [vmem:[%s17380_s2 + $0x420] sm:$0xff] }
 0x60b   : > { %11774 = vmatprep.mubr.f32.mxu1 %v16528_v27  ;;  %v9472_v27 = vld [vmem:[%s17380_s2 + $0x428] sm:$0xff] }
 0x60e   : > { %11775 = vmatmul.mubr.f32.gmra.mrb[20].mxu1 %v16531_v53  ;;  %v7895_v53 = vld [vmem:[#allocation3 + $0x35] sm:$0xff] }
 0x60f   : > { %11777 = vmatprep.mubr.f32.mxu1 %v16534_v0  ;;  %v12522_v0 = vpack.c.bf16 %v9472_v27, %v9471_v34  ;;  %v7918_v34 = vld [vmem:[#allocation3 + $0xed] sm:$0xff]  ;;  %v7919_v27 = vld [vmem:[#allocation3 + $0xf5] sm:$0xff] }
 0x612   : > { %11778 = vmatmul.mubr.f32.gmra.mrb[22].mxu1 %v16537_v54  ;;  %v7896_v54 = vld [vmem:[#allocation3 + $0x3d] sm:$0xff] }
 0x613   : > { %11780 = vmatprep.mubr.f32.mxu1 %v16540_v5  ;;  %v9473_v5 = vld [vmem:[%s17380_s2 + $0x430] sm:$0xff] }
 0x616   : > { %11781 = vmatmul.mubr.f32.gmra.mrb[24].mxu1 %v16543_v37  ;;  %v9474_v37 = vld [vmem:[%s17380_s2 + $0x438] sm:$0xff] }
 0x617   : > { %11783 = vmatprep.mubr.f32.mxu1 %v16546_v47  ;;  %v7897_v47 = vld [vmem:[#allocation3 + $0x45] sm:$0xff] }
 0x61a   : > { %11784 = vmatmul.mubr.f32.gmra.mrb[26].mxu1 %v16549_v14  ;;  %v12526_v14 = vpack.c.bf16 %v9474_v37, %v9473_v5  ;;  %v7923_v5 = vld [vmem:[#allocation3 + $0x115] sm:$0xff]  ;;  %v7924_v37 = vld [vmem:[#allocation3 + $0x11d] sm:$0xff] }
 0x61b   : > { %11786 = vmatprep.mubr.f32.mxu1 %v16552_v40  ;;  %v7898_v40 = vld [vmem:[#allocation3 + $0x4d] sm:$0xff] }
 0x61e   : > { %11787 = vmatmul.mubr.f32.gmra.mrb[28].mxu1 %v16555_v18  ;;  %v9475_v18 = vld [vmem:[%s17380_s2 + $0x440] sm:$0xff] }
 0x61f   : > { %11789 = vmatprep.mubr.f32.mxu1 %v16558_v41  ;;  %v9476_v41 = vld [vmem:[%s17380_s2 + $0x448] sm:$0xff] }
 0x622   : > { %11790 = vmatmul.mubr.f32.gmra.mrb[30].mxu1 %v16561_v9  ;;  %v7899_v9 = vld [vmem:[#allocation3 + $0x55] sm:$0xff] }
 0x623   : > { %11792 = vmatprep.mubr.f32.mxu1 %v16564_v10  ;;  %v12530_v10 = vpack.c.bf16 %v9476_v41, %v9475_v18  ;;  %v7928_v18 = vld [vmem:[#allocation3 + $0x13d] sm:$0xff]  ;;  %v8299_v41 = vld [vmem:[#allocation3 + $0x26] sm:$0xff] }
 0x626   : > { %11793 = vmatmul.mubr.f32.gmra.mrb[32].mxu1 %v16567_v11  ;;  %v7900_v11 = vld [vmem:[#allocation3 + $0x5d] sm:$0xff] }
 0x627   : > { %11795 = vmatprep.mubr.f32.mxu1 %v7521_v46  ;;  %v7911_v46 = vld [vmem:[#allocation3 + $0xb5] sm:$0xff] }
 0x62a   : > { %11796 = vmatmul.mubr.f32.gmra.mrb[34].mxu1 %v7522_v16  ;;  %v7912_v16 = vld [vmem:[#allocation3 + $0xbd] sm:$0xff] }
 0x62b   : > { %11830 = vmatprep.mubr.f32.mxu1 %v7893_v61  ;;  %v7915_v61 = vld [vmem:[#allocation3 + $0xd5] sm:$0xff] }
 0x62e   : > { %11831 = vmatmul.mubr.f32.vlgmr.msra.gmra.mrb[0].mxu1 %v7894_v32  ;;  %v7917_v32 = vld [vmem:[#allocation3 + $0xe5] sm:$0xff] }
 0x62f   : > { %11833 = vmatprep.mubr.f32.mxu1 %v7895_v53  ;;  %12517 = vmatpush3.bf16.msra.mxu1 %v12514_v2  ;;  %v7910_v2 = vld [vmem:[#allocation3 + $0xad] sm:$0xff]  ;;  %v7920_v53 = vld [vmem:[#allocation3 + $0xfd] sm:$0xff] }
 0x630   : > { %12519 = vmatprep.subr.bf16.mxu1 %v12518_v30 }
 0x632   : > { %11834 = vmatmul.mubr.f32.gmra.mrb[2].mxu1 %v7896_v54  ;;  %v7922_v54 = vld [vmem:[#allocation3 + $0x10d] sm:$0xff] }
 0x633   : > { %11836 = vmatprep.mubr.f32.mxu1 %v7897_v47  ;;  %12521 = vmatpush3.bf16.msra.mxu1 %v12518_v30  ;;  %v7916_v30 = vld [vmem:[#allocation3 + $0xdd] sm:$0xff]  ;;  %v7925_v47 = vld [vmem:[#allocation3 + $0x125] sm:$0xff] }
 0x634   : > { %12523 = vmatprep.subr.bf16.mxu1 %v12522_v0 }
 0x636   : > { %11837 = vmatmul.mubr.f32.gmra.mrb[4].mxu1 %v7898_v40  ;;  %v7926_v40 = vld [vmem:[#allocation3 + $0x12d] sm:$0xff] }
 0x637   : > { %11839 = vmatprep.mubr.f32.mxu1 %v7899_v9  ;;  %12525 = vmatpush3.bf16.msra.mxu1 %v12522_v0  ;;  %v7921_v0 = vld [vmem:[#allocation3 + $0x105] sm:$0xff]  ;;  %v8300_v9 = vld [vmem:[#allocation3 + $0x2e] sm:$0xff] }
 0x638   : > { %12527 = vmatprep.subr.bf16.mxu1 %v12526_v14 }
 0x63a   : > { %11840 = vmatmul.mubr.f32.gmra.mrb[6].mxu1 %v7900_v11  ;;  %v8302_v11 = vld [vmem:[#allocation3 + $0x3e] sm:$0xff] }
 0x63b   : > { %11842 = vmatprep.mubr.f32.mxu1 %v7901_v55  ;;  %12529 = vmatpush3.bf16.msra.mxu1 %v12526_v14  ;;  %v7927_v14 = vld [vmem:[#allocation3 + $0x135] sm:$0xff] }
 0x63c   : > { %12531 = vmatprep.subr.bf16.mxu1 %v12530_v10  ;;  %v8305_v55 = vld [vmem:[#allocation3 + $0x56] sm:$0xff] }
 0x63e   : > { %11843 = vmatmul.mubr.f32.gmra.mrb[8].mxu1 %v7902_v24  ;;  %v8307_v24 = vld [vmem:[#allocation3 + $0x66] sm:$0xff] }
 0x63f   : > { %11845 = vmatprep.mubr.f32.mxu1 %v7903_v12  ;;  %12533 = vmatpush3.bf16.msra.mxu1 %v12530_v10  ;;  %v8301_v10 = vld [vmem:[#allocation3 + $0x36] sm:$0xff]  ;;  %v8310_v12 = vld [vmem:[#allocation3 + $0x7e] sm:$0xff] }
 0x640   : > { %12535 = vmatprep.subr.bf16.mxu1 %v12534_v13 }
 0x642   : > { %11846 = vmatmul.mubr.f32.gmra.mrb[10].mxu1 %v7904_v31  ;;  %v8312_v31 = vld [vmem:[#allocation3 + $0x8e] sm:$0xff] }
 0x643   : > { %11848 = vmatprep.mubr.f32.mxu1 %v7905_v6  ;;  %12537 = vmatpush3.bf16.msra.mxu1 %v12534_v13  ;;  %v8306_v13 = vld [vmem:[#allocation3 + $0x5e] sm:$0xff]  ;;  %v8315_v6 = vld [vmem:[#allocation3 + $0xa6] sm:$0xff] }
 0x644   : > { %12539 = vmatprep.subr.bf16.mxu1 %v12538_v57 }
 0x646   : > { %11849 = vmatmul.mubr.f32.gmra.mrb[12].mxu1 %v7906_v49  ;;  %v8317_v49 = vld [vmem:[#allocation3 + $0xb6] sm:$0xff] }
 0x647   : > { %11851 = vmatprep.mubr.f32.mxu1 %v7907_v33  ;;  %12541 = vmatpush3.bf16.msra.mxu1 %v12538_v57  ;;  %v8311_v57 = vld [vmem:[#allocation3 + $0x86] sm:$0xff]  ;;  %v8318_v33 = vld [vmem:[#allocation3 + $0xbe] sm:$0xff] }
 0x648   : > { %12543 = vmatprep.subr.bf16.mxu1 %v12542_v22 }
 0x64a   : > { %11852 = vmatmul.mubr.f32.gmra.mrb[14].mxu1 %v7908_v52  ;;  %v8319_v52 = vld [vmem:[#allocation3 + $0xc6] sm:$0xff] }
 0x64b   : > { %11854 = vmatprep.mubr.f32.mxu1 %v7909_v63  ;;  %12545 = vmatpush3.bf16.msra.mxu1 %v12542_v22  ;;  %v8316_v22 = vld [vmem:[#allocation3 + $0xae] sm:$0xff] }
 0x64c   : > { %v8320_v63 = vld [vmem:[#allocation3 + $0xce] sm:$0xff] }
 0x64e   : > { %11855 = vmatmul.mubr.f32.gmra.mrb[16].mxu1 %v7910_v2  ;;  %v8321_v2 = vld [vmem:[#allocation3 + $0xd6] sm:$0xff] }
 0x64f   : > { %11857 = vmatprep.mubr.f32.mxu1 %v7911_v46  ;;  %v8322_v46 = vld [vmem:[#allocation3 + $0xde] sm:$0xff] }
 0x652   : > { %11858 = vmatmul.mubr.f32.gmra.mrb[18].mxu1 %v7912_v16  ;;  %v8323_v16 = vld [vmem:[#allocation3 + $0xe6] sm:$0xff] }
 0x653   : > { %11860 = vmatprep.mubr.f32.mxu1 %v7913_v62  ;;  %v8324_v62 = vld [vmem:[#allocation3 + $0xee] sm:$0xff] }
 0x656   : > { %11861 = vmatmul.mubr.f32.gmra.mrb[20].mxu1 %v7914_v3  ;;  %v8325_v3 = vld [vmem:[#allocation3 + $0xf6] sm:$0xff] }
 0x657   : > { %11863 = vmatprep.mubr.f32.mxu1 %v7915_v61  ;;  %v8326_v61 = vld [vmem:[#allocation3 + $0xfe] sm:$0xff] }
 0x65a   : > { %11864 = vmatmul.mubr.f32.gmra.mrb[22].mxu1 %v7916_v30  ;;  %v8327_v30 = vld [vmem:[#allocation3 + $0x106] sm:$0xff] }
 0x65b   : > { %11866 = vmatprep.mubr.f32.mxu1 %v7917_v32  ;;  %v8328_v32 = vld [vmem:[#allocation3 + $0x10e] sm:$0xff] }
 0x65e   : > { %11867 = vmatmul.mubr.f32.gmra.mrb[24].mxu1 %v7918_v34  ;;  %v8329_v34 = vld [vmem:[#allocation3 + $0x116] sm:$0xff] }
 0x65f   : > { %11869 = vmatprep.mubr.f32.mxu1 %v7919_v27  ;;  %v8330_v27 = vld [vmem:[#allocation3 + $0x11e] sm:$0xff] }
 0x662   : > { %11870 = vmatmul.mubr.f32.gmra.mrb[26].mxu1 %v7920_v53  ;;  %v8331_v53 = vld [vmem:[#allocation3 + $0x126] sm:$0xff] }
 0x663   : > { %11872 = vmatprep.mubr.f32.mxu1 %v7921_v0  ;;  %v8333_v0 = vld [vmem:[#allocation3 + $0x136] sm:$0xff] }
 0x666   : > { %11873 = vmatmul.mubr.f32.gmra.mrb[28].mxu1 %v7922_v54  ;;  %v8332_v54 = vld [vmem:[#allocation3 + $0x12e] sm:$0xff] }
 0x667   : > { %11875 = vmatprep.mubr.f32.mxu1 %v7923_v5  ;;  %v8334_v5 = vld [vmem:[#allocation3 + $0x13e] sm:$0xff] }
 0x66a   : > { %11876 = vmatmul.mubr.f32.gmra.mrb[30].mxu1 %v7924_v37 }
 0x66b   : > { %11878 = vmatprep.mubr.f32.mxu1 %v7925_v47 }
 0x66e   : > { %11879 = vmatmul.mubr.f32.gmra.mrb[32].mxu1 %v7926_v40 }
 0x66f   : > { %11881 = vmatprep.mubr.f32.mxu1 %v7927_v14 }
 0x672   : > { %11882 = vmatmul.mubr.f32.gmra.mrb[34].mxu1 %v7928_v18 }
 0x673   : > { %11916 = vmatprep.mubr.f32.mxu1 %v8299_v41 }
 0x676   : > { %11917 = vmatmul.mubr.f32.vlgmr.msra.gmra.mrb[0].mxu1 %v8300_v9 }
 0x677   : > { %11919 = vmatprep.mubr.f32.mxu1 %v8301_v10 }
 0x67a   : > { %11920 = vmatmul.mubr.f32.gmra.mrb[2].mxu1 %v8302_v11 }
 0x67b   : > { %11922 = vmatprep.mubr.f32.mxu1 %v8303_v26 }
 0x67e   : > { %11923 = vmatmul.mubr.f32.gmra.mrb[4].mxu1 %v8304_v17 }
 0x67f   : > { %11925 = vmatprep.mubr.f32.mxu1 %v8305_v55 }
 0x682   : > { %11926 = vmatmul.mubr.f32.gmra.mrb[6].mxu1 %v8306_v13 }
 0x683   : > { %11928 = vmatprep.mubr.f32.mxu1 %v8307_v24 }
 0x686   : > { %11929 = vmatmul.mubr.f32.gmra.mrb[8].mxu1 %v8308_v38 }
 0x687   : > { %11931 = vmatprep.mubr.f32.mxu1 %v8309_v58 }
 0x68a   : > { %11932 = vmatmul.mubr.f32.gmra.mrb[10].mxu1 %v8310_v12 }
 0x68b   : > { %11934 = vmatprep.mubr.f32.mxu1 %v8311_v57 }
 0x68e   : > { %11935 = vmatmul.mubr.f32.gmra.mrb[12].mxu1 %v8312_v31 }
 0x68f   : > { %11937 = vmatprep.mubr.f32.mxu1 %v8313_v56 }
 0x692   : > { %11938 = vmatmul.mubr.f32.gmra.mrb[14].mxu1 %v8314_v8 }
 0x693   : > { %11940 = vmatprep.mubr.f32.mxu1 %v8315_v6 }
 0x696   : > { %11941 = vmatmul.mubr.f32.gmra.mrb[16].mxu1 %v8316_v22 }
 0x697   : > { %11943 = vmatprep.mubr.f32.mxu1 %v8317_v49 }
 0x69a   : > { %11944 = vmatmul.mubr.f32.gmra.mrb[18].mxu1 %v8318_v33 }
 0x69b   : > { %11946 = vmatprep.mubr.f32.mxu1 %v8319_v52 }
 0x69e   : > { %11947 = vmatmul.mubr.f32.gmra.mrb[20].mxu1 %v8320_v63 }
 0x69f   : > { %11949 = vmatprep.mubr.f32.mxu1 %v8321_v2 }
 0x6a2   : > { %11950 = vmatmul.mubr.f32.gmra.mrb[22].mxu1 %v8322_v46 }
 0x6a3   : > { %11952 = vmatprep.mubr.f32.mxu1 %v8323_v16 }
 0x6a6   : > { %11953 = vmatmul.mubr.f32.gmra.mrb[24].mxu1 %v8324_v62 }
 0x6a7   : > { %11955 = vmatprep.mubr.f32.mxu1 %v8325_v3 }
 0x6aa   : > { %11956 = vmatmul.mubr.f32.gmra.mrb[26].mxu1 %v8326_v61 }
 0x6ab   : > { %11958 = vmatprep.mubr.f32.mxu1 %v8327_v30 }
 0x6ae   : > { %11959 = vmatmul.mubr.f32.gmra.mrb[28].mxu1 %v8328_v32 }
 0x6af   : > { %11961 = vmatprep.mubr.f32.mxu1 %v8329_v34 }
 0x6b2   : > { %11962 = vmatmul.mubr.f32.gmra.mrb[30].mxu1 %v8330_v27 }
 0x6b3   : > { %11964 = vmatprep.mubr.f32.mxu1 %v8331_v53 }
 0x6b6   : > { %11965 = vmatmul.mubr.f32.gmra.mrb[32].mxu1 %v8332_v54 }
 0x6b7   : > { %11967 = vmatprep.mubr.f32.mxu1 %v8333_v0 }
 0x6ba   : > { %11968 = vmatmul.mubr.f32.gmra.mrb[34].mxu1 %v8334_v5 }
 0x749   : > { %v16694_v37 = vpop.f32.mrb[0].mxu1 }
 0x74a   : > { %v8742_v47 = vsel %vm17768_vm9, %v16694_v37, 0.0  ;;  %v16699_v14 = vpop.f32.mrb[1].mxu1 }
 0x74b   : > { %v8741_v40 = vsel %vm17890_vm8, %v16699_v14, 0.0 }
 0x74c   : > { %v8777_v18 = vadd.f32 %v8742_v47, %v8741_v40 }
 0x74d   : > { %v16704_v41 = vpop.f32.mrb[2].mxu1 }
 0x74e   : > { %v16706_v9 = vpop.f32.mrb[3].mxu1  ;;  %v8744_v26 = vsel %vm17849_vm7, %v16704_v41, 0.0  ;;  %vm17893_vm7 = vnez %v17856_v19 }
 0x74f   : > { %v8743_v10 = vsel %vm17891_vm2, %v16706_v9, 0.0 }
 0x750   : > { %v8778_v11 = vadd.f32 %v8777_v18, %v8743_v10 }
 0x751   : > { %v16714_v17 = vpop.f32.mrb[4].mxu1 }
 0x752   : > { %v16716_v55 = vpop.f32.mrb[5].mxu1  ;;  %v8779_v13 = vadd.f32 %v8778_v11, %v8744_v26  ;;  %v8746_v12 = vsel %vm17853_vm3, %v16714_v17, 0.0  ;;  %vm17894_vm3 = vnez %v17858_v25 }
 0x753   : > { %v8745_v38 = vsel %vm17851_vm12, %v16716_v55, 0.0 }
 0x754   : > { %v8780_v58 = vadd.f32 %v8779_v13, %v8745_v38 }
 0x755   : > { %v16724_v57 = vpop.f32.mrb[6].mxu1 }
 0x756   : > { %v16726_v31 = vpop.f32.mrb[7].mxu1  ;;  %v8781_v56 = vadd.f32 %v8780_v58, %v8746_v12  ;;  %v8748_v22 = vsel %vm17893_vm7, %v16724_v57, 0.0  ;;  %vm17895_vm7 = vnez %v17860_v39 }
 0x757   : > { %v8747_v8 = vsel %vm17855_vm13, %v16726_v31, 0.0  ;;  %vm17896_vm13 = vnez %v17792_v20 }
 0x758   : > { %v8782_v6 = vadd.f32 %v8781_v56, %v8747_v8 }
 0x759   : > { %v16734_v49 = vpop.f32.mrb[8].mxu1 }
 0x75a   : > { %v16736_v33 = vpop.f32.mrb[9].mxu1  ;;  %v8783_v52 = vadd.f32 %v8782_v6, %v8748_v22  ;;  %v8750_v46 = vsel %vm17787_vm14, %v16734_v49, 0.0  ;;  %vm17897_vm14 = vnez %v17646_v15 }
 0x75b   : > { %v8749_v63 = vsel %vm17894_vm3, %v16736_v33, 0.0  ;;  %vm17898_vm3 = vnez %v17649_v1 }
 0x75c   : > { %v8784_v2 = vadd.f32 %v8783_v52, %v8749_v63 }
 0x75d   : > { %v16744_v16 = vpop.f32.mrb[10].mxu1 }
 0x75e   : > { %v16746_v62 = vpop.f32.mrb[11].mxu1  ;;  %v8785_v3 = vadd.f32 %v8784_v2, %v8750_v46  ;;  %v8752_v32 = vsel %vm17896_vm13, %v16744_v16, 0.0  ;;  %vm17899_vm13 = vnez %v17862_v23 }
 0x75f   : > { %v8751_v61 = vsel %vm17895_vm7, %v16746_v62, 0.0  ;;  %vm17900_vm7 = vnez %v17864_v28 }
 0x760   : > { %v8786_v30 = vadd.f32 %v8785_v3, %v8751_v61 }
 0x761   : > { %v16754_v34 = vpop.f32.mrb[12].mxu1 }
 0x762   : > { %v16756_v27 = vpop.f32.mrb[13].mxu1  ;;  %v8787_v53 = vadd.f32 %v8786_v30, %v8752_v32  ;;  %v8754_v5 = vsel %vm17898_vm3, %v16754_v34, 0.0  ;;  %vm17901_vm3 = vnez %v17866_v4 }
 0x763   : > { %v8753_v0 = vsel %vm17897_vm14, %v16756_v27, 0.0  ;;  %vm17902_vm14 = vnez %v17802_v29 }
 0x764   : > { %v8788_v54 = vadd.f32 %v8787_v53, %v8753_v0 }
 0x765   : > { %v16764_v47 = vpop.f32.mrb[14].mxu1 }
 0x766   : > { %v16766_v40 = vpop.f32.mrb[15].mxu1  ;;  %v8789_v18 = vadd.f32 %v8788_v54, %v8754_v5  ;;  %v8756_v26 = vsel %vm17900_vm7, %v16764_v47, 0.0  ;;  %vm17903_vm7 = vnez %v17805_v43 }
 0x767   : > { %v8755_v10 = vsel %vm17899_vm13, %v16766_v40, 0.0  ;;  %vm17904_vm13 = vnez %v17869_v21 }
 0x768   : > { %v8790_v11 = vadd.f32 %v8789_v18, %v8755_v10 }
 0x769   : > { %v16774_v13 = vpop.f32.mrb[16].mxu1 }
 0x76a   : > { %v16776_v38 = vpop.f32.mrb[17].mxu1  ;;  %v8791_v58 = vadd.f32 %v8790_v11, %v8756_v26  ;;  %v8758_v8 = vsel %vm17902_vm14, %v16774_v13, 0.0  ;;  %vm17905_vm14 = vnez %v17871_v59 }
 0x76b   : > { %v8757_v12 = vsel %vm17901_vm3, %v16776_v38, 0.0 }
 0x76c   : > { %v8792_v56 = vadd.f32 %v8791_v58, %v8757_v12 }
 0x76d   : > { %v16784_v6 = vpop.f32.mrb[18].mxu1 }
 0x76e   : > { %v16786_v22 = vpop.f32.mrb[19].mxu1  ;;  %v8793_v52 = vadd.f32 %v8792_v56, %v8758_v8  ;;  %v8760_v46 = vsel %vm17904_vm13, %v16784_v6, 0.0 }
 0x76f   : > { %v8759_v63 = vsel %vm17903_vm7, %v16786_v22, 0.0 }
 0x770   : > { %v8794_v2 = vadd.f32 %v8793_v52, %v8759_v63 }
 0x771   : > { %v16794_v3 = vpop.f32.mrb[20].mxu1 }
 0x772   : > { %v16796_v61 = vpop.f32.mrb[21].mxu1  ;;  %v8795_v30 = vadd.f32 %v8794_v2, %v8760_v46  ;;  %v8762_v0 = vsel %vm17874_vm15, %v16794_v3, 0.0  ;;  %v17907_v2 = vld [vmem:[#allocation30_spill] sm:$0xff] }
 0x773   : > { %v8761_v32 = vsel %vm17905_vm14, %v16796_v61, 0.0  ;;  %vm17908_vm15 = vnez %v17907_v2  ;;  %v17913_v2 = vld [vmem:[#allocation34_spill] sm:$0xff] }
 0x774   : > { %v8796_v53 = vadd.f32 %v8795_v30, %v8761_v32 }
 0x775   : > { %v16804_v54 = vpop.f32.mrb[22].mxu1 }
 0x776   : > { %v16806_v5 = vpop.f32.mrb[23].mxu1  ;;  %v8797_v18 = vadd.f32 %v8796_v53, %v8762_v0  ;;  %v8764_v26 = vsel %vm17877_vm6, %v16804_v54, 0.0  ;;  %v17909_v0 = vld [vmem:[#allocation32_spill] sm:$0xff] }
 0x777   : > { %v8763_v10 = vsel %vm17876_vm4, %v16806_v5, 0.0  ;;  %vm17910_vm6 = vnez %v17909_v0 }
 0x778   : > { %v8798_v11 = vadd.f32 %v8797_v18, %v8763_v10 }
 0x779   : > { %v16814_v58 = vpop.f32.mrb[24].mxu1 }
 0x77a   : > { %v16816_v12 = vpop.f32.mrb[25].mxu1  ;;  %v8799_v56 = vadd.f32 %v8798_v11, %v8764_v26  ;;  %v8766_v46 = vsel %vm17908_vm15, %v16814_v58, 0.0  ;;  %v17911_v11 = vld [vmem:[#allocation33_spill] sm:$0xff]  ;;  %vm17914_vm15 = vnez %v17913_v2 }
 0x77b   : > { %v8765_v52 = vsel %vm17878_vm1, %v16816_v12, 0.0  ;;  %vm17912_vm4 = vnez %v17911_v11 }
 0x77c   : > { %v8800_v63 = vadd.f32 %v8799_v56, %v8765_v52 }
 0x77d   : > { %v16824_v30 = vpop.f32.mrb[26].mxu1 }
 0x77e   : > { %v16826_v32 = vpop.f32.mrb[27].mxu1  ;;  %v8801_v53 = vadd.f32 %v8800_v63, %v8766_v46  ;;  %v8768_v26 = vsel %vm17912_vm4, %v16824_v30, 0.0 }
 0x77f   : > { %v8767_v18 = vsel %vm17910_vm6, %v16826_v32, 0.0 }
 0x780   : > { %v8802_v10 = vadd.f32 %v8801_v53, %v8767_v18 }
 0x781   : > { %v16834_v8 = vpop.f32.mrb[28].mxu1 }
 0x782   : > { %v16836_v56 = vpop.f32.mrb[29].mxu1  ;;  %v8803_v52 = vadd.f32 %v8802_v10, %v8768_v26  ;;  %v8770_v46 = vsel %vm15266_vm11, %v16834_v8, 0.0  ;;  %v17921_v10 = vld [vmem:[#allocation40_spill] sm:$0xff] }
 0x783   : > { %v8769_v36 = vsel %vm17914_vm15, %v16836_v56, 0.0 }
 0x784   : > { %v8804_v48 = vadd.f32 %v8803_v52, %v8769_v36 }
 0x785   : > { %v16844_v0 = vpop.f32.mrb[30].mxu1 }
 0x786   : > { %v16846_v53 = vpop.f32.mrb[31].mxu1  ;;  %v8805_v18 = vadd.f32 %v8804_v48, %v8770_v46  ;;  %v8772_v26 = vsel %vm17883_vm0, %v16844_v0, 0.0  ;;  %v17919_v48 = vld [vmem:[#allocation39_spill] sm:$0xff]  ;;  %vm17922_vm0 = vnez %v17921_v10 }
 0x787   : > { %v8771_v44 = vsel %vm15284_vm10, %v16846_v53, 0.0  ;;  %vm17920_vm11 = vnez %v17919_v48 }
 0x788   : > { %v8806_v59 = vadd.f32 %v8805_v18, %v8771_v44 }
 0x789   : > { %v16854_v2 = vpop.f32.mrb[32].mxu1 }
 0x78a   : > { %v16856_v36 = vpop.f32.mrb[33].mxu1  ;;  %v8807_v52 = vadd.f32 %v8806_v59, %v8772_v26  ;;  %v8774_v46 = vsel %vm17920_vm11, %v16854_v2, 0.0  ;;  %v17923_v59 = vld [vmem:[#allocation41_spill] sm:$0xff] }
 0x78b   : > { %v8773_v21 = vsel %vm17885_vm5, %v16856_v36, 0.0  ;;  %vm17924_vm10 = vnez %v17923_v59 }
 0x78c   : > { %v8808_v43 = vadd.f32 %v8807_v52, %v8773_v21 }
 0x78d   : > { %v16864_v11 = vpop.f32.mrb[34].mxu1 }
 0x78e   : > { %v16866_v44 = vpop.f32.mrb[35].mxu1  ;;  %v8809_v18 = vadd.f32 %v8808_v43, %v8774_v46  ;;  %v8776_v26 = vsel %vm17924_vm10, %v16864_v11, 0.0  ;;  %vm17925_vm10 = vnez %v17848_v50 }
 0x78f   : > { %v8775_v29 = vsel %vm17922_vm0, %v16866_v44, 0.0 }
 0x790   : > { %v8810_v4 = vadd.f32 %v8809_v18, %v8775_v29 }
 0x792   : > { %v8811_v63 = vadd.f32 %v8810_v4, %v8776_v26 }
 0x794   : > { %v8812_v21 = vrot.slane %v8811_v63, 4 }
 0x796   : > { %v8813_v52 = vadd.f32 %v8812_v21, %v8811_v63 }
 0x798   : > { %v8814_v28 = vrot.slane %v8813_v52, 2 }
 0x79a   : > { %v8815_v48 = vadd.f32 %v8814_v28, %v8813_v52 }
 0x79c   : > { %v8816_v23 = vrot.slane %v8815_v48, 1 }
 0x79e   : > { %v8817_v1 = vadd.f32 %v8816_v23, %v8815_v48 }
 0x7a0   : > { %v16874_v15 = vmul.f32 0.00390625, %v8817_v1 }
 0x7a2   : > { %v8819_v43 = vsub.f32 %v16699_v14, %v16874_v15  ;;  %v8820_v46 = vsub.f32 %v16694_v37, %v16874_v15  ;;  %v8821_v29 = vsub.f32 %v16706_v9, %v16874_v15  ;;  %v8822_v4 = vsub.f32 %v16704_v41, %v16874_v15 }
 0x7a3   : > { %v8823_v63 = vsub.f32 %v16716_v55, %v16874_v15  ;;  %v8824_v23 = vsub.f32 %v16714_v17, %v16874_v15  ;;  %v8825_v1 = vsub.f32 %v16726_v31, %v16874_v15  ;;  %v8826_v28 = vsub.f32 %v16724_v57, %v16874_v15 }
 0x7a4   : > { %v8827_v37 = vsub.f32 %v16736_v33, %v16874_v15  ;;  %v8828_v14 = vsub.f32 %v16734_v49, %v16874_v15  ;;  %v8829_v41 = vsub.f32 %v16746_v62, %v16874_v15  ;;  %v8830_v9 = vsub.f32 %v16744_v16, %v16874_v15 }
 0x7a5   : > { %v8831_v17 = vsub.f32 %v16756_v27, %v16874_v15  ;;  %v8832_v55 = vsub.f32 %v16754_v34, %v16874_v15  ;;  %v8833_v57 = vsub.f32 %v16766_v40, %v16874_v15  ;;  %v8834_v31 = vsub.f32 %v16764_v47, %v16874_v15 }
 0x7a6   : > { %v8835_v49 = vsub.f32 %v16776_v38, %v16874_v15  ;;  %v8836_v33 = vsub.f32 %v16774_v13, %v16874_v15  ;;  %v8837_v16 = vsub.f32 %v16786_v22, %v16874_v15  ;;  %v8838_v62 = vsub.f32 %v16784_v6, %v16874_v15  ;;  %v17947_v6 = vld [vmem:[#allocation27_spill] sm:$0xff] }
 0x7a7   : > { %v8839_v34 = vsub.f32 %v16796_v61, %v16874_v15  ;;  %v8840_v27 = vsub.f32 %v16794_v3, %v16874_v15  ;;  %v16950_v47 = vsel %vm17890_vm8, %v8819_v43, 0.0  ;;  %v16954_v40 = vsel %vm17768_vm9, %v8820_v46, 0.0 }
 0x7a8   : > { %v8891_v18 = vmul.f32 %v16950_v47, %v16950_v47  ;;  %v8892_v26 = vmul.f32 %v16954_v40, %v16954_v40  ;;  %v16962_v21 = vsel %vm17891_vm2, %v8821_v29, 0.0  ;;  %v16966_v52 = vsel %vm17925_vm10, %v8822_v4, 0.0 }
 0x7a9   : > { %v8893_v60 = vmul.f32 %v16962_v21, %v16962_v21  ;;  %v16972_v43 = vsel %vm17851_vm12, %v8823_v63, 0.0  ;;  %v8894_v46 = vmul.f32 %v16966_v52, %v16966_v52  ;;  %vm17926_vm8 = vnez %v17852_v45 }
 0x7aa   : > { %v8927_v7 = vadd.f32 %v8892_v26, %v8891_v18  ;;  %v16978_v35 = vsel %vm17926_vm8, %v8824_v23, 0.0  ;;  %v8895_v50 = vmul.f32 %v16972_v43, %v16972_v43  ;;  %vm17927_vm2 = vnez %v17854_v51 }
 0x7ab   : > { %v16984_v4 = vsel %vm17927_vm2, %v8825_v1, 0.0  ;;  %v8896_v24 = vmul.f32 %v16978_v35, %v16978_v35  ;;  %vm17928_vm10 = vnez %v17856_v19  ;;  %vm17929_vm12 = vnez %v17858_v25 }
 0x7ac   : > { %v8928_v48 = vadd.f32 %v8927_v7, %v8893_v60  ;;  %v16990_v18 = vsel %vm17928_vm10, %v8826_v28, 0.0  ;;  %v8897_v45 = vmul.f32 %v16984_v4, %v16984_v4  ;;  %v16996_v26 = vsel %vm17929_vm12, %v8827_v37, 0.0 }
 0x7ad   : > { %v8898_v51 = vmul.f32 %v16990_v18, %v16990_v18  ;;  %vm17930_vm9 = vnez %v17786_v42  ;;  %v8899_v19 = vmul.f32 %v16996_v26, %v16996_v26  ;;  %vm17931_vm8 = vnez %v17860_v39 }
 0x7ae   : > { %v8929_v29 = vadd.f32 %v8928_v48, %v8894_v46  ;;  %v17002_v48 = vsel %vm17930_vm9, %v8828_v14, 0.0  ;;  %v17008_v60 = vsel %vm17931_vm8, %v8829_v41, 0.0  ;;  %vm17932_vm2 = vnez %v17792_v20  ;;  %v17933_v46 = vld [vmem:[#allocation18_spill] sm:$0xff] }
 0x7af   : > { %v8900_v25 = vmul.f32 %v17002_v48, %v17002_v48  ;;  %v17014_v7 = vsel %vm17932_vm2, %v8830_v9, 0.0  ;;  %v8901_v42 = vmul.f32 %v17008_v60, %v17008_v60  ;;  %vm17934_vm10 = vnez %v17933_v46 }
 0x7b0   : > { %v8930_v63 = vadd.f32 %v8929_v29, %v8895_v50  ;;  %v17020_v50 = vsel %vm17934_vm10, %v8831_v17, 0.0  ;;  %v8902_v39 = vmul.f32 %v17014_v7, %v17014_v7  ;;  %v17935_v29 = vld [vmem:[#allocation19_spill] sm:$0xff]  ;;  %v17949_v61 = vsub.f32 %v16806_v5, %v16874_v15 }
 0x7b1   : > { %vm17936_vm12 = vnez %v17935_v29  ;;  %v8903_v20 = vmul.f32 %v17020_v50, %v17020_v50  ;;  %v17952_v3 = vsub.f32 %v16804_v54, %v16874_v15  ;;  %v17955_v5 = vsub.f32 %v16816_v12, %v16874_v15 }
 0x7b2   : > { %v8931_v23 = vadd.f32 %v8930_v63, %v8896_v24  ;;  %v17026_v24 = vsel %vm17936_vm12, %v8832_v55, 0.0  ;;  %v17937_v63 = vld [vmem:[#allocation20_spill] sm:$0xff]  ;;  %v17957_v54 = vsub.f32 %v16814_v58, %v16874_v15  ;;  %v17960_v12 = vsub.f32 %v16826_v32, %v16874_v15 }
 0x7b3   : > { %vm17938_vm9 = vnez %v17937_v63  ;;  %v8904_v17 = vmul.f32 %v17026_v24, %v17026_v24  ;;  %v17962_v58 = vsub.f32 %v16824_v30, %v16874_v15  ;;  %v17964_v32 = vsub.f32 %v16836_v56, %v16874_v15 }
 0x7b4   : > { %v8932_v1 = vadd.f32 %v8931_v23, %v8897_v45  ;;  %v17032_v45 = vsel %vm17938_vm9, %v8833_v57, 0.0  ;;  %v17137_v22 = vsel %vm17910_vm6, %v17960_v12, 0.0  ;;  %v17966_v30 = vsub.f32 %v16834_v8, %v16874_v15 }
 0x7b5   : > { %v8905_v55 = vmul.f32 %v17032_v45, %v17032_v45  ;;  %v17969_v56 = vsub.f32 %v16846_v53, %v16874_v15  ;;  %v17972_v8 = vsub.f32 %v16844_v0, %v16874_v15  ;;  %v17975_v53 = vsub.f32 %v16856_v36, %v16874_v15 }
 0x7b6   : > { %v8933_v28 = vadd.f32 %v8932_v1, %v8898_v51  ;;  %v17939_v51 = vld [vmem:[#allocation21_spill] sm:$0xff]  ;;  %v17977_v0 = vsub.f32 %v16854_v2, %v16874_v15 }
 0x7b7   : > { %vm17940_vm8 = vnez %v17939_v51 }
 0x7b8   : > { %v8934_v37 = vadd.f32 %v8933_v28, %v8899_v19  ;;  %v17038_v1 = vsel %vm17940_vm8, %v8834_v31, 0.0  ;;  %v17942_v31 = vld [vmem:[#allocation23_spill] sm:$0xff] }
 0x7b9   : > { %v8906_v57 = vmul.f32 %v17038_v1, %v17038_v1  ;;  %vm17943_vm2 = vnez %v17942_v31  ;;  %v17970_v31 = vld [vmem:[#allocation36_spill] sm:$0xff] }
 0x7ba   : > { %v8935_v14 = vadd.f32 %v8934_v37, %v8900_v25  ;;  %v17047_v25 = vsel %vm17901_vm3, %v8835_v49, 0.0  ;;  %v17065_v49 = vsel %vm17903_vm7, %v8837_v16, 0.0  ;;  %v17083_v16 = vsel %vm17905_vm14, %v8839_v34, 0.0  ;;  %v17950_v34 = vld [vmem:[#allocation28_spill] sm:$0xff] }
 0x7bb   : > { %v8909_v29 = vmul.f32 %v17065_v49, %v17065_v49  ;;  %vm17951_vm3 = vnez %v17950_v34  ;;  %vm17971_vm6 = vnez %v17970_v31  ;;  %v17979_v34 = vsub.f32 %v16866_v44, %v16874_v15 }
 0x7bc   : > { %v8936_v41 = vadd.f32 %v8935_v14, %v8901_v42  ;;  %v17056_v42 = vsel %vm17943_vm2, %v8836_v33, 0.0  ;;  %v8907_v14 = vmul.f32 %v17047_v25, %v17047_v25  ;;  %v17074_v33 = vsel %vm17904_vm13, %v8838_v62, 0.0 }
 0x7bd   : > { %vm17948_vm13 = vnez %v17947_v6  ;;  %v17101_v51 = vsel %vm17951_vm3, %v17949_v61, 0.0  ;;  %v8889_v36 = vsel %vm17922_vm0, %v17979_v34, 0.0 }
 0x7be   : > { %v8937_v9 = vadd.f32 %v8936_v41, %v8902_v39  ;;  %v8908_v39 = vmul.f32 %v17056_v42, %v17056_v42  ;;  %v17092_v62 = vsel %vm17948_vm13, %v8840_v27, 0.0  ;;  %v17953_v27 = vld [vmem:[#allocation29_spill] sm:$0xff]  ;;  %v8925_v2 = vmul.f32 %v8889_v36, %v8889_v36 }
 0x7bf   : > { %vm17954_vm7 = vnez %v17953_v27  ;;  %v17967_v27 = vld [vmem:[#allocation35_spill] sm:$0xff] }
 0x7c0   : > { %v8938_v23 = vadd.f32 %v8937_v9, %v8903_v20  ;;  %v8910_v9 = vmul.f32 %v17074_v33, %v17074_v33  ;;  %v17110_v28 = vsel %vm17954_vm7, %v17952_v3, 0.0 }
 0x7c2   : > { %v8939_v19 = vadd.f32 %v8938_v23, %v8904_v17  ;;  %v8911_v17 = vmul.f32 %v17083_v16, %v17083_v16 }
 0x7c4   : > { %v8940_v37 = vadd.f32 %v8939_v19, %v8905_v55  ;;  %v8912_v55 = vmul.f32 %v17092_v62, %v17092_v62 }
 0x7c6   : > { %v8941_v46 = vadd.f32 %v8940_v37, %v8906_v57  ;;  %v8913_v57 = vmul.f32 %v17101_v51, %v17101_v51 }
 0x7c8   : > { %v8942_v41 = vadd.f32 %v8941_v46, %v8907_v14  ;;  %v17119_v14 = vsel %vm17878_vm1, %v17955_v5, 0.0  ;;  %v8914_v46 = vmul.f32 %v17110_v28, %v17110_v28  ;;  %vm17968_vm1 = vnez %v17967_v27 }
 0x7c9   : > { %v8915_v13 = vmul.f32 %v17119_v14, %v17119_v14 }
 0x7ca   : > { %v8943_v20 = vadd.f32 %v8942_v41, %v8908_v39  ;;  %v17958_v39 = vld [vmem:[#allocation30_spill] sm:$0xff] }
 0x7cb   : > { %vm17959_vm14 = vnez %v17958_v39  ;;  %v17973_v39 = vld [vmem:[#allocation37_spill] sm:$0xff] }
 0x7cc   : > { %v8944_v63 = vadd.f32 %v8943_v20, %v8909_v29  ;;  %v17128_v41 = vsel %vm17959_vm14, %v17957_v54, 0.0 }
 0x7ce   : > { %v8945_v23 = vadd.f32 %v8944_v63, %v8910_v9  ;;  %v8916_v9 = vmul.f32 %v17128_v41, %v17128_v41 }
 0x7d0   : > { %v8946_v19 = vadd.f32 %v8945_v23, %v8911_v17  ;;  %v17146_v17 = vsel %vm17912_vm4, %v17962_v58, 0.0  ;;  %v8917_v23 = vmul.f32 %v17137_v22, %v17137_v22  ;;  %vm17974_vm4 = vnez %v17973_v39 }
 0x7d2   : > { %v8947_v37 = vadd.f32 %v8946_v19, %v8912_v55  ;;  %v17155_v55 = vsel %vm17914_vm15, %v17964_v32, 0.0  ;;  %v8918_v19 = vmul.f32 %v17146_v17, %v17146_v17 }
 0x7d4   : > { %v8948_v38 = vadd.f32 %v8947_v37, %v8913_v57  ;;  %v17164_v57 = vsel %vm17968_vm1, %v17966_v30, 0.0  ;;  %v8919_v37 = vmul.f32 %v17155_v55, %v17155_v55  ;;  %v17980_v30 = vsub.f32 %v16864_v11, %v16874_v15  ;;  %v8971_v15 = vld [vmem:[%s17383_s5] sm:$0x1] }
 0x7d6   : > { %v8949_v29 = vadd.f32 %v8948_v38, %v8914_v46  ;;  %v17173_v46 = vsel %vm17971_vm6, %v17969_v56, 0.0  ;;  %v8920_v38 = vmul.f32 %v17164_v57, %v17164_v57 }
 0x7d8   : > { %v8950_v63 = vadd.f32 %v8949_v29, %v8915_v13  ;;  %v17182_v13 = vsel %vm17974_vm4, %v17972_v8, 0.0  ;;  %v8921_v29 = vmul.f32 %v17173_v46, %v17173_v46 }
 0x7da   : > { %v8951_v61 = vadd.f32 %v8950_v63, %v8916_v9  ;;  %v8887_v9 = vsel %vm17885_vm5, %v17975_v53, 0.0  ;;  %v8922_v63 = vmul.f32 %v17182_v13, %v17182_v13  ;;  %vm17981_vm5 = vnez %v17923_v59  ;;  %v17982_v53 = vld [vmem:[#allocation5_spill] sm:$0xff] }
 0x7db   : > { %v8890_v27 = vsel %vm17981_vm5, %v17980_v30, 0.0  ;;  %v17983_v20 = vsub.s32 0, %v17982_v53 }
 0x7dc   : > { %v8952_v3 = vadd.f32 %v8951_v61, %v8917_v23  ;;  %v8888_v23 = vsel %vm17920_vm11, %v17977_v0, 0.0  ;;  %v8923_v61 = vmul.f32 %v8887_v9, %v8887_v9 }
 0x7de   : > { %v8953_v5 = vadd.f32 %v8952_v3, %v8918_v19  ;;  %v8924_v19 = vmul.f32 %v8888_v23, %v8888_v23 }
 0x7e0   : > { %v8954_v54 = vadd.f32 %v8953_v5, %v8919_v37  ;;  %v8926_v5 = vmul.f32 %v8890_v27, %v8890_v27 }
 0x7e2   : > { %v8955_v12 = vadd.f32 %v8954_v54, %v8920_v38 }
 0x7e4   : > { %v8956_v58 = vadd.f32 %v8955_v12, %v8921_v29 }
 0x7e6   : > { %v8957_v32 = vadd.f32 %v8956_v58, %v8922_v63 }
 0x7e8   : > { %v8958_v3 = vadd.f32 %v8957_v32, %v8923_v61 }
 0x7ea   : > { %v8959_v37 = vadd.f32 %v8958_v3, %v8924_v19 }
 0x7ec   : > { %v8960_v56 = vadd.f32 %v8959_v37, %v8925_v2 }
 0x7ee   : > { %v8961_v31 = vadd.f32 %v8960_v56, %v8926_v5 }
 0x7f0   : > { %v8962_v38 = vrot.slane %v8961_v31, 4 }
 0x7f2   : > { %v8963_v54 = vadd.f32 %v8962_v38, %v8961_v31 }
 0x7f4   : > { %v8964_v8 = vrot.slane %v8963_v54, 2 }
 0x7f6   : > { %v8965_v44 = vadd.f32 %v8964_v8, %v8963_v54 }
 0x7f8   : > { %v8966_v39 = vrot.slane %v8965_v44, 1 }
 0x7fa   : > { %v8967_v10 = vadd.f32 %v8966_v39, %v8965_v44 }
 0x7fc   : > { %v8968_v29 = vmul.f32 0.00390625, %v8967_v10 }
 0x7fe   : > { %v8969_v12 = vadd.f32 1e-05, %v8968_v29 }
 0x800   : > { %13206 = vrsqrt.f32 %v8969_v12 }
 0x80a   : > { %v13207_v11 = vpop.eup %13206 }
 0x80b   : > { %v8972_v59 = vmul.f32 %v13207_v11, %v8971_v15 }
 0x80d   : > { %v8976_v63 = vrot.slane %v8972_v59, %v17983_v20 }
 0x80f   : > { %v8977_v58 = vmul.f32 %v8976_v63, %v16950_v47  ;;  %v8978_v0 = vmul.f32 %v8976_v63, %v16954_v40  ;;  %v8979_v6 = vmul.f32 %v8976_v63, %v16962_v21  ;;  %v8980_v61 = vmul.f32 %v8976_v63, %v16966_v52 }
 0x810   : > { %v8981_v32 = vmul.f32 %v8976_v63, %v16972_v43  ;;  %v8982_v34 = vmul.f32 %v8976_v63, %v16978_v35  ;;  %v8983_v19 = vmul.f32 %v8976_v63, %v16984_v4  ;;  %v8984_v3 = vmul.f32 %v8976_v63, %v16990_v18 }
 0x811   : > { %v8985_v30 = vmul.f32 %v8976_v63, %v16996_v26  ;;  %v8986_v2 = vmul.f32 %v8976_v63, %v17002_v48  ;;  %v8987_v47 = vmul.f32 %v8976_v63, %v17008_v60  ;;  %v8988_v40 = vmul.f32 %v8976_v63, %v17014_v7 }
 0x812   : > { %v8989_v21 = vmul.f32 %v8976_v63, %v17020_v50  ;;  %v8990_v52 = vmul.f32 %v8976_v63, %v17026_v24  ;;  %v8991_v43 = vmul.f32 %v8976_v63, %v17032_v45  ;;  %v8992_v35 = vmul.f32 %v8976_v63, %v17038_v1 }
 0x813   : > { %v8993_v4 = vmul.f32 %v8976_v63, %v17047_v25  ;;  %v8994_v18 = vmul.f32 %v8976_v63, %v17056_v42  ;;  %v8995_v26 = vmul.f32 %v8976_v63, %v17065_v49  ;;  %v8996_v48 = vmul.f32 %v8976_v63, %v17074_v33  ;;  %v9483_v49 = vld [vmem:[%s17384_s6] ss:$0 sm:$0xff] }
 0x814   : > { %v8997_v60 = vmul.f32 %v8976_v63, %v17083_v16  ;;  %v8998_v7 = vmul.f32 %v8976_v63, %v17092_v62  ;;  %v8999_v50 = vmul.f32 %v8976_v63, %v17101_v51  ;;  %v9000_v24 = vmul.f32 %v8976_v63, %v17110_v28 }
 0x815   : > { %v9001_v45 = vmul.f32 %v8976_v63, %v17119_v14  ;;  %v9002_v1 = vmul.f32 %v8976_v63, %v17128_v41  ;;  %v9003_v25 = vmul.f32 %v8976_v63, %v17137_v22  ;;  %v9004_v42 = vmul.f32 %v8976_v63, %v17146_v17 }
 0x816   : > { %v9005_v33 = vmul.f32 %v8976_v63, %v17155_v55  ;;  %v9006_v16 = vmul.f32 %v8976_v63, %v17164_v57  ;;  %v9007_v62 = vmul.f32 %v8976_v63, %v17173_v46  ;;  %v9008_v51 = vmul.f32 %v8976_v63, %v17182_v13 }
 0x817   : > { %v9009_v28 = vmul.f32 %v8976_v63, %v8887_v9  ;;  %v9010_v14 = vmul.f32 %v8976_v63, %v8888_v23  ;;  %v9011_v37 = vmul.f32 %v8976_v63, %v8889_v36  ;;  %v9012_v41 = vmul.f32 %v8976_v63, %v8890_v27 }
 0x818   : > { %v9020_v5 = vadd.f32 %v9483_v49, %v8977_v58  ;;  %v9021_v22 = vadd.f32 %v9483_v49, %v8978_v0  ;;  %v9022_v56 = vadd.f32 %v9483_v49, %v8979_v6  ;;  %v9023_v17 = vadd.f32 %v9483_v49, %v8980_v61  ;;  %v9065_v0 = vld [vmem:[#allocation2 + $0x5b] sm:$0xff]  ;;  %v9066_v6 = vld [vmem:[#allocation2 + $0x63] sm:$0xff]  ;;  %v9067_v61 = vld [vmem:[#allocation2 + $0x6b] sm:$0xff] }
 0x819   : > { %v9024_v31 = vadd.f32 %v9483_v49, %v8981_v32  ;;  %v9025_v38 = vadd.f32 %v9483_v49, %v8982_v34  ;;  %v9026_v54 = vadd.f32 %v9483_v49, %v8983_v19  ;;  %v9027_v8 = vadd.f32 %v9483_v49, %v8984_v3 }
 0x81a   : > { %v17248_v44 = vadd.f32 %v9483_v49, %v8985_v30  ;;  %v17250_v55 = vadd.f32 %v9483_v49, %v8986_v2  ;;  %v17252_v57 = vadd.f32 %v9483_v49, %v8987_v47  ;;  %v17254_v46 = vadd.f32 %v9483_v49, %v8988_v40  ;;  %v9068_v30 = vld [vmem:[#allocation2 + $0x73] sm:$0xff]  ;;  %v9069_v2 = vld [vmem:[#allocation2 + $0x7b] sm:$0xff]  ;;  %v9070_v47 = vld [vmem:[#allocation2 + $0x83] sm:$0xff] }
 0x81b   : > { %v17256_v13 = vadd.f32 %v9483_v49, %v8989_v21  ;;  %v17258_v9 = vadd.f32 %v9483_v49, %v8990_v52  ;;  %v17260_v23 = vadd.f32 %v9483_v49, %v8991_v43  ;;  %v17262_v36 = vadd.f32 %v9483_v49, %v8992_v35  ;;  %v9071_v35 = vld [vmem:[#allocation2 + $0x8b] sm:$0xff] }
 0x81c   : > { %v17264_v27 = vadd.f32 %v9483_v49, %v8993_v4  ;;  %v17266_v39 = vadd.f32 %v9483_v49, %v8994_v18  ;;  %v17268_v10 = vadd.f32 %v9483_v49, %v8995_v26  ;;  %v17270_v29 = vadd.f32 %v9483_v49, %v8996_v48  ;;  %v9072_v4 = vld [vmem:[#allocation2 + $0x93] sm:$0xff]  ;;  %v9073_v18 = vld [vmem:[#allocation2 + $0x9b] sm:$0xff]  ;;  %v9074_v26 = vld [vmem:[#allocation2 + $0xa3] sm:$0xff] }
 0x81d   : > { %v17272_v12 = vadd.f32 %v9483_v49, %v8997_v60  ;;  %v17274_v15 = vadd.f32 %v9483_v49, %v8998_v7  ;;  %v17276_v11 = vadd.f32 %v9483_v49, %v8999_v50  ;;  %v17278_v59 = vadd.f32 %v9483_v49, %v9000_v24  ;;  %v9075_v48 = vld [vmem:[#allocation2 + $0xab] sm:$0xff]  ;;  %v9076_v60 = vld [vmem:[#allocation2 + $0xb3] sm:$0xff]  ;;  %v13210_v24 = vld [vmem:[#allocation2 + $0x1b] sm:$0xff] }
 0x81e   : > { %v17280_v53 = vadd.f32 %v9483_v49, %v9001_v45  ;;  %v17282_v20 = vadd.f32 %v9483_v49, %v9002_v1  ;;  %v17284_v63 = vadd.f32 %v9483_v49, %v9003_v25  ;;  %v17286_v58 = vadd.f32 %v9483_v49, %v9004_v42  ;;  %v13209_v7 = vld [vmem:[#allocation2 + $0x13] sm:$0xff]  ;;  %v13211_v1 = vld [vmem:[#allocation2 + $0x23] sm:$0xff]  ;;  %v13212_v42 = vld [vmem:[#allocation2 + $0x2b] sm:$0xff] }
 0x81f   : > { %v17288_v32 = vadd.f32 %v9483_v49, %v9005_v33  ;;  %v17290_v34 = vadd.f32 %v9483_v49, %v9006_v16  ;;  %v17292_v19 = vadd.f32 %v9483_v49, %v9007_v62  ;;  %v17294_v3 = vadd.f32 %v9483_v49, %v9008_v51  ;;  %v9077_v16 = vld [vmem:[#allocation2 + $0xbb] sm:$0xff]  ;;  %v9078_v62 = vld [vmem:[#allocation2 + $0xc3] sm:$0xff]  ;;  %v9079_v51 = vld [vmem:[#allocation2 + $0xcb] sm:$0xff] }
 0x820   : > { %v17303_v40 = vadd.f32 %v9483_v49, %v9009_v28  ;;  %v17305_v21 = vadd.f32 %v9483_v49, %v9010_v14  ;;  %v17307_v52 = vadd.f32 %v9483_v49, %v9011_v37  ;;  %v17309_v43 = vadd.f32 %v9483_v49, %v9012_v41  ;;  %v13213_v28 = vld [vmem:[#allocation2 + $0x33] sm:$0xff]  ;;  %v13214_v14 = vld [vmem:[#allocation2 + $0x3b] sm:$0xff]  ;;  %v13215_v41 = vld [vmem:[#allocation2 + $0x43] sm:$0xff] }
 0x821   : > { %v9092_v50 = vadd.f32 %v13209_v7, %v9020_v5  ;;  %v9093_v45 = vadd.f32 %v13210_v24, %v9021_v22  ;;  %v9094_v25 = vadd.f32 %v13211_v1, %v9022_v56  ;;  %v9095_v33 = vadd.f32 %v13212_v42, %v9023_v17  ;;  %v13216_v5 = vld [vmem:[#allocation2 + $0x4b] sm:$0xff]  ;;  %v9080_v22 = vld [vmem:[#allocation2 + $0xd3] sm:$0xff]  ;;  %v9081_v24 = vld [vmem:[#allocation2 + $0xdb] sm:$0xff] }
 0x822   : > { %17984 = vst [vmem:[#allocation15_spill] sm:$0xff] %v17309_v43  ;;  %v9096_v49 = vadd.f32 %v13213_v28, %v9024_v31  ;;  %v9097_v37 = vadd.f32 %v13214_v14, %v9025_v38  ;;  %v9098_v43 = vadd.f32 %v13215_v41, %v9026_v54  ;;  %v9099_v7 = vadd.f32 %v13216_v5, %v9027_v8  ;;  %v9082_v56 = vld [vmem:[#allocation2 + $0xe3] sm:$0xff]  ;;  %v13217_v1 = vld [vmem:[#allocation2 + $0x53] sm:$0xff]  ;;  %v9083_v54 = vld [vmem:[#allocation2 + $0xeb] sm:$0xff] }
 0x823   : > { %v9100_v17 = vadd.f32 %v13217_v1, %v17248_v44  ;;  %v9101_v42 = vadd.f32 %v9065_v0, %v17250_v55  ;;  %v9102_v31 = vadd.f32 %v9066_v6, %v17252_v57  ;;  %v9103_v38 = vadd.f32 %v9067_v61, %v17254_v46  ;;  %9128 = vst [vmem:[%s17301_s18] sm:$0xff] %v9092_v50  ;;  %v9084_v8 = vld [vmem:[#allocation2 + $0xf3] sm:$0xff]  ;;  %v9085_v28 = vld [vmem:[#allocation2 + $0xfb] sm:$0xff]  ;;  %v9086_v46 = vld [vmem:[#allocation2 + $0x103] sm:$0xff] }
 0x824   : > { %9129 = vst [vmem:[%s17301_s18 + $0x8] sm:$0xff] %v9093_v45  ;;  %9130 = vst [vmem:[%s17301_s18 + $0x10] sm:$0xff] %v9094_v25  ;;  %v9104_v14 = vadd.f32 %v9068_v30, %v17256_v13  ;;  %v9105_v44 = vadd.f32 %v9069_v2, %v17258_v9  ;;  %v9106_v55 = vadd.f32 %v9070_v47, %v17260_v23  ;;  %v9087_v0 = vld [vmem:[#allocation2 + $0x10b] sm:$0xff]  ;;  %v9088_v6 = vld [vmem:[#allocation2 + $0x113] sm:$0xff] }
 0x825   : > { %9131 = vst [vmem:[%s17301_s18 + $0x18] sm:$0xff] %v9095_v33  ;;  %v9107_v57 = vadd.f32 %v9071_v35, %v17262_v36  ;;  %9132 = vst [vmem:[%s17301_s18 + $0x20] sm:$0xff] %v9096_v49  ;;  %v9108_v61 = vadd.f32 %v9072_v4, %v17264_v27  ;;  %v9109_v13 = vadd.f32 %v9073_v18, %v17266_v39  ;;  %v9089_v36 = vld [vmem:[#allocation2 + $0x11b] sm:$0xff]  ;;  %v9090_v30 = vld [vmem:[#allocation2 + $0x123] sm:$0xff] }
 0x826   : > { %9133 = vst [vmem:[%s17301_s18 + $0x28] sm:$0xff] %v9097_v37  ;;  %9134 = vst [vmem:[%s17301_s18 + $0x30] sm:$0xff] %v9098_v43  ;;  %v9110_v9 = vadd.f32 %v9074_v26, %v17268_v10  ;;  %v9111_v23 = vadd.f32 %v9075_v48, %v17270_v29  ;;  %v9091_v2 = vld [vmem:[#allocation2 + $0x12b] sm:$0xff]  ;;  %v9112_v27 = vadd.f32 %v9076_v60, %v17272_v12 }
 0x827   : > { %9135 = vst [vmem:[%s17301_s18 + $0x38] sm:$0xff] %v9099_v7  ;;  %9136 = vst [vmem:[%s17301_s18 + $0x40] sm:$0xff] %v9100_v17  ;;  %v9113_v39 = vadd.f32 %v9077_v16, %v17274_v15  ;;  %v9114_v10 = vadd.f32 %v9078_v62, %v17276_v11  ;;  %v9115_v47 = vadd.f32 %v9079_v51, %v17278_v59 }
 0x828   : > { %9137 = vst [vmem:[%s17301_s18 + $0x48] sm:$0xff] %v9101_v42  ;;  %9138 = vst [vmem:[%s17301_s18 + $0x50] sm:$0xff] %v9102_v31  ;;  %v9116_v29 = vadd.f32 %v9080_v22, %v17280_v53  ;;  %v9117_v43 = vadd.f32 %v9081_v24, %v17282_v20  ;;  %v9118_v12 = vadd.f32 %v9082_v56, %v17284_v63 }
 0x829   : > { %9139 = vst [vmem:[%s17301_s18 + $0x58] sm:$0xff] %v9103_v38  ;;  %9140 = vst [vmem:[%s17301_s18 + $0x60] sm:$0xff] %v9104_v14  ;;  %v9119_v15 = vadd.f32 %v9083_v54, %v17286_v58  ;;  %v9120_v11 = vadd.f32 %v9084_v8, %v17288_v32  ;;  %v9121_v59 = vadd.f32 %v9085_v28, %v17290_v34  ;;  %v17985_v34 = vld [vmem:[#allocation15_spill] sm:$0xff] }
 0x82a   : > { %9141 = vst [vmem:[%s17301_s18 + $0x68] sm:$0xff] %v9105_v44  ;;  %9142 = vst [vmem:[%s17301_s18 + $0x70] sm:$0xff] %v9106_v55  ;;  %v9122_v53 = vadd.f32 %v9086_v46, %v17292_v19  ;;  %v9123_v20 = vadd.f32 %v9087_v0, %v17294_v3  ;;  %v9124_v63 = vadd.f32 %v9088_v6, %v17303_v40 }
 0x82b   : > { %9143 = vst [vmem:[%s17301_s18 + $0x78] sm:$0xff] %v9107_v57  ;;  %9144 = vst [vmem:[%s17301_s18 + $0x80] sm:$0xff] %v9108_v61  ;;  %v9125_v58 = vadd.f32 %v9089_v36, %v17305_v21  ;;  %v9126_v32 = vadd.f32 %v9090_v30, %v17307_v52  ;;  %v9127_v19 = vadd.f32 %v9091_v2, %v17985_v34 }
 0x82c   : > { %9145 = vst [vmem:[%s17301_s18 + $0x88] sm:$0xff] %v9109_v13  ;;  %9146 = vst [vmem:[%s17301_s18 + $0x90] sm:$0xff] %v9110_v9 }
 0x82d   : > { %9147 = vst [vmem:[%s17301_s18 + $0x98] sm:$0xff] %v9111_v23  ;;  %9148 = vst [vmem:[%s17301_s18 + $0xa0] sm:$0xff] %v9112_v27 }
 0x82e   : > { %9149 = vst [vmem:[%s17301_s18 + $0xa8] sm:$0xff] %v9113_v39  ;;  %9150 = vst [vmem:[%s17301_s18 + $0xb0] sm:$0xff] %v9114_v10 }
 0x82f   : > { %9151 = vst [vmem:[%s17301_s18 + $0xb8] sm:$0xff] %v9115_v47  ;;  %9152 = vst [vmem:[%s17301_s18 + $0xc0] sm:$0xff] %v9116_v29 }
 0x830   : > { %9153 = vst [vmem:[%s17301_s18 + $0xc8] sm:$0xff] %v9117_v43  ;;  %9154 = vst [vmem:[%s17301_s18 + $0xd0] sm:$0xff] %v9118_v12 }
 0x831   : > { %9155 = vst [vmem:[%s17301_s18 + $0xd8] sm:$0xff] %v9119_v15  ;;  %9156 = vst [vmem:[%s17301_s18 + $0xe0] sm:$0xff] %v9120_v11 }
 0x832   : > { %9157 = vst [vmem:[%s17301_s18 + $0xe8] sm:$0xff] %v9121_v59  ;;  %9158 = vst [vmem:[%s17301_s18 + $0xf0] sm:$0xff] %v9122_v53 }
 0x833   : > { %9159 = vst [vmem:[%s17301_s18 + $0xf8] sm:$0xff] %v9123_v20  ;;  %9160 = vst [vmem:[%s17301_s18 + $0x100] sm:$0xff] %v9124_v63 }
 0x834   : > { %9161 = vst [vmem:[%s17301_s18 + $0x108] sm:$0xff] %v9125_v58  ;;  %9162 = vst [vmem:[%s17301_s18 + $0x110] sm:$0xff] %v9126_v32 }
 0x835   : > { %9163 = vst [vmem:[%s17301_s18 + $0x118] sm:$0xff] %v9127_v19 }
 0x836 PF: > { %s17_s24 = sadd.s32 1, %s13224_s24  }
 0x837   : > { %p14_p4 = scmp.ge.s32.totalorder %s17_s24, 4  }
 0x839   :  { %16 = sbr.rel (!%p14_p4) target bundleno = 1 (0x1), region = 94 }

</bundles_post_ra>
